<compile_context>
chip_gen: v7x
topology: tpu7x:2x2x1
jax: 0.10.0
libtpu: 0.0.40
codegen_flags: <defaults>
</compile_context>

<pallas_src>
import jax
import jax.numpy as jnp
from jax import lax
from jax.experimental import pallas as pl
from jax.experimental.pallas import tpu as pltpu


_CONV_SHAPES = [(32, 27, 3), (64, 32, 3), (128, 64, 3), (256, 128, 3), (512, 256, 3)]


def conv_stack_lengths(seq_len):
    """Sequence lengths through 5x conv(k=3, valid) with 4x maxpool(2,2)."""
    pool_in = []
    l = seq_len
    for stage in range(5):
        l = l - 2                              # conv k=3, stride 1, valid
        assert l >= 1, "sequence too short for the conv stack"
        if stage < 4:
            pool_in.append(l)
            l = l // 2                         # maxpool(2,2), floor (drops odd tail)
            assert l >= 1, "sequence too short for the conv stack"
    return pool_in, l                          # (pool input lengths, final length l5)


# --------------------------------- the kernel --------------------------------

def _hybrid_kernel(x_ref, scale_ref, shift_ref,
                   w1_ref, b1_ref, w2_ref, b2_ref, w3_ref, b3_ref,
                   w4_ref, b4_ref, w5_ref, b5_ref,
                   s1_ref, s2_ref, s3_ref, s4_ref,
                   wd1_ref, bd1_ref, wd2_ref, bd2_ref,
                   o_ref, flat_ref):
    tb = x_ref.shape[0]
    scale = scale_ref[...]                     # (1, 27) f32  (BN gamma / sqrt(var+eps))
    shift = shift_ref[...]                     # (1, 27) f32  (BN beta - mean*scale)
    stages = ((w1_ref, b1_ref, s1_ref),
              (w2_ref, b2_ref, s2_ref),
              (w3_ref, b3_ref, s3_ref),
              (w4_ref, b4_ref, s4_ref),
              (w5_ref, b5_ref, None))          # last conv has no pool

    for b in range(tb):
        # BatchNorm1d with precomputed affine (training-mode stats), f32.
        a = x_ref[b] * scale + shift                                   # (L, 27) f32

        for w_ref, bias_ref, sel_ref in stages:
            lout = a.shape[0] - 2
            # Conv1d(k=3, valid): fuse the 3 taps into one deeper-K bf16 matmul.
            lhs = jnp.concatenate([a[k:k + lout, :] for k in range(3)], axis=-1)
            y = jnp.dot(lhs.astype(jnp.bfloat16), w_ref[...],
                        preferred_element_type=jnp.float32)            # (lout, Cout)
            y = jnp.maximum(y + bias_ref[...], 0.0)                    # bias + ReLU, f32
            if sel_ref is not None:
                # MaxPool1d(2,2): pairwise max (VPU), then one exact bf16
                # even-row selector matmul (selector precomputed in wrapper).
                pm = jnp.maximum(y[:-1, :], y[1:, :])                  # (lout-1, Cout)
                a = jnp.dot(sel_ref[...], pm.astype(jnp.bfloat16),
                            preferred_element_type=jnp.float32)        # (lout//2, Cout)
            else:
                a = y

        # Flatten per sample (l-major; wd1 rows regrouped to match in wrapper)
        # directly into the VMEM scratch to bound vreg pressure.
        l5, cout = a.shape
        for l in range(l5):
            flat_ref[pl.ds(b, 1), pl.ds(l * cout, cout)] = a[l:l + 1, :]

    # ---- dense head: one matmul for the whole batch block ----
    lhs = flat_ref[...].astype(jnp.bfloat16)                           # (TB, l5*512)
    h = jnp.dot(lhs, wd1_ref[...], preferred_element_type=jnp.float32)
    h = jnp.maximum(h + bd1_ref[...], 0.0)                             # (TB, 1024) f32
    # Linear(1024, 1): weight zero-padded to 128 lanes; real result is lane 0.
    out = jnp.dot(h.astype(jnp.bfloat16), wd2_ref[...],
                  preferred_element_type=jnp.float32) + bd2_ref[...]   # (TB, 128)
    o_ref[0] = out.astype(o_ref.dtype)


# -------------------------------- parameters --------------------------------

def init_params(key, flat_dim):
    keys = jax.random.split(key, 16)
    ki = 0
    params = {
        "bn_gamma": jnp.ones((27,), jnp.float32),
        "bn_beta": jnp.zeros((27,), jnp.float32),
    }
    for i, (co, ci, k) in enumerate(_CONV_SHAPES, start=1):
        bound = 1.0 / float((ci * k) ** 0.5)
        params[f"w{i}"] = jax.random.uniform(keys[ki], (co, ci, k), jnp.float32, -bound, bound); ki += 1
        params[f"b{i}"] = jax.random.uniform(keys[ki], (co,), jnp.float32, -bound, bound); ki += 1
    bound = 1.0 / float(flat_dim ** 0.5)
    # wd1 rows are in PyTorch flatten order (c*l5 + l).
    params["wd1"] = jax.random.uniform(keys[ki], (flat_dim, 1024), jnp.float32, -bound, bound); ki += 1
    params["bd1"] = jax.random.uniform(keys[ki], (1024,), jnp.float32, -bound, bound); ki += 1
    bound = 1.0 / float(1024 ** 0.5)
    # Final Linear(1024, 1): padded to 128 output lanes for a lane-dense store;
    # only column 0 is real, the wrapper slices the result back to (N, 1).
    w_last = jax.random.uniform(keys[ki], (1024, 1), jnp.float32, -bound, bound); ki += 1
    b_last = jax.random.uniform(keys[ki], (1,), jnp.float32, -bound, bound); ki += 1
    params["wd2"] = jnp.pad(w_last, ((0, 0), (0, 127)))
    params["bd2"] = jnp.pad(b_last, (0, 127))
    return params


# --------------------------------- forward ----------------------------------

def hybrid_forward(params, x_ncl, *, block_batch=None):
    # x_ncl: (N, 27, L), same convention as the PyTorch module.
    n, c_in, seq_len = x_ncl.shape
    assert c_in == 27
    x = jnp.transpose(x_ncl, (0, 2, 1)).astype(jnp.float32)            # (N, L, 27)

    # ---- BatchNorm1d(27): training-mode batch stats, hoisted out of the kernel ----
    eps = 1e-5
    mean = jnp.mean(x, axis=(0, 1))                                    # (27,)
    var = jnp.mean(jnp.square(x - mean), axis=(0, 1))                  # biased variance
    scale = (params["bn_gamma"] * lax.rsqrt(var + eps)).reshape(1, 27).astype(jnp.float32)
    shift = (params["bn_beta"] - mean * scale[0]).reshape(1, 27).astype(jnp.float32)

    pool_in, l5 = conv_stack_lengths(seq_len)
    flat_dim = 512 * l5
    assert params["wd1"].shape[0] == flat_dim

    # ---- batch blocking: TB samples per grid step; keep grid >= 2 when N >= 2 ----
    if block_batch is None:
        block_batch = 8 if n >= 16 else max(1, n // 2)
    tb = block_batch
    n_pad = -(-n // tb) * tb
    if n_pad != n:
        x = jnp.pad(x, ((0, n_pad - n), (0, 0), (0, 0)))
    num_blocks = n_pad // tb

    def conv_w(w):   # torch Conv1d weight (Cout, Cin, 3) -> fused (3*Cin, Cout) bf16
        co, ci, k = w.shape
        return jnp.transpose(w, (2, 1, 0)).reshape(k * ci, co).astype(jnp.bfloat16)

    def row(v):      # (C,) -> (1, C) f32
        return v.reshape(1, -1).astype(jnp.float32)

    def even_sel(p):  # exact 0/1 selector of even rows of the (p-1)-row pairwise max
        half = p // 2
        r = jnp.arange(half, dtype=jnp.int32)[:, None]
        c = jnp.arange(p - 1, dtype=jnp.int32)[None, :]
        return (c == 2 * r).astype(jnp.bfloat16)

    # PyTorch nn.Flatten of (N, 512, l5) is channel-major (flat = c*l5 + l); regroup
    # wd1's rows position-major so the in-kernel l-major flatten matches.
    wd1_lm = jnp.transpose(params["wd1"].reshape(512, l5, 1024), (1, 0, 2))
    wd1_lm = wd1_lm.reshape(l5 * 512, 1024).astype(jnp.bfloat16)

    inputs = (
        x, scale, shift,
        conv_w(params["w1"]), row(params["b1"]),
        conv_w(params["w2"]), row(params["b2"]),
        conv_w(params["w3"]), row(params["b3"]),
        conv_w(params["w4"]), row(params["b4"]),
        conv_w(params["w5"]), row(params["b5"]),
        even_sel(pool_in[0]), even_sel(pool_in[1]),
        even_sel(pool_in[2]), even_sel(pool_in[3]),
        wd1_lm, row(params["bd1"]),
        params["wd2"].astype(jnp.bfloat16), row(params["bd2"]),
    )

    def resident_spec(a):          # constant index map -> DMA'd once, stays resident
        nd = a.ndim
        return pl.BlockSpec(a.shape, lambda i, _nd=nd: (0,) * _nd)

    in_specs = [pl.BlockSpec((tb, seq_len, 27), lambda i: (i, 0, 0))]
    in_specs += [resident_spec(a) for a in inputs[1:]]

    out = pl.pallas_call(
        _hybrid_kernel,
        out_shape=jax.ShapeDtypeStruct((num_blocks, tb, 128), jnp.float32),
        grid=(num_blocks,),
        in_specs=in_specs,
        out_specs=pl.BlockSpec((1, tb, 128), lambda i: (i, 0, 0)),
        scratch_shapes=[pltpu.VMEM((tb, flat_dim), jnp.float32)],
        compiler_params=pltpu.CompilerParams(
            dimension_semantics=("parallel",),
            vmem_limit_bytes=16 * 1024 * 1024,
        ),
    )(*inputs)
    return out.reshape(n_pad, 128)[:n, :1]                             # (N, 1)


# ----------------------------------- main ------------------------------------

if __name__ == "__main__":
    N, C, L = 2, 27, 128
    key = jax.random.PRNGKey(0)
    kx, kp = jax.random.split(key)
    x = jax.random.normal(kx, (N, C, L), jnp.float32)

    _, l5 = conv_stack_lengths(L)
    flat_dim = 512 * l5                      # 512 * 4 = 2048 for L=128

    params = init_params(kp, flat_dim)
    fwd = jax.jit(hybrid_forward)
    out = jax.block_until_ready(fwd(params, x))
    assert out.shape == (N, 1), out.shape
    print("KERNEL_OK")
</pallas_src>

<mosaic_0001>
module attributes {stable_mosaic.version = 11 : i64} {
  func.func @_hybrid_kernel(%arg0: i32, %arg1: memref<1x128x27xf32, #tpu.memory_space<vmem>>, %arg2: memref<1x27xf32, #tpu.memory_space<vmem>>, %arg3: memref<1x27xf32, #tpu.memory_space<vmem>>, %arg4: memref<81x32xbf16, #tpu.memory_space<vmem>>, %arg5: memref<1x32xf32, #tpu.memory_space<vmem>>, %arg6: memref<96x64xbf16, #tpu.memory_space<vmem>>, %arg7: memref<1x64xf32, #tpu.memory_space<vmem>>, %arg8: memref<192x128xbf16, #tpu.memory_space<vmem>>, %arg9: memref<1x128xf32, #tpu.memory_space<vmem>>, %arg10: memref<384x256xbf16, #tpu.memory_space<vmem>>, %arg11: memref<1x256xf32, #tpu.memory_space<vmem>>, %arg12: memref<768x512xbf16, #tpu.memory_space<vmem>>, %arg13: memref<1x512xf32, #tpu.memory_space<vmem>>, %arg14: memref<63x125xbf16, #tpu.memory_space<vmem>>, %arg15: memref<30x60xbf16, #tpu.memory_space<vmem>>, %arg16: memref<14x27xbf16, #tpu.memory_space<vmem>>, %arg17: memref<6x11xbf16, #tpu.memory_space<vmem>>, %arg18: memref<2048x1024xbf16, #tpu.memory_space<vmem>>, %arg19: memref<1x1024xf32, #tpu.memory_space<vmem>>, %arg20: memref<1024x128xbf16, #tpu.memory_space<vmem>>, %arg21: memref<1x128xf32, #tpu.memory_space<vmem>>, %arg22: memref<1x1x128xf32, #tpu.memory_space<vmem>>, %arg23: memref<1x2048xf32, #tpu.memory_space<vmem>>) attributes {dimension_semantics = [#tpu.dimension_semantics<parallel>], iteration_bounds = array<i64: 2>, scalar_prefetch = 0 : i64, scratch_operands = 1 : i64, tpu.core_type = #tpu.core_type<tc>, window_params = [{transform_indices = @transform_0, window_bounds = array<i64: 1, 128, 27>}, {pipeline_mode = #tpu.pipeline_mode<synchronous>, transform_indices = @transform_1, window_bounds = array<i64: 1, 27>}, {pipeline_mode = #tpu.pipeline_mode<synchronous>, transform_indices = @transform_2, window_bounds = array<i64: 1, 27>}, {pipeline_mode = #tpu.pipeline_mode<synchronous>, transform_indices = @transform_3, window_bounds = array<i64: 81, 32>}, {pipeline_mode = #tpu.pipeline_mode<synchronous>, transform_indices = @transform_4, window_bounds = array<i64: 1, 32>}, {pipeline_mode = #tpu.pipeline_mode<synchronous>, transform_indices = @transform_5, window_bounds = array<i64: 96, 64>}, {pipeline_mode = #tpu.pipeline_mode<synchronous>, transform_indices = @transform_6, window_bounds = array<i64: 1, 64>}, {pipeline_mode = #tpu.pipeline_mode<synchronous>, transform_indices = @transform_7, window_bounds = array<i64: 192, 128>}, {pipeline_mode = #tpu.pipeline_mode<synchronous>, transform_indices = @transform_8, window_bounds = array<i64: 1, 128>}, {pipeline_mode = #tpu.pipeline_mode<synchronous>, transform_indices = @transform_9, window_bounds = array<i64: 384, 256>}, {pipeline_mode = #tpu.pipeline_mode<synchronous>, transform_indices = @transform_10, window_bounds = array<i64: 1, 256>}, {pipeline_mode = #tpu.pipeline_mode<synchronous>, transform_indices = @transform_11, window_bounds = array<i64: 768, 512>}, {pipeline_mode = #tpu.pipeline_mode<synchronous>, transform_indices = @transform_12, window_bounds = array<i64: 1, 512>}, {pipeline_mode = #tpu.pipeline_mode<synchronous>, transform_indices = @transform_13, window_bounds = array<i64: 63, 125>}, {pipeline_mode = #tpu.pipeline_mode<synchronous>, transform_indices = @transform_14, window_bounds = array<i64: 30, 60>}, {pipeline_mode = #tpu.pipeline_mode<synchronous>, transform_indices = @transform_15, window_bounds = array<i64: 14, 27>}, {pipeline_mode = #tpu.pipeline_mode<synchronous>, transform_indices = @transform_16, window_bounds = array<i64: 6, 11>}, {pipeline_mode = #tpu.pipeline_mode<synchronous>, transform_indices = @transform_17, window_bounds = array<i64: 2048, 1024>}, {pipeline_mode = #tpu.pipeline_mode<synchronous>, transform_indices = @transform_18, window_bounds = array<i64: 1, 1024>}, {pipeline_mode = #tpu.pipeline_mode<synchronous>, transform_indices = @transform_19, window_bounds = array<i64: 1024, 128>}, {pipeline_mode = #tpu.pipeline_mode<synchronous>, transform_indices = @transform_20, window_bounds = array<i64: 1, 128>}, {transform_indices = @transform_21, window_bounds = array<i64: 1, 1, 128>}]} {
    %c0 = arith.constant 0 : index
    %c0_0 = arith.constant 0 : index
    %0 = vector.load %arg2[%c0, %c0_0] : memref<1x27xf32, #tpu.memory_space<vmem>>, vector<1x27xf32>
    %c0_1 = arith.constant 0 : index
    %c0_2 = arith.constant 0 : index
    %1 = vector.load %arg3[%c0_1, %c0_2] : memref<1x27xf32, #tpu.memory_space<vmem>>, vector<1x27xf32>
    %c0_3 = arith.constant 0 : index
    %c0_4 = arith.constant 0 : index
    %c0_5 = arith.constant 0 : index
    %2 = vector.load %arg1[%c0_3, %c0_4, %c0_5] : memref<1x128x27xf32, #tpu.memory_space<vmem>>, vector<1x128x27xf32>
    %3 = vector.shape_cast %2 : vector<1x128x27xf32> to vector<128x27xf32>
    %4 = vector.broadcast %0 : vector<1x27xf32> to vector<128x27xf32>
    %5 = arith.mulf %3, %4 : vector<128x27xf32>
    %6 = vector.broadcast %1 : vector<1x27xf32> to vector<128x27xf32>
    %7 = arith.addf %5, %6 : vector<128x27xf32>
    %8 = vector.extract_strided_slice %7 {offsets = [0, 0], sizes = [126, 27], strides = [1, 1]} : vector<128x27xf32> to vector<126x27xf32>
    %9 = vector.extract_strided_slice %7 {offsets = [1, 0], sizes = [126, 27], strides = [1, 1]} : vector<128x27xf32> to vector<126x27xf32>
    %10 = vector.extract_strided_slice %7 {offsets = [2, 0], sizes = [126, 27], strides = [1, 1]} : vector<128x27xf32> to vector<126x27xf32>
    %11 = tpu.concatenate %8, %9, %10 in 1 : vector<126x27xf32>, vector<126x27xf32>, vector<126x27xf32> -> vector<126x81xf32>
    %12 = arith.truncf %11 : vector<126x81xf32> to vector<126x81xbf16>
    %c0_6 = arith.constant 0 : index
    %c0_7 = arith.constant 0 : index
    %13 = vector.load %arg4[%c0_6, %c0_7] : memref<81x32xbf16, #tpu.memory_space<vmem>>, vector<81x32xbf16>
    %cst = arith.constant dense<0.000000e+00> : vector<126x32xf32>
    %14 = tpu.matmul %12, %13, %cst {dimension_numbers = #tpu.dot_dimension_numbers<[1], [0], [0], [1], [0, 0, 1, 1], [], []>} : vector<126x81xbf16>, vector<81x32xbf16>, vector<126x32xf32> -> vector<126x32xf32>
    %c0_8 = arith.constant 0 : index
    %c0_9 = arith.constant 0 : index
    %15 = vector.load %arg5[%c0_8, %c0_9] : memref<1x32xf32, #tpu.memory_space<vmem>>, vector<1x32xf32>
    %16 = vector.broadcast %15 : vector<1x32xf32> to vector<126x32xf32>
    %17 = arith.addf %14, %16 : vector<126x32xf32>
    %cst_10 = arith.constant 0.000000e+00 : f32
    %18 = vector.broadcast %cst_10 : f32 to vector<126x32xf32>
    %19 = arith.maximumf %17, %18 : vector<126x32xf32>
    %20 = vector.extract_strided_slice %19 {offsets = [0, 0], sizes = [125, 32], strides = [1, 1]} : vector<126x32xf32> to vector<125x32xf32>
    %21 = vector.extract_strided_slice %19 {offsets = [1, 0], sizes = [125, 32], strides = [1, 1]} : vector<126x32xf32> to vector<125x32xf32>
    %22 = arith.maximumf %20, %21 : vector<125x32xf32>
    %c0_11 = arith.constant 0 : index
    %c0_12 = arith.constant 0 : index
    %23 = vector.load %arg14[%c0_11, %c0_12] : memref<63x125xbf16, #tpu.memory_space<vmem>>, vector<63x125xbf16>
    %24 = arith.truncf %22 : vector<125x32xf32> to vector<125x32xbf16>
    %cst_13 = arith.constant dense<0.000000e+00> : vector<63x32xf32>
    %25 = tpu.matmul %23, %24, %cst_13 {dimension_numbers = #tpu.dot_dimension_numbers<[1], [0], [0], [1], [0, 0, 1, 1], [], []>} : vector<63x125xbf16>, vector<125x32xbf16>, vector<63x32xf32> -> vector<63x32xf32>
    %26 = vector.extract_strided_slice %25 {offsets = [0, 0], sizes = [61, 32], strides = [1, 1]} : vector<63x32xf32> to vector<61x32xf32>
    %27 = vector.extract_strided_slice %25 {offsets = [1, 0], sizes = [61, 32], strides = [1, 1]} : vector<63x32xf32> to vector<61x32xf32>
    %28 = vector.extract_strided_slice %25 {offsets = [2, 0], sizes = [61, 32], strides = [1, 1]} : vector<63x32xf32> to vector<61x32xf32>
    %29 = tpu.concatenate %26, %27, %28 in 1 : vector<61x32xf32>, vector<61x32xf32>, vector<61x32xf32> -> vector<61x96xf32>
    %30 = arith.truncf %29 : vector<61x96xf32> to vector<61x96xbf16>
    %c0_14 = arith.constant 0 : index
    %c0_15 = arith.constant 0 : index
    %31 = vector.load %arg6[%c0_14, %c0_15] : memref<96x64xbf16, #tpu.memory_space<vmem>>, vector<96x64xbf16>
    %cst_16 = arith.constant dense<0.000000e+00> : vector<61x64xf32>
    %32 = tpu.matmul %30, %31, %cst_16 {dimension_numbers = #tpu.dot_dimension_numbers<[1], [0], [0], [1], [0, 0, 1, 1], [], []>} : vector<61x96xbf16>, vector<96x64xbf16>, vector<61x64xf32> -> vector<61x64xf32>
    %c0_17 = arith.constant 0 : index
    %c0_18 = arith.constant 0 : index
    %33 = vector.load %arg7[%c0_17, %c0_18] : memref<1x64xf32, #tpu.memory_space<vmem>>, vector<1x64xf32>
    %34 = vector.broadcast %33 : vector<1x64xf32> to vector<61x64xf32>
    %35 = arith.addf %32, %34 : vector<61x64xf32>
    %cst_19 = arith.constant 0.000000e+00 : f32
    %36 = vector.broadcast %cst_19 : f32 to vector<61x64xf32>
    %37 = arith.maximumf %35, %36 : vector<61x64xf32>
    %38 = vector.extract_strided_slice %37 {offsets = [0, 0], sizes = [60, 64], strides = [1, 1]} : vector<61x64xf32> to vector<60x64xf32>
    %39 = vector.extract_strided_slice %37 {offsets = [1, 0], sizes = [60, 64], strides = [1, 1]} : vector<61x64xf32> to vector<60x64xf32>
    %40 = arith.maximumf %38, %39 : vector<60x64xf32>
    %c0_20 = arith.constant 0 : index
    %c0_21 = arith.constant 0 : index
    %41 = vector.load %arg15[%c0_20, %c0_21] : memref<30x60xbf16, #tpu.memory_space<vmem>>, vector<30x60xbf16>
    %42 = arith.truncf %40 : vector<60x64xf32> to vector<60x64xbf16>
    %cst_22 = arith.constant dense<0.000000e+00> : vector<30x64xf32>
    %43 = tpu.matmul %41, %42, %cst_22 {dimension_numbers = #tpu.dot_dimension_numbers<[1], [0], [0], [1], [0, 0, 1, 1], [], []>} : vector<30x60xbf16>, vector<60x64xbf16>, vector<30x64xf32> -> vector<30x64xf32>
    %44 = vector.extract_strided_slice %43 {offsets = [0, 0], sizes = [28, 64], strides = [1, 1]} : vector<30x64xf32> to vector<28x64xf32>
    %45 = vector.extract_strided_slice %43 {offsets = [1, 0], sizes = [28, 64], strides = [1, 1]} : vector<30x64xf32> to vector<28x64xf32>
    %46 = vector.extract_strided_slice %43 {offsets = [2, 0], sizes = [28, 64], strides = [1, 1]} : vector<30x64xf32> to vector<28x64xf32>
    %47 = tpu.concatenate %44, %45, %46 in 1 : vector<28x64xf32>, vector<28x64xf32>, vector<28x64xf32> -> vector<28x192xf32>
    %48 = arith.truncf %47 : vector<28x192xf32> to vector<28x192xbf16>
    %c0_23 = arith.constant 0 : index
    %c0_24 = arith.constant 0 : index
    %49 = vector.load %arg8[%c0_23, %c0_24] : memref<192x128xbf16, #tpu.memory_space<vmem>>, vector<192x128xbf16>
    %cst_25 = arith.constant dense<0.000000e+00> : vector<28x128xf32>
    %50 = tpu.matmul %48, %49, %cst_25 {dimension_numbers = #tpu.dot_dimension_numbers<[1], [0], [0], [1], [0, 0, 1, 1], [], []>} : vector<28x192xbf16>, vector<192x128xbf16>, vector<28x128xf32> -> vector<28x128xf32>
    %c0_26 = arith.constant 0 : index
    %c0_27 = arith.constant 0 : index
    %51 = vector.load %arg9[%c0_26, %c0_27] : memref<1x128xf32, #tpu.memory_space<vmem>>, vector<1x128xf32>
    %52 = vector.broadcast %51 : vector<1x128xf32> to vector<28x128xf32>
    %53 = arith.addf %50, %52 : vector<28x128xf32>
    %cst_28 = arith.constant 0.000000e+00 : f32
    %54 = vector.broadcast %cst_28 : f32 to vector<28x128xf32>
    %55 = arith.maximumf %53, %54 : vector<28x128xf32>
    %56 = vector.extract_strided_slice %55 {offsets = [0, 0], sizes = [27, 128], strides = [1, 1]} : vector<28x128xf32> to vector<27x128xf32>
    %57 = vector.extract_strided_slice %55 {offsets = [1, 0], sizes = [27, 128], strides = [1, 1]} : vector<28x128xf32> to vector<27x128xf32>
    %58 = arith.maximumf %56, %57 : vector<27x128xf32>
    %c0_29 = arith.constant 0 : index
    %c0_30 = arith.constant 0 : index
    %59 = vector.load %arg16[%c0_29, %c0_30] : memref<14x27xbf16, #tpu.memory_space<vmem>>, vector<14x27xbf16>
    %60 = arith.truncf %58 : vector<27x128xf32> to vector<27x128xbf16>
    %cst_31 = arith.constant dense<0.000000e+00> : vector<14x128xf32>
    %61 = tpu.matmul %59, %60, %cst_31 {dimension_numbers = #tpu.dot_dimension_numbers<[1], [0], [0], [1], [0, 0, 1, 1], [], []>} : vector<14x27xbf16>, vector<27x128xbf16>, vector<14x128xf32> -> vector<14x128xf32>
    %62 = vector.extract_strided_slice %61 {offsets = [0, 0], sizes = [12, 128], strides = [1, 1]} : vector<14x128xf32> to vector<12x128xf32>
    %63 = vector.extract_strided_slice %61 {offsets = [1, 0], sizes = [12, 128], strides = [1, 1]} : vector<14x128xf32> to vector<12x128xf32>
    %64 = vector.extract_strided_slice %61 {offsets = [2, 0], sizes = [12, 128], strides = [1, 1]} : vector<14x128xf32> to vector<12x128xf32>
    %65 = tpu.concatenate %62, %63, %64 in 1 : vector<12x128xf32>, vector<12x128xf32>, vector<12x128xf32> -> vector<12x384xf32>
    %66 = arith.truncf %65 : vector<12x384xf32> to vector<12x384xbf16>
    %c0_32 = arith.constant 0 : index
    %c0_33 = arith.constant 0 : index
    %67 = vector.load %arg10[%c0_32, %c0_33] : memref<384x256xbf16, #tpu.memory_space<vmem>>, vector<384x256xbf16>
    %cst_34 = arith.constant dense<0.000000e+00> : vector<12x256xf32>
    %68 = tpu.matmul %66, %67, %cst_34 {dimension_numbers = #tpu.dot_dimension_numbers<[1], [0], [0], [1], [0, 0, 1, 1], [], []>} : vector<12x384xbf16>, vector<384x256xbf16>, vector<12x256xf32> -> vector<12x256xf32>
    %c0_35 = arith.constant 0 : index
    %c0_36 = arith.constant 0 : index
    %69 = vector.load %arg11[%c0_35, %c0_36] : memref<1x256xf32, #tpu.memory_space<vmem>>, vector<1x256xf32>
    %70 = vector.broadcast %69 : vector<1x256xf32> to vector<12x256xf32>
    %71 = arith.addf %68, %70 : vector<12x256xf32>
    %cst_37 = arith.constant 0.000000e+00 : f32
    %72 = vector.broadcast %cst_37 : f32 to vector<12x256xf32>
    %73 = arith.maximumf %71, %72 : vector<12x256xf32>
    %74 = vector.extract_strided_slice %73 {offsets = [0, 0], sizes = [11, 256], strides = [1, 1]} : vector<12x256xf32> to vector<11x256xf32>
    %75 = vector.extract_strided_slice %73 {offsets = [1, 0], sizes = [11, 256], strides = [1, 1]} : vector<12x256xf32> to vector<11x256xf32>
    %76 = arith.maximumf %74, %75 : vector<11x256xf32>
    %c0_38 = arith.constant 0 : index
    %c0_39 = arith.constant 0 : index
    %77 = vector.load %arg17[%c0_38, %c0_39] : memref<6x11xbf16, #tpu.memory_space<vmem>>, vector<6x11xbf16>
    %78 = arith.truncf %76 : vector<11x256xf32> to vector<11x256xbf16>
    %cst_40 = arith.constant dense<0.000000e+00> : vector<6x256xf32>
    %79 = tpu.matmul %77, %78, %cst_40 {dimension_numbers = #tpu.dot_dimension_numbers<[1], [0], [0], [1], [0, 0, 1, 1], [], []>} : vector<6x11xbf16>, vector<11x256xbf16>, vector<6x256xf32> -> vector<6x256xf32>
    %80 = vector.extract_strided_slice %79 {offsets = [0, 0], sizes = [4, 256], strides = [1, 1]} : vector<6x256xf32> to vector<4x256xf32>
    %81 = vector.extract_strided_slice %79 {offsets = [1, 0], sizes = [4, 256], strides = [1, 1]} : vector<6x256xf32> to vector<4x256xf32>
    %82 = vector.extract_strided_slice %79 {offsets = [2, 0], sizes = [4, 256], strides = [1, 1]} : vector<6x256xf32> to vector<4x256xf32>
    %83 = tpu.concatenate %80, %81, %82 in 1 : vector<4x256xf32>, vector<4x256xf32>, vector<4x256xf32> -> vector<4x768xf32>
    %84 = arith.truncf %83 : vector<4x768xf32> to vector<4x768xbf16>
    %c0_41 = arith.constant 0 : index
    %c0_42 = arith.constant 0 : index
    %85 = vector.load %arg12[%c0_41, %c0_42] : memref<768x512xbf16, #tpu.memory_space<vmem>>, vector<768x512xbf16>
    %cst_43 = arith.constant dense<0.000000e+00> : vector<4x512xf32>
    %86 = tpu.matmul %84, %85, %cst_43 {dimension_numbers = #tpu.dot_dimension_numbers<[1], [0], [0], [1], [0, 0, 1, 1], [], []>} : vector<4x768xbf16>, vector<768x512xbf16>, vector<4x512xf32> -> vector<4x512xf32>
    %c0_44 = arith.constant 0 : index
    %c0_45 = arith.constant 0 : index
    %87 = vector.load %arg13[%c0_44, %c0_45] : memref<1x512xf32, #tpu.memory_space<vmem>>, vector<1x512xf32>
    %88 = vector.broadcast %87 : vector<1x512xf32> to vector<4x512xf32>
    %89 = arith.addf %86, %88 : vector<4x512xf32>
    %cst_46 = arith.constant 0.000000e+00 : f32
    %90 = vector.broadcast %cst_46 : f32 to vector<4x512xf32>
    %91 = arith.maximumf %89, %90 : vector<4x512xf32>
    %92 = vector.extract_strided_slice %91 {offsets = [0, 0], sizes = [1, 512], strides = [1, 1]} : vector<4x512xf32> to vector<1x512xf32>
    %c0_47 = arith.constant 0 : index
    %c0_48 = arith.constant 0 : index
    %93 = vector.load %arg23[%c0_47, %c0_48] : memref<1x2048xf32, #tpu.memory_space<vmem>>, vector<1x512xf32>
    tpu.vector_store %arg23[%c0_47, %c0_48], %92 {strides = array<i32>} : memref<1x2048xf32, #tpu.memory_space<vmem>>, vector<1x512xf32>,
    %94 = vector.extract_strided_slice %91 {offsets = [1, 0], sizes = [1, 512], strides = [1, 1]} : vector<4x512xf32> to vector<1x512xf32>
    %c0_49 = arith.constant 0 : index
    %c512 = arith.constant 512 : index
    %95 = vector.load %arg23[%c0_49, %c512] : memref<1x2048xf32, #tpu.memory_space<vmem>>, vector<1x512xf32>
    tpu.vector_store %arg23[%c0_49, %c512], %94 {strides = array<i32>} : memref<1x2048xf32, #tpu.memory_space<vmem>>, vector<1x512xf32>,
    %96 = vector.extract_strided_slice %91 {offsets = [2, 0], sizes = [1, 512], strides = [1, 1]} : vector<4x512xf32> to vector<1x512xf32>
    %c0_50 = arith.constant 0 : index
    %c1024 = arith.constant 1024 : index
    %97 = vector.load %arg23[%c0_50, %c1024] : memref<1x2048xf32, #tpu.memory_space<vmem>>, vector<1x512xf32>
    tpu.vector_store %arg23[%c0_50, %c1024], %96 {strides = array<i32>} : memref<1x2048xf32, #tpu.memory_space<vmem>>, vector<1x512xf32>,
    %98 = vector.extract_strided_slice %91 {offsets = [3, 0], sizes = [1, 512], strides = [1, 1]} : vector<4x512xf32> to vector<1x512xf32>
    %c0_51 = arith.constant 0 : index
    %c1536 = arith.constant 1536 : index
    %99 = vector.load %arg23[%c0_51, %c1536] : memref<1x2048xf32, #tpu.memory_space<vmem>>, vector<1x512xf32>
    tpu.vector_store %arg23[%c0_51, %c1536], %98 {strides = array<i32>} : memref<1x2048xf32, #tpu.memory_space<vmem>>, vector<1x512xf32>,
    %c0_52 = arith.constant 0 : index
    %c0_53 = arith.constant 0 : index
    %100 = vector.load %arg23[%c0_52, %c0_53] : memref<1x2048xf32, #tpu.memory_space<vmem>>, vector<1x2048xf32>
    %101 = arith.truncf %100 : vector<1x2048xf32> to vector<1x2048xbf16>
    %c0_54 = arith.constant 0 : index
    %c0_55 = arith.constant 0 : index
    %102 = vector.load %arg18[%c0_54, %c0_55] : memref<2048x1024xbf16, #tpu.memory_space<vmem>>, vector<2048x1024xbf16>
    %cst_56 = arith.constant dense<0.000000e+00> : vector<1x1024xf32>
    %103 = tpu.matmul %101, %102, %cst_56 {dimension_numbers = #tpu.dot_dimension_numbers<[1], [0], [0], [1], [0, 0, 1, 1], [], []>} : vector<1x2048xbf16>, vector<2048x1024xbf16>, vector<1x1024xf32> -> vector<1x1024xf32>
    %c0_57 = arith.constant 0 : index
    %c0_58 = arith.constant 0 : index
    %104 = vector.load %arg19[%c0_57, %c0_58] : memref<1x1024xf32, #tpu.memory_space<vmem>>, vector<1x1024xf32>
    %105 = arith.addf %103, %104 : vector<1x1024xf32>
    %cst_59 = arith.constant 0.000000e+00 : f32
    %106 = vector.broadcast %cst_59 : f32 to vector<1x1024xf32>
    %107 = arith.maximumf %105, %106 : vector<1x1024xf32>
    %108 = arith.truncf %107 : vector<1x1024xf32> to vector<1x1024xbf16>
    %c0_60 = arith.constant 0 : index
    %c0_61 = arith.constant 0 : index
    %109 = vector.load %arg20[%c0_60, %c0_61] : memref<1024x128xbf16, #tpu.memory_space<vmem>>, vector<1024x128xbf16>
    %cst_62 = arith.constant dense<0.000000e+00> : vector<1x128xf32>
    %110 = tpu.matmul %108, %109, %cst_62 {dimension_numbers = #tpu.dot_dimension_numbers<[1], [0], [0], [1], [0, 0, 1, 1], [], []>} : vector<1x1024xbf16>, vector<1024x128xbf16>, vector<1x128xf32> -> vector<1x128xf32>
    %c0_63 = arith.constant 0 : index
    %c0_64 = arith.constant 0 : index
    %111 = vector.load %arg21[%c0_63, %c0_64] : memref<1x128xf32, #tpu.memory_space<vmem>>, vector<1x128xf32>
    %112 = arith.addf %110, %111 : vector<1x128xf32>
    %c0_65 = arith.constant 0 : index
    %c0_66 = arith.constant 0 : index
    %c0_67 = arith.constant 0 : index
    %113 = vector.load %arg22[%c0_65, %c0_66, %c0_67] : memref<1x1x128xf32, #tpu.memory_space<vmem>>, vector<1x1x128xf32>
    %114 = vector.shape_cast %113 : vector<1x1x128xf32> to vector<1x128xf32>
    %115 = vector.shape_cast %112 : vector<1x128xf32> to vector<1x1x128xf32>
    tpu.vector_store %arg22[%c0_65, %c0_66, %c0_67], %115 {strides = array<i32>} : memref<1x1x128xf32, #tpu.memory_space<vmem>>, vector<1x1x128xf32>,
    return
  }
  func.func @transform_0(%arg0: i32) -> (i32, i32, i32) {
    %c0_i32 = arith.constant 0 : i32
    %c0_i32_0 = arith.constant 0 : i32
    %c0_i32_1 = arith.constant 0 : i32
    return %arg0, %c0_i32, %c0_i32_0 : i32, i32, i32
  }
  func.func @transform_1(%arg0: i32) -> (i32, i32) {
    %c0_i32 = arith.constant 0 : i32
    %c0_i32_0 = arith.constant 0 : i32
    %c0_i32_1 = arith.constant 0 : i32
    return %c0_i32, %c0_i32_0 : i32, i32
  }
  func.func @transform_2(%arg0: i32) -> (i32, i32) {
    %c0_i32 = arith.constant 0 : i32
    %c0_i32_0 = arith.constant 0 : i32
    %c0_i32_1 = arith.constant 0 : i32
    return %c0_i32, %c0_i32_0 : i32, i32
  }
  func.func @transform_3(%arg0: i32) -> (i32, i32) {
    %c0_i32 = arith.constant 0 : i32
    %c0_i32_0 = arith.constant 0 : i32
    %c0_i32_1 = arith.constant 0 : i32
    return %c0_i32, %c0_i32_0 : i32, i32
  }
  func.func @transform_4(%arg0: i32) -> (i32, i32) {
    %c0_i32 = arith.constant 0 : i32
    %c0_i32_0 = arith.constant 0 : i32
    %c0_i32_1 = arith.constant 0 : i32
    return %c0_i32, %c0_i32_0 : i32, i32
  }
  func.func @transform_5(%arg0: i32) -> (i32, i32) {
    %c0_i32 = arith.constant 0 : i32
    %c0_i32_0 = arith.constant 0 : i32
    %c0_i32_1 = arith.constant 0 : i32
    return %c0_i32, %c0_i32_0 : i32, i32
  }
  func.func @transform_6(%arg0: i32) -> (i32, i32) {
    %c0_i32 = arith.constant 0 : i32
    %c0_i32_0 = arith.constant 0 : i32
    %c0_i32_1 = arith.constant 0 : i32
    return %c0_i32, %c0_i32_0 : i32, i32
  }
  func.func @transform_7(%arg0: i32) -> (i32, i32) {
    %c0_i32 = arith.constant 0 : i32
    %c0_i32_0 = arith.constant 0 : i32
    %c0_i32_1 = arith.constant 0 : i32
    return %c0_i32, %c0_i32_0 : i32, i32
  }
  func.func @transform_8(%arg0: i32) -> (i32, i32) {
    %c0_i32 = arith.constant 0 : i32
    %c0_i32_0 = arith.constant 0 : i32
    %c0_i32_1 = arith.constant 0 : i32
    return %c0_i32, %c0_i32_0 : i32, i32
  }
  func.func @transform_9(%arg0: i32) -> (i32, i32) {
    %c0_i32 = arith.constant 0 : i32
    %c0_i32_0 = arith.constant 0 : i32
    %c0_i32_1 = arith.constant 0 : i32
    return %c0_i32, %c0_i32_0 : i32, i32
  }
  func.func @transform_10(%arg0: i32) -> (i32, i32) {
    %c0_i32 = arith.constant 0 : i32
    %c0_i32_0 = arith.constant 0 : i32
    %c0_i32_1 = arith.constant 0 : i32
    return %c0_i32, %c0_i32_0 : i32, i32
  }
  func.func @transform_11(%arg0: i32) -> (i32, i32) {
    %c0_i32 = arith.constant 0 : i32
    %c0_i32_0 = arith.constant 0 : i32
    %c0_i32_1 = arith.constant 0 : i32
    return %c0_i32, %c0_i32_0 : i32, i32
  }
  func.func @transform_12(%arg0: i32) -> (i32, i32) {
    %c0_i32 = arith.constant 0 : i32
    %c0_i32_0 = arith.constant 0 : i32
    %c0_i32_1 = arith.constant 0 : i32
    return %c0_i32, %c0_i32_0 : i32, i32
  }
  func.func @transform_13(%arg0: i32) -> (i32, i32) {
    %c0_i32 = arith.constant 0 : i32
    %c0_i32_0 = arith.constant 0 : i32
    %c0_i32_1 = arith.constant 0 : i32
    return %c0_i32, %c0_i32_0 : i32, i32
  }
  func.func @transform_14(%arg0: i32) -> (i32, i32) {
    %c0_i32 = arith.constant 0 : i32
    %c0_i32_0 = arith.constant 0 : i32
    %c0_i32_1 = arith.constant 0 : i32
    return %c0_i32, %c0_i32_0 : i32, i32
  }
  func.func @transform_15(%arg0: i32) -> (i32, i32) {
    %c0_i32 = arith.constant 0 : i32
    %c0_i32_0 = arith.constant 0 : i32
    %c0_i32_1 = arith.constant 0 : i32
    return %c0_i32, %c0_i32_0 : i32, i32
  }
  func.func @transform_16(%arg0: i32) -> (i32, i32) {
    %c0_i32 = arith.constant 0 : i32
    %c0_i32_0 = arith.constant 0 : i32
    %c0_i32_1 = arith.constant 0 : i32
    return %c0_i32, %c0_i32_0 : i32, i32
  }
  func.func @transform_17(%arg0: i32) -> (i32, i32) {
    %c0_i32 = arith.constant 0 : i32
    %c0_i32_0 = arith.constant 0 : i32
    %c0_i32_1 = arith.constant 0 : i32
    return %c0_i32, %c0_i32_0 : i32, i32
  }
  func.func @transform_18(%arg0: i32) -> (i32, i32) {
    %c0_i32 = arith.constant 0 : i32
    %c0_i32_0 = arith.constant 0 : i32
    %c0_i32_1 = arith.constant 0 : i32
    return %c0_i32, %c0_i32_0 : i32, i32
  }
  func.func @transform_19(%arg0: i32) -> (i32, i32) {
    %c0_i32 = arith.constant 0 : i32
    %c0_i32_0 = arith.constant 0 : i32
    %c0_i32_1 = arith.constant 0 : i32
    return %c0_i32, %c0_i32_0 : i32, i32
  }
  func.func @transform_20(%arg0: i32) -> (i32, i32) {
    %c0_i32 = arith.constant 0 : i32
    %c0_i32_0 = arith.constant 0 : i32
    %c0_i32_1 = arith.constant 0 : i32
    return %c0_i32, %c0_i32_0 : i32, i32
  }
  func.func @transform_21(%arg0: i32) -> (i32, i32, i32) {
    %c0_i32 = arith.constant 0 : i32
    %c0_i32_0 = arith.constant 0 : i32
    %c0_i32_1 = arith.constant 0 : i32
    return %arg0, %c0_i32, %c0_i32_0 : i32, i32, i32
  }
}

</mosaic_0001>

<bundles_post_ra>
// kernel: hybrid_forward.1
= control target key start
LH: loop header
LB: loop body
LE: loop exit
PB: predicated region body
PF: predicated region fallthrough
CT: control target
= control target key end

     0   :  { %s19534_s0 = inlined_call_operand.vmem [shape: f32[2,128,27], index: 0, kind: input, shape index: {}]   ;;  %s19535_s1 = inlined_call_operand.vmem [shape: f32[1,27], index: 1, kind: input, shape index: {}]   ;;  %s19536_s2 = inlined_call_operand.vmem [shape: f32[1,27], index: 2, kind: input, shape index: {}]   ;;  %s19537_s3 = inlined_call_operand.vmem [shape: bf16[81,32], index: 3, kind: input, shape index: {}]   ;;  %s19538_s4 = inlined_call_operand.vmem [shape: f32[1,32], index: 4, kind: input, shape index: {}]   ;;  %s19539_s5 = inlined_call_operand.vmem [shape: bf16[96,64], index: 5, kind: input, shape index: {}]   ;;  %s19540_s6 = inlined_call_operand.vmem [shape: f32[1,64], index: 6, kind: input, shape index: {}]   ;;  %s19541_s7 = inlined_call_operand.vmem [shape: bf16[192,128], index: 7, kind: input, shape index: {}]   ;;  %s19542_s8 = inlined_call_operand.vmem [shape: f32[1,128], index: 8, kind: input, shape index: {}]   ;;  %s19543_s9 = inlined_call_operand.vmem [shape: bf16[384,256], index: 9, kind: input, shape index: {}]   ;;  %s19544_s10 = inlined_call_operand.vmem [shape: f32[1,256], index: 10, kind: input, shape index: {}]   ;;  %s19545_s11 = inlined_call_operand.vmem [shape: bf16[768,512], index: 11, kind: input, shape index: {}]   ;;  %s19546_s12 = inlined_call_operand.vmem [shape: f32[1,512], index: 12, kind: input, shape index: {}]   ;;  %s19547_s13 = inlined_call_operand.vmem [shape: bf16[63,125], index: 13, kind: input, shape index: {}]   ;;  %s19548_s14 = inlined_call_operand.vmem [shape: bf16[30,60], index: 14, kind: input, shape index: {}]   ;;  %s19549_s15 = inlined_call_operand.vmem [shape: bf16[14,27], index: 15, kind: input, shape index: {}]   ;;  %s19550_s16 = inlined_call_operand.vmem [shape: bf16[6,11], index: 16, kind: input, shape index: {}]   ;;  %s19551_s17 = inlined_call_operand.vmem [shape: bf16[2048,1024], index: 17, kind: input, shape index: {}]   ;;  %s19552_s18 = inlined_call_operand.vmem [shape: f32[1,1024], index: 18, kind: input, shape index: {}]   ;;  %s19553_s19 = inlined_call_operand.vmem [shape: bf16[1024,128], index: 19, kind: input, shape index: {}]   ;;  %s19554_s20 = inlined_call_operand.vmem [shape: f32[1,128], index: 20, kind: input, shape index: {}]   ;;  %s19555_s21 = inlined_call_operand.vmem [shape: f32[2,1,128], index: 21, kind: output, shape index: {}]  }
   0x1   :  { %19559 = sst [smem:[#allocation4_spill]] %s19534_s0 }
   0x2   :  { %19560 = sst [smem:[#allocation5_spill]] %s19535_s1 }
   0x3   :  { %19561 = sst [smem:[#allocation6_spill]] %s19536_s2  ;;  %s14777_s2 = smov 0  }
   0x4   :  { %19562 = sst [smem:[#allocation7_spill]] %s19537_s3 }
   0x5   :  { %19563 = sst [smem:[#allocation8_spill]] %s19538_s4 }
   0x6   :  { %19564 = sst [smem:[#allocation9_spill]] %s19539_s5 }
   0x7 LB: > { %19565 = sst [smem:[#allocation3_spill]] %s14656_s2  ;;  %s12276_s25 = sadd.s32 4294967295, %s14656_s2   ;;  %s14656_s2 = sphi %s14777_s2, %s31_s2  }
   0x8   : > { %p12280_p0 = scmp.ge.s32.totalorder %s14656_s2, 1  ;;  %p587_p1 = scmp.lt.s32.totalorder %s14656_s2, 3 }
   0xa   : > { %p588_p2 = pnand %p12280_p0, %p587_p1 }
   0xb   : > { %p645_p3 = scmp.lt.s32.totalorder (!%p588_p2), %s12276_s25, 1  ;;  %s19566_s3 = sld [smem:[#allocation7_spill]] (!%p588_p2)  ;;  %vm812_vm0 = vcmask (!%p588_p2), 1045504   ;;  %vm732_vm1 = vcmask (!%p588_p2), 1046528   ;;  %vm1010_vm2 = vcmask (!%p588_p2), 1040384   ;;  %vm892_vm3 = vcmask (!%p588_p2), 220160  }
   0xc   : > { %591 = sbr.rel (%p588_p2) target bundleno = 4059 (0xfdb), region = 104  ;;  %s19567_s0 = sld [smem:[#allocation5_spill]] (!%p588_p2)  ;;  %vm909_vm4 = vcmask (!%p588_p2), 441344   ;;  %vm985_vm5 = vcmask (!%p588_p2), 662528   ;;  %vm1244_vm6 = vcmask (!%p588_p2), 1022976   ;;  %vm1413_vm7 = vcmask (!%p588_p2), 261120  }
   0xd   : > { %s19568_s1 = sld [smem:[#allocation6_spill]] (!%p588_p2)  ;;  %s19569_s27 = sld [smem:[#allocation4_spill]] (!%p588_p2)  ;;  %vm1422_vm8 = vcmask (!%p588_p2), 523264   ;;  %vm1490_vm9 = vcmask (!%p588_p2), 785408   ;;  %vm1633_vm10 = vcmask (!%p588_p2), 490496   ;;  %vm14665_vm11 = vmmov (!%p588_p2), 0  }
   0xe   : > { %s14658_s22 = smov (!%p588_p2), 54   ;;  %s14659_s23 = smov (!%p588_p2), 27   ;;  %vm1927_vm12 = vcmask (!%p588_p2), 1044480   ;;  %vm2400_vm13 = vcmask (!%p588_p2), 89088  }
   0xf   : > { %s19570_s29 = sld [smem:[#allocation8_spill]] (!%p588_p2)  ;;  %s19571_s24 = sld [smem:[#allocation9_spill]] (!%p588_p2) }
  0x11   : > { %v14193_v0 = vld [vmem:[%s19566_s3] sm:$0xff] (!%p588_p2)   ;;  %v14194_v2 = vld [vmem:[%s19566_s3 + $0x8] sm:$0xff] (!%p588_p2)   ;;  %v14195_v4 = vld [vmem:[%s19566_s3 + $0x10] sm:$0xff] (!%p588_p2)  }
  0x12   : > { %v14793_v1 = vld [vmem:[%s19567_s0] ss:$0 sm:$0xff] (!%p588_p2)  ;;  %13805 = vmatprep.subr.bf16.mxu0 (!%p588_p2), %v14193_v0  ;;  %v14196_v23 = vld [vmem:[%s19566_s3 + $0x18] sm:$0xff] (!%p588_p2)  }
  0x13   : > { %s19574_s25 = smov (!%p645_p3, %s12276_s25), 1  ;;  %v14802_v3 = vld [vmem:[%s19568_s1] ss:$0 sm:$0xff]  ;;  %13806 = vmatpush3.bf16.msra.mxu0 %v14193_v0  ;;  %s14663_s1 = smov 64  }
  0x14   : > { %s13671_s5 = sshll.u32 %s19574_s25, 7  ;;  %13807 = vmatprep.subr.bf16.mxu0 %v14194_v2  ;;  %v14197_v42 = vld [vmem:[%s19566_s3 + $0x20] sm:$0xff]   ;;  %s652_s0 = scalar_lea.vmem %s19555_s21, %s19574_s25 }
  0x15   : > { %s14807_s2 = scalar_lea.vmem %s19569_s27, %s13671_s5 }
  0x16   : > { %v656_v5 = vld [vmem:[%s14807_s2] sm:$0xff]  ;;  %v657_v6 = vld [vmem:[%s14807_s2 + $0x8] sm:$0xff]  ;;  %v658_v7 = vld [vmem:[%s14807_s2 + $0x10] sm:$0xff] }
  0x17   : > { %v678_v8 = vmul.f32 %v14793_v1, %v656_v5  ;;  %v679_v9 = vmul.f32 %v14793_v1, %v657_v6  ;;  %v680_v10 = vmul.f32 %v14793_v1, %v658_v7  ;;  %v659_v11 = vld [vmem:[%s14807_s2 + $0x18] sm:$0xff]  ;;  %v660_v12 = vld [vmem:[%s14807_s2 + $0x20] sm:$0xff]  ;;  %v662_v13 = vld [vmem:[%s14807_s2 + $0x30] sm:$0xff]  ;;  %13808 = vmatpush3.bf16.msra.mxu0 %v14194_v2 }
  0x18   : > { %v681_v14 = vmul.f32 %v14793_v1, %v659_v11  ;;  %v682_v15 = vmul.f32 %v14793_v1, %v660_v12  ;;  %v663_v16 = vld [vmem:[%s14807_s2 + $0x38] sm:$0xff]  ;;  %v664_v17 = vld [vmem:[%s14807_s2 + $0x40] sm:$0xff]  ;;  %v684_v18 = vmul.f32 %v14793_v1, %v662_v13  ;;  %13809 = vmatprep.subr.bf16.mxu0 %v14195_v4  ;;  %v661_v36 = vld [vmem:[%s14807_s2 + $0x28] sm:$0xff] }
  0x19   : > { %v14827_v19 = vadd.f32 %v14802_v3, %v678_v8  ;;  %v14830_v20 = vadd.f32 %v14802_v3, %v679_v9  ;;  %v14833_v21 = vadd.f32 %v14802_v3, %v680_v10  ;;  %v685_v22 = vmul.f32 %v14793_v1, %v663_v16  ;;  %v666_v41 = vld [vmem:[%s14807_s2 + $0x50] sm:$0xff]  ;;  %v667_v47 = vld [vmem:[%s14807_s2 + $0x58] sm:$0xff]  ;;  %v668_v48 = vld [vmem:[%s14807_s2 + $0x60] sm:$0xff] }
  0x1a   : > { %v14840_v24 = vadd.f32 %v14802_v3, %v681_v14  ;;  %v14843_v25 = vadd.f32 %v14802_v3, %v682_v15  ;;  %v686_v26 = vmul.f32 %v14793_v1, %v664_v17  ;;  %v14847_v27 = vadd.f32 %v14802_v3, %v684_v18  ;;  %v665_v61 = vld [vmem:[%s14807_s2 + $0x48] sm:$0xff]  ;;  %v670_v16 = vld [vmem:[%s14807_s2 + $0x70] sm:$0xff]  ;;  %v671_v17 = vld [vmem:[%s14807_s2 + $0x78] sm:$0xff] }
  0x1b   : > { %v813_v28 = vrot.slane %v14827_v19, 2  ;;  %v814_v29 = vrot.slane %v14830_v20, 2  ;;  %v816_v30 = vrot.slane %v14833_v21, 2  ;;  %v733_v31 = vrot.slane %v14827_v19, 1  ;;  %13810 = vmatpush3.bf16.msra.mxu0 %v14195_v4 }
  0x1c   : > { %v734_v32 = vrot.slane %v14830_v20, 1  ;;  %v736_v33 = vrot.slane %v14833_v21, 1  ;;  %v818_v34 = vrot.slane %v14840_v24, 2  ;;  %v820_v35 = vrot.slane %v14843_v25, 2  ;;  %13811 = vmatprep.subr.bf16.mxu0 %v14196_v23 }
  0x1d   : > { %v815_v37 = vsel %vm812_vm0, %v813_v28, %v814_v29  ;;  %v817_v38 = vsel %vm812_vm0, %v814_v29, %v816_v30  ;;  %v738_v39 = vrot.slane %v14840_v24, 1  ;;  %v740_v40 = vrot.slane %v14843_v25, 1 }
  0x1e   : > { %v14073_v43 = vpack.i.bf16 %v817_v38, %v815_v37  ;;  %v735_v44 = vsel %vm732_vm1, %v733_v31, %v734_v32  ;;  %v737_v45 = vsel %vm732_vm1, %v734_v32, %v736_v33  ;;  %v819_v46 = vsel %vm812_vm0, %v816_v30, %v818_v34  ;;  %v669_v37 = vld [vmem:[%s14807_s2 + $0x68] sm:$0xff]  ;;  %s14662_s2 = smov 32  }
  0x1f   : > { %v14063_v49 = vpack.i.bf16 %v737_v45, %v735_v44  ;;  %v821_v50 = vsel %vm812_vm0, %v818_v34, %v820_v35  ;;  %v739_v51 = vsel %vm732_vm1, %v736_v33, %v738_v39  ;;  %v741_v52 = vsel %vm732_vm1, %v738_v39, %v740_v40  ;;  %13812 = vmatpush3.bf16.msra.mxu0 %v14196_v23  ;;  %v14198_v45 = vld [vmem:[%s19566_s3 + $0x28] ss:$0 sps:$4 sm:$0x11]  }
  0x20   : > { %14074 = vrot.lane.b32.xlu1 %v14073_v43, %s14658_s22  ;;  %v14078_v53 = vpack.i.bf16 %v821_v50, %v819_v46  ;;  %v14068_v54 = vpack.i.bf16 %v741_v52, %v739_v51  ;;  %v14878_v55 = vadd.f32 %v14802_v3, %v685_v22  ;;  %v14881_v56 = vadd.f32 %v14802_v3, %v686_v26 }
  0x21   : > { %14064 = vrot.lane.b32.xlu0 %v14063_v49, %s14659_s23  ;;  %v744_v57 = vrot.slane %v14847_v27, 1  ;;  %v683_v58 = vmul.f32 %v14793_v1, %v661_v36  ;;  %v824_v59 = vrot.slane %v14847_v27, 2  ;;  %v688_v60 = vmul.f32 %v14793_v1, %v666_v41  ;;  %13813 = vmatprep.subr.bf16.mxu0 %v14197_v42 }
  0x22   : > { %v746_v62 = vrot.slane %v14878_v55, 1  ;;  %v748_v63 = vrot.slane %v14881_v56, 1  ;;  %v826_v0 = vrot.slane %v14878_v55, 2  ;;  %v828_v2 = vrot.slane %v14881_v56, 2 }
  0x23   : > { %v14894_v4 = vadd.f32 %v14802_v3, %v683_v58  ;;  %v689_v5 = vmul.f32 %v14793_v1, %v667_v47  ;;  %v690_v6 = vmul.f32 %v14793_v1, %v668_v48  ;;  %v14899_v7 = vadd.f32 %v14802_v3, %v688_v60  ;;  %13814 = vmatpush3.bf16.msra.mxu0 %v14197_v42 }
  0x24   : > { %14079 = vrot.lane.b32.xlu1 %v14078_v53, %s14658_s22  ;;  %v747_v8 = vsel %vm732_vm1, %v744_v57, %v746_v62  ;;  %v749_v9 = vsel %vm732_vm1, %v746_v62, %v748_v63  ;;  %v827_v10 = vsel %vm812_vm0, %v824_v59, %v826_v0  ;;  %v829_v11 = vsel %vm812_vm0, %v826_v0, %v828_v2 }
  0x25   : > { %14069 = vrot.lane.b32.xlu0 %v14068_v54, %s14659_s23  ;;  %v14088_v12 = vpack.i.bf16 %v749_v9, %v747_v8  ;;  %v742_v13 = vrot.slane %v14894_v4, 1  ;;  %v14098_v14 = vpack.i.bf16 %v829_v11, %v827_v10  ;;  %v822_v15 = vrot.slane %v14894_v4, 2 }
  0x26   : > { %v14912_v18 = vadd.f32 %v14802_v3, %v689_v5  ;;  %v14915_v22 = vadd.f32 %v14802_v3, %v690_v6  ;;  %v752_v23 = vrot.slane %v14899_v7, 1  ;;  %v687_v26 = vmul.f32 %v14793_v1, %v665_v61 }
  0x27   : > { %v743_v28 = vsel %vm732_vm1, %v740_v40, %v742_v13  ;;  %v745_v29 = vsel %vm732_vm1, %v742_v13, %v744_v57  ;;  %v823_v30 = vsel %vm812_vm0, %v820_v35, %v822_v15  ;;  %v825_v31 = vsel %vm812_vm0, %v822_v15, %v824_v59 }
  0x28   : > { %14089 = vrot.lane.b32.xlu1 %v14088_v12, %s14659_s23  ;;  %v14083_v32 = vpack.i.bf16 %v745_v29, %v743_v28  ;;  %v14093_v33 = vpack.i.bf16 %v825_v31, %v823_v30  ;;  %v754_v34 = vrot.slane %v14912_v18, 1  ;;  %v756_v36 = vrot.slane %v14915_v22, 1 }
  0x29   : > { %v14930_v38 = vadd.f32 %v14802_v3, %v687_v26  ;;  %v832_v39 = vrot.slane %v14899_v7, 2  ;;  %v834_v40 = vrot.slane %v14912_v18, 2  ;;  %v836_v35 = vrot.slane %v14915_v22, 2 }
  0x2a   : > { %14084 = vrot.lane.b32.xlu0 %v14083_v32, %s14659_s23  ;;  %v755_v41 = vsel %vm732_vm1, %v752_v23, %v754_v34  ;;  %v757_v42 = vsel %vm732_vm1, %v754_v34, %v756_v36  ;;  %v692_v43 = vmul.f32 %v14793_v1, %v670_v16  ;;  %v693_v44 = vmul.f32 %v14793_v1, %v671_v17 }
  0x2b   : > { %v14108_v46 = vpack.i.bf16 %v757_v42, %v755_v41  ;;  %v750_v47 = vrot.slane %v14930_v38, 1  ;;  %v835_v48 = vsel %vm812_vm0, %v832_v39, %v834_v40  ;;  %v837_v49 = vsel %vm812_vm0, %v834_v40, %v836_v35 }
  0x2c   : > { %14099 = vrot.lane.b32.xlu1 %v14098_v14, %s14658_s22  ;;  %v830_v50 = vrot.slane %v14930_v38, 2  ;;  %v14949_v51 = vadd.f32 %v14802_v3, %v692_v43  ;;  %v14952_v52 = vadd.f32 %v14802_v3, %v693_v44  ;;  %v691_v57 = vmul.f32 %v14793_v1, %v669_v37 }
  0x2d   : > { %v751_v53 = vsel %vm732_vm1, %v748_v63, %v750_v47  ;;  %v753_v54 = vsel %vm732_vm1, %v750_v47, %v752_v23  ;;  %v14660_v58 = vmov 0   ;;  %v14118_v1 = vpack.i.bf16 %v837_v49, %v835_v48 }
  0x2e   : > { %v1012_v59 = vsel %vm1010_vm2, 65535, %v14660_v58  ;;  %14094 = vrot.lane.b32.xlu0 %v14093_v33, %s14658_s22  ;;  %v14103_v60 = vpack.i.bf16 %v753_v54, %v751_v53  ;;  %v760_v61 = vrot.slane %v14949_v51, 1  ;;  %v831_v62 = vsel %vm812_vm0, %v828_v2, %v830_v50 }
  0x2f   : > { %v833_v0 = vsel %vm812_vm0, %v830_v50, %v832_v39  ;;  %v762_v5 = vrot.slane %v14952_v52, 1  ;;  %v14965_v63 = vadd.f32 %v14802_v3, %v691_v57  ;;  %v840_v6 = vrot.slane %v14949_v51, 2 }
  0x30   : > { %14109 = vrot.lane.b32.xlu1 %v14108_v46, %s14659_s23  ;;  %v842_v8 = vrot.slane %v14952_v52, 2  ;;  %v1014_v9 = vand.u32 %v14198_v45, %v1012_v59  ;;  %v14113_v12 = vpack.i.bf16 %v833_v0, %v831_v62 }
  0x31   : > { %v763_v10 = vsel %vm732_vm1, %v760_v61, %v762_v5  ;;  %v758_v11 = vrot.slane %v14965_v63, 1  ;;  %v838_v2 = vrot.slane %v14965_v63, 2 }
  0x32   : > { %14104 = vrot.lane.b32.xlu0 %v14103_v60, %s14659_s23  ;;  %13815 = vmatprep.subr.bf16.mxu0 %v1014_v9  ;;  %v14128_v14 = vpack.i.bf16 %v762_v5, %v763_v10  ;;  %v843_v15 = vsel %vm812_vm0, %v840_v6, %v842_v8 }
  0x33   : > { %v759_v3 = vsel %vm732_vm1, %v756_v36, %v758_v11  ;;  %v761_v13 = vsel %vm732_vm1, %v758_v11, %v760_v61  ;;  %13816 = vmatpush3.bf16.msra.mxu0 %v1014_v9  ;;  %v839_v17 = vsel %vm812_vm0, %v836_v35, %v838_v2  ;;  %v841_v23 = vsel %vm812_vm0, %v838_v2, %v840_v6 }
  0x34   : > { %14119 = vrot.lane.b32.xlu1 %v14118_v1, %s14658_s22  ;;  %v14123_v16 = vpack.i.bf16 %v761_v13, %v759_v3  ;;  %v14138_v26 = vpack.i.bf16 %v842_v8, %v843_v15  ;;  %v14133_v28 = vpack.i.bf16 %v841_v23, %v839_v17 }
  0x36   : > { %14114 = vrot.lane.b32.xlu0 %v14113_v12, %s14658_s22 }
  0x38   : > { %14129 = vrot.lane.b32.xlu1 %v14128_v14, %s14659_s23 }
  0x3a   : > { %14124 = vrot.lane.b32.xlu0 %v14123_v16, %s14659_s23 }
  0x3c   : > { %14139 = vrot.lane.b32.xlu1 %v14138_v26, %s14658_s22 }
  0x3e   : > { %14134 = vrot.lane.b32.xlu0 %v14133_v28, %s14658_s22 }
  0x92   : > { %v14075_v29 = vpop.permute.xlu1 %14074 }
  0x93   : > { %v14077_v30 = vunpack.i.h.bf16 %v14075_v29  ;;  %v14076_v31 = vunpack.i.l.bf16 %v14075_v29  ;;  %v14065_v32 = vpop.permute.xlu0 %14064 }
  0x94   : > { %v14067_v33 = vunpack.i.h.bf16 %v14065_v32  ;;  %v14066_v34 = vunpack.i.l.bf16 %v14065_v32 }
  0x96   : > { %v14080_v36 = vpop.permute.xlu1 %14079  ;;  %v893_v37 = vsel %vm892_vm3, %v14827_v19, %v14066_v34  ;;  %v894_v39 = vsel %vm892_vm3, %v14830_v20, %v14067_v33 }
  0x97   : > { %v14082_v40 = vunpack.i.h.bf16 %v14080_v36  ;;  %v14081_v35 = vunpack.i.l.bf16 %v14080_v36  ;;  %v14070_v41 = vpop.permute.xlu0 %14069  ;;  %v910_v42 = vsel %vm909_vm4, %v893_v37, %v14076_v31  ;;  %v911_v43 = vsel %vm909_vm4, %v894_v39, %v14077_v30 }
  0x98   : > { %v14072_v44 = vunpack.i.h.bf16 %v14070_v41  ;;  %v14071_v45 = vunpack.i.l.bf16 %v14070_v41  ;;  %v926_v46 = vpack.c.bf16 %v911_v43, %v910_v42 }
  0x9a   : > { %v896_v47 = vsel %vm892_vm3, %v14840_v24, %v14072_v44  ;;  %v895_v48 = vsel %vm892_vm3, %v14833_v21, %v14071_v45  ;;  %13817 = vmatprep.mubr.msk.bf16.mxu0 %vm985_vm5, %v926_v46  ;;  %v14090_v19 = vpop.permute.xlu1 %14089 }
  0x9b   : > { %v912_v20 = vsel %vm909_vm4, %v895_v48, %v14081_v35  ;;  %v913_v49 = vsel %vm909_vm4, %v896_v47, %v14082_v40  ;;  %v14092_v50 = vunpack.i.h.bf16 %v14090_v19  ;;  %v14091_v53 = vunpack.i.l.bf16 %v14090_v19 }
  0x9c   : > { %v14085_v54 = vpop.permute.xlu0 %14084  ;;  %v927_v57 = vpack.c.bf16 %v913_v49, %v912_v20 }
  0x9d   : > { %v14087_v59 = vunpack.i.h.bf16 %v14085_v54  ;;  %v14086_v60 = vunpack.i.l.bf16 %v14085_v54  ;;  %v900_v21 = vsel %vm892_vm3, %v14878_v55, %v14092_v50  ;;  %v899_v0 = vsel %vm892_vm3, %v14847_v27, %v14091_v53 }
  0x9e   : > { %13818 = vmatmul.mubr.msk.bf16.vlgmr.msra.gmra.mrb[0].mxu0 %vm985_vm5, %v927_v57  ;;  %v14100_v61 = vpop.permute.xlu1 %14099 }
  0x9f   : > { %v14102_v24 = vunpack.i.h.bf16 %v14100_v61  ;;  %v14101_v62 = vunpack.i.l.bf16 %v14100_v61  ;;  %v898_v10 = vsel %vm892_vm3, %v14894_v4, %v14087_v59  ;;  %v897_v11 = vsel %vm892_vm3, %v14843_v25, %v14086_v60 }
  0xa0   : > { %v14095_v5 = vpop.permute.xlu0 %14094 }
  0xa1   : > { %v916_v1 = vsel %vm909_vm4, %v899_v0, %v14101_v62  ;;  %v917_v6 = vsel %vm909_vm4, %v900_v21, %v14102_v24  ;;  %v14097_v8 = vunpack.i.h.bf16 %v14095_v5  ;;  %v14096_v9 = vunpack.i.l.bf16 %v14095_v5 }
  0xa2   : > { %v14110_v2 = vpop.permute.xlu1 %14109  ;;  %v929_v12 = vpack.c.bf16 %v917_v6, %v916_v1 }
  0xa3   : > { %v914_v55 = vsel %vm909_vm4, %v897_v11, %v14096_v9  ;;  %v915_v3 = vsel %vm909_vm4, %v898_v10, %v14097_v8  ;;  %v14112_v13 = vunpack.i.h.bf16 %v14110_v2  ;;  %v14111_v14 = vunpack.i.l.bf16 %v14110_v2 }
  0xa4   : > { %v928_v27 = vpack.c.bf16 %v915_v3, %v914_v55  ;;  %v14105_v15 = vpop.permute.xlu0 %14104 }
  0xa5   : > { %v14107_v16 = vunpack.i.h.bf16 %v14105_v15  ;;  %v14106_v17 = vunpack.i.l.bf16 %v14105_v15  ;;  %v904_v25 = vsel %vm892_vm3, %v14912_v18, %v14112_v13  ;;  %v903_v28 = vsel %vm892_vm3, %v14899_v7, %v14111_v14 }
  0xa6   : > { %13821 = vmatprep.mubr.msk.bf16.mxu0 %vm985_vm5, %v928_v27  ;;  %v14120_v23 = vpop.permute.xlu1 %14119 }
  0xa7   : > { %13822 = vmatmul.mubr.msk.bf16.gmra.mrb[4].mxu0 %vm985_vm5, %v929_v12  ;;  %v14122_v4 = vunpack.i.h.bf16 %v14120_v23  ;;  %v14121_v26 = vunpack.i.l.bf16 %v14120_v23  ;;  %v902_v34 = vsel %vm892_vm3, %v14930_v38, %v14107_v16  ;;  %v901_v36 = vsel %vm892_vm3, %v14881_v56, %v14106_v17 }
  0xa8   : > { %v14115_v29 = vpop.permute.xlu0 %14114 }
  0xa9   : > { %v920_v30 = vsel %vm909_vm4, %v903_v28, %v14121_v26  ;;  %v921_v31 = vsel %vm909_vm4, %v904_v25, %v14122_v4  ;;  %v14117_v32 = vunpack.i.h.bf16 %v14115_v29  ;;  %v14116_v33 = vunpack.i.l.bf16 %v14115_v29 }
  0xaa   : > { %v14130_v37 = vpop.permute.xlu1 %14129  ;;  %v931_v39 = vpack.c.bf16 %v921_v31, %v920_v30 }
  0xab   : > { %v918_v18 = vsel %vm909_vm4, %v901_v36, %v14116_v33  ;;  %v919_v40 = vsel %vm909_vm4, %v902_v34, %v14117_v32  ;;  %v14132_v35 = vunpack.i.h.bf16 %v14130_v37  ;;  %v14131_v41 = vunpack.i.l.bf16 %v14130_v37 }
  0xac   : > { %v930_v7 = vpack.c.bf16 %v919_v40, %v918_v18  ;;  %v14125_v42 = vpop.permute.xlu0 %14124 }
  0xad   : > { %v14127_v43 = vunpack.i.h.bf16 %v14125_v42  ;;  %v14126_v44 = vunpack.i.l.bf16 %v14125_v42  ;;  %v908_v56 = vsel %vm892_vm3, %v14952_v52, %v14132_v35  ;;  %v907_v47 = vsel %vm892_vm3, %v14949_v51, %v14131_v41  ;;  %v14199_v51 = vld [vmem:[%s19547_s13] sm:$0xff]  }
  0xae   : > { %13825 = vmatprep.mubr.msk.bf16.mxu0 %vm985_vm5, %v930_v7  ;;  %v14140_v45 = vpop.permute.xlu1 %14139  ;;  %13849 = vmatprep.mubr.msk.bf16.mxu1 %vm1244_vm6, %v14199_v51 }
  0xaf   : > { %13826 = vmatmul.mubr.msk.bf16.gmra.mrb[8].mxu0 %vm985_vm5, %v931_v39  ;;  %v14142_v38 = vunpack.i.h.bf16 %v14140_v45  ;;  %v14141_v46 = vunpack.i.l.bf16 %v14140_v45  ;;  %v906_v53 = vsel %vm892_vm3, %v14965_v63, %v14127_v43  ;;  %v905_v54 = vsel %vm892_vm3, %v14915_v22, %v14126_v44  ;;  %v15048_v22 = vld [vmem:[%s19570_s29] ss:$0 sm:$0xff] }
  0xb0   : > { %v14135_v48 = vpop.permute.xlu0 %14134 }
  0xb1   : > { %v924_v19 = vsel %vm909_vm4, %v907_v47, %v14141_v46  ;;  %v925_v20 = vsel %vm909_vm4, %v908_v56, %v14142_v38  ;;  %v14137_v49 = vunpack.i.h.bf16 %v14135_v48  ;;  %v14136_v50 = vunpack.i.l.bf16 %v14135_v48 }
  0xb2   : > { %v933_v57 = vpack.c.bf16 %v925_v20, %v924_v19 }
  0xb3   : > { %v922_v59 = vsel %vm909_vm4, %v905_v54, %v14136_v50  ;;  %v923_v52 = vsel %vm909_vm4, %v906_v53, %v14137_v49 }
  0xb4   : > { %v932_v60 = vpack.c.bf16 %v923_v52, %v922_v59 }
  0xb6   : > { %13829 = vmatprep.mubr.msk.bf16.mxu0 %vm985_vm5, %v932_v60 }
  0xb7   : > { %13830 = vmatmul.mubr.msk.bf16.gmra.mrb[12].mxu0 %vm985_vm5, %v933_v57 }
 0x171   : > { %v13819_v63 = vpop.f32.mrb[0].mxu0 }
 0x172   : > { %v1059_v61 = vadd.f32 %v13819_v63, %v15048_v22  ;;  %v1050_v24 = vpop.f32.mrb[1].mxu0 }
 0x173   : > { %v1051_v62 = vadd.f32 %v15048_v22, %v1050_v24  ;;  %v13820_v21 = vpop.f32.mrb[2].mxu0 }
 0x174   : > { %v1115_v0 = vmax.f32 %v1059_v61, 0.0  ;;  %v1062_v5 = vadd.f32 %v13820_v21, %v15048_v22  ;;  %v1053_v1 = vpop.f32.mrb[3].mxu0 }
 0x175   : > { %v1113_v6 = vmax.f32 %v1051_v62, 0.0  ;;  %v1054_v8 = vadd.f32 %v15048_v22, %v1053_v1 }
 0x176   : > { %v1116_v9 = vmax.f32 %v1062_v5, 0.0  ;;  %v1148_v11 = vrot.slane %v1115_v0, 1 }
 0x177   : > { %v1114_v10 = vmax.f32 %v1054_v8, 0.0  ;;  %v1145_v12 = vrot.slane %v1113_v6, 1 }
 0x178   : > { %v1150_v2 = vrot.slane %v1116_v9, 1 }
 0x179   : > { %v1146_v55 = vrot.slane %v1114_v10, 1 }
 0x17a   : > { %v13823_v3 = vpop.f32.mrb[4].mxu0  ;;  %v1151_v27 = vsel %vm732_vm1, %v1148_v11, %v1150_v2 }
 0x17b   : > { %v1149_v13 = vsel %vm732_vm1, %v1146_v55, %v1148_v11  ;;  %v1075_v14 = vadd.f32 %v13823_v3, %v15048_v22  ;;  %v1066_v15 = vpop.f32.mrb[5].mxu0  ;;  %v1147_v16 = vsel %vm732_vm1, %v1145_v12, %v1146_v55  ;;  %v1194_v17 = vmax.f32 %v1115_v0, %v1151_v27 }
 0x17c   : > { %v1193_v23 = vmax.f32 %v1114_v10, %v1149_v13  ;;  %v1067_v4 = vadd.f32 %v15048_v22, %v1066_v15  ;;  %v13824_v26 = vpop.f32.mrb[6].mxu0  ;;  %v1192_v25 = vmax.f32 %v1113_v6, %v1147_v16 }
 0x17d   : > { %v1119_v28 = vmax.f32 %v1075_v14, 0.0  ;;  %v1078_v29 = vadd.f32 %v13824_v26, %v15048_v22  ;;  %v1069_v30 = vpop.f32.mrb[7].mxu0 }
 0x17e   : > { %v1117_v31 = vmax.f32 %v1067_v4, 0.0  ;;  %v1070_v32 = vadd.f32 %v15048_v22, %v1069_v30  ;;  %v1216_v33 = vpack.c.bf16 %v1193_v23, %v1192_v25 }
 0x17f   : > { %v1120_v34 = vmax.f32 %v1078_v29, 0.0  ;;  %v1156_v39 = vrot.slane %v1119_v28, 1 }
 0x180   : > { %v1152_v36 = vrot.slane %v1117_v31, 1  ;;  %v1118_v37 = vmax.f32 %v1070_v32, 0.0  ;;  %13833 = vmatprep.subr.bf16.mxu1 %v1216_v33 }
 0x181   : > { %v1158_v18 = vrot.slane %v1120_v34, 1  ;;  %13834 = vmatpush3.bf16.msra.mxu1 %v1216_v33 }
 0x182   : > { %v1154_v40 = vrot.slane %v1118_v37, 1  ;;  %v13827_v7 = vpop.f32.mrb[8].mxu0  ;;  %v1153_v35 = vsel %vm732_vm1, %v1150_v2, %v1152_v36 }
 0x183   : > { %v1091_v41 = vadd.f32 %v13827_v7, %v15048_v22  ;;  %v1082_v42 = vpop.f32.mrb[9].mxu0  ;;  %v1195_v43 = vmax.f32 %v1116_v9, %v1153_v35  ;;  %v1159_v44 = vsel %vm732_vm1, %v1156_v39, %v1158_v18 }
 0x184   : > { %v1157_v45 = vsel %vm732_vm1, %v1154_v40, %v1156_v39  ;;  %v1083_v38 = vadd.f32 %v15048_v22, %v1082_v42  ;;  %v13828_v46 = vpop.f32.mrb[10].mxu0  ;;  %v1155_v56 = vsel %vm732_vm1, %v1152_v36, %v1154_v40  ;;  %v1198_v47 = vmax.f32 %v1119_v28, %v1159_v44  ;;  %v14200_v44 = vld [vmem:[%s19547_s13 + $0x8] sm:$0xff]  }
 0x185   : > { %v1197_v48 = vmax.f32 %v1118_v37, %v1157_v45  ;;  %v1123_v19 = vmax.f32 %v1091_v41, 0.0  ;;  %v1094_v20 = vadd.f32 %v13828_v46, %v15048_v22  ;;  %v1085_v49 = vpop.f32.mrb[11].mxu0  ;;  %v1217_v50 = vpack.c.bf16 %v1195_v43, %v1194_v17  ;;  %v14201_v45 = vld [vmem:[%s19547_s13 + $0x10] sm:$0xff]   ;;  %v14203_v46 = vld [vmem:[%s19571_s24] sm:$0xff]  }
 0x186   : > { %v1121_v53 = vmax.f32 %v1083_v38, 0.0  ;;  %v1086_v54 = vadd.f32 %v15048_v22, %v1085_v49  ;;  %v1196_v57 = vmax.f32 %v1117_v31, %v1155_v56  ;;  %v14661_v40 = vmov 65535   ;;  %v14202_v38 = vld [vmem:[%s19547_s13 + $0x18] sm:$0xff]   ;;  %v14204_v56 = vld [vmem:[%s19571_s24 + $0x8] sm:$0xff]   ;;  %13857 = vmatprep.subr.bf16.mxu0 %v14203_v46 }
 0x187   : > { %v1124_v59 = vmax.f32 %v1094_v20, 0.0  ;;  %13835 = vmatprep.subr.bf16.mxu1 %v1217_v50  ;;  %v1164_v63 = vrot.slane %v1123_v19, 1  ;;  %v1257_v7 = vsel %vm812_vm0, 4294967295, %v14661_v40  ;;  %13858 = vmatpush3.bf16.msra.mxu0 %v14203_v46 }
 0x188   : > { %v1160_v52 = vrot.slane %v1121_v53, 1  ;;  %v1122_v60 = vmax.f32 %v1086_v54, 0.0  ;;  %13836 = vmatpush3.bf16.msra.mxu1 %v1217_v50  ;;  %v1218_v51 = vpack.c.bf16 %v1197_v48, %v1196_v57  ;;  %v1258_v42 = vsel %vm732_vm1, %v1257_v7, 0  ;;  %13859 = vmatprep.subr.bf16.mxu0 %v14204_v56  ;;  %v14206_v48 = vld [vmem:[%s19571_s24 + $0x18] sm:$0xff]   ;;  %v14207_v50 = vld [vmem:[%s19571_s24 + $0x20] sm:$0xff]  }
 0x189   : > { %v1166_v61 = vrot.slane %v1124_v59, 1 }
 0x18a   : > { %v1162_v24 = vrot.slane %v1122_v60, 1  ;;  %13837 = vmatprep.subr.bf16.mxu1 %v1218_v51  ;;  %v13831_v62 = vpop.f32.mrb[12].mxu0  ;;  %v1161_v21 = vsel %vm732_vm1, %v1158_v18, %v1160_v52 }
 0x18b   : > { %v1107_v0 = vadd.f32 %v13831_v62, %v15048_v22  ;;  %v1098_v5 = vpop.f32.mrb[13].mxu0  ;;  %v1199_v1 = vmax.f32 %v1120_v34, %v1161_v21  ;;  %v1167_v6 = vsel %vm732_vm1, %v1164_v63, %v1166_v61  ;;  %13860 = vmatpush3.bf16.msra.mxu0 %v14204_v56 }
 0x18c   : > { %v1165_v8 = vsel %vm732_vm1, %v1162_v24, %v1164_v63  ;;  %v1099_v9 = vadd.f32 %v15048_v22, %v1098_v5  ;;  %v13832_v10 = vpop.f32.mrb[14].mxu0  ;;  %13838 = vmatpush3.bf16.msra.mxu1 %v1218_v51  ;;  %v1163_v11 = vsel %vm732_vm1, %v1160_v52, %v1162_v24  ;;  %v1202_v2 = vmax.f32 %v1123_v19, %v1167_v6  ;;  %v14208_v6 = vld [vmem:[%s19571_s24 + $0x28] sm:$0xff]  }
 0x18d   : > { %v1201_v12 = vmax.f32 %v1122_v60, %v1165_v8  ;;  %v1127_v55 = vmax.f32 %v1107_v0, 0.0  ;;  %v1110_v3 = vadd.f32 %v13832_v10, %v15048_v22  ;;  %v1101_v27 = vpop.f32.mrb[15].mxu0  ;;  %v1219_v13 = vpack.c.bf16 %v1199_v1, %v1198_v47  ;;  %v14205_v47 = vld [vmem:[%s19571_s24 + $0x10] sm:$0xff]  }
 0x18e   : > { %v1125_v14 = vmax.f32 %v1099_v9, 0.0  ;;  %v1102_v15 = vadd.f32 %v15048_v22, %v1101_v27  ;;  %v1200_v16 = vmax.f32 %v1121_v53, %v1163_v11  ;;  %13861 = vmatprep.subr.bf16.mxu0 %v14205_v47 }
 0x18f   : > { %v1128_v17 = vmax.f32 %v1110_v3, 0.0  ;;  %13839 = vmatprep.subr.bf16.mxu1 %v1219_v13  ;;  %v1172_v25 = vrot.slane %v1127_v55, 1  ;;  %13862 = vmatpush3.bf16.msra.mxu0 %v14205_v47 }
 0x190   : > { %v1168_v23 = vrot.slane %v1125_v14, 1  ;;  %v1126_v4 = vmax.f32 %v1102_v15, 0.0  ;;  %13840 = vmatpush3.bf16.msra.mxu1 %v1219_v13  ;;  %v1220_v26 = vpack.c.bf16 %v1201_v12, %v1200_v16  ;;  %13863 = vmatprep.subr.bf16.mxu0 %v14206_v48 }
 0x191   : > { %v1174_v28 = vrot.slane %v1128_v17, 1 }
 0x192   : > { %v1170_v29 = vrot.slane %v1126_v4, 1  ;;  %13841 = vmatprep.subr.bf16.mxu1 %v1220_v26  ;;  %v1169_v30 = vsel %vm732_vm1, %v1166_v61, %v1168_v23 }
 0x193   : > { %v1175_v31 = vsel %vm732_vm1, %v1172_v25, %v1174_v28  ;;  %v1207_v32 = vmax.f32 %v1128_v17, %v1174_v28  ;;  %v1203_v33 = vmax.f32 %v1124_v59, %v1169_v30  ;;  %13864 = vmatpush3.bf16.msra.mxu0 %v14206_v48 }
 0x194   : > { %v1206_v34 = vmax.f32 %v1127_v55, %v1175_v31  ;;  %v1173_v22 = vsel %vm732_vm1, %v1170_v29, %v1172_v25  ;;  %13842 = vmatpush3.bf16.msra.mxu1 %v1220_v26  ;;  %v1171_v36 = vsel %vm732_vm1, %v1168_v23, %v1170_v29  ;;  %13865 = vmatprep.subr.bf16.mxu0 %v14207_v50 }
 0x195   : > { %v1205_v37 = vmax.f32 %v1126_v4, %v1173_v22  ;;  %v1221_v39 = vpack.c.bf16 %v1203_v33, %v1202_v2  ;;  %v1204_v18 = vmax.f32 %v1125_v14, %v1171_v36 }
 0x196   : > { %v1223_v35 = vpack.c.bf16 %v1207_v32, %v1206_v34 }
 0x197   : > { %13843 = vmatprep.subr.bf16.mxu1 %v1221_v39  ;;  %v1222_v41 = vpack.c.bf16 %v1205_v37, %v1204_v18  ;;  %13866 = vmatpush3.bf16.msra.mxu0 %v14207_v50 }
 0x198   : > { %13844 = vmatpush3.bf16.msra.mxu1 %v1221_v39  ;;  %v1260_v43 = vand.u32 %v1258_v42, %v1223_v35  ;;  %13867 = vmatprep.subr.bf16.mxu0 %v14208_v6 }
 0x199   : > { %13845 = vmatprep.subr.bf16.mxu1 %v1222_v41 }
 0x19b   : > { %13868 = vmatpush3.bf16.msra.mxu0 %v14208_v6 }
 0x19c   : > { %13846 = vmatpush3.bf16.msra.mxu1 %v1222_v41 }
 0x19d   : > { %13847 = vmatprep.subr.bf16.mxu1 %v1260_v43 }
 0x1a0   : > { %13848 = vmatpush3.bf16.msra.mxu1 %v1260_v43 }
 0x1a3   : > { %13850 = vmatmul.mubr.msk.bf16.vlgmr.msra.gmra.mrb[0].mxu1 %vm1244_vm6, %v14200_v44 }
 0x1a4   : > { %13853 = vmatprep.mubr.msk.bf16.mxu1 %vm1244_vm6, %v14201_v45 }
 0x1ab   : > { %13854 = vmatmul.mubr.msk.bf16.gmra.mrb[4].mxu1 %vm1244_vm6, %v14202_v38 }
 0x276   : > { %v15108_v19 = vpop.f32.mrb[0].mxu1 }
 0x277   : > { %v15110_v20 = vpop.f32.mrb[1].mxu1  ;;  %v1338_v53 = vrot.slane %v15108_v19, 1  ;;  %v1377_v54 = vrot.slane %v15108_v19, 2 }
 0x278   : > { %v15112_v49 = vpop.f32.mrb[2].mxu1  ;;  %v1335_v60 = vrot.slane %v15110_v20, 1  ;;  %v1374_v51 = vrot.slane %v15110_v20, 2 }
 0x279   : > { %v1340_v57 = vrot.slane %v15112_v49, 1  ;;  %v1379_v59 = vrot.slane %v15112_v49, 2  ;;  %v15121_v52 = vpop.f32.mrb[3].mxu1 }
 0x27a   : > { %v1336_v63 = vrot.slane %v15121_v52, 1  ;;  %v1375_v61 = vrot.slane %v15121_v52, 2 }
 0x27b   : > { %v1341_v24 = vsel %vm732_vm1, %v1338_v53, %v1340_v57  ;;  %v1380_v62 = vsel %vm812_vm0, %v1377_v54, %v1379_v59 }
 0x27c   : > { %v1337_v21 = vsel %vm732_vm1, %v1335_v60, %v1336_v63  ;;  %v1339_v0 = vsel %vm732_vm1, %v1336_v63, %v1338_v53  ;;  %v1376_v5 = vsel %vm812_vm0, %v1374_v51, %v1375_v61  ;;  %v1378_v1 = vsel %vm812_vm0, %v1375_v61, %v1377_v54 }
 0x27d   : > { %v14143_v8 = vpack.i.bf16 %v1339_v0, %v1337_v21  ;;  %v14148_v9 = vpack.i.bf16 %v1378_v1, %v1376_v5 }
 0x27e   : > { %v15136_v10 = vpop.f32.mrb[4].mxu1 }
 0x27f   : > { %14144 = vrot.lane.b32.xlu0 %v14143_v8, %s14662_s2  ;;  %v15139_v11 = vpop.f32.mrb[5].mxu1  ;;  %v1346_v3 = vrot.slane %v15136_v10, 1  ;;  %v1385_v27 = vrot.slane %v15136_v10, 2 }
 0x280   : > { %v1342_v2 = vrot.slane %v15139_v11, 1  ;;  %v1381_v12 = vrot.slane %v15139_v11, 2  ;;  %v15143_v55 = vpop.f32.mrb[6].mxu1 }
 0x281   : > { %v1348_v13 = vrot.slane %v15143_v55, 1  ;;  %v1387_v14 = vrot.slane %v15143_v55, 2  ;;  %v1315_v15 = vpop.f32.mrb[7].mxu1 }
 0x282   : > { %v1344_v16 = vrot.slane %v1315_v15, 1  ;;  %v1383_v17 = vrot.slane %v1315_v15, 2  ;;  %v1343_v23 = vsel %vm732_vm1, %v1340_v57, %v1342_v2  ;;  %v1382_v4 = vsel %vm812_vm0, %v1379_v59, %v1381_v12 }
 0x283   : > { %14149 = vrot.lane.b32.xlu0 %v14148_v9, %s14663_s1  ;;  %v14153_v26 = vpack.i.bf16 %v1343_v23, %v1341_v24  ;;  %v14158_v25 = vpack.i.bf16 %v1382_v4, %v1380_v62  ;;  %v1349_v28 = vsel %vm732_vm1, %v1346_v3, %v1348_v13  ;;  %v1388_v29 = vsel %vm812_vm0, %v1385_v27, %v1387_v14 }
 0x284   : > { %v1345_v30 = vsel %vm732_vm1, %v1342_v2, %v1344_v16  ;;  %v1347_v31 = vsel %vm732_vm1, %v1344_v16, %v1346_v3  ;;  %v1384_v32 = vsel %vm812_vm0, %v1381_v12, %v1383_v17  ;;  %v1386_v33 = vsel %vm812_vm0, %v1383_v17, %v1385_v27  ;;  %v14209_v16 = vld [vmem:[%s19548_s14] sm:$0xff]  }
 0x285   : > { %14154 = vrot.lane.b32.xlu1 %v14153_v26, %s14662_s2  ;;  %v14168_v34 = vpack.i.bf16 %v1347_v31, %v1345_v30  ;;  %v14173_v22 = vpack.i.bf16 %v1386_v33, %v1384_v32  ;;  %v14163_v36 = vpack.i.bf16 %v1348_v13, %v1349_v28  ;;  %v14178_v37 = vpack.i.bf16 %v1387_v14, %v1388_v29 }
 0x286   : > { %13885 = vmatprep.mubr.msk.bf16.mxu1 %vm1633_vm10, %v14209_v16  ;;  %v14218_v16 = vld [vmem:[%s19541_s7 + $0x38] sm:$0xff]  }
 0x287   : > { %14169 = vrot.lane.b32.xlu0 %v14168_v34, %s14662_s2 }
 0x289   : > { %14159 = vrot.lane.b32.xlu1 %v14158_v25, %s14663_s1 }
 0x28b   : > { %14174 = vrot.lane.b32.xlu0 %v14173_v22, %s14663_s1 }
 0x28d   : > { %14164 = vrot.lane.b32.xlu1 %v14163_v36, %s14662_s2 }
 0x291   : > { %14179 = vrot.lane.b32.xlu1 %v14178_v37, %s14663_s1 }
 0x2f1   : > { %v14145_v39 = vpop.permute.xlu0 %14144 }
 0x2f2   : > { %v14147_v18 = vunpack.i.h.bf16 %v14145_v39  ;;  %v14146_v7 = vunpack.i.l.bf16 %v14145_v39 }
 0x2f4   : > { %v1415_v43 = vsel %vm1413_vm7, %v15121_v52, %v14147_v18  ;;  %v1414_v44 = vsel %vm1413_vm7, %v15110_v20, %v14146_v7 }
 0x2f5   : > { %v14150_v35 = vpop.permute.xlu0 %14149 }
 0x2f6   : > { %v14152_v41 = vunpack.i.h.bf16 %v14150_v35  ;;  %v14151_v42 = vunpack.i.l.bf16 %v14150_v35 }
 0x2f7   : > { %v14155_v45 = vpop.permute.xlu1 %14154 }
 0x2f8   : > { %v1423_v38 = vsel %vm1422_vm8, %v1414_v44, %v14151_v42  ;;  %v1424_v46 = vsel %vm1422_vm8, %v1415_v43, %v14152_v41  ;;  %v14157_v47 = vunpack.i.h.bf16 %v14155_v45  ;;  %v14156_v48 = vunpack.i.l.bf16 %v14155_v45 }
 0x2f9   : > { %v1431_v56 = vpack.c.bf16 %v1424_v46, %v1423_v38  ;;  %v14170_v50 = vpop.permute.xlu0 %14169 }
 0x2fa   : > { %v14172_v53 = vunpack.i.h.bf16 %v14170_v50  ;;  %v14171_v54 = vunpack.i.l.bf16 %v14170_v50  ;;  %v1417_v20 = vsel %vm1413_vm7, %v15112_v49, %v14157_v47  ;;  %v1416_v60 = vsel %vm1413_vm7, %v15108_v19, %v14156_v48 }
 0x2fb   : > { %13869 = vmatprep.mubr.msk.bf16.mxu0 %vm1490_vm9, %v1431_v56  ;;  %v14160_v57 = vpop.permute.xlu1 %14159 }
 0x2fc   : > { %v14162_v59 = vunpack.i.h.bf16 %v14160_v57  ;;  %v14161_v52 = vunpack.i.l.bf16 %v14160_v57  ;;  %v1419_v21 = vsel %vm1413_vm7, %v1315_v15, %v14172_v53  ;;  %v1418_v0 = vsel %vm1413_vm7, %v15139_v11, %v14171_v54 }
 0x2fd   : > { %v14175_v51 = vpop.permute.xlu0 %14174 }
 0x2fe   : > { %v1425_v63 = vsel %vm1422_vm8, %v1416_v60, %v14161_v52  ;;  %v1426_v61 = vsel %vm1422_vm8, %v1417_v20, %v14162_v59  ;;  %v14177_v24 = vunpack.i.h.bf16 %v14175_v51  ;;  %v14176_v62 = vunpack.i.l.bf16 %v14175_v51 }
 0x2ff   : > { %v1432_v5 = vpack.c.bf16 %v1426_v61, %v1425_v63  ;;  %v14165_v1 = vpop.permute.xlu1 %14164 }
 0x300   : > { %v1427_v6 = vsel %vm1422_vm8, %v1418_v0, %v14176_v62  ;;  %v1428_v49 = vsel %vm1422_vm8, %v1419_v21, %v14177_v24  ;;  %v14167_v19 = vunpack.i.h.bf16 %v14165_v1  ;;  %v14166_v9 = vunpack.i.l.bf16 %v14165_v1 }
 0x301   : > { %v1433_v8 = vpack.c.bf16 %v1428_v49, %v1427_v6  ;;  %13870 = vmatmul.mubr.msk.bf16.vlgmr.msra.gmra.mrb[16].mxu0 %vm1490_vm9, %v1432_v5 }
 0x302   : > { %v1421_v27 = vsel %vm1413_vm7, %v15143_v55, %v14167_v19  ;;  %v1420_v11 = vsel %vm1413_vm7, %v15136_v10, %v14166_v9  ;;  %v12308_v55 = vld [vmem:[%s19540_s6] ss:$0 sm:$0xff] }
 0x303   : > { %v14180_v2 = vpop.permute.xlu1 %14179  ;;  %13873 = vmatprep.mubr.msk.bf16.mxu0 %vm1490_vm9, %v1433_v8 }
 0x304   : > { %v14182_v12 = vunpack.i.h.bf16 %v14180_v2  ;;  %v14181_v3 = vunpack.i.l.bf16 %v14180_v2  ;;  %v14210_v2 = vld [vmem:[%s19548_s14 + $0x8] sm:$0x7f]  }
 0x306   : > { %v1429_v13 = vsel %vm1422_vm8, %v1420_v11, %v14181_v3  ;;  %v1430_v14 = vsel %vm1422_vm8, %v1421_v27, %v14182_v12  ;;  %v14211_v12 = vld [vmem:[%s19541_s7] sm:$0xff]   ;;  %v14212_v3 = vld [vmem:[%s19541_s7 + $0x8] sm:$0xff]   ;;  %v14213_v27 = vld [vmem:[%s19541_s7 + $0x10] sm:$0xff]  }
 0x307   : > { %v1434_v15 = vpack.c.bf16 %v1430_v14, %v1429_v13  ;;  %v14214_v11 = vld [vmem:[%s19541_s7 + $0x18] sm:$0xff]   ;;  %v14215_v13 = vld [vmem:[%s19541_s7 + $0x20] sm:$0xff]   ;;  %v14216_v14 = vld [vmem:[%s19541_s7 + $0x28] sm:$0xff]  }
 0x309   : > { %13874 = vmatmul.mubr.msk.bf16.gmra.mrb[20].mxu0 %vm1490_vm9, %v1434_v15  ;;  %v14217_v15 = vld [vmem:[%s19541_s7 + $0x30] sm:$0xff]  }
 0x3d4   : > { %v13871_v17 = vpop.f32.mrb[16].mxu0 }
 0x3d5   : > { %v1546_v10 = vadd.f32 %v13871_v17, %v12308_v55  ;;  %v1537_v23 = vpop.f32.mrb[17].mxu0  ;;  %v14220_v17 = vld [vmem:[%s19541_s7 + $0x48] sm:$0xff]  }
 0x3d6   : > { %v1538_v4 = vadd.f32 %v12308_v55, %v1537_v23  ;;  %v13872_v26 = vpop.f32.mrb[18].mxu0  ;;  %v14222_v23 = vld [vmem:[%s19541_s7 + $0x58] sm:$0xff]  }
 0x3d7   : > { %v1570_v25 = vmax.f32 %v1546_v10, 0.0  ;;  %v1549_v28 = vadd.f32 %v13872_v26, %v12308_v55  ;;  %v1540_v29 = vpop.f32.mrb[19].mxu0  ;;  %v14221_v10 = vld [vmem:[%s19541_s7 + $0x50] sm:$0xff]  }
 0x3d8   : > { %v1568_v30 = vmax.f32 %v1538_v4, 0.0  ;;  %v1541_v31 = vadd.f32 %v12308_v55, %v1540_v29 }
 0x3d9   : > { %v1571_v32 = vmax.f32 %v1549_v28, 0.0  ;;  %v1587_v34 = vrot.slane %v1570_v25, 1 }
 0x3da   : > { %v1569_v33 = vmax.f32 %v1541_v31, 0.0  ;;  %v1584_v36 = vrot.slane %v1568_v30, 1 }
 0x3db   : > { %v1589_v22 = vrot.slane %v1571_v32, 1 }
 0x3dc   : > { %v1585_v37 = vrot.slane %v1569_v33, 1  ;;  %v13875_v39 = vpop.f32.mrb[20].mxu0 }
 0x3dd   : > { %v1562_v18 = vadd.f32 %v13875_v39, %v12308_v55  ;;  %v1553_v7 = vpop.f32.mrb[21].mxu0  ;;  %v1590_v35 = vsel %vm732_vm1, %v1587_v34, %v1589_v22 }
 0x3de   : > { %v1588_v41 = vsel %vm732_vm1, %v1585_v37, %v1587_v34  ;;  %v1554_v42 = vadd.f32 %v12308_v55, %v1553_v7  ;;  %v13876_v43 = vpop.f32.mrb[22].mxu0  ;;  %v1586_v44 = vsel %vm732_vm1, %v1584_v36, %v1585_v37  ;;  %v1609_v45 = vmax.f32 %v1570_v25, %v1590_v35 }
 0x3df   : > { %v1608_v38 = vmax.f32 %v1569_v33, %v1588_v41  ;;  %v1574_v46 = vmax.f32 %v1562_v18, 0.0  ;;  %v1565_v56 = vadd.f32 %v13876_v43, %v12308_v55  ;;  %v1556_v47 = vpop.f32.mrb[23].mxu0  ;;  %v1607_v48 = vmax.f32 %v1568_v30, %v1586_v44 }
 0x3e0   : > { %v1572_v50 = vmax.f32 %v1554_v42, 0.0  ;;  %v1557_v53 = vadd.f32 %v12308_v55, %v1556_v47  ;;  %v14219_v55 = vld [vmem:[%s19541_s7 + $0x40] sm:$0xff]  }
 0x3e1   : > { %v1575_v54 = vmax.f32 %v1565_v56, 0.0  ;;  %v1619_v57 = vpack.c.bf16 %v1608_v38, %v1607_v48  ;;  %v1595_v20 = vrot.slane %v1574_v46, 1 }
 0x3e2   : > { %v1591_v59 = vrot.slane %v1572_v50, 1  ;;  %v1573_v52 = vmax.f32 %v1557_v53, 0.0 }
 0x3e3   : > { %v1597_v60 = vrot.slane %v1575_v54, 1  ;;  %13877 = vmatprep.subr.bf16.mxu1 %v1619_v57 }
 0x3e4   : > { %v1593_v51 = vrot.slane %v1573_v52, 1  ;;  %13878 = vmatpush3.bf16.msra.mxu1 %v1619_v57  ;;  %v1592_v63 = vsel %vm732_vm1, %v1589_v22, %v1591_v59 }
 0x3e5   : > { %v1598_v61 = vsel %vm732_vm1, %v1595_v20, %v1597_v60  ;;  %v1614_v24 = vmax.f32 %v1575_v54, %v1597_v60  ;;  %v1610_v62 = vmax.f32 %v1571_v32, %v1592_v63  ;;  %v14664_v60 = vmov 0.0  }
 0x3e6   : > { %v1613_v21 = vmax.f32 %v1574_v46, %v1598_v61  ;;  %v1596_v0 = vsel %vm732_vm1, %v1593_v51, %v1595_v20  ;;  %v1594_v5 = vsel %vm732_vm1, %v1591_v59, %v1593_v51  ;;  %13889 = vmatprep.subr.bf16.mxu0 %v14664_v60  ;;  %13893 = vmatprep.mubr.msk.bf16.mxu0 %vm14665_vm11, %v14664_v60  ;;  %v12323_v51 = vld [vmem:[%s19542_s8] ss:$0 sm:$0xff] }
 0x3e7   : > { %v1612_v1 = vmax.f32 %v1573_v52, %v1596_v0  ;;  %v1620_v6 = vpack.c.bf16 %v1610_v62, %v1609_v45  ;;  %v1611_v49 = vmax.f32 %v1572_v50, %v1594_v5 }
 0x3e8   : > { %v1622_v8 = vpack.c.bf16 %v1614_v24, %v1613_v21 }
 0x3e9   : > { %13879 = vmatprep.subr.bf16.mxu1 %v1620_v6  ;;  %v1621_v19 = vpack.c.bf16 %v1612_v1, %v1611_v49 }
 0x3ea   : > { %13880 = vmatpush3.bf16.msra.mxu1 %v1620_v6  ;;  %v1641_v9 = vsel %vm812_vm0, %v1622_v8, 0 }
 0x3eb   : > { %13881 = vmatprep.subr.bf16.mxu1 %v1621_v19 }
 0x3ee   : > { %13882 = vmatpush3.bf16.msra.mxu1 %v1621_v19 }
 0x3ef   : > { %14045 = vmatprep.subr.msk.bf16.mxu1 %vm812_vm0, %v1622_v8 }
 0x3f2   : > { %13884 = vmatpush3.bf16.msra.mxu1 %v1641_v9 }
 0x3f3   : > { %1843 = vmatprep.subr.bf16.mxu1 %v14660_v58 }
 0x3f5   : > { %13886 = vmatmul.mubr.msk.bf16.vlgmr.msra.gmra.mrb[8].mxu1 %vm1633_vm10, %v14210_v2 }
 0x3f6   : > { %1844 = vmatpush1.bf16.msra.mxu1 %v14211_v12 }
 0x3f7   : > { %1845 = vmatprep.subr.bf16.mxu1 %v14660_v58 }
 0x3fa   : > { %1846 = vmatpush1.bf16.msra.mxu1 %v14212_v3 }
 0x3fb   : > { %1847 = vmatprep.subr.bf16.mxu1 %v14660_v58 }
 0x3fe   : > { %1848 = vmatpush1.bf16.msra.mxu1 %v14213_v27 }
 0x3ff   : > { %1849 = vmatprep.subr.bf16.mxu1 %v14660_v58 }
 0x402   : > { %1850 = vmatpush1.bf16.msra.mxu1 %v14214_v11 }
 0x403   : > { %1851 = vmatprep.subr.bf16.mxu1 %v14660_v58 }
 0x406   : > { %1852 = vmatpush1.bf16.msra.mxu1 %v14215_v13 }
 0x407   : > { %1853 = vmatprep.subr.bf16.mxu1 %v14660_v58 }
 0x40a   : > { %1854 = vmatpush1.bf16.msra.mxu1 %v14216_v14 }
 0x40b   : > { %1855 = vmatprep.subr.bf16.mxu1 %v14660_v58 }
 0x40e   : > { %1856 = vmatpush1.bf16.msra.mxu1 %v14217_v15 }
 0x40f   : > { %1857 = vmatprep.subr.bf16.mxu1 %v14660_v58 }
 0x412   : > { %1858 = vmatpush1.bf16.msra.mxu1 %v14218_v16 }
 0x413   : > { %1859 = vmatprep.subr.bf16.mxu1 %v14660_v58 }
 0x416   : > { %1860 = vmatpush1.bf16.msra.mxu1 %v14219_v55 }
 0x417   : > { %1861 = vmatprep.subr.bf16.mxu1 %v14660_v58 }
 0x41a   : > { %1862 = vmatpush1.bf16.msra.mxu1 %v14220_v17  ;;  %v1928_v17 = vsel %vm1927_vm12, 4294967295, %v14661_v40  ;;  %v14223_v40 = vld [vmem:[%s19549_s15] sm:$0x7f]  }
 0x41b   : > { %1863 = vmatprep.subr.bf16.mxu1 %v14660_v58 }
 0x41e   : > { %1864 = vmatpush1.bf16.msra.mxu1 %v14221_v10 }
 0x41f   : > { %1865 = vmatprep.subr.bf16.mxu1 %v14660_v58 }
 0x422   : > { %1866 = vmatpush1.bf16.msra.mxu1 %v14222_v23 }
 0x4c8   : > { %v13887_v4 = vpop.f32.mrb[8].mxu1 }
 0x4c9   : > { %v1677_v26 = vpop.f32.mrb[9].mxu1  ;;  %v1699_v28 = vrot.slane %v13887_v4, 1  ;;  %v1718_v29 = vrot.slane %v13887_v4, 2 }
 0x4ca   : > { %v13888_v25 = vpop.f32.mrb[10].mxu1  ;;  %v1715_v33 = vrot.slane %v1677_v26, 2  ;;  %v1696_v36 = vrot.slane %v1677_v26, 1 }
 0x4cb   : > { %v1701_v30 = vrot.slane %v13888_v25, 1  ;;  %v1720_v31 = vrot.slane %v13888_v25, 2  ;;  %v1680_v32 = vpop.f32.mrb[11].mxu1 }
 0x4cc   : > { %v1697_v34 = vrot.slane %v1680_v32, 1  ;;  %v1716_v22 = vrot.slane %v1680_v32, 2 }
 0x4cd   : > { %v1721_v37 = vsel %vm812_vm0, %v1718_v29, %v1720_v31  ;;  %v1702_v39 = vsel %vm732_vm1, %v1699_v28, %v1701_v30 }
 0x4ce   : > { %v1733_v18 = vpack.c.bf16 %v1720_v31, %v1721_v37  ;;  %v1717_v7 = vsel %vm812_vm0, %v1715_v33, %v1716_v22  ;;  %v1719_v35 = vsel %vm812_vm0, %v1716_v22, %v1718_v29  ;;  %v14188_v41 = vpack.i.bf16 %v1701_v30, %v1702_v39  ;;  %v14226_v30 = vld [vmem:[%s19543_s9 + $0x4] ss:$8 sps:$4 sm:$0xff]   ;;  %v14229_v33 = vld [vmem:[%s19543_s9 + $0x14] ss:$8 sps:$4 sm:$0xff]   ;;  %v14233_v39 = vld [vmem:[%s19543_s9 + $0x30] ss:$8 sps:$4 sm:$0xff]  }
 0x4cf   : > { %v1731_v42 = vpack.c.bf16 %v1719_v35, %v1717_v7  ;;  %v1698_v43 = vsel %vm732_vm1, %v1696_v36, %v1697_v34  ;;  %v1700_v44 = vsel %vm732_vm1, %v1697_v34, %v1699_v28  ;;  %v15282_v28 = vsel %vm812_vm0, %v1928_v17, 0  ;;  %v14227_v34 = vld [vmem:[%s19543_s9 + $0x10] ss:$8 sps:$4 sm:$0xff]   ;;  %v14232_v22 = vld [vmem:[%s19543_s9 + $0x24] ss:$8 sps:$4 sm:$0xff]  }
 0x4d0   : > { %14189 = vrot.lane.b32.xlu1 %v14188_v41, %s14663_s1  ;;  %v14183_v45 = vpack.i.bf16 %v1700_v44, %v1698_v43  ;;  %v14230_v36 = vld [vmem:[%s19543_s9 + $0x20] ss:$8 sps:$4 sm:$0xff]   ;;  %v14235_v37 = vld [vmem:[%s19543_s9 + $0x34] ss:$8 sps:$4 sm:$0xff]   ;;  %v14239_v41 = vld [vmem:[%s19543_s9 + $0x50] ss:$8 sps:$4 sm:$0xff]  }
 0x4d1   : > { %12336 = vmatprep.mubr.msk.bf16.mxu1 %vm1422_vm8, %v1731_v42  ;;  %v14236_v7 = vld [vmem:[%s19543_s9 + $0x40] ss:$8 sps:$4 sm:$0xff]   ;;  %v14241_v35 = vld [vmem:[%s19543_s9 + $0x54] ss:$8 sps:$4 sm:$0xff]   ;;  %v14244_v42 = vld [vmem:[%s19543_s9 + $0x64] ss:$8 sps:$4 sm:$0xff]  }
 0x4d2   : > { %14184 = vrot.lane.b32.xlu0 %v14183_v45, %s14663_s1  ;;  %v14242_v43 = vld [vmem:[%s19543_s9 + $0x60] ss:$8 sps:$4 sm:$0xff]   ;;  %v14247_v44 = vld [vmem:[%s19543_s9 + $0x74] ss:$8 sps:$4 sm:$0xff]   ;;  %v14245_v45 = vld [vmem:[%s19543_s9 + $0x70] ss:$8 sps:$4 sm:$0xff]  }
 0x4d3   : > { %v14284_v17 = vld [vmem:[%s19543_s9 + $0x140] ss:$8 sps:$4 sm:$0xff]  }
 0x542   : > { %v14190_v38 = vpop.permute.xlu1 %14189 }
 0x543   : > { %v14192_v46 = vunpack.i.h.bf16 %v14190_v38  ;;  %v14191_v56 = vunpack.i.l.bf16 %v14190_v38  ;;  %v14250_v38 = vld [vmem:[%s19543_s9 + $0x84] ss:$8 sps:$4 sm:$0xff]  }
 0x544   : > { %v14185_v47 = vpop.permute.xlu0 %14184 }
 0x545   : > { %v14187_v48 = vunpack.i.h.bf16 %v14185_v47  ;;  %v14186_v50 = vunpack.i.l.bf16 %v14185_v47  ;;  %v1728_v53 = vsel %vm1422_vm8, %v13887_v4, %v14191_v56  ;;  %v1729_v54 = vsel %vm1422_vm8, %v13888_v25, %v14192_v46  ;;  %v14248_v46 = vld [vmem:[%s19543_s9 + $0x80] ss:$8 sps:$4 sm:$0xff]   ;;  %v14253_v56 = vld [vmem:[%s19543_s9 + $0x94] ss:$8 sps:$4 sm:$0xff]   ;;  %v14251_v47 = vld [vmem:[%s19543_s9 + $0x90] ss:$8 sps:$4 sm:$0xff]  }
 0x546   : > { %v1732_v57 = vpack.c.bf16 %v1729_v54, %v1728_v53  ;;  %v14259_v53 = vld [vmem:[%s19543_s9 + $0xb4] ss:$8 sps:$4 sm:$0xff]   ;;  %v14257_v54 = vld [vmem:[%s19543_s9 + $0xb0] ss:$8 sps:$4 sm:$0xff]  }
 0x547   : > { %v1727_v59 = vsel %vm1422_vm8, %v1680_v32, %v14187_v48  ;;  %v1726_v52 = vsel %vm1422_vm8, %v1677_v26, %v14186_v50  ;;  %v14224_v32 = vld [vmem:[%s19543_s9] ss:$8 sps:$4 sm:$0xff]   ;;  %v14256_v48 = vld [vmem:[%s19543_s9 + $0xa4] ss:$8 sps:$4 sm:$0xff]  }
 0x548   : > { %v1730_v20 = vpack.c.bf16 %v1727_v59, %v1726_v52  ;;  %v14254_v50 = vld [vmem:[%s19543_s9 + $0xa0] ss:$8 sps:$4 sm:$0xff]   ;;  %v14265_v52 = vld [vmem:[%s19543_s9 + $0xd4] ss:$8 sps:$4 sm:$0xff]  }
 0x549   : > { %v14260_v59 = vld [vmem:[%s19543_s9 + $0xc0] ss:$8 sps:$4 sm:$0xff]  }
 0x54a   : > { %1876 = vmatmul.mubr.bf16.vlgmr.msra.gmra.mrb[12].mxu1 %v1730_v20  ;;  %v14263_v20 = vld [vmem:[%s19543_s9 + $0xd0] ss:$8 sps:$4 sm:$0xff]  }
 0x54b   : > { %12337 = vmatprep.mubr.msk.bf16.mxu1 %vm1422_vm8, %v1733_v18  ;;  %v14238_v18 = vld [vmem:[%s19543_s9 + $0x44] ss:$8 sps:$4 sm:$0xff]  }
 0x552   : > { %1884 = vmatmul.mubr.bf16.gmra.mrb[16].mxu1 %v1732_v57  ;;  %v14262_v57 = vld [vmem:[%s19543_s9 + $0xc4] ss:$8 sps:$4 sm:$0xff]  }
 0x553   : > { %2442 = vmatprep.mubr.bf16.mxu1 %v14660_v58 }
 0x61d   : > { %v1877_v63 = vpop.f32.mrb[12].mxu1 }
 0x61e   : > { %v1878_v61 = vadd.f32 %v12323_v51, %v1877_v63  ;;  %v1879_v24 = vpop.f32.mrb[13].mxu1  ;;  %v14271_v63 = vld [vmem:[%s19543_s9 + $0xf4] ss:$8 sps:$4 sm:$0xff]  }
 0x61f   : > { %v1880_v62 = vpop.f32.mrb[14].mxu1  ;;  %v14274_v24 = vld [vmem:[%s19543_s9 + $0x104] ss:$8 sps:$4 sm:$0xff]  }
 0x620   : > { %v1892_v21 = vmax.f32 %v1878_v61, 0.0  ;;  %v1881_v0 = vadd.f32 %v12323_v51, %v1880_v62  ;;  %v1882_v5 = vpop.f32.mrb[15].mxu1  ;;  %v14269_v61 = vld [vmem:[%s19543_s9 + $0xf0] ss:$8 sps:$4 sm:$0xff]  }
 0x622   : > { %v1893_v1 = vmax.f32 %v1881_v0, 0.0  ;;  %v1900_v6 = vrot.slane %v1892_v21, 1 }
 0x624   : > { %v1901_v49 = vrot.slane %v1893_v1, 1 }
 0x625   : > { %v1885_v8 = vpop.f32.mrb[16].mxu1 }
 0x626   : > { %v1902_v19 = vsel %vm732_vm1, %v1900_v6, %v1901_v49  ;;  %v1886_v9 = vadd.f32 %v12323_v51, %v1885_v8  ;;  %v1887_v2 = vpop.f32.mrb[17].mxu1 }
 0x627   : > { %v1911_v12 = vmax.f32 %v1892_v21, %v1902_v19  ;;  %v1888_v3 = vpop.f32.mrb[18].mxu1 }
 0x628   : > { %v1894_v27 = vmax.f32 %v1886_v9, 0.0  ;;  %v1889_v11 = vadd.f32 %v12323_v51, %v1888_v3  ;;  %v1890_v13 = vpop.f32.mrb[19].mxu1  ;;  %v14266_v51 = vld [vmem:[%s19543_s9 + $0xe0] ss:$8 sps:$4 sm:$0xff]  }
 0x629   : > { %v14275_v13 = vld [vmem:[%s19543_s9 + $0x110] ss:$8 sps:$4 sm:$0xff]  }
 0x62a   : > { %v1903_v14 = vrot.slane %v1894_v27, 1  ;;  %v1895_v15 = vmax.f32 %v1889_v11, 0.0  ;;  %v14277_v11 = vld [vmem:[%s19543_s9 + $0x114] ss:$8 sps:$4 sm:$0xff]  }
 0x62c   : > { %v1904_v16 = vsel %vm732_vm1, %v1901_v49, %v1903_v14  ;;  %v1905_v55 = vrot.slane %v1895_v15, 1 }
 0x62d   : > { %v1912_v10 = vmax.f32 %v1893_v1, %v1904_v16  ;;  %v14283_v16 = vld [vmem:[%s19543_s9 + $0x134] ss:$8 sps:$4 sm:$0xff]  }
 0x62e   : > { %v1906_v23 = vsel %vm732_vm1, %v1903_v14, %v1905_v55  ;;  %v1914_v4 = vmax.f32 %v1895_v15, %v1905_v55  ;;  %v14280_v14 = vld [vmem:[%s19543_s9 + $0x124] ss:$8 sps:$4 sm:$0xff]   ;;  %v14278_v15 = vld [vmem:[%s19543_s9 + $0x120] ss:$8 sps:$4 sm:$0xff]  }
 0x62f   : > { %v1913_v26 = vmax.f32 %v1894_v27, %v1906_v23  ;;  %v1917_v25 = vpack.c.bf16 %v1912_v10, %v1911_v12  ;;  %v14272_v27 = vld [vmem:[%s19543_s9 + $0x100] ss:$8 sps:$4 sm:$0xff]   ;;  %v14286_v55 = vld [vmem:[%s19543_s9 + $0x144] ss:$8 sps:$4 sm:$0xff]   ;;  %v14289_v10 = vld [vmem:[%s19543_s9 + $0x154] ss:$8 sps:$4 sm:$0xff]  }
 0x630   : > { %v14287_v23 = vld [vmem:[%s19543_s9 + $0x150] ss:$8 sps:$4 sm:$0xff]  }
 0x631   : > { %v1918_v29 = vpack.c.bf16 %v1914_v4, %v1913_v26  ;;  %13890 = vmatpush3.bf16.msra.mxu0 %v1917_v25  ;;  %v14292_v4 = vld [vmem:[%s19543_s9 + $0x164] ss:$8 sps:$4 sm:$0xff]   ;;  %v14290_v26 = vld [vmem:[%s19543_s9 + $0x160] ss:$8 sps:$4 sm:$0xff]   ;;  %v14295_v25 = vld [vmem:[%s19543_s9 + $0x174] ss:$8 sps:$4 sm:$0xff]  }
 0x632   : > { %13891 = vmatprep.subr.bf16.mxu0 %v14664_v60  ;;  %v14268_v60 = vld [vmem:[%s19543_s9 + $0xe4] ss:$8 sps:$4 sm:$0xff]  }
 0x633   : > { %v1931_v31 = vand.u32 %v15282_v28, %v1918_v29  ;;  %v14293_v29 = vld [vmem:[%s19543_s9 + $0x170] ss:$8 sps:$4 sm:$0xff]  }
 0x635   : > { %13892 = vmatpush3.bf16.msra.mxu0 %v1931_v31  ;;  %v14301_v31 = vld [vmem:[%s19545_s11 + $0xc] ss:$16 sps:$4 sm:$0xff]  }
 0x636   : > { %2289 = vmatprep.subr.bf16.mxu0 %v14226_v30  ;;  %v14299_v30 = vld [vmem:[%s19545_s11 + $0x8] ss:$16 sps:$4 sm:$0xff]  }
 0x638   : > { %13894 = vmatmul.mubr.msk.bf16.vlgmr.msra.gmra.mrb[24].mxu0 %vm892_vm3, %v14223_v40  ;;  %v14307_v40 = vld [vmem:[%s19545_s11 + $0x2c] ss:$16 sps:$4 sm:$0xff]  }
 0x639   : > { %2290 = vmatpush1.bf16.msra.mxu0 %v14224_v32  ;;  %v14305_v32 = vld [vmem:[%s19545_s11 + $0x28] ss:$16 sps:$4 sm:$0xff]  }
 0x63a   : > { %2291 = vmatprep.subr.bf16.mxu0 %v14229_v33  ;;  %v14313_v33 = vld [vmem:[%s19545_s11 + $0x4c] ss:$16 sps:$4 sm:$0xff]  }
 0x63d   : > { %2292 = vmatpush1.bf16.msra.mxu0 %v14227_v34  ;;  %v14311_v34 = vld [vmem:[%s19545_s11 + $0x48] ss:$16 sps:$4 sm:$0xff]  }
 0x63e   : > { %2293 = vmatprep.subr.bf16.mxu0 %v14232_v22  ;;  %v14319_v22 = vld [vmem:[%s19545_s11 + $0x6c] ss:$16 sps:$4 sm:$0xff]  }
 0x641   : > { %2294 = vmatpush1.bf16.msra.mxu0 %v14230_v36  ;;  %v14317_v36 = vld [vmem:[%s19545_s11 + $0x68] ss:$16 sps:$4 sm:$0xff]  }
 0x642   : > { %2295 = vmatprep.subr.bf16.mxu0 %v14235_v37  ;;  %v14325_v37 = vld [vmem:[%s19545_s11 + $0x8c] ss:$16 sps:$4 sm:$0xff]  }
 0x645   : > { %2296 = vmatpush1.bf16.msra.mxu0 %v14233_v39  ;;  %v14323_v39 = vld [vmem:[%s19545_s11 + $0x88] ss:$16 sps:$4 sm:$0xff]  }
 0x646   : > { %2297 = vmatprep.subr.bf16.mxu0 %v14238_v18  ;;  %v14331_v18 = vld [vmem:[%s19545_s11 + $0xac] ss:$16 sps:$4 sm:$0xff]  }
 0x649   : > { %2298 = vmatpush1.bf16.msra.mxu0 %v14236_v7  ;;  %v14329_v7 = vld [vmem:[%s19545_s11 + $0xa8] ss:$16 sps:$4 sm:$0xff]  }
 0x64a   : > { %2299 = vmatprep.subr.bf16.mxu0 %v14241_v35  ;;  %v14337_v35 = vld [vmem:[%s19545_s11 + $0xcc] ss:$16 sps:$4 sm:$0xff]  }
 0x64d   : > { %2300 = vmatpush1.bf16.msra.mxu0 %v14239_v41  ;;  %v14335_v41 = vld [vmem:[%s19545_s11 + $0xc8] ss:$16 sps:$4 sm:$0xff]  }
 0x64e   : > { %2301 = vmatprep.subr.bf16.mxu0 %v14244_v42  ;;  %v14343_v42 = vld [vmem:[%s19545_s11 + $0xec] ss:$16 sps:$4 sm:$0xff]  }
 0x651   : > { %2302 = vmatpush1.bf16.msra.mxu0 %v14242_v43  ;;  %v14341_v43 = vld [vmem:[%s19545_s11 + $0xe8] ss:$16 sps:$4 sm:$0xff]  }
 0x652   : > { %2303 = vmatprep.subr.bf16.mxu0 %v14247_v44  ;;  %v14349_v44 = vld [vmem:[%s19545_s11 + $0x10c] ss:$16 sps:$4 sm:$0xff]  }
 0x655   : > { %2304 = vmatpush1.bf16.msra.mxu0 %v14245_v45  ;;  %v14347_v45 = vld [vmem:[%s19545_s11 + $0x108] ss:$16 sps:$4 sm:$0xff]  }
 0x656   : > { %2305 = vmatprep.subr.bf16.mxu0 %v14250_v38  ;;  %v14355_v38 = vld [vmem:[%s19545_s11 + $0x12c] ss:$16 sps:$4 sm:$0xff]  }
 0x659   : > { %2306 = vmatpush1.bf16.msra.mxu0 %v14248_v46  ;;  %v14353_v46 = vld [vmem:[%s19545_s11 + $0x128] ss:$16 sps:$4 sm:$0xff]  }
 0x65a   : > { %2307 = vmatprep.subr.bf16.mxu0 %v14253_v56  ;;  %v14361_v56 = vld [vmem:[%s19545_s11 + $0x14c] ss:$16 sps:$4 sm:$0xff]  }
 0x65d   : > { %2308 = vmatpush1.bf16.msra.mxu0 %v14251_v47  ;;  %v14359_v47 = vld [vmem:[%s19545_s11 + $0x148] ss:$16 sps:$4 sm:$0xff]  }
 0x65e   : > { %2309 = vmatprep.subr.bf16.mxu0 %v14256_v48  ;;  %v14367_v48 = vld [vmem:[%s19545_s11 + $0x16c] ss:$16 sps:$4 sm:$0xff]  }
 0x661   : > { %2310 = vmatpush1.bf16.msra.mxu0 %v14254_v50  ;;  %v14365_v50 = vld [vmem:[%s19545_s11 + $0x168] ss:$16 sps:$4 sm:$0xff]  }
 0x662   : > { %2311 = vmatprep.subr.bf16.mxu0 %v14259_v53  ;;  %v14373_v53 = vld [vmem:[%s19545_s11 + $0x18c] ss:$16 sps:$4 sm:$0xff]  }
 0x665   : > { %2312 = vmatpush1.bf16.msra.mxu0 %v14257_v54  ;;  %v14371_v54 = vld [vmem:[%s19545_s11 + $0x188] ss:$16 sps:$4 sm:$0xff]  }
 0x666   : > { %2313 = vmatprep.subr.bf16.mxu0 %v14262_v57  ;;  %v14379_v57 = vld [vmem:[%s19545_s11 + $0x1ac] ss:$16 sps:$4 sm:$0xff]  }
 0x669   : > { %2314 = vmatpush1.bf16.msra.mxu0 %v14260_v59  ;;  %v14377_v59 = vld [vmem:[%s19545_s11 + $0x1a8] ss:$16 sps:$4 sm:$0xff]  }
 0x66a   : > { %2315 = vmatprep.subr.bf16.mxu0 %v14265_v52  ;;  %v14385_v52 = vld [vmem:[%s19545_s11 + $0x1cc] ss:$16 sps:$4 sm:$0xff]  }
 0x66d   : > { %2316 = vmatpush1.bf16.msra.mxu0 %v14263_v20  ;;  %v14383_v20 = vld [vmem:[%s19545_s11 + $0x1c8] ss:$16 sps:$4 sm:$0xff]  }
 0x66e   : > { %2317 = vmatprep.subr.bf16.mxu0 %v14268_v60  ;;  %v2039_v60 = vlaneseq }
 0x670   : > { %vm3922_vm14 = vcmp.lt.s32.totalorder %v2039_v60, 512 }
 0x671   : > { %2318 = vmatpush1.bf16.msra.mxu0 %v14266_v51  ;;  %v15527_v51 = vshrl.u32 %v2039_v60, 7  ;;  %v4177_v60 = vld [vmem:[%s19551_s17 + $0x440] sm:$0xff] }
 0x672   : > { %2319 = vmatprep.subr.bf16.mxu0 %v14271_v63 }
 0x673   : > { %v15530_v63 = vsub.s32 0, %v15527_v51 }
 0x675   : > { %2320 = vmatpush1.bf16.msra.mxu0 %v14269_v61  ;;  %v2037_v61 = vld [vmem:[%s19544_s10] sm:$0x3] }
 0x676   : > { %2332 = vmatprep.subr.bf16.mxu0 %v14274_v24  ;;  %v15536_v24 = vsub.s32 1, %v15527_v51 }
 0x70b   : > { %v1967_v62 = vpop.f32.mrb[24].mxu0 }
 0x70c   : > { %v13895_v21 = vpop.f32.mrb[25].mxu0  ;;  %v1976_v0 = vrot.slane %v1967_v62, 1  ;;  %v1981_v1 = vrot.slane %v1967_v62, 2 }
 0x70d   : > { %v1970_v5 = vpop.f32.mrb[26].mxu0  ;;  %v2046_v21 = vrot.slane %v2037_v61, %v15536_v24 }
 0x70e   : > { %v1977_v6 = vrot.slane %v1970_v5, 1  ;;  %v1982_v49 = vrot.slane %v1970_v5, 2  ;;  %v1986_v8 = vpack.c.bf16 %v1970_v5, %v1967_v62  ;;  %v13896_v19 = vpop.f32.mrb[27].mxu0  ;;  %v2042_v62 = vrot.slane %v2037_v61, %v15530_v63  ;;  %v14388_v61 = vld [vmem:[%s19545_s11 + $0x1e4] ss:$16 sps:$4 sm:$0xff]  }
 0x710   : > { %v1983_v9 = vsel %vm812_vm0, %v1981_v1, %v1982_v49  ;;  %v1978_v2 = vsel %vm732_vm1, %v1976_v0, %v1977_v6 }
 0x711   : > { %v1988_v12 = vpack.c.bf16 %v1982_v49, %v1983_v9  ;;  %v1987_v3 = vpack.c.bf16 %v1977_v6, %v1978_v2 }
 0x713   : > { %2321 = vmatprep.mubr.bf16.mxu0 %v1987_v3 }
 0x714   : > { %2322 = vmatmul.mubr.bf16.vlgmr.msra.gmra.mrb[28].mxu0 %v1986_v8 }
 0x715   : > { %2333 = vmatpush1.bf16.msra.mxu0 %v14272_v27  ;;  %2364 = vmatprep.mubr.bf16.mxu0 %v14660_v58  ;;  %v14281_v58 = vld [vmem:[%s19543_s9 + $0x130] ss:$8 sps:$4 sm:$0xff]  }
 0x716   : > { %2334 = vmatprep.subr.bf16.mxu0 %v14277_v11 }
 0x719   : > { %2335 = vmatpush1.bf16.msra.mxu0 %v14275_v13 }
 0x71a   : > { %2336 = vmatprep.subr.bf16.mxu0 %v14280_v14 }
 0x71d   : > { %2337 = vmatpush1.bf16.msra.mxu0 %v14278_v15 }
 0x71e   : > { %2338 = vmatprep.subr.bf16.mxu0 %v14283_v16 }
 0x721   : > { %2339 = vmatpush1.bf16.msra.mxu0 %v14281_v58 }
 0x722   : > { %2340 = vmatprep.subr.bf16.mxu0 %v14286_v55 }
 0x725   : > { %2341 = vmatpush1.bf16.msra.mxu0 %v14284_v17 }
 0x726   : > { %2342 = vmatprep.subr.bf16.mxu0 %v14289_v10 }
 0x729   : > { %2343 = vmatpush1.bf16.msra.mxu0 %v14287_v23 }
 0x72a   : > { %2344 = vmatprep.subr.bf16.mxu0 %v14292_v4 }
 0x72d   : > { %2345 = vmatpush1.bf16.msra.mxu0 %v14290_v26 }
 0x72e   : > { %2346 = vmatprep.subr.bf16.mxu0 %v14295_v25 }
 0x731   : > { %2347 = vmatpush1.bf16.msra.mxu0 %v14293_v29  ;;  %v14298_v29 = vld [vmem:[%s19545_s11 + $0x4] ss:$16 sps:$4 sm:$0xff]  }
 0x732   : > { %3764 = vmatprep.subr.bf16.mxu0 %v14301_v31  ;;  %v2397_v31 = vld [vmem:[%s19550_s16] sm:$0x7] }
 0x734   : > { %2365 = vmatmul.mubr.bf16.vlgmr.msra.gmra.mrb[28].mxu0 %v1988_v12 }
 0x735   : > { %3765 = vmatpush1.bf16.msra.mxu0 %v14299_v30 }
 0x736   : > { %3766 = vmatprep.subr.bf16.mxu0 %v14307_v40  ;;  %v14296_v40 = vld [vmem:[%s19545_s11] ss:$16 sps:$4 sm:$0xff]  }
 0x739   : > { %3767 = vmatpush1.bf16.msra.mxu0 %v14305_v32  ;;  %v14304_v32 = vld [vmem:[%s19545_s11 + $0x24] ss:$16 sps:$4 sm:$0xff]  }
 0x73a   : > { %3768 = vmatprep.subr.bf16.mxu0 %v14313_v33  ;;  %v14310_v33 = vld [vmem:[%s19545_s11 + $0x44] ss:$16 sps:$4 sm:$0xff]  }
 0x73d   : > { %3769 = vmatpush1.bf16.msra.mxu0 %v14311_v34  ;;  %v14308_v34 = vld [vmem:[%s19545_s11 + $0x40] ss:$16 sps:$4 sm:$0xff]  }
 0x73e   : > { %3770 = vmatprep.subr.bf16.mxu0 %v14319_v22  ;;  %v14316_v22 = vld [vmem:[%s19545_s11 + $0x64] ss:$16 sps:$4 sm:$0xff]  }
 0x741   : > { %3771 = vmatpush1.bf16.msra.mxu0 %v14317_v36  ;;  %v14314_v36 = vld [vmem:[%s19545_s11 + $0x60] ss:$16 sps:$4 sm:$0xff]  }
 0x742   : > { %3772 = vmatprep.subr.bf16.mxu0 %v14325_v37  ;;  %v14322_v37 = vld [vmem:[%s19545_s11 + $0x84] ss:$16 sps:$4 sm:$0xff]  }
 0x745   : > { %3773 = vmatpush1.bf16.msra.mxu0 %v14323_v39  ;;  %v14320_v39 = vld [vmem:[%s19545_s11 + $0x80] ss:$16 sps:$4 sm:$0xff]  }
 0x746   : > { %3774 = vmatprep.subr.bf16.mxu0 %v14331_v18  ;;  %v14328_v18 = vld [vmem:[%s19545_s11 + $0xa4] ss:$16 sps:$4 sm:$0xff]  }
 0x749   : > { %3775 = vmatpush1.bf16.msra.mxu0 %v14329_v7  ;;  %v14326_v7 = vld [vmem:[%s19545_s11 + $0xa0] ss:$16 sps:$4 sm:$0xff]  }
 0x74a   : > { %3776 = vmatprep.subr.bf16.mxu0 %v14337_v35  ;;  %v14334_v35 = vld [vmem:[%s19545_s11 + $0xc4] ss:$16 sps:$4 sm:$0xff]  }
 0x74d   : > { %3777 = vmatpush1.bf16.msra.mxu0 %v14335_v41  ;;  %v14332_v41 = vld [vmem:[%s19545_s11 + $0xc0] ss:$16 sps:$4 sm:$0xff]  }
 0x74e   : > { %3778 = vmatprep.subr.bf16.mxu0 %v14343_v42  ;;  %v14340_v42 = vld [vmem:[%s19545_s11 + $0xe4] ss:$16 sps:$4 sm:$0xff]  }
 0x751   : > { %3779 = vmatpush1.bf16.msra.mxu0 %v14341_v43  ;;  %v14338_v43 = vld [vmem:[%s19545_s11 + $0xe0] ss:$16 sps:$4 sm:$0xff]  }
 0x752   : > { %3780 = vmatprep.subr.bf16.mxu0 %v14349_v44  ;;  %v14346_v44 = vld [vmem:[%s19545_s11 + $0x104] ss:$16 sps:$4 sm:$0xff]  }
 0x755   : > { %3781 = vmatpush1.bf16.msra.mxu0 %v14347_v45  ;;  %v14344_v45 = vld [vmem:[%s19545_s11 + $0x100] ss:$16 sps:$4 sm:$0xff]  }
 0x756   : > { %3782 = vmatprep.subr.bf16.mxu0 %v14355_v38  ;;  %v14352_v38 = vld [vmem:[%s19545_s11 + $0x124] ss:$16 sps:$4 sm:$0xff]  }
 0x759   : > { %3783 = vmatpush1.bf16.msra.mxu0 %v14353_v46  ;;  %v14350_v46 = vld [vmem:[%s19545_s11 + $0x120] ss:$16 sps:$4 sm:$0xff]  }
 0x75a   : > { %3784 = vmatprep.subr.bf16.mxu0 %v14361_v56  ;;  %v14358_v56 = vld [vmem:[%s19545_s11 + $0x144] ss:$16 sps:$4 sm:$0xff]  }
 0x75d   : > { %3785 = vmatpush1.bf16.msra.mxu0 %v14359_v47  ;;  %v14356_v47 = vld [vmem:[%s19545_s11 + $0x140] ss:$16 sps:$4 sm:$0xff]  }
 0x75e   : > { %3786 = vmatprep.subr.bf16.mxu0 %v14367_v48  ;;  %v14364_v48 = vld [vmem:[%s19545_s11 + $0x164] ss:$16 sps:$4 sm:$0xff]  }
 0x761   : > { %3787 = vmatpush1.bf16.msra.mxu0 %v14365_v50  ;;  %v14362_v50 = vld [vmem:[%s19545_s11 + $0x160] ss:$16 sps:$4 sm:$0xff]  }
 0x762   : > { %3788 = vmatprep.subr.bf16.mxu0 %v14373_v53  ;;  %v14370_v53 = vld [vmem:[%s19545_s11 + $0x184] ss:$16 sps:$4 sm:$0xff]  }
 0x765   : > { %3789 = vmatpush1.bf16.msra.mxu0 %v14371_v54  ;;  %v14368_v54 = vld [vmem:[%s19545_s11 + $0x180] ss:$16 sps:$4 sm:$0xff]  }
 0x766   : > { %3790 = vmatprep.subr.bf16.mxu0 %v14379_v57  ;;  %v14376_v57 = vld [vmem:[%s19545_s11 + $0x1a4] ss:$16 sps:$4 sm:$0xff]  }
 0x769   : > { %3791 = vmatpush1.bf16.msra.mxu0 %v14377_v59  ;;  %v14374_v59 = vld [vmem:[%s19545_s11 + $0x1a0] ss:$16 sps:$4 sm:$0xff]  }
 0x76a   : > { %3792 = vmatprep.subr.bf16.mxu0 %v14385_v52  ;;  %v14382_v52 = vld [vmem:[%s19545_s11 + $0x1c4] ss:$16 sps:$4 sm:$0xff]  }
 0x76d   : > { %3793 = vmatpush1.bf16.msra.mxu0 %v14383_v20  ;;  %v14380_v20 = vld [vmem:[%s19545_s11 + $0x1c0] ss:$16 sps:$4 sm:$0xff]  }
 0x807   : > { %v2366_v0 = vpop.f32.mrb[28].mxu0 }
 0x808   : > { %v13897_v5 = vadd.f32 %v2366_v0, %v2042_v62  ;;  %v2368_v1 = vpop.f32.mrb[29].mxu0  ;;  %v14389_v0 = vld [vmem:[%s19545_s11 + $0x1e8] ss:$16 sps:$4 sm:$0xff]  }
 0x809   : > { %v13898_v6 = vadd.f32 %v2368_v1, %v2046_v21  ;;  %v2370_v49 = vpop.f32.mrb[30].mxu0  ;;  %v14397_v1 = vld [vmem:[%s19545_s11 + $0x20c] ss:$16 sps:$4 sm:$0xff]  }
 0x80a   : > { %v2375_v8 = vmax.f32 %v13897_v5, 0.0  ;;  %v13899_v19 = vadd.f32 %v2370_v49, %v2042_v62  ;;  %v2372_v9 = vpop.f32.mrb[31].mxu0  ;;  %v14391_v62 = vld [vmem:[%s19545_s11 + $0x1ec] ss:$16 sps:$4 sm:$0xff]   ;;  %v14394_v5 = vld [vmem:[%s19545_s11 + $0x204] ss:$16 sps:$4 sm:$0xff]  }
 0x80b   : > { %v2376_v2 = vmax.f32 %v13898_v6, 0.0  ;;  %v13900_v12 = vadd.f32 %v2372_v9, %v2046_v21  ;;  %v14386_v21 = vld [vmem:[%s19545_s11 + $0x1e0] ss:$16 sps:$4 sm:$0xff]   ;;  %3794 = vmatprep.subr.bf16.mxu0 %v14391_v62  ;;  %v14469_v62 = vld [vmem:[%s19545_s11 + $0x38c] ss:$16 sps:$4 sm:$0xff]  }
 0x80c   : > { %v2377_v3 = vmax.f32 %v13899_v19, 0.0  ;;  %v2383_v11 = vrot.slane %v2375_v8, 1  ;;  %3795 = vmatpush1.bf16.msra.mxu0 %v14389_v0  ;;  %v14392_v9 = vld [vmem:[%s19545_s11 + $0x200] ss:$16 sps:$4 sm:$0xff]   ;;  %v14467_v0 = vld [vmem:[%s19545_s11 + $0x388] ss:$16 sps:$4 sm:$0xff]  }
 0x80d   : > { %v2378_v27 = vmax.f32 %v13900_v12, 0.0  ;;  %v2386_v14 = vrot.slane %v2376_v2, 1  ;;  %3805 = vmatprep.subr.bf16.mxu0 %v14397_v1  ;;  %v14475_v1 = vld [vmem:[%s19545_s11 + $0x3ac] ss:$16 sps:$4 sm:$0xff]  }
 0x80e   : > { %v2384_v13 = vrot.slane %v2377_v3, 1 }
 0x80f   : > { %v2387_v15 = vrot.slane %v2378_v27, 1 }
 0x810   : > { %v2385_v16 = vsel %vm732_vm1, %v2383_v11, %v2384_v13  ;;  %v2395_v58 = vmax.f32 %v2377_v3, %v2384_v13  ;;  %v14403_v11 = vld [vmem:[%s19545_s11 + $0x22c] ss:$16 sps:$4 sm:$0xff]  }
 0x811   : > { %v2393_v55 = vmax.f32 %v2375_v8, %v2385_v16  ;;  %v2388_v17 = vsel %vm732_vm1, %v2386_v14, %v2387_v15  ;;  %v2396_v10 = vmax.f32 %v2378_v27, %v2387_v15  ;;  %v14400_v27 = vld [vmem:[%s19545_s11 + $0x224] ss:$16 sps:$4 sm:$0xff]   ;;  %v14398_v15 = vld [vmem:[%s19545_s11 + $0x220] ss:$16 sps:$4 sm:$0xff]   ;;  %v14401_v16 = vld [vmem:[%s19545_s11 + $0x228] ss:$16 sps:$4 sm:$0xff]  }
 0x812   : > { %v2394_v23 = vmax.f32 %v2376_v2, %v2388_v17  ;;  %v14395_v2 = vld [vmem:[%s19545_s11 + $0x208] ss:$16 sps:$4 sm:$0xff]   ;;  %v14404_v17 = vld [vmem:[%s19545_s11 + $0x240] ss:$16 sps:$4 sm:$0xff]  }
 0x813   : > { %v2398_v4 = vpack.c.bf16 %v2395_v58, %v2393_v55  ;;  %v14406_v58 = vld [vmem:[%s19545_s11 + $0x244] ss:$16 sps:$4 sm:$0xff]   ;;  %v14409_v55 = vld [vmem:[%s19545_s11 + $0x24c] ss:$16 sps:$4 sm:$0xff]  }
 0x814   : > { %v2399_v26 = vpack.c.bf16 %v2396_v10, %v2394_v23  ;;  %v14407_v10 = vld [vmem:[%s19545_s11 + $0x248] ss:$16 sps:$4 sm:$0xff]   ;;  %v14412_v23 = vld [vmem:[%s19545_s11 + $0x264] ss:$16 sps:$4 sm:$0xff]  }
 0x815   : > { %v2405_v30 = vand.u32 %v2398_v4, %v15282_v28  ;;  %v14415_v4 = vld [vmem:[%s19545_s11 + $0x26c] ss:$16 sps:$4 sm:$0xff]  }
 0x816   : > { %v2408_v25 = vand.u32 %v2399_v26, %v15282_v28  ;;  %v14302_v28 = vld [vmem:[%s19545_s11 + $0x20] ss:$16 sps:$4 sm:$0xff]  }
 0x817   : > { %v14410_v26 = vld [vmem:[%s19545_s11 + $0x260] ss:$16 sps:$4 sm:$0xff]  }
 0x818   : > { %2410 = vmatprep.subr.bf16.mxu1 %v2408_v25  ;;  %v14413_v25 = vld [vmem:[%s19545_s11 + $0x268] ss:$16 sps:$4 sm:$0xff]  }
 0x819   : > { %2411 = vmatpush1.bf16.msra.mxu1 %v2405_v30  ;;  %v14421_v30 = vld [vmem:[%s19545_s11 + $0x28c] ss:$16 sps:$4 sm:$0xff]  }
 0x81a   : > { %3641 = vmatprep.subr.bf16.mxu1 %v14298_v29  ;;  %v14418_v29 = vld [vmem:[%s19545_s11 + $0x284] ss:$16 sps:$4 sm:$0xff]  }
 0x81c   : > { %12388 = vmatmul.mubr.msk.bf16.vlgmr.msra.gmra.mrb[20].mxu1 %vm2400_vm13, %v2397_v31  ;;  %v14416_v31 = vld [vmem:[%s19545_s11 + $0x280] ss:$16 sps:$4 sm:$0xff]  }
 0x81d   : > { %3642 = vmatpush1.bf16.msra.mxu1 %v14296_v40  ;;  %v14419_v40 = vld [vmem:[%s19545_s11 + $0x288] ss:$16 sps:$4 sm:$0xff]  }
 0x81e   : > { %3643 = vmatprep.subr.bf16.mxu1 %v14304_v32  ;;  %v14424_v32 = vld [vmem:[%s19545_s11 + $0x2a4] ss:$16 sps:$4 sm:$0xff]  }
 0x821   : > { %3644 = vmatpush1.bf16.msra.mxu1 %v14302_v28  ;;  %v14427_v28 = vld [vmem:[%s19545_s11 + $0x2ac] ss:$16 sps:$4 sm:$0xff]  }
 0x822   : > { %3645 = vmatprep.subr.bf16.mxu1 %v14310_v33  ;;  %v14422_v33 = vld [vmem:[%s19545_s11 + $0x2a0] ss:$16 sps:$4 sm:$0xff]  }
 0x825   : > { %3646 = vmatpush1.bf16.msra.mxu1 %v14308_v34  ;;  %v14425_v34 = vld [vmem:[%s19545_s11 + $0x2a8] ss:$16 sps:$4 sm:$0xff]  }
 0x826   : > { %3647 = vmatprep.subr.bf16.mxu1 %v14316_v22  ;;  %v14430_v22 = vld [vmem:[%s19545_s11 + $0x2c4] ss:$16 sps:$4 sm:$0xff]  }
 0x829   : > { %3648 = vmatpush1.bf16.msra.mxu1 %v14314_v36  ;;  %v14433_v36 = vld [vmem:[%s19545_s11 + $0x2cc] ss:$16 sps:$4 sm:$0xff]  }
 0x82a   : > { %3649 = vmatprep.subr.bf16.mxu1 %v14322_v37  ;;  %v14428_v37 = vld [vmem:[%s19545_s11 + $0x2c0] ss:$16 sps:$4 sm:$0xff]  }
 0x82d   : > { %3650 = vmatpush1.bf16.msra.mxu1 %v14320_v39  ;;  %v14431_v39 = vld [vmem:[%s19545_s11 + $0x2c8] ss:$16 sps:$4 sm:$0xff]  }
 0x82e   : > { %3651 = vmatprep.subr.bf16.mxu1 %v14328_v18  ;;  %v14436_v18 = vld [vmem:[%s19545_s11 + $0x2e4] ss:$16 sps:$4 sm:$0xff]  }
 0x831   : > { %3652 = vmatpush1.bf16.msra.mxu1 %v14326_v7  ;;  %v14439_v7 = vld [vmem:[%s19545_s11 + $0x2ec] ss:$16 sps:$4 sm:$0xff]  }
 0x832   : > { %3653 = vmatprep.subr.bf16.mxu1 %v14334_v35  ;;  %v14434_v35 = vld [vmem:[%s19545_s11 + $0x2e0] ss:$16 sps:$4 sm:$0xff]  }
 0x835   : > { %3654 = vmatpush1.bf16.msra.mxu1 %v14332_v41  ;;  %v14437_v41 = vld [vmem:[%s19545_s11 + $0x2e8] ss:$16 sps:$4 sm:$0xff]  }
 0x836   : > { %3655 = vmatprep.subr.bf16.mxu1 %v14340_v42  ;;  %v14442_v42 = vld [vmem:[%s19545_s11 + $0x304] ss:$16 sps:$4 sm:$0xff]  }
 0x839   : > { %3656 = vmatpush1.bf16.msra.mxu1 %v14338_v43  ;;  %v14445_v43 = vld [vmem:[%s19545_s11 + $0x30c] ss:$16 sps:$4 sm:$0xff]  }
 0x83a   : > { %3657 = vmatprep.subr.bf16.mxu1 %v14346_v44  ;;  %v14440_v44 = vld [vmem:[%s19545_s11 + $0x300] ss:$16 sps:$4 sm:$0xff]  }
 0x83d   : > { %3658 = vmatpush1.bf16.msra.mxu1 %v14344_v45  ;;  %v14443_v45 = vld [vmem:[%s19545_s11 + $0x308] ss:$16 sps:$4 sm:$0xff]  }
 0x83e   : > { %3659 = vmatprep.subr.bf16.mxu1 %v14352_v38  ;;  %v14448_v38 = vld [vmem:[%s19545_s11 + $0x324] ss:$16 sps:$4 sm:$0xff]  }
 0x841   : > { %3660 = vmatpush1.bf16.msra.mxu1 %v14350_v46  ;;  %v14451_v46 = vld [vmem:[%s19545_s11 + $0x32c] ss:$16 sps:$4 sm:$0xff]  }
 0x842   : > { %3661 = vmatprep.subr.bf16.mxu1 %v14358_v56  ;;  %v14446_v56 = vld [vmem:[%s19545_s11 + $0x320] ss:$16 sps:$4 sm:$0xff]  }
 0x845   : > { %3662 = vmatpush1.bf16.msra.mxu1 %v14356_v47  ;;  %v14449_v47 = vld [vmem:[%s19545_s11 + $0x328] ss:$16 sps:$4 sm:$0xff]  }
 0x846   : > { %3663 = vmatprep.subr.bf16.mxu1 %v14364_v48  ;;  %v14454_v48 = vld [vmem:[%s19545_s11 + $0x344] ss:$16 sps:$4 sm:$0xff]  }
 0x849   : > { %3664 = vmatpush1.bf16.msra.mxu1 %v14362_v50  ;;  %v14457_v50 = vld [vmem:[%s19545_s11 + $0x34c] ss:$16 sps:$4 sm:$0xff]  }
 0x84a   : > { %3665 = vmatprep.subr.bf16.mxu1 %v14370_v53  ;;  %v14452_v53 = vld [vmem:[%s19545_s11 + $0x340] ss:$16 sps:$4 sm:$0xff]  }
 0x84d   : > { %3666 = vmatpush1.bf16.msra.mxu1 %v14368_v54  ;;  %v14455_v54 = vld [vmem:[%s19545_s11 + $0x348] ss:$16 sps:$4 sm:$0xff]  }
 0x84e   : > { %3667 = vmatprep.subr.bf16.mxu1 %v14376_v57  ;;  %v14460_v57 = vld [vmem:[%s19545_s11 + $0x364] ss:$16 sps:$4 sm:$0xff]  }
 0x851   : > { %3668 = vmatpush1.bf16.msra.mxu1 %v14374_v59  ;;  %v14463_v59 = vld [vmem:[%s19545_s11 + $0x36c] ss:$16 sps:$4 sm:$0xff]  }
 0x852   : > { %3669 = vmatprep.subr.bf16.mxu1 %v14382_v52  ;;  %v14458_v52 = vld [vmem:[%s19545_s11 + $0x360] ss:$16 sps:$4 sm:$0xff]  }
 0x855   : > { %3670 = vmatpush1.bf16.msra.mxu1 %v14380_v20  ;;  %v14461_v20 = vld [vmem:[%s19545_s11 + $0x368] ss:$16 sps:$4 sm:$0xff]  }
 0x856   : > { %3671 = vmatprep.subr.bf16.mxu1 %v14388_v61  ;;  %v14466_v61 = vld [vmem:[%s19545_s11 + $0x384] ss:$16 sps:$4 sm:$0xff]  }
 0x859   : > { %3672 = vmatpush1.bf16.msra.mxu1 %v14386_v21  ;;  %v14464_v21 = vld [vmem:[%s19545_s11 + $0x380] ss:$16 sps:$4 sm:$0xff]  }
 0x85a   : > { %3682 = vmatprep.subr.bf16.mxu1 %v14394_v5  ;;  %v14472_v5 = vld [vmem:[%s19545_s11 + $0x3a4] ss:$16 sps:$4 sm:$0xff]  }
 0x8ef   : > { %v15655_v6 = vpop.f32.mrb[20].mxu1 }
 0x8f0   : > { %v15657_v49 = vpop.f32.mrb[21].mxu1  ;;  %v2461_v3 = vpack.c.bf16 %v15655_v6, %v15655_v6 }
 0x8f1   : > { %v2454_v8 = vrot.slane %v15657_v49, 1  ;;  %v2462_v19 = vpack.c.bf16 %v15657_v49, %v15657_v49  ;;  %v2448_v12 = vpop.f32.mrb[22].mxu1 }
 0x8f2   : > { %v2449_v13 = vpop.f32.mrb[23].mxu1  ;;  %v14476_v12 = vld [vmem:[%s19545_s11 + $0x3c0] ss:$16 sps:$4 sm:$0xff]  }
 0x8f3   : > { %3673 = vmatprep.mubr.bf16.mxu1 %v2462_v19  ;;  %3796 = vmatprep.mubr.bf16.mxu0 %v2462_v19  ;;  %v2464_v14 = vpack.c.bf16 %v2454_v8, %v2454_v8  ;;  %v14470_v8 = vld [vmem:[%s19545_s11 + $0x3a0] ss:$16 sps:$4 sm:$0xff]   ;;  %v14473_v19 = vld [vmem:[%s19545_s11 + $0x3a8] ss:$16 sps:$4 sm:$0xff]  }
 0x8f4   : > { %3674 = vmatmul.mubr.bf16.vlgmr.msra.gmra.mrb[24].mxu1 %v2461_v3  ;;  %3797 = vmatmul.mubr.bf16.vlgmr.msra.gmra.mrb[32].mxu0 %v2461_v3  ;;  %v14479_v3 = vld [vmem:[%s19545_s11 + $0x3c8] ss:$16 sps:$4 sm:$0xff]   ;;  %v14482_v13 = vld [vmem:[%s19545_s11 + $0x3e0] ss:$16 sps:$4 sm:$0xff]  }
 0x8f5   : > { %3683 = vmatpush1.bf16.msra.mxu1 %v14392_v9  ;;  %3806 = vmatpush1.bf16.msra.mxu0 %v14395_v2  ;;  %v14478_v9 = vld [vmem:[%s19545_s11 + $0x3c4] ss:$16 sps:$4 sm:$0xff]   ;;  %v14481_v2 = vld [vmem:[%s19545_s11 + $0x3cc] ss:$16 sps:$4 sm:$0xff]  }
 0x8f6   : > { %3684 = vmatprep.subr.bf16.mxu1 %v14400_v27  ;;  %3807 = vmatprep.subr.bf16.mxu0 %v14403_v11  ;;  %v14484_v27 = vld [vmem:[%s19545_s11 + $0x3e4] ss:$16 sps:$4 sm:$0xff]   ;;  %v14487_v11 = vld [vmem:[%s19545_s11 + $0x3ec] ss:$16 sps:$4 sm:$0xff]  }
 0x8f7   : > { %3714 = vmatprep.mubr.bf16.mxu1 %v2464_v14  ;;  %3837 = vmatprep.mubr.bf16.mxu0 %v2464_v14  ;;  %v14485_v14 = vld [vmem:[%s19545_s11 + $0x3e8] ss:$16 sps:$4 sm:$0xff]  }
 0x8f9   : > { %3685 = vmatpush1.bf16.msra.mxu1 %v14398_v15  ;;  %3808 = vmatpush1.bf16.msra.mxu0 %v14401_v16  ;;  %v2453_v15 = vrot.slane %v15655_v6, 1  ;;  %v14490_v16 = vld [vmem:[%s19545_s11 + $0x404] ss:$16 sps:$4 sm:$0xff]  }
 0x8fa   : > { %3686 = vmatprep.subr.bf16.mxu1 %v14406_v58  ;;  %3809 = vmatprep.subr.bf16.mxu0 %v14409_v55  ;;  %v14493_v58 = vld [vmem:[%s19545_s11 + $0x40c] ss:$16 sps:$4 sm:$0xff]   ;;  %v2458_v55 = vrot.slane %v15657_v49, 2 }
 0x8fb   : > { %v14499_v49 = vld [vmem:[%s19545_s11 + $0x42c] ss:$16 sps:$4 sm:$0xff]  }
 0x8fd   : > { %3687 = vmatpush1.bf16.msra.mxu1 %v14404_v17  ;;  %3810 = vmatpush1.bf16.msra.mxu0 %v14407_v10  ;;  %v14488_v17 = vld [vmem:[%s19545_s11 + $0x400] ss:$16 sps:$4 sm:$0xff]   ;;  %v2463_v10 = vpack.c.bf16 %v2453_v15, %v2453_v15  ;;  %v14569_v15 = vld [vmem:[%s19545_s11 + $0x5a8] ss:$16 sps:$4 sm:$0xff]  }
 0x8fe   : > { %3688 = vmatprep.subr.bf16.mxu1 %v14412_v23  ;;  %3811 = vmatprep.subr.bf16.mxu0 %v14415_v4  ;;  %v14491_v23 = vld [vmem:[%s19545_s11 + $0x408] ss:$16 sps:$4 sm:$0xff]   ;;  %v2466_v4 = vpack.c.bf16 %v2458_v55, %v2458_v55  ;;  %v14572_v55 = vld [vmem:[%s19545_s11 + $0x5c0] ss:$16 sps:$4 sm:$0xff]  }
 0x901   : > { %3689 = vmatpush1.bf16.msra.mxu1 %v14410_v26  ;;  %3812 = vmatpush1.bf16.msra.mxu0 %v14413_v25  ;;  %v14496_v26 = vld [vmem:[%s19545_s11 + $0x424] ss:$16 sps:$4 sm:$0xff]   ;;  %v14494_v25 = vld [vmem:[%s19545_s11 + $0x420] ss:$16 sps:$4 sm:$0xff]  }
 0x902   : > { %3690 = vmatprep.subr.bf16.mxu1 %v14418_v29  ;;  %3813 = vmatprep.subr.bf16.mxu0 %v14421_v30  ;;  %v14497_v29 = vld [vmem:[%s19545_s11 + $0x428] ss:$16 sps:$4 sm:$0xff]   ;;  %v14502_v30 = vld [vmem:[%s19545_s11 + $0x444] ss:$16 sps:$4 sm:$0xff]  }
 0x905   : > { %3691 = vmatpush1.bf16.msra.mxu1 %v14416_v31  ;;  %3814 = vmatpush1.bf16.msra.mxu0 %v14419_v40  ;;  %v14505_v31 = vld [vmem:[%s19545_s11 + $0x44c] ss:$16 sps:$4 sm:$0xff]   ;;  %v14500_v40 = vld [vmem:[%s19545_s11 + $0x440] ss:$16 sps:$4 sm:$0xff]  }
 0x906   : > { %3692 = vmatprep.subr.bf16.mxu1 %v14424_v32  ;;  %3815 = vmatprep.subr.bf16.mxu0 %v14427_v28  ;;  %v14503_v32 = vld [vmem:[%s19545_s11 + $0x448] ss:$16 sps:$4 sm:$0xff]   ;;  %v14508_v28 = vld [vmem:[%s19545_s11 + $0x464] ss:$16 sps:$4 sm:$0xff]  }
 0x909   : > { %3693 = vmatpush1.bf16.msra.mxu1 %v14422_v33  ;;  %3816 = vmatpush1.bf16.msra.mxu0 %v14425_v34  ;;  %v14511_v33 = vld [vmem:[%s19545_s11 + $0x46c] ss:$16 sps:$4 sm:$0xff]   ;;  %v14506_v34 = vld [vmem:[%s19545_s11 + $0x460] ss:$16 sps:$4 sm:$0xff]  }
 0x90a   : > { %3694 = vmatprep.subr.bf16.mxu1 %v14430_v22  ;;  %3817 = vmatprep.subr.bf16.mxu0 %v14433_v36  ;;  %v14509_v22 = vld [vmem:[%s19545_s11 + $0x468] ss:$16 sps:$4 sm:$0xff]   ;;  %v14514_v36 = vld [vmem:[%s19545_s11 + $0x484] ss:$16 sps:$4 sm:$0xff]  }
 0x90d   : > { %3695 = vmatpush1.bf16.msra.mxu1 %v14428_v37  ;;  %3818 = vmatpush1.bf16.msra.mxu0 %v14431_v39  ;;  %v14517_v37 = vld [vmem:[%s19545_s11 + $0x48c] ss:$16 sps:$4 sm:$0xff]   ;;  %v14512_v39 = vld [vmem:[%s19545_s11 + $0x480] ss:$16 sps:$4 sm:$0xff]  }
 0x90e   : > { %3696 = vmatprep.subr.bf16.mxu1 %v14436_v18  ;;  %3819 = vmatprep.subr.bf16.mxu0 %v14439_v7  ;;  %v14515_v18 = vld [vmem:[%s19545_s11 + $0x488] ss:$16 sps:$4 sm:$0xff]   ;;  %v14520_v7 = vld [vmem:[%s19545_s11 + $0x4a4] ss:$16 sps:$4 sm:$0xff]  }
 0x911   : > { %3697 = vmatpush1.bf16.msra.mxu1 %v14434_v35  ;;  %3820 = vmatpush1.bf16.msra.mxu0 %v14437_v41  ;;  %v14523_v35 = vld [vmem:[%s19545_s11 + $0x4ac] ss:$16 sps:$4 sm:$0xff]   ;;  %v14518_v41 = vld [vmem:[%s19545_s11 + $0x4a0] ss:$16 sps:$4 sm:$0xff]  }
 0x912   : > { %3698 = vmatprep.subr.bf16.mxu1 %v14442_v42  ;;  %3821 = vmatprep.subr.bf16.mxu0 %v14445_v43  ;;  %v14521_v42 = vld [vmem:[%s19545_s11 + $0x4a8] ss:$16 sps:$4 sm:$0xff]   ;;  %v14526_v43 = vld [vmem:[%s19545_s11 + $0x4c4] ss:$16 sps:$4 sm:$0xff]  }
 0x915   : > { %3699 = vmatpush1.bf16.msra.mxu1 %v14440_v44  ;;  %3822 = vmatpush1.bf16.msra.mxu0 %v14443_v45  ;;  %v14529_v44 = vld [vmem:[%s19545_s11 + $0x4cc] ss:$16 sps:$4 sm:$0xff]   ;;  %v14524_v45 = vld [vmem:[%s19545_s11 + $0x4c0] ss:$16 sps:$4 sm:$0xff]  }
 0x916   : > { %3700 = vmatprep.subr.bf16.mxu1 %v14448_v38  ;;  %3823 = vmatprep.subr.bf16.mxu0 %v14451_v46  ;;  %v14527_v38 = vld [vmem:[%s19545_s11 + $0x4c8] ss:$16 sps:$4 sm:$0xff]   ;;  %v14532_v46 = vld [vmem:[%s19545_s11 + $0x4e4] ss:$16 sps:$4 sm:$0xff]  }
 0x919   : > { %3701 = vmatpush1.bf16.msra.mxu1 %v14446_v56  ;;  %3824 = vmatpush1.bf16.msra.mxu0 %v14449_v47  ;;  %v14535_v56 = vld [vmem:[%s19545_s11 + $0x4ec] ss:$16 sps:$4 sm:$0xff]   ;;  %v14530_v47 = vld [vmem:[%s19545_s11 + $0x4e0] ss:$16 sps:$4 sm:$0xff]  }
 0x91a   : > { %3702 = vmatprep.subr.bf16.mxu1 %v14454_v48  ;;  %3825 = vmatprep.subr.bf16.mxu0 %v14457_v50  ;;  %v14533_v48 = vld [vmem:[%s19545_s11 + $0x4e8] ss:$16 sps:$4 sm:$0xff]   ;;  %v14538_v50 = vld [vmem:[%s19545_s11 + $0x504] ss:$16 sps:$4 sm:$0xff]  }
 0x91d   : > { %3703 = vmatpush1.bf16.msra.mxu1 %v14452_v53  ;;  %3826 = vmatpush1.bf16.msra.mxu0 %v14455_v54  ;;  %v14541_v53 = vld [vmem:[%s19545_s11 + $0x50c] ss:$16 sps:$4 sm:$0xff]   ;;  %v14536_v54 = vld [vmem:[%s19545_s11 + $0x500] ss:$16 sps:$4 sm:$0xff]  }
 0x91e   : > { %3704 = vmatprep.subr.bf16.mxu1 %v14460_v57  ;;  %3827 = vmatprep.subr.bf16.mxu0 %v14463_v59  ;;  %v14539_v57 = vld [vmem:[%s19545_s11 + $0x508] ss:$16 sps:$4 sm:$0xff]   ;;  %v14544_v59 = vld [vmem:[%s19545_s11 + $0x524] ss:$16 sps:$4 sm:$0xff]  }
 0x921   : > { %3705 = vmatpush1.bf16.msra.mxu1 %v14458_v52  ;;  %3828 = vmatpush1.bf16.msra.mxu0 %v14461_v20  ;;  %v14547_v52 = vld [vmem:[%s19545_s11 + $0x52c] ss:$16 sps:$4 sm:$0xff]   ;;  %v14542_v20 = vld [vmem:[%s19545_s11 + $0x520] ss:$16 sps:$4 sm:$0xff]  }
 0x922   : > { %3706 = vmatprep.subr.bf16.mxu1 %v14466_v61  ;;  %3829 = vmatprep.subr.bf16.mxu0 %v14469_v62  ;;  %v14545_v61 = vld [vmem:[%s19545_s11 + $0x528] ss:$16 sps:$4 sm:$0xff]   ;;  %v14550_v62 = vld [vmem:[%s19545_s11 + $0x544] ss:$16 sps:$4 sm:$0xff]  }
 0x925   : > { %3707 = vmatpush1.bf16.msra.mxu1 %v14464_v21  ;;  %3830 = vmatpush1.bf16.msra.mxu0 %v14467_v0  ;;  %v14553_v21 = vld [vmem:[%s19545_s11 + $0x54c] ss:$16 sps:$4 sm:$0xff]   ;;  %v14548_v0 = vld [vmem:[%s19545_s11 + $0x540] ss:$16 sps:$4 sm:$0xff]  }
 0x926   : > { %3708 = vmatprep.subr.bf16.mxu1 %v14472_v5  ;;  %3831 = vmatprep.subr.bf16.mxu0 %v14475_v1  ;;  %v14551_v5 = vld [vmem:[%s19545_s11 + $0x548] ss:$16 sps:$4 sm:$0xff]   ;;  %v14556_v1 = vld [vmem:[%s19545_s11 + $0x564] ss:$16 sps:$4 sm:$0xff]  }
 0x929   : > { %3709 = vmatpush1.bf16.msra.mxu1 %v14470_v8  ;;  %3832 = vmatpush1.bf16.msra.mxu0 %v14473_v19  ;;  %v14559_v8 = vld [vmem:[%s19545_s11 + $0x56c] ss:$16 sps:$4 sm:$0xff]   ;;  %v14554_v19 = vld [vmem:[%s19545_s11 + $0x560] ss:$16 sps:$4 sm:$0xff]  }
 0x92a   : > { %3710 = vmatprep.subr.bf16.mxu1 %v14478_v9  ;;  %3833 = vmatprep.subr.bf16.mxu0 %v14481_v2  ;;  %v14557_v9 = vld [vmem:[%s19545_s11 + $0x568] ss:$16 sps:$4 sm:$0xff]   ;;  %v14562_v2 = vld [vmem:[%s19545_s11 + $0x584] ss:$16 sps:$4 sm:$0xff]  }
 0x92d   : > { %3711 = vmatpush1.bf16.msra.mxu1 %v14476_v12  ;;  %3834 = vmatpush1.bf16.msra.mxu0 %v14479_v3  ;;  %v14565_v12 = vld [vmem:[%s19545_s11 + $0x58c] ss:$16 sps:$4 sm:$0xff]   ;;  %v14560_v3 = vld [vmem:[%s19545_s11 + $0x580] ss:$16 sps:$4 sm:$0xff]  }
 0x92e   : > { %3712 = vmatprep.subr.bf16.mxu1 %v14484_v27  ;;  %3835 = vmatprep.subr.bf16.mxu0 %v14487_v11  ;;  %v14563_v27 = vld [vmem:[%s19545_s11 + $0x588] ss:$16 sps:$4 sm:$0xff]   ;;  %v14568_v11 = vld [vmem:[%s19545_s11 + $0x5a4] ss:$16 sps:$4 sm:$0xff]  }
 0x931   : > { %3713 = vmatpush1.bf16.msra.mxu1 %v14482_v13  ;;  %3836 = vmatpush1.bf16.msra.mxu0 %v14485_v14  ;;  %v14571_v13 = vld [vmem:[%s19545_s11 + $0x5ac] ss:$16 sps:$4 sm:$0xff]   ;;  %v14566_v14 = vld [vmem:[%s19545_s11 + $0x5a0] ss:$16 sps:$4 sm:$0xff]  }
 0x932   : > { %3723 = vmatprep.subr.bf16.mxu1 %v14490_v16  ;;  %3846 = vmatprep.subr.bf16.mxu0 %v14493_v58  ;;  %v14574_v16 = vld [vmem:[%s19545_s11 + $0x5c4] ss:$16 sps:$4 sm:$0xff]   ;;  %v14577_v58 = vld [vmem:[%s19545_s11 + $0x5cc] ss:$16 sps:$4 sm:$0xff]  }
 0x934   : > { %3715 = vmatmul.mubr.bf16.vlgmr.msra.gmra.mrb[24].mxu1 %v2463_v10  ;;  %3838 = vmatmul.mubr.bf16.vlgmr.msra.gmra.mrb[32].mxu0 %v2463_v10  ;;  %v14580_v10 = vld [vmem:[%s19545_s11 + $0x5e4] ss:$16 sps:$4 sm:$0xff]  }
 0x935   : > { %3724 = vmatpush1.bf16.msra.mxu1 %v14488_v17  ;;  %3755 = vmatprep.mubr.bf16.mxu1 %v2466_v4  ;;  %v14575_v17 = vld [vmem:[%s19545_s11 + $0x5c8] ss:$16 sps:$4 sm:$0xff]  }
 0x936   : > { %3847 = vmatpush1.bf16.msra.mxu0 %v14491_v23  ;;  %3878 = vmatprep.mubr.bf16.mxu0 %v2466_v4  ;;  %v14583_v23 = vld [vmem:[%s19545_s11 + $0x5ec] ss:$16 sps:$4 sm:$0xff]   ;;  %v4041_v4 = vld [vmem:[%s19551_s17] sm:$0xff] }
 0x937   : > { %3725 = vmatprep.subr.bf16.mxu1 %v14496_v26  ;;  %3848 = vmatprep.subr.bf16.mxu0 %v14499_v49  ;;  %v4045_v26 = vld [vmem:[%s19551_s17 + $0x20] sm:$0xff]  ;;  %v4042_v49 = vld [vmem:[%s19551_s17 + $0x8] sm:$0xff] }
 0x939   : > { %3726 = vmatpush1.bf16.msra.mxu1 %v14494_v25  ;;  %v4046_v25 = vld [vmem:[%s19551_s17 + $0x28] sm:$0xff] }
 0x93a   : > { %3849 = vmatpush1.bf16.msra.mxu0 %v14497_v29  ;;  %3727 = vmatprep.subr.bf16.mxu1 %v14502_v30  ;;  %v14578_v29 = vld [vmem:[%s19545_s11 + $0x5e0] ss:$16 sps:$4 sm:$0xff]   ;;  %v2457_v30 = vrot.slane %v15655_v6, 2  ;;  %v4050_v6 = vld [vmem:[%s19551_s17 + $0x48] sm:$0xff] }
 0x93b   : > { %3850 = vmatprep.subr.bf16.mxu0 %v14505_v31  ;;  %v14581_v31 = vld [vmem:[%s19545_s11 + $0x5e8] ss:$16 sps:$4 sm:$0xff]  }
 0x93d   : > { %3728 = vmatpush1.bf16.msra.mxu1 %v14500_v40  ;;  %v12582_v40 = vcombine.high %v4041_v4, %v4045_v26 }
 0x93e   : > { %3851 = vmatpush1.bf16.msra.mxu0 %v14503_v32  ;;  %3729 = vmatprep.subr.bf16.mxu1 %v14508_v28  ;;  %v12584_v32 = vcombine.high %v4042_v49, %v4046_v25  ;;  %v4049_v28 = vld [vmem:[%s19551_s17 + $0x40] sm:$0xff] }
 0x93f   : > { %3852 = vmatprep.subr.bf16.mxu0 %v14511_v33  ;;  %v4053_v33 = vld [vmem:[%s19551_s17 + $0x60] sm:$0xff] }
 0x941   : > { %3730 = vmatpush1.bf16.msra.mxu1 %v14506_v34  ;;  %v4054_v34 = vld [vmem:[%s19551_s17 + $0x68] sm:$0xff] }
 0x942   : > { %3853 = vmatpush1.bf16.msra.mxu0 %v14509_v22  ;;  %3731 = vmatprep.subr.bf16.mxu1 %v14514_v36  ;;  %v12581_v22 = vcombine.low %v4041_v4, %v4045_v26  ;;  %v2465_v36 = vpack.c.bf16 %v2457_v30, %v2457_v30  ;;  %v4098_v4 = vld [vmem:[%s19551_s17 + $0x1c8] sm:$0xff] }
 0x943   : > { %3854 = vmatprep.subr.bf16.mxu0 %v14517_v37  ;;  %v12583_v37 = vcombine.low %v4042_v49, %v4046_v25  ;;  %v4102_v26 = vld [vmem:[%s19551_s17 + $0x1e8] sm:$0xff] }
 0x944   : > { %v12640_v30 = vcombine.high %v4098_v4, %v4102_v26 }
 0x945   : > { %3732 = vmatpush1.bf16.msra.mxu1 %v14512_v39  ;;  %v12590_v39 = vcombine.high %v4049_v28, %v4053_v33 }
 0x946   : > { %3855 = vmatpush1.bf16.msra.mxu0 %v14515_v18  ;;  %3733 = vmatprep.subr.bf16.mxu1 %v14520_v7  ;;  %v12592_v18 = vcombine.high %v4050_v6, %v4054_v34  ;;  %v4057_v7 = vld [vmem:[%s19551_s17 + $0x80] sm:$0xff] }
 0x947   : > { %3856 = vmatprep.subr.bf16.mxu0 %v14523_v35  ;;  %v4061_v35 = vld [vmem:[%s19551_s17 + $0xa0] sm:$0xff] }
 0x949   : > { %3734 = vmatpush1.bf16.msra.mxu1 %v14518_v41  ;;  %v4058_v41 = vld [vmem:[%s19551_s17 + $0x88] sm:$0xff] }
 0x94a   : > { %3857 = vmatpush1.bf16.msra.mxu0 %v14521_v42  ;;  %3735 = vmatprep.subr.bf16.mxu1 %v14526_v43  ;;  %v4062_v42 = vld [vmem:[%s19551_s17 + $0xa8] sm:$0xff]  ;;  %v12589_v43 = vcombine.low %v4049_v28, %v4053_v33 }
 0x94b   : > { %3858 = vmatprep.subr.bf16.mxu0 %v14529_v44  ;;  %v12591_v44 = vcombine.low %v4050_v6, %v4054_v34  ;;  %v4110_v28 = vld [vmem:[%s19551_s17 + $0x228] sm:$0xff]  ;;  %v12639_v6 = vcombine.low %v4098_v4, %v4102_v26 }
 0x94c   : > { %v4158_v26 = vld [vmem:[%s19551_s17 + $0x3a8] sm:$0xff] }
 0x94d   : > { %3736 = vmatpush1.bf16.msra.mxu1 %v14524_v45  ;;  %v12598_v45 = vcombine.high %v4057_v7, %v4061_v35 }
 0x94e   : > { %3859 = vmatpush1.bf16.msra.mxu0 %v14527_v38  ;;  %3737 = vmatprep.subr.bf16.mxu1 %v14532_v46  ;;  %v12600_v38 = vcombine.high %v4058_v41, %v4062_v42  ;;  %v4065_v46 = vld [vmem:[%s19551_s17 + $0xc0] sm:$0xff] }
 0x94f   : > { %3860 = vmatprep.subr.bf16.mxu0 %v14535_v56  ;;  %v4069_v56 = vld [vmem:[%s19551_s17 + $0xe0] sm:$0xff] }
 0x951   : > { %3738 = vmatpush1.bf16.msra.mxu1 %v14530_v47  ;;  %v4066_v47 = vld [vmem:[%s19551_s17 + $0xc8] sm:$0xff] }
 0x952   : > { %3861 = vmatpush1.bf16.msra.mxu0 %v14533_v48  ;;  %3739 = vmatprep.subr.bf16.mxu1 %v14538_v50  ;;  %v4070_v48 = vld [vmem:[%s19551_s17 + $0xe8] sm:$0xff]  ;;  %v12597_v50 = vcombine.low %v4057_v7, %v4061_v35 }
 0x953   : > { %3862 = vmatprep.subr.bf16.mxu0 %v14541_v53  ;;  %v12599_v53 = vcombine.low %v4058_v41, %v4062_v42 }
 0x955   : > { %3740 = vmatpush1.bf16.msra.mxu1 %v14536_v54  ;;  %v12606_v54 = vcombine.high %v4065_v46, %v4069_v56 }
 0x956   : > { %3863 = vmatpush1.bf16.msra.mxu0 %v14539_v57  ;;  %3741 = vmatprep.subr.bf16.mxu1 %v14544_v59  ;;  %v12608_v57 = vcombine.high %v4066_v47, %v4070_v48  ;;  %v4073_v59 = vld [vmem:[%s19551_s17 + $0x100] sm:$0xff] }
 0x957   : > { %3864 = vmatprep.subr.bf16.mxu0 %v14547_v52  ;;  %v4077_v52 = vld [vmem:[%s19551_s17 + $0x120] sm:$0xff] }
 0x959   : > { %3742 = vmatpush1.bf16.msra.mxu1 %v14542_v20  ;;  %v4074_v20 = vld [vmem:[%s19551_s17 + $0x108] sm:$0xff] }
 0x95a   : > { %3865 = vmatpush1.bf16.msra.mxu0 %v14545_v61  ;;  %3743 = vmatprep.subr.bf16.mxu1 %v14550_v62  ;;  %v4078_v61 = vld [vmem:[%s19551_s17 + $0x128] sm:$0xff]  ;;  %v12605_v62 = vcombine.low %v4065_v46, %v4069_v56 }
 0x95b   : > { %3866 = vmatprep.subr.bf16.mxu0 %v14553_v21  ;;  %v12607_v21 = vcombine.low %v4066_v47, %v4070_v48  ;;  %v4122_v46 = vld [vmem:[%s19551_s17 + $0x288] sm:$0xff] }
 0x95c   : > { %v4126_v47 = vld [vmem:[%s19551_s17 + $0x2a8] sm:$0xff] }
 0x95d   : > { %3744 = vmatpush1.bf16.msra.mxu1 %v14548_v0  ;;  %v12614_v0 = vcombine.high %v4073_v59, %v4077_v52 }
 0x95e   : > { %3867 = vmatpush1.bf16.msra.mxu0 %v14551_v5  ;;  %3745 = vmatprep.subr.bf16.mxu1 %v14556_v1  ;;  %v12616_v5 = vcombine.high %v4074_v20, %v4078_v61  ;;  %v4081_v1 = vld [vmem:[%s19551_s17 + $0x140] sm:$0xff] }
 0x95f   : > { %3868 = vmatprep.subr.bf16.mxu0 %v14559_v8  ;;  %v4085_v8 = vld [vmem:[%s19551_s17 + $0x160] sm:$0xff] }
 0x961   : > { %3746 = vmatpush1.bf16.msra.mxu1 %v14554_v19  ;;  %v4082_v19 = vld [vmem:[%s19551_s17 + $0x148] sm:$0xff] }
 0x962   : > { %3869 = vmatpush1.bf16.msra.mxu0 %v14557_v9  ;;  %3747 = vmatprep.subr.bf16.mxu1 %v14562_v2  ;;  %v4086_v9 = vld [vmem:[%s19551_s17 + $0x168] sm:$0xff]  ;;  %v12613_v2 = vcombine.low %v4073_v59, %v4077_v52 }
 0x963   : > { %3870 = vmatprep.subr.bf16.mxu0 %v14565_v12  ;;  %v12615_v12 = vcombine.low %v4074_v20, %v4078_v61  ;;  %v4130_v59 = vld [vmem:[%s19551_s17 + $0x2c8] sm:$0xff] }
 0x964   : > { %v4134_v20 = vld [vmem:[%s19551_s17 + $0x2e8] sm:$0xff] }
 0x965   : > { %3748 = vmatpush1.bf16.msra.mxu1 %v14560_v3  ;;  %v12622_v3 = vcombine.high %v4081_v1, %v4085_v8 }
 0x966   : > { %3871 = vmatpush1.bf16.msra.mxu0 %v14563_v27  ;;  %3749 = vmatprep.subr.bf16.mxu1 %v14568_v11  ;;  %v12624_v27 = vcombine.high %v4082_v19, %v4086_v9  ;;  %v4089_v11 = vld [vmem:[%s19551_s17 + $0x180] sm:$0xff] }
 0x967   : > { %3872 = vmatprep.subr.bf16.mxu0 %v14571_v13  ;;  %v4093_v13 = vld [vmem:[%s19551_s17 + $0x1a0] sm:$0xff] }
 0x968   : > { %v12629_v49 = vcombine.low %v4089_v11, %v4093_v13 }
 0x969   : > { %3750 = vmatpush1.bf16.msra.mxu1 %v14566_v14  ;;  %v4090_v14 = vld [vmem:[%s19551_s17 + $0x188] sm:$0xff] }
 0x96a   : > { %3873 = vmatpush1.bf16.msra.mxu0 %v14569_v15  ;;  %3751 = vmatprep.subr.bf16.mxu1 %v14574_v16  ;;  %v4094_v15 = vld [vmem:[%s19551_s17 + $0x1a8] sm:$0xff]  ;;  %v12621_v16 = vcombine.low %v4081_v1, %v4085_v8 }
 0x96b   : > { %3874 = vmatprep.subr.bf16.mxu0 %v14577_v58  ;;  %v12623_v58 = vcombine.low %v4082_v19, %v4086_v9  ;;  %v12631_v25 = vcombine.low %v4090_v14, %v4094_v15  ;;  %v4138_v1 = vld [vmem:[%s19551_s17 + $0x308] sm:$0xff] }
 0x96c   : > { %v4142_v19 = vld [vmem:[%s19551_s17 + $0x328] sm:$0xff] }
 0x96d   : > { %3752 = vmatpush1.bf16.msra.mxu1 %v14572_v55  ;;  %v12630_v55 = vcombine.high %v4089_v11, %v4093_v13  ;;  %v4146_v11 = vld [vmem:[%s19551_s17 + $0x348] sm:$0xff] }
 0x96e   : > { %3875 = vmatpush1.bf16.msra.mxu0 %v14575_v17  ;;  %3753 = vmatprep.subr.bf16.mxu1 %v14580_v10  ;;  %v12632_v17 = vcombine.high %v4090_v14, %v4094_v15  ;;  %v4097_v10 = vld [vmem:[%s19551_s17 + $0x1c0] sm:$0xff]  ;;  %v4150_v14 = vld [vmem:[%s19551_s17 + $0x368] sm:$0xff] }
 0x96f   : > { %3876 = vmatprep.subr.bf16.mxu0 %v14583_v23  ;;  %v4101_v23 = vld [vmem:[%s19551_s17 + $0x1e0] sm:$0xff] }
 0x970   : > { %v12637_v33 = vcombine.low %v4097_v10, %v4101_v23 }
 0x971   : > { %3754 = vmatpush1.bf16.msra.mxu1 %v14578_v29  ;;  %v12638_v29 = vcombine.high %v4097_v10, %v4101_v23  ;;  %v4154_v10 = vld [vmem:[%s19551_s17 + $0x388] sm:$0xff] }
 0x972   : > { %3877 = vmatpush1.bf16.msra.mxu0 %v14581_v31  ;;  %10227 = vmatprep.subr.bf16.mxu1 %v12582_v40  ;;  %v4105_v31 = vld [vmem:[%s19551_s17 + $0x200] sm:$0xff] }
 0x973   : > { %10555 = vmatprep.subr.bf16.mxu0 %v12584_v32  ;;  %v4109_v40 = vld [vmem:[%s19551_s17 + $0x220] sm:$0xff]  ;;  %v4106_v32 = vld [vmem:[%s19551_s17 + $0x208] sm:$0xff] }
 0x974   : > { %3756 = vmatmul.mubr.bf16.vlgmr.msra.gmra.mrb[24].mxu1 %v2465_v36  ;;  %v12646_v34 = vcombine.high %v4105_v31, %v4109_v40  ;;  %v12645_v7 = vcombine.low %v4105_v31, %v4109_v40  ;;  %v12647_v35 = vcombine.low %v4106_v32, %v4110_v28  ;;  %v4162_v40 = vld [vmem:[%s19551_s17 + $0x3c8] sm:$0xff] }
 0x975   : > { %3879 = vmatmul.mubr.bf16.vlgmr.msra.gmra.mrb[32].mxu0 %v2465_v36  ;;  %10228 = vmatpush1.bf16.msra.mxu1 %v12581_v22  ;;  %v12648_v22 = vcombine.high %v4106_v32, %v4110_v28  ;;  %v4113_v36 = vld [vmem:[%s19551_s17 + $0x240] sm:$0xff]  ;;  %v4166_v32 = vld [vmem:[%s19551_s17 + $0x3e8] sm:$0xff] }
 0x976   : > { %10556 = vmatpush1.bf16.msra.mxu0 %v12583_v37  ;;  %10229 = vmatprep.subr.bf16.mxu1 %v12590_v39  ;;  %v4117_v37 = vld [vmem:[%s19551_s17 + $0x260] sm:$0xff]  ;;  %v4114_v39 = vld [vmem:[%s19551_s17 + $0x248] sm:$0xff]  ;;  %v12704_v28 = vcombine.high %v4162_v40, %v4166_v32 }
 0x977   : > { %10557 = vmatprep.subr.bf16.mxu0 %v12592_v18  ;;  %v4118_v18 = vld [vmem:[%s19551_s17 + $0x268] sm:$0xff]  ;;  %v12654_v41 = vcombine.high %v4113_v36, %v4117_v37 }
 0x978   : > { %v12656_v42 = vcombine.high %v4114_v39, %v4118_v18 }
 0x979   : > { %10230 = vmatpush1.bf16.msra.mxu1 %v12589_v43  ;;  %v12653_v43 = vcombine.low %v4113_v36, %v4117_v37  ;;  %v16250_v36 = vld [vmem:[%s19551_s17 + $0x408] sm:$0xff] }
 0x97a   : > { %10558 = vmatpush1.bf16.msra.mxu0 %v12591_v44  ;;  %10231 = vmatprep.subr.bf16.mxu1 %v12598_v45  ;;  %v12655_v44 = vcombine.low %v4114_v39, %v4118_v18  ;;  %v4121_v45 = vld [vmem:[%s19551_s17 + $0x280] sm:$0xff]  ;;  %v16257_v39 = vld [vmem:[%s19551_s17 + $0x428] sm:$0xff] }
 0x97b   : > { %10559 = vmatprep.subr.bf16.mxu0 %v12600_v38  ;;  %v4125_v38 = vld [vmem:[%s19551_s17 + $0x2a0] sm:$0xff] }
 0x97c   : > { %v12662_v56 = vcombine.high %v4121_v45, %v4125_v38  ;;  %v12661_v48 = vcombine.low %v4121_v45, %v4125_v38 }
 0x97d   : > { %10232 = vmatpush1.bf16.msra.mxu1 %v12597_v50  ;;  %v12663_v50 = vcombine.low %v4122_v46, %v4126_v47 }
 0x97e   : > { %10560 = vmatpush1.bf16.msra.mxu0 %v12599_v53  ;;  %10233 = vmatprep.subr.bf16.mxu1 %v12606_v54  ;;  %v12664_v53 = vcombine.high %v4122_v46, %v4126_v47  ;;  %v4129_v54 = vld [vmem:[%s19551_s17 + $0x2c0] sm:$0xff] }
 0x97f   : > { %10561 = vmatprep.subr.bf16.mxu0 %v12608_v57  ;;  %v4133_v57 = vld [vmem:[%s19551_s17 + $0x2e0] sm:$0xff] }
 0x980   : > { %v12670_v52 = vcombine.high %v4129_v54, %v4133_v57  ;;  %v12669_v61 = vcombine.low %v4129_v54, %v4133_v57 }
 0x981   : > { %10234 = vmatpush1.bf16.msra.mxu1 %v12605_v62  ;;  %v12671_v62 = vcombine.low %v4130_v59, %v4134_v20 }
 0x982   : > { %10562 = vmatpush1.bf16.msra.mxu0 %v12607_v21  ;;  %10235 = vmatprep.subr.bf16.mxu1 %v12614_v0  ;;  %v12672_v21 = vcombine.high %v4130_v59, %v4134_v20  ;;  %v4137_v0 = vld [vmem:[%s19551_s17 + $0x300] sm:$0xff] }
 0x983   : > { %10563 = vmatprep.subr.bf16.mxu0 %v12616_v5  ;;  %v4141_v5 = vld [vmem:[%s19551_s17 + $0x320] sm:$0xff] }
 0x984   : > { %v12678_v8 = vcombine.high %v4137_v0, %v4141_v5  ;;  %v12677_v9 = vcombine.low %v4137_v0, %v4141_v5 }
 0x985   : > { %10236 = vmatpush1.bf16.msra.mxu1 %v12613_v2  ;;  %v12679_v2 = vcombine.low %v4138_v1, %v4142_v19 }
 0x986   : > { %10564 = vmatpush1.bf16.msra.mxu0 %v12615_v12  ;;  %10237 = vmatprep.subr.bf16.mxu1 %v12622_v3  ;;  %v12680_v12 = vcombine.high %v4138_v1, %v4142_v19  ;;  %v4145_v3 = vld [vmem:[%s19551_s17 + $0x340] sm:$0xff] }
 0x987   : > { %10565 = vmatprep.subr.bf16.mxu0 %v12624_v27  ;;  %v4149_v27 = vld [vmem:[%s19551_s17 + $0x360] sm:$0xff] }
 0x988   : > { %v12686_v13 = vcombine.high %v4145_v3, %v4149_v27  ;;  %v12685_v15 = vcombine.low %v4145_v3, %v4149_v27 }
 0x989   : > { %10238 = vmatpush1.bf16.msra.mxu1 %v12621_v16  ;;  %v12687_v16 = vcombine.low %v4146_v11, %v4150_v14 }
 0x98a   : > { %10566 = vmatpush1.bf16.msra.mxu0 %v12623_v58  ;;  %10239 = vmatprep.subr.bf16.mxu1 %v12630_v55  ;;  %v12688_v58 = vcombine.high %v4146_v11, %v4150_v14  ;;  %v4153_v55 = vld [vmem:[%s19551_s17 + $0x380] sm:$0xff] }
 0x98b   : > { %10567 = vmatprep.subr.bf16.mxu0 %v12632_v17  ;;  %v4157_v17 = vld [vmem:[%s19551_s17 + $0x3a0] sm:$0xff] }
 0x98c   : > { %v12693_v23 = vcombine.low %v4153_v55, %v4157_v17  ;;  %v12694_v4 = vcombine.high %v4153_v55, %v4157_v17 }
 0x98d   : > { %10240 = vmatpush1.bf16.msra.mxu1 %v12629_v49  ;;  %v4161_v49 = vld [vmem:[%s19551_s17 + $0x3c0] sm:$0xff] }
 0x98e   : > { %10568 = vmatpush1.bf16.msra.mxu0 %v12631_v25  ;;  %10241 = vmatprep.subr.bf16.mxu1 %v12638_v29  ;;  %v4165_v25 = vld [vmem:[%s19551_s17 + $0x3e0] sm:$0xff]  ;;  %v12695_v29 = vcombine.low %v4154_v10, %v4158_v26 }
 0x98f   : > { %10569 = vmatprep.subr.bf16.mxu0 %v12640_v30  ;;  %v12696_v30 = vcombine.high %v4154_v10, %v4158_v26  ;;  %v12702_v31 = vcombine.high %v4161_v49, %v4165_v25  ;;  %v4181_v26 = vld [vmem:[%s19551_s17 + $0x460] sm:$0xff] }
 0x991   : > { %10242 = vmatpush1.bf16.msra.mxu1 %v12637_v33  ;;  %v12701_v33 = vcombine.low %v4161_v49, %v4165_v25  ;;  %v4178_v49 = vld [vmem:[%s19551_s17 + $0x448] sm:$0xff] }
 0x992   : > { %10570 = vmatpush1.bf16.msra.mxu0 %v12639_v6  ;;  %10243 = vmatprep.subr.bf16.mxu1 %v12646_v34  ;;  %v12703_v6 = vcombine.low %v4162_v40, %v4166_v32  ;;  %v16240_v34 = vld [vmem:[%s19551_s17 + $0x400] sm:$0xff]  ;;  %v4182_v25 = vld [vmem:[%s19551_s17 + $0x468] sm:$0xff]  ;;  %v12718_v40 = vcombine.high %v4177_v60, %v4181_v26 }
 0x993   : > { %10571 = vmatprep.subr.bf16.mxu0 %v12648_v22  ;;  %v16245_v22 = vld [vmem:[%s19551_s17 + $0x420] sm:$0xff]  ;;  %v12720_v32 = vcombine.high %v4178_v49, %v4182_v25 }
 0x994   : > { %v12710_v37 = vcombine.high %v16240_v34, %v16245_v22  ;;  %v12709_v18 = vcombine.low %v16240_v34, %v16245_v22  ;;  %v4197_v34 = vld [vmem:[%s19551_s17 + $0x4e0] sm:$0xff]  ;;  %v4194_v22 = vld [vmem:[%s19551_s17 + $0x4c8] sm:$0xff] }
 0x995   : > { %10244 = vmatpush1.bf16.msra.mxu1 %v12645_v7  ;;  %v12711_v7 = vcombine.low %v16250_v36, %v16257_v39 }
 0x996   : > { %10572 = vmatpush1.bf16.msra.mxu0 %v12647_v35  ;;  %10245 = vmatprep.subr.bf16.mxu1 %v12654_v41  ;;  %v12712_v35 = vcombine.high %v16250_v36, %v16257_v39  ;;  %v2659_v41 = vld [vmem:[%s19546_s12] sm:$0xf]  ;;  %v4198_v36 = vld [vmem:[%s19551_s17 + $0x4e8] sm:$0xff] }
 0x997   : > { %10573 = vmatprep.subr.bf16.mxu0 %v12656_v42  ;;  %v16269_v42 = vsub.s32 2, %v15527_v51  ;;  %v2664_v38 = vrot.slane %v2659_v41, %v15530_v63 }
 0x999   : > { %10246 = vmatpush1.bf16.msra.mxu1 %v12653_v43  ;;  %v16272_v43 = vsub.s32 3, %v15527_v51  ;;  %v2672_v46 = vrot.slane %v2659_v41, %v16269_v42 }
 0x99a   : > { %10574 = vmatpush1.bf16.msra.mxu0 %v12655_v44  ;;  %10247 = vmatprep.subr.bf16.mxu1 %v12662_v56  ;;  %v14666_v44 = vmov 1966171168   ;;  %v2668_v56 = vrot.slane %v2659_v41, %v15536_v24 }
 0x99b   : > { %10575 = vmatprep.subr.bf16.mxu0 %v12664_v53  ;;  %v3898_v45 = vunpack.c.l.s4 %v14666_v44  ;;  %v2676_v47 = vrot.slane %v2659_v41, %v16272_v43  ;;  %v12719_v41 = vcombine.low %v4178_v49, %v4182_v25  ;;  %v4238_v49 = vld [vmem:[%s19551_s17 + $0x628] sm:$0xff] }
 0x99d   : > { %10248 = vmatpush1.bf16.msra.mxu1 %v12661_v48 }
 0x99e   : > { %10576 = vmatpush1.bf16.msra.mxu0 %v12663_v50  ;;  %10249 = vmatprep.subr.bf16.mxu1 %v12670_v52  ;;  %v3899_v50 = vunpack.c.0.s8 %v3898_v45 }
 0x99f   : > { %10577 = vmatprep.subr.bf16.mxu0 %v12672_v21 }
 0x9a0   : > { %v3902_v19 = vsub.s32 %v3899_v50, %v15527_v51  ;;  %v4206_v50 = vld [vmem:[%s19551_s17 + $0x528] sm:$0xff] }
 0x9a1   : > { %10250 = vmatpush1.bf16.msra.mxu1 %v12669_v61 }
 0x9a2   : > { %10578 = vmatpush1.bf16.msra.mxu0 %v12671_v62  ;;  %10251 = vmatprep.subr.bf16.mxu1 %v12678_v8 }
 0x9a3   : > { %10579 = vmatprep.subr.bf16.mxu0 %v12680_v12 }
 0x9a5   : > { %10252 = vmatpush1.bf16.msra.mxu1 %v12677_v9 }
 0x9a6   : > { %10580 = vmatpush1.bf16.msra.mxu0 %v12679_v2  ;;  %10253 = vmatprep.subr.bf16.mxu1 %v12686_v13 }
 0x9a7   : > { %10581 = vmatprep.subr.bf16.mxu0 %v12688_v58 }
 0x9a9   : > { %10254 = vmatpush1.bf16.msra.mxu1 %v12685_v15 }
 0x9aa   : > { %10582 = vmatpush1.bf16.msra.mxu0 %v12687_v16  ;;  %10255 = vmatprep.subr.bf16.mxu1 %v12694_v4 }
 0x9ab   : > { %10583 = vmatprep.subr.bf16.mxu0 %v12696_v30 }
 0x9ad   : > { %10256 = vmatpush1.bf16.msra.mxu1 %v12693_v23 }
 0x9ae   : > { %10584 = vmatpush1.bf16.msra.mxu0 %v12695_v29  ;;  %10257 = vmatprep.subr.bf16.mxu1 %v12702_v31  ;;  %v4185_v31 = vld [vmem:[%s19551_s17 + $0x480] sm:$0xff] }
 0x9af   : > { %10585 = vmatprep.subr.bf16.mxu0 %v12704_v28  ;;  %v4189_v28 = vld [vmem:[%s19551_s17 + $0x4a0] sm:$0xff] }
 0x9b0   : > { %v12726_v44 = vcombine.high %v4185_v31, %v4189_v28  ;;  %v12725_v39 = vcombine.low %v4185_v31, %v4189_v28  ;;  %v4241_v28 = vld [vmem:[%s19551_s17 + $0x640] sm:$0xff] }
 0x9b1   : > { %10258 = vmatpush1.bf16.msra.mxu1 %v12701_v33  ;;  %v4186_v33 = vld [vmem:[%s19551_s17 + $0x488] sm:$0xff] }
 0x9b2   : > { %10586 = vmatpush1.bf16.msra.mxu0 %v12703_v6  ;;  %10268 = vmatprep.subr.bf16.mxu1 %v12710_v37  ;;  %v4190_v6 = vld [vmem:[%s19551_s17 + $0x4a8] sm:$0xff] }
 0x9b3   : > { %10596 = vmatprep.subr.bf16.mxu0 %v12712_v35  ;;  %v12717_v35 = vcombine.low %v4177_v60, %v4181_v26  ;;  %v12728_v45 = vcombine.high %v4186_v33, %v4190_v6  ;;  %v4233_v60 = vld [vmem:[%s19551_s17 + $0x600] sm:$0xff]  ;;  %v4234_v26 = vld [vmem:[%s19551_s17 + $0x608] sm:$0xff] }
 0xa47   : > { %v3757_v48 = vpop.f32.mrb[24].mxu1 }
 0xa48   : > { %v13901_v53 = vadd.f32 %v3757_v48, %v2664_v38  ;;  %v3880_v54 = vpop.f32.mrb[32].mxu0  ;;  %v3759_v57 = vpop.f32.mrb[25].mxu1  ;;  %v4193_v38 = vld [vmem:[%s19551_s17 + $0x4c0] sm:$0xff]  ;;  %v4202_v48 = vld [vmem:[%s19551_s17 + $0x508] sm:$0xff] }
 0xa49   : > { %v13903_v59 = vadd.f32 %v3880_v54, %v2672_v46  ;;  %v13902_v52 = vadd.f32 %v3759_v57, %v2668_v56  ;;  %v3882_v20 = vpop.f32.mrb[33].mxu0  ;;  %v3761_v61 = vpop.f32.mrb[26].mxu1  ;;  %v12736_v46 = vcombine.high %v4194_v22, %v4198_v36  ;;  %v4201_v56 = vld [vmem:[%s19551_s17 + $0x500] sm:$0xff]  ;;  %v12735_v54 = vcombine.low %v4194_v22, %v4198_v36  ;;  %v4250_v36 = vld [vmem:[%s19551_s17 + $0x688] sm:$0xff] }
 0xa4a   : > { %v3887_v62 = vmax.f32 %v13901_v53, 0.0  ;;  %v13904_v21 = vadd.f32 %v3882_v20, %v2676_v47  ;;  %v3884_v0 = vpop.f32.mrb[34].mxu0  ;;  %v3762_v5 = vpop.f32.mrb[27].mxu1  ;;  %v4205_v47 = vld [vmem:[%s19551_s17 + $0x520] sm:$0xff]  ;;  %v12733_v53 = vcombine.low %v4193_v38, %v4197_v34  ;;  %v4210_v61 = vld [vmem:[%s19551_s17 + $0x548] sm:$0xff] }
 0xa4b   : > { %v3889_v1 = vmax.f32 %v13903_v59, 0.0  ;;  %v3888_v8 = vmax.f32 %v13902_v52, 0.0  ;;  %v3885_v9 = vpop.f32.mrb[35].mxu0  ;;  %v12742_v57 = vcombine.high %v4201_v56, %v4205_v47  ;;  %v12744_v59 = vcombine.high %v4202_v48, %v4206_v50  ;;  %v4209_v52 = vld [vmem:[%s19551_s17 + $0x540] sm:$0xff] }
 0xa4c   : > { %v3890_v2 = vmax.f32 %v13904_v21, 0.0  ;;  %v4213_v20 = vld [vmem:[%s19551_s17 + $0x560] sm:$0xff]  ;;  %v12741_v21 = vcombine.low %v4201_v56, %v4205_v47  ;;  %v12743_v0 = vcombine.low %v4202_v48, %v4206_v50  ;;  %v4218_v9 = vld [vmem:[%s19551_s17 + $0x588] sm:$0xff] }
 0xa4d   : > { %v3895_v12 = vcombine.low %v3887_v62, %v3888_v8  ;;  %v4214_v62 = vld [vmem:[%s19551_s17 + $0x568] sm:$0xff]  ;;  %v12750_v5 = vcombine.high %v4209_v52, %v4213_v20  ;;  %v4217_v8 = vld [vmem:[%s19551_s17 + $0x580] sm:$0xff] }
 0xa4e   : > { %v3896_v3 = vcombine.low %v3889_v1, %v3890_v2  ;;  %v12752_v1 = vcombine.high %v4210_v61, %v4214_v62  ;;  %v4222_v2 = vld [vmem:[%s19551_s17 + $0x5a8] sm:$0xff]  ;;  %v4253_v22 = vld [vmem:[%s19551_s17 + $0x6a0] sm:$0xff] }
 0xa4f   : > { %v3903_v27 = vrot.slane %v3895_v12, %v3902_v19  ;;  %v12749_v12 = vcombine.low %v4209_v52, %v4213_v20  ;;  %v4257_v47 = vld [vmem:[%s19551_s17 + $0x6c0] sm:$0xff]  ;;  %v4258_v50 = vld [vmem:[%s19551_s17 + $0x6c8] sm:$0xff] }
 0xa50   : > { %v3910_v11 = vrot.slane %v3896_v3, %v3902_v19  ;;  %v12751_v3 = vcombine.low %v4210_v61, %v4214_v62  ;;  %v4261_v48 = vld [vmem:[%s19551_s17 + $0x6e0] sm:$0xff]  ;;  %v4266_v62 = vld [vmem:[%s19551_s17 + $0x708] sm:$0xff] }
 0xa51   : > { %v4265_v20 = vld [vmem:[%s19551_s17 + $0x700] sm:$0xff] }
 0xa52   : > { %v3911_v13 = vcombine.low %v3903_v27, %v3910_v11  ;;  %v3925_v14 = vcombine.high %v3903_v27, %v3910_v11  ;;  %v12760_v11 = vcombine.high %v4218_v9, %v4222_v2  ;;  %v4269_v61 = vld [vmem:[%s19551_s17 + $0x720] sm:$0xff] }
 0xa54   : > { %v3918_v15 = vrot.slane %v3911_v13, %v3902_v19  ;;  %v3932_v16 = vrot.slane %v3925_v14, %v3902_v19  ;;  %v4221_v19 = vld [vmem:[%s19551_s17 + $0x5a0] sm:$0xff] }
 0xa55   : > { %v12758_v27 = vcombine.high %v4217_v8, %v4221_v19  ;;  %v4225_v13 = vld [vmem:[%s19551_s17 + $0x5c0] sm:$0xff] }
 0xa56   : > { %3924 = vst.msk [vmem:[#allocation2] sm:$0xf] %vm3922_vm14, %v3918_v15  ;;  %3934 = vst.msk [vmem:[#allocation2 + $0x4] sm:$0xf] %vm3922_vm14, %v3932_v16  ;;  %v3935_v58 = vcombine.high %v3918_v15, %v3918_v15  ;;  %v3938_v55 = vcombine.high %v3932_v16, %v3932_v16  ;;  %v4229_v14 = vld [vmem:[%s19551_s17 + $0x5e0] sm:$0xff]  ;;  %v4226_v15 = vld [vmem:[%s19551_s17 + $0x5c8] sm:$0xff] }
 0xa57   : > { %v4230_v16 = vld [vmem:[%s19551_s17 + $0x5e8] sm:$0xff]  ;;  %v12765_v25 = vcombine.low %v4225_v13, %v4229_v14 }
 0xa58   : > { %3937 = vst.msk [vmem:[#allocation2 + $0x8] sm:$0xf] %vm3922_vm14, %v3935_v58  ;;  %3940 = vst.msk [vmem:[#allocation2 + $0xc] sm:$0xf] %vm3922_vm14, %v3938_v55  ;;  %v12757_v58 = vcombine.low %v4217_v8, %v4221_v19  ;;  %v12759_v55 = vcombine.low %v4218_v9, %v4222_v2  ;;  %v12767_v31 = vcombine.low %v4226_v15, %v4230_v16  ;;  %v4273_v19 = vld [vmem:[%s19551_s17 + $0x740] sm:$0xff]  ;;  %v4274_v2 = vld [vmem:[%s19551_s17 + $0x748] sm:$0xff] }
 0xa59   : > { %v4277_v9 = vld [vmem:[%s19551_s17 + $0x760] sm:$0xff] }
 0xa5d   : > { %v16280_v17 = vld [vmem:[#allocation2] sm:$0xff] }
 0xa5e   : > { %v3952_v10 = vrot.slane %v16280_v17, %v15536_v24  ;;  %v3948_v23 = vrot.slane %v16280_v17, %v15530_v63  ;;  %v3960_v4 = vrot.slane %v16280_v17, %v16272_v43 }
 0xa60   : > { %v16300_v29 = vpack.c.bf16 %v3952_v10, %v3952_v10  ;;  %v16302_v30 = vpack.c.bf16 %v3948_v23, %v3948_v23  ;;  %v16320_v37 = vpack.c.bf16 %v3960_v4, %v3960_v4  ;;  %v12766_v10 = vcombine.high %v4225_v13, %v4229_v14  ;;  %v4237_v4 = vld [vmem:[%s19551_s17 + $0x620] sm:$0xff] }
 0xa61   : > { %v12768_v23 = vcombine.high %v4226_v15, %v4230_v16  ;;  %v4281_v14 = vld [vmem:[%s19551_s17 + $0x780] sm:$0xff]  ;;  %v4282_v16 = vld [vmem:[%s19551_s17 + $0x788] sm:$0xff] }
 0xa62   : > { %10259 = vmatprep.mubr.bf16.mxu1 %v16300_v29  ;;  %10587 = vmatprep.mubr.bf16.mxu0 %v16300_v29  ;;  %v4285_v15 = vld [vmem:[%s19551_s17 + $0x7a0] sm:$0xff] }
 0xa63   : > { %10260 = vmatmul.mubr.bf16.vlgmr.msra.gmra.mrb[28].mxu1 %v16302_v30  ;;  %10588 = vmatmul.mubr.bf16.vlgmr.msra.gmra.mrb[36].mxu0 %v16302_v30 }
 0xa64   : > { %10269 = vmatpush1.bf16.msra.mxu1 %v12709_v18  ;;  %10597 = vmatpush1.bf16.msra.mxu0 %v12711_v7  ;;  %v12727_v18 = vcombine.low %v4186_v33, %v4190_v6  ;;  %v12734_v7 = vcombine.high %v4193_v38, %v4197_v34  ;;  %v4245_v33 = vld [vmem:[%s19551_s17 + $0x660] sm:$0xff]  ;;  %v4242_v6 = vld [vmem:[%s19551_s17 + $0x648] sm:$0xff] }
 0xa65   : > { %10300 = vmatprep.mubr.bf16.mxu1 %v16320_v37  ;;  %10628 = vmatprep.mubr.bf16.mxu0 %v16320_v37  ;;  %v4249_v34 = vld [vmem:[%s19551_s17 + $0x680] sm:$0xff] }
 0xa66   : > { %10270 = vmatprep.subr.bf16.mxu1 %v12718_v40  ;;  %10598 = vmatprep.subr.bf16.mxu0 %v12720_v32  ;;  %v12774_v40 = vcombine.high %v4233_v60, %v4237_v4  ;;  %v12776_v32 = vcombine.high %v4234_v26, %v4238_v49 }
 0xa68   : > { %10271 = vmatpush1.bf16.msra.mxu1 %v12717_v35  ;;  %10599 = vmatpush1.bf16.msra.mxu0 %v12719_v41  ;;  %v4246_v35 = vld [vmem:[%s19551_s17 + $0x668] sm:$0xff]  ;;  %v12773_v41 = vcombine.low %v4233_v60, %v4237_v4  ;;  %v4289_v4 = vld [vmem:[%s19551_s17 + $0x7c0] sm:$0xff] }
 0xa69   : > { %10272 = vmatprep.subr.bf16.mxu1 %v12726_v44  ;;  %10600 = vmatprep.subr.bf16.mxu0 %v12728_v45  ;;  %v12775_v44 = vcombine.low %v4234_v26, %v4238_v49  ;;  %v12782_v45 = vcombine.high %v4241_v28, %v4245_v33  ;;  %v12784_v38 = vcombine.high %v4242_v6, %v4246_v35  ;;  %v4293_v26 = vld [vmem:[%s19551_s17 + $0x7e0] sm:$0xff]  ;;  %v4290_v49 = vld [vmem:[%s19551_s17 + $0x7c8] sm:$0xff] }
 0xa6c   : > { %10273 = vmatpush1.bf16.msra.mxu1 %v12725_v39  ;;  %10601 = vmatpush1.bf16.msra.mxu0 %v12727_v18  ;;  %v4254_v39 = vld [vmem:[%s19551_s17 + $0x6a8] sm:$0xff]  ;;  %v12781_v18 = vcombine.low %v4241_v28, %v4245_v33  ;;  %v4297_v33 = vld [vmem:[%s19551_s17 + $0x800] sm:$0xff] }
 0xa6d   : > { %10274 = vmatprep.subr.bf16.mxu1 %v12734_v7  ;;  %10602 = vmatprep.subr.bf16.mxu0 %v12736_v46  ;;  %v12783_v7 = vcombine.low %v4242_v6, %v4246_v35  ;;  %v12790_v46 = vcombine.high %v4249_v34, %v4253_v22  ;;  %v12792_v56 = vcombine.high %v4250_v36, %v4254_v39  ;;  %v4301_v6 = vld [vmem:[%s19551_s17 + $0x820] sm:$0xff]  ;;  %v4298_v35 = vld [vmem:[%s19551_s17 + $0x808] sm:$0xff] }
 0xa70   : > { %10275 = vmatpush1.bf16.msra.mxu1 %v12733_v53  ;;  %10603 = vmatpush1.bf16.msra.mxu0 %v12735_v54  ;;  %v4262_v53 = vld [vmem:[%s19551_s17 + $0x6e8] sm:$0xff]  ;;  %v12789_v54 = vcombine.low %v4249_v34, %v4253_v22  ;;  %v3956_v34 = vrot.slane %v16280_v17, %v16269_v42  ;;  %v12838_v22 = vcombine.high %v4297_v33, %v4301_v6 }
 0xa71   : > { %10276 = vmatprep.subr.bf16.mxu1 %v12742_v57  ;;  %10604 = vmatprep.subr.bf16.mxu0 %v12744_v59  ;;  %v12791_v57 = vcombine.low %v4250_v36, %v4254_v39  ;;  %v12798_v59 = vcombine.high %v4257_v47, %v4261_v48  ;;  %v12800_v52 = vcombine.high %v4258_v50, %v4262_v53 }
 0xa74   : > { %10277 = vmatpush1.bf16.msra.mxu1 %v12741_v21  ;;  %10605 = vmatpush1.bf16.msra.mxu0 %v12743_v0  ;;  %v4270_v21 = vld [vmem:[%s19551_s17 + $0x728] sm:$0xff]  ;;  %v12797_v0 = vcombine.low %v4257_v47, %v4261_v48  ;;  %v12837_v47 = vcombine.low %v4297_v33, %v4301_v6  ;;  %v16517_v48 = vpack.c.bf16 %v3956_v34, %v3956_v34  ;;  %v4353_v34 = vld [vmem:[%s19551_s17 + $0x9c0] sm:$0xff] }
 0xa75   : > { %10278 = vmatprep.subr.bf16.mxu1 %v12750_v5  ;;  %10606 = vmatprep.subr.bf16.mxu0 %v12752_v1  ;;  %v12799_v5 = vcombine.low %v4258_v50, %v4262_v53  ;;  %v12806_v1 = vcombine.high %v4265_v20, %v4269_v61  ;;  %v12808_v8 = vcombine.high %v4266_v62, %v4270_v21  ;;  %v4346_v33 = vld [vmem:[%s19551_s17 + $0x988] sm:$0xff] }
 0xa76   : > { %v4350_v6 = vld [vmem:[%s19551_s17 + $0x9a8] sm:$0xff] }
 0xa78   : > { %10279 = vmatpush1.bf16.msra.mxu1 %v12749_v12  ;;  %10607 = vmatpush1.bf16.msra.mxu0 %v12751_v3  ;;  %v4278_v12 = vld [vmem:[%s19551_s17 + $0x768] sm:$0xff]  ;;  %v12805_v3 = vcombine.low %v4265_v20, %v4269_v61 }
 0xa79   : > { %10280 = vmatprep.subr.bf16.mxu1 %v12758_v27  ;;  %10608 = vmatprep.subr.bf16.mxu0 %v12760_v11  ;;  %v12807_v27 = vcombine.low %v4266_v62, %v4270_v21  ;;  %v12814_v11 = vcombine.high %v4273_v19, %v4277_v9  ;;  %v12816_v13 = vcombine.high %v4274_v2, %v4278_v12  ;;  %v4314_v20 = vld [vmem:[%s19551_s17 + $0x888] sm:$0xff] }
 0xa7a   : > { %v4318_v61 = vld [vmem:[%s19551_s17 + $0x8a8] sm:$0xff] }
 0xa7c   : > { %10281 = vmatpush1.bf16.msra.mxu1 %v12757_v58  ;;  %10609 = vmatpush1.bf16.msra.mxu0 %v12759_v55  ;;  %v4286_v58 = vld [vmem:[%s19551_s17 + $0x7a8] sm:$0xff]  ;;  %v12813_v55 = vcombine.low %v4273_v19, %v4277_v9 }
 0xa7d   : > { %10282 = vmatprep.subr.bf16.mxu1 %v12766_v10  ;;  %10610 = vmatprep.subr.bf16.mxu0 %v12768_v23  ;;  %v12815_v10 = vcombine.low %v4274_v2, %v4278_v12  ;;  %v12822_v23 = vcombine.high %v4281_v14, %v4285_v15  ;;  %v12824_v60 = vcombine.high %v4282_v16, %v4286_v58  ;;  %v4322_v19 = vld [vmem:[%s19551_s17 + $0x8c8] sm:$0xff] }
 0xa7e   : > { %v4326_v9 = vld [vmem:[%s19551_s17 + $0x8e8] sm:$0xff]  ;;  %v12855_v12 = vcombine.low %v4314_v20, %v4318_v61 }
 0xa80   : > { %10283 = vmatpush1.bf16.msra.mxu1 %v12765_v25  ;;  %10611 = vmatpush1.bf16.msra.mxu0 %v12767_v31  ;;  %v4294_v25 = vld [vmem:[%s19551_s17 + $0x7e8] sm:$0xff]  ;;  %v12821_v31 = vcombine.low %v4281_v14, %v4285_v15 }
 0xa81   : > { %10284 = vmatprep.subr.bf16.mxu1 %v12774_v40  ;;  %10612 = vmatprep.subr.bf16.mxu0 %v12776_v32  ;;  %v12823_v40 = vcombine.low %v4282_v16, %v4286_v58  ;;  %v12830_v32 = vcombine.high %v4289_v4, %v4293_v26  ;;  %v12832_v28 = vcombine.high %v4290_v49, %v4294_v25  ;;  %v4330_v14 = vld [vmem:[%s19551_s17 + $0x908] sm:$0xff] }
 0xa82   : > { %v4334_v15 = vld [vmem:[%s19551_s17 + $0x928] sm:$0xff]  ;;  %v12863_v58 = vcombine.low %v4322_v19, %v4326_v9 }
 0xa84   : > { %10285 = vmatpush1.bf16.msra.mxu1 %v12773_v41  ;;  %10613 = vmatpush1.bf16.msra.mxu0 %v12775_v44  ;;  %v4302_v41 = vld [vmem:[%s19551_s17 + $0x828] sm:$0xff]  ;;  %v16499_v44 = vsub.s32 5, %v15527_v51 }
 0xa85   : > { %10286 = vmatprep.subr.bf16.mxu1 %v12782_v45  ;;  %10614 = vmatprep.subr.bf16.mxu0 %v12784_v38  ;;  %v12829_v45 = vcombine.low %v4289_v4, %v4293_v26  ;;  %v12831_v38 = vcombine.low %v4290_v49, %v4294_v25  ;;  %v12840_v36 = vcombine.high %v4298_v35, %v4302_v41  ;;  %v4338_v4 = vld [vmem:[%s19551_s17 + $0x948] sm:$0xff] }
 0xa86   : > { %v3968_v39 = vrot.slane %v16280_v17, %v16499_v44  ;;  %v12839_v50 = vcombine.low %v4298_v35, %v4302_v41  ;;  %v4342_v26 = vld [vmem:[%s19551_s17 + $0x968] sm:$0xff]  ;;  %v12871_v25 = vcombine.low %v4330_v14, %v4334_v15 }
 0xa87   : > { %v12879_v41 = vcombine.low %v4338_v4, %v4342_v26 }
 0xa88   : > { %10287 = vmatpush1.bf16.msra.mxu1 %v12781_v18  ;;  %10615 = vmatpush1.bf16.msra.mxu0 %v12783_v7  ;;  %v4305_v18 = vld [vmem:[%s19551_s17 + $0x840] sm:$0xff]  ;;  %v16519_v53 = vpack.c.bf16 %v3968_v39, %v3968_v39  ;;  %v4358_v39 = vld [vmem:[%s19551_s17 + $0x9e8] sm:$0xff] }
 0xa89   : > { %10288 = vmatprep.subr.bf16.mxu1 %v12790_v46  ;;  %10616 = vmatprep.subr.bf16.mxu0 %v12792_v56  ;;  %v4309_v7 = vld [vmem:[%s19551_s17 + $0x860] sm:$0xff]  ;;  %v4306_v46 = vld [vmem:[%s19551_s17 + $0x848] sm:$0xff] }
 0xa8a   : > { %v4310_v56 = vld [vmem:[%s19551_s17 + $0x868] sm:$0xff]  ;;  %v12845_v62 = vcombine.low %v4305_v18, %v4309_v7 }
 0xa8b   : > { %v12847_v21 = vcombine.low %v4306_v46, %v4310_v56 }
 0xa8c   : > { %10289 = vmatpush1.bf16.msra.mxu1 %v12789_v54  ;;  %10617 = vmatpush1.bf16.msra.mxu0 %v12791_v57  ;;  %v12846_v54 = vcombine.high %v4305_v18, %v4309_v7  ;;  %v12848_v57 = vcombine.high %v4306_v46, %v4310_v56  ;;  %v12887_v7 = vcombine.low %v4346_v33, %v4350_v6 }
 0xa8d   : > { %10290 = vmatprep.subr.bf16.mxu1 %v12798_v59  ;;  %10618 = vmatprep.subr.bf16.mxu0 %v12800_v52  ;;  %v4313_v59 = vld [vmem:[%s19551_s17 + $0x880] sm:$0xff] }
 0xa8e   : > { %v4317_v52 = vld [vmem:[%s19551_s17 + $0x8a0] sm:$0xff] }
 0xa8f   : > { %v12853_v2 = vcombine.low %v4313_v59, %v4317_v52 }
 0xa90   : > { %10291 = vmatpush1.bf16.msra.mxu1 %v12797_v0  ;;  %10619 = vmatpush1.bf16.msra.mxu0 %v12799_v5  ;;  %v12854_v0 = vcombine.high %v4313_v59, %v4317_v52  ;;  %v12856_v5 = vcombine.high %v4314_v20, %v4318_v61 }
 0xa91   : > { %10292 = vmatprep.subr.bf16.mxu1 %v12806_v1  ;;  %10620 = vmatprep.subr.bf16.mxu0 %v12808_v8  ;;  %v4321_v1 = vld [vmem:[%s19551_s17 + $0x8c0] sm:$0xff] }
 0xa92   : > { %v4325_v8 = vld [vmem:[%s19551_s17 + $0x8e0] sm:$0xff] }
 0xa93   : > { %v12861_v16 = vcombine.low %v4321_v1, %v4325_v8 }
 0xa94   : > { %10293 = vmatpush1.bf16.msra.mxu1 %v12805_v3  ;;  %10621 = vmatpush1.bf16.msra.mxu0 %v12807_v27  ;;  %v12862_v3 = vcombine.high %v4321_v1, %v4325_v8  ;;  %v12864_v27 = vcombine.high %v4322_v19, %v4326_v9 }
 0xa95   : > { %10294 = vmatprep.subr.bf16.mxu1 %v12814_v11  ;;  %10622 = vmatprep.subr.bf16.mxu0 %v12816_v13  ;;  %v4329_v11 = vld [vmem:[%s19551_s17 + $0x900] sm:$0xff] }
 0xa96   : > { %v4333_v13 = vld [vmem:[%s19551_s17 + $0x920] sm:$0xff] }
 0xa97   : > { %v12869_v49 = vcombine.low %v4329_v11, %v4333_v13 }
 0xa98   : > { %10295 = vmatpush1.bf16.msra.mxu1 %v12813_v55  ;;  %10623 = vmatpush1.bf16.msra.mxu0 %v12815_v10  ;;  %v12870_v55 = vcombine.high %v4329_v11, %v4333_v13  ;;  %v12872_v10 = vcombine.high %v4330_v14, %v4334_v15 }
 0xa99   : > { %10296 = vmatprep.subr.bf16.mxu1 %v12822_v23  ;;  %10624 = vmatprep.subr.bf16.mxu0 %v12824_v60  ;;  %v4337_v23 = vld [vmem:[%s19551_s17 + $0x940] sm:$0xff] }
 0xa9a   : > { %v4341_v60 = vld [vmem:[%s19551_s17 + $0x960] sm:$0xff] }
 0xa9b   : > { %v12877_v35 = vcombine.low %v4337_v23, %v4341_v60 }
 0xa9c   : > { %10297 = vmatpush1.bf16.msra.mxu1 %v12821_v31  ;;  %10625 = vmatpush1.bf16.msra.mxu0 %v12823_v40  ;;  %v12878_v31 = vcombine.high %v4337_v23, %v4341_v60  ;;  %v12880_v40 = vcombine.high %v4338_v4, %v4342_v26 }
 0xa9d   : > { %10298 = vmatprep.subr.bf16.mxu1 %v12830_v32  ;;  %10626 = vmatprep.subr.bf16.mxu0 %v12832_v28  ;;  %v4345_v32 = vld [vmem:[%s19551_s17 + $0x980] sm:$0xff] }
 0xa9e   : > { %v4349_v28 = vld [vmem:[%s19551_s17 + $0x9a0] sm:$0xff] }
 0xa9f   : > { %v12885_v18 = vcombine.low %v4345_v32, %v4349_v28 }
 0xaa0   : > { %10299 = vmatpush1.bf16.msra.mxu1 %v12829_v45  ;;  %10627 = vmatpush1.bf16.msra.mxu0 %v12831_v38  ;;  %v12886_v45 = vcombine.high %v4345_v32, %v4349_v28  ;;  %v12888_v38 = vcombine.high %v4346_v33, %v4350_v6 }
 0xaa1   : > { %10309 = vmatprep.subr.bf16.mxu1 %v12838_v22  ;;  %10637 = vmatprep.subr.bf16.mxu0 %v12840_v36  ;;  %v4357_v22 = vld [vmem:[%s19551_s17 + $0x9e0] sm:$0xff]  ;;  %v4354_v36 = vld [vmem:[%s19551_s17 + $0x9c8] sm:$0xff] }
 0xaa2   : > { %v12894_v46 = vcombine.high %v4353_v34, %v4357_v22  ;;  %v12896_v56 = vcombine.high %v4354_v36, %v4358_v39  ;;  %v12893_v59 = vcombine.low %v4353_v34, %v4357_v22  ;;  %v12895_v52 = vcombine.low %v4354_v36, %v4358_v39 }
 0xaa3   : > { %10301 = vmatmul.mubr.bf16.vlgmr.msra.gmra.mrb[28].mxu1 %v16517_v48  ;;  %10629 = vmatmul.mubr.bf16.vlgmr.msra.gmra.mrb[36].mxu0 %v16517_v48 }
 0xaa4   : > { %10310 = vmatpush1.bf16.msra.mxu1 %v12837_v47  ;;  %10341 = vmatprep.mubr.bf16.mxu1 %v16519_v53  ;;  %v4361_v47 = vld [vmem:[%s19551_s17 + $0xa00] sm:$0xff] }
 0xaa5   : > { %10638 = vmatpush1.bf16.msra.mxu0 %v12839_v50  ;;  %10669 = vmatprep.mubr.bf16.mxu0 %v16519_v53  ;;  %v4365_v50 = vld [vmem:[%s19551_s17 + $0xa20] sm:$0xff] }
 0xaa6   : > { %10311 = vmatprep.subr.bf16.mxu1 %v12846_v54  ;;  %10639 = vmatprep.subr.bf16.mxu0 %v12848_v57  ;;  %v4362_v54 = vld [vmem:[%s19551_s17 + $0xa08] sm:$0xff]  ;;  %v12902_v20 = vcombine.high %v4361_v47, %v4365_v50  ;;  %v12901_v1 = vcombine.low %v4361_v47, %v4365_v50 }
 0xaa7   : > { %v4366_v57 = vld [vmem:[%s19551_s17 + $0xa28] sm:$0xff] }
 0xaa8   : > { %10312 = vmatpush1.bf16.msra.mxu1 %v12845_v62  ;;  %v12904_v61 = vcombine.high %v4362_v54, %v4366_v57  ;;  %v4369_v62 = vld [vmem:[%s19551_s17 + $0xa40] sm:$0xff]  ;;  %v12903_v8 = vcombine.low %v4362_v54, %v4366_v57 }
 0xaa9   : > { %10640 = vmatpush1.bf16.msra.mxu0 %v12847_v21  ;;  %10313 = vmatprep.subr.bf16.mxu1 %v12854_v0  ;;  %v4373_v21 = vld [vmem:[%s19551_s17 + $0xa60] sm:$0xff]  ;;  %v4370_v0 = vld [vmem:[%s19551_s17 + $0xa48] sm:$0xff] }
 0xaaa   : > { %10641 = vmatprep.subr.bf16.mxu0 %v12856_v5  ;;  %v4374_v5 = vld [vmem:[%s19551_s17 + $0xa68] sm:$0xff]  ;;  %v12910_v19 = vcombine.high %v4369_v62, %v4373_v21  ;;  %v12909_v11 = vcombine.low %v4369_v62, %v4373_v21 }
 0xaab   : > { %v12912_v9 = vcombine.high %v4370_v0, %v4374_v5  ;;  %v12911_v13 = vcombine.low %v4370_v0, %v4374_v5  ;;  %v16694_v5 = vsub.s32 4, %v15527_v51 }
 0xaac   : > { %10314 = vmatpush1.bf16.msra.mxu1 %v12853_v2  ;;  %v4377_v2 = vld [vmem:[%s19551_s17 + $0xa80] sm:$0xff] }
 0xaad   : > { %10642 = vmatpush1.bf16.msra.mxu0 %v12855_v12  ;;  %10315 = vmatprep.subr.bf16.mxu1 %v12862_v3  ;;  %v4381_v12 = vld [vmem:[%s19551_s17 + $0xaa0] sm:$0xff]  ;;  %v4378_v3 = vld [vmem:[%s19551_s17 + $0xa88] sm:$0xff] }
 0xaae   : > { %10643 = vmatprep.subr.bf16.mxu0 %v12864_v27  ;;  %v4382_v27 = vld [vmem:[%s19551_s17 + $0xaa8] sm:$0xff]  ;;  %v12918_v14 = vcombine.high %v4377_v2, %v4381_v12  ;;  %v12917_v23 = vcombine.low %v4377_v2, %v4381_v12  ;;  %v16709_v12 = vsub.s32 7, %v15527_v51 }
 0xaaf   : > { %v12920_v15 = vcombine.high %v4378_v3, %v4382_v27  ;;  %v12919_v60 = vcombine.low %v4378_v3, %v4382_v27  ;;  %v4430_v2 = vld [vmem:[%s19551_s17 + $0xc28] sm:$0xff] }
 0xab0   : > { %10316 = vmatpush1.bf16.msra.mxu1 %v12861_v16  ;;  %v4385_v16 = vld [vmem:[%s19551_s17 + $0xac0] sm:$0xff] }
 0xab1   : > { %10644 = vmatpush1.bf16.msra.mxu0 %v12863_v58  ;;  %10317 = vmatprep.subr.bf16.mxu1 %v12870_v55  ;;  %v4389_v58 = vld [vmem:[%s19551_s17 + $0xae0] sm:$0xff]  ;;  %v4386_v55 = vld [vmem:[%s19551_s17 + $0xac8] sm:$0xff] }
 0xab2   : > { %10645 = vmatprep.subr.bf16.mxu0 %v12872_v10  ;;  %v4390_v10 = vld [vmem:[%s19551_s17 + $0xae8] sm:$0xff]  ;;  %v12926_v4 = vcombine.high %v4385_v16, %v4389_v58  ;;  %v12925_v32 = vcombine.low %v4385_v16, %v4389_v58  ;;  %v4433_v16 = vld [vmem:[%s19551_s17 + $0xc40] sm:$0xff] }
 0xab3   : > { %v12928_v26 = vcombine.high %v4386_v55, %v4390_v10  ;;  %v12927_v28 = vcombine.low %v4386_v55, %v4390_v10  ;;  %v4437_v58 = vld [vmem:[%s19551_s17 + $0xc60] sm:$0xff]  ;;  %v4434_v10 = vld [vmem:[%s19551_s17 + $0xc48] sm:$0xff] }
 0xab4   : > { %10318 = vmatpush1.bf16.msra.mxu1 %v12869_v49  ;;  %v4393_v49 = vld [vmem:[%s19551_s17 + $0xb00] sm:$0xff] }
 0xab5   : > { %10646 = vmatpush1.bf16.msra.mxu0 %v12871_v25  ;;  %10319 = vmatprep.subr.bf16.mxu1 %v12878_v31  ;;  %v4397_v25 = vld [vmem:[%s19551_s17 + $0xb20] sm:$0xff]  ;;  %v4394_v31 = vld [vmem:[%s19551_s17 + $0xb08] sm:$0xff] }
 0xab6   : > { %10647 = vmatprep.subr.bf16.mxu0 %v12880_v40  ;;  %v4398_v40 = vld [vmem:[%s19551_s17 + $0xb28] sm:$0xff]  ;;  %v12934_v33 = vcombine.high %v4393_v49, %v4397_v25  ;;  %v12933_v34 = vcombine.low %v4393_v49, %v4397_v25  ;;  %v4445_v49 = vld [vmem:[%s19551_s17 + $0xca0] sm:$0xff] }
 0xab7   : > { %v12936_v6 = vcombine.high %v4394_v31, %v4398_v40  ;;  %v12935_v22 = vcombine.low %v4394_v31, %v4398_v40  ;;  %v4442_v40 = vld [vmem:[%s19551_s17 + $0xc88] sm:$0xff] }
 0xab8   : > { %10320 = vmatpush1.bf16.msra.mxu1 %v12877_v35  ;;  %v4401_v35 = vld [vmem:[%s19551_s17 + $0xb40] sm:$0xff] }
 0xab9   : > { %10648 = vmatpush1.bf16.msra.mxu0 %v12879_v41  ;;  %10321 = vmatprep.subr.bf16.mxu1 %v12886_v45  ;;  %v4405_v41 = vld [vmem:[%s19551_s17 + $0xb60] sm:$0xff]  ;;  %v4402_v45 = vld [vmem:[%s19551_s17 + $0xb48] sm:$0xff] }
 0xaba   : > { %10649 = vmatprep.subr.bf16.mxu0 %v12888_v38  ;;  %v4406_v38 = vld [vmem:[%s19551_s17 + $0xb68] sm:$0xff]  ;;  %v12942_v36 = vcombine.high %v4401_v35, %v4405_v41  ;;  %v12941_v47 = vcombine.low %v4401_v35, %v4405_v41  ;;  %v4449_v41 = vld [vmem:[%s19551_s17 + $0xcc0] sm:$0xff] }
 0xabb   : > { %v12944_v39 = vcombine.high %v4402_v45, %v4406_v38  ;;  %v12943_v50 = vcombine.low %v4402_v45, %v4406_v38  ;;  %v4453_v45 = vld [vmem:[%s19551_s17 + $0xce0] sm:$0xff]  ;;  %v4450_v38 = vld [vmem:[%s19551_s17 + $0xcc8] sm:$0xff] }
 0xabc   : > { %10322 = vmatpush1.bf16.msra.mxu1 %v12885_v18  ;;  %v4409_v18 = vld [vmem:[%s19551_s17 + $0xb80] sm:$0xff] }
 0xabd   : > { %10650 = vmatpush1.bf16.msra.mxu0 %v12887_v7  ;;  %10323 = vmatprep.subr.bf16.mxu1 %v12894_v46  ;;  %v4413_v7 = vld [vmem:[%s19551_s17 + $0xba0] sm:$0xff]  ;;  %v4410_v46 = vld [vmem:[%s19551_s17 + $0xb88] sm:$0xff] }
 0xabe   : > { %10651 = vmatprep.subr.bf16.mxu0 %v12896_v56  ;;  %v4414_v56 = vld [vmem:[%s19551_s17 + $0xba8] sm:$0xff]  ;;  %v12950_v54 = vcombine.high %v4409_v18, %v4413_v7  ;;  %v12949_v62 = vcombine.low %v4409_v18, %v4413_v7  ;;  %v4457_v7 = vld [vmem:[%s19551_s17 + $0xd00] sm:$0xff] }
 0xabf   : > { %v12952_v57 = vcombine.high %v4410_v46, %v4414_v56  ;;  %v12951_v21 = vcombine.low %v4410_v46, %v4414_v56  ;;  %v4461_v46 = vld [vmem:[%s19551_s17 + $0xd20] sm:$0xff]  ;;  %v4458_v56 = vld [vmem:[%s19551_s17 + $0xd08] sm:$0xff] }
 0xac0   : > { %10324 = vmatpush1.bf16.msra.mxu1 %v12893_v59  ;;  %v4417_v59 = vld [vmem:[%s19551_s17 + $0xbc0] sm:$0xff] }
 0xac1   : > { %10652 = vmatpush1.bf16.msra.mxu0 %v12895_v52  ;;  %10325 = vmatprep.subr.bf16.mxu1 %v12902_v20  ;;  %v4421_v52 = vld [vmem:[%s19551_s17 + $0xbe0] sm:$0xff]  ;;  %v4418_v20 = vld [vmem:[%s19551_s17 + $0xbc8] sm:$0xff] }
 0xac2   : > { %10653 = vmatprep.subr.bf16.mxu0 %v12904_v61  ;;  %v4422_v61 = vld [vmem:[%s19551_s17 + $0xbe8] sm:$0xff]  ;;  %v12958_v0 = vcombine.high %v4417_v59, %v4421_v52  ;;  %v12957_v3 = vcombine.low %v4417_v59, %v4421_v52  ;;  %v4465_v52 = vld [vmem:[%s19551_s17 + $0xd40] sm:$0xff] }
 0xac3   : > { %v12959_v27 = vcombine.low %v4418_v20, %v4422_v61 }
 0xac4   : > { %10326 = vmatpush1.bf16.msra.mxu1 %v12901_v1  ;;  %v12960_v1 = vcombine.high %v4418_v20, %v4422_v61  ;;  %v4469_v20 = vld [vmem:[%s19551_s17 + $0xd60] sm:$0xff]  ;;  %v4466_v61 = vld [vmem:[%s19551_s17 + $0xd48] sm:$0xff] }
 0xac5   : > { %10654 = vmatpush1.bf16.msra.mxu0 %v12903_v8  ;;  %10327 = vmatprep.subr.bf16.mxu1 %v12910_v19  ;;  %v4425_v8 = vld [vmem:[%s19551_s17 + $0xc00] sm:$0xff] }
 0xac6   : > { %10655 = vmatprep.subr.bf16.mxu0 %v12912_v9  ;;  %v4429_v19 = vld [vmem:[%s19551_s17 + $0xc20] sm:$0xff]  ;;  %v4426_v9 = vld [vmem:[%s19551_s17 + $0xc08] sm:$0xff] }
 0xac7   : > { %v12965_v55 = vcombine.low %v4425_v8, %v4429_v19 }
 0xac8   : > { %10328 = vmatpush1.bf16.msra.mxu1 %v12909_v11  ;;  %v3964_v11 = vrot.slane %v16280_v17, %v16694_v5 }
 0xac9   : > { %10656 = vmatpush1.bf16.msra.mxu0 %v12911_v13  ;;  %10329 = vmatprep.subr.bf16.mxu1 %v12918_v14  ;;  %v12966_v13 = vcombine.high %v4425_v8, %v4429_v19  ;;  %v12968_v14 = vcombine.high %v4426_v9, %v4430_v2  ;;  %v4473_v19 = vld [vmem:[%s19551_s17 + $0xd80] sm:$0xff] }
 0xaca   : > { %10657 = vmatprep.subr.bf16.mxu0 %v12920_v15  ;;  %v3976_v15 = vrot.slane %v16280_v17, %v16709_v12  ;;  %v16727_v17 = vpack.c.bf16 %v3964_v11, %v3964_v11 }
 0xacc   : > { %10330 = vmatpush1.bf16.msra.mxu1 %v12917_v23  ;;  %v4438_v23 = vld [vmem:[%s19551_s17 + $0xc68] sm:$0xff]  ;;  %v16736_v25 = vpack.c.bf16 %v3976_v15, %v3976_v15  ;;  %v4481_v15 = vld [vmem:[%s19551_s17 + $0xdc0] sm:$0xff] }
 0xacd   : > { %10658 = vmatpush1.bf16.msra.mxu0 %v12919_v60  ;;  %10331 = vmatprep.subr.bf16.mxu1 %v12926_v4  ;;  %v12967_v60 = vcombine.low %v4426_v9, %v4430_v2  ;;  %v12974_v4 = vcombine.high %v4433_v16, %v4437_v58  ;;  %v12976_v31 = vcombine.high %v4434_v10, %v4438_v23  ;;  %v4477_v9 = vld [vmem:[%s19551_s17 + $0xda0] sm:$0xff]  ;;  %v4474_v2 = vld [vmem:[%s19551_s17 + $0xd88] sm:$0xff] }
 0xace   : > { %10659 = vmatprep.subr.bf16.mxu0 %v12928_v26  ;;  %v4441_v26 = vld [vmem:[%s19551_s17 + $0xc80] sm:$0xff] }
 0xad0   : > { %10332 = vmatpush1.bf16.msra.mxu1 %v12925_v32  ;;  %v4446_v32 = vld [vmem:[%s19551_s17 + $0xca8] sm:$0xff] }
 0xad1   : > { %10660 = vmatpush1.bf16.msra.mxu0 %v12927_v28  ;;  %10333 = vmatprep.subr.bf16.mxu1 %v12934_v33  ;;  %v12973_v28 = vcombine.low %v4433_v16, %v4437_v58  ;;  %v12975_v33 = vcombine.low %v4434_v10, %v4438_v23  ;;  %v12984_v35 = vcombine.high %v4442_v40, %v4446_v32  ;;  %v4485_v16 = vld [vmem:[%s19551_s17 + $0xde0] sm:$0xff]  ;;  %v4482_v58 = vld [vmem:[%s19551_s17 + $0xdc8] sm:$0xff] }
 0xad2   : > { %10661 = vmatprep.subr.bf16.mxu0 %v12936_v6  ;;  %v12982_v6 = vcombine.high %v4441_v26, %v4445_v49  ;;  %v13013_v10 = vcombine.low %v4473_v19, %v4477_v9 }
 0xad4   : > { %10334 = vmatpush1.bf16.msra.mxu1 %v12933_v34  ;;  %v4454_v34 = vld [vmem:[%s19551_s17 + $0xce8] sm:$0xff] }
 0xad5   : > { %10662 = vmatpush1.bf16.msra.mxu0 %v12935_v22  ;;  %10335 = vmatprep.subr.bf16.mxu1 %v12942_v36  ;;  %v12981_v22 = vcombine.low %v4441_v26, %v4445_v49  ;;  %v12983_v36 = vcombine.low %v4442_v40, %v4446_v32  ;;  %v12992_v18 = vcombine.high %v4450_v38, %v4454_v34  ;;  %v4489_v26 = vld [vmem:[%s19551_s17 + $0xe00] sm:$0xff]  ;;  %v4494_v40 = vld [vmem:[%s19551_s17 + $0xe28] sm:$0xff] }
 0xad6   : > { %10663 = vmatprep.subr.bf16.mxu0 %v12944_v39  ;;  %v12990_v39 = vcombine.high %v4449_v41, %v4453_v45  ;;  %v4493_v49 = vld [vmem:[%s19551_s17 + $0xe20] sm:$0xff]  ;;  %v13021_v32 = vcombine.low %v4481_v15, %v4485_v16 }
 0xad8   : > { %10336 = vmatpush1.bf16.msra.mxu1 %v12941_v47  ;;  %v4462_v47 = vld [vmem:[%s19551_s17 + $0xd28] sm:$0xff] }
 0xad9   : > { %10664 = vmatpush1.bf16.msra.mxu0 %v12943_v50  ;;  %10337 = vmatprep.subr.bf16.mxu1 %v12950_v54  ;;  %v12989_v50 = vcombine.low %v4449_v41, %v4453_v45  ;;  %v12991_v54 = vcombine.low %v4450_v38, %v4454_v34  ;;  %v13000_v59 = vcombine.high %v4458_v56, %v4462_v47  ;;  %v4501_v41 = vld [vmem:[%s19551_s17 + $0xe60] sm:$0xff]  ;;  %v4498_v45 = vld [vmem:[%s19551_s17 + $0xe48] sm:$0xff] }
 0xada   : > { %10665 = vmatprep.subr.bf16.mxu0 %v12952_v57  ;;  %v12998_v57 = vcombine.high %v4457_v7, %v4461_v46  ;;  %v4502_v38 = vld [vmem:[%s19551_s17 + $0xe68] sm:$0xff]  ;;  %v13029_v34 = vcombine.low %v4489_v26, %v4493_v49 }
 0xadc   : > { %10338 = vmatpush1.bf16.msra.mxu1 %v12949_v62  ;;  %v4470_v62 = vld [vmem:[%s19551_s17 + $0xd68] sm:$0xff] }
 0xadd   : > { %10666 = vmatpush1.bf16.msra.mxu0 %v12951_v21  ;;  %10339 = vmatprep.subr.bf16.mxu1 %v12958_v0  ;;  %v12997_v21 = vcombine.low %v4457_v7, %v4461_v46  ;;  %v12999_v0 = vcombine.low %v4458_v56, %v4462_v47  ;;  %v13008_v8 = vcombine.high %v4466_v61, %v4470_v62  ;;  %v4509_v7 = vld [vmem:[%s19551_s17 + $0xea0] sm:$0xff]  ;;  %v4506_v46 = vld [vmem:[%s19551_s17 + $0xe88] sm:$0xff] }
 0xade   : > { %10667 = vmatprep.subr.bf16.mxu0 %v12960_v1  ;;  %v13006_v1 = vcombine.high %v4465_v52, %v4469_v20  ;;  %v13007_v11 = vcombine.low %v4466_v61, %v4470_v62  ;;  %v4510_v56 = vld [vmem:[%s19551_s17 + $0xea8] sm:$0xff] }
 0xadf   : > { %v4518_v61 = vld [vmem:[%s19551_s17 + $0xee8] sm:$0xff] }
 0xae0   : > { %10340 = vmatpush1.bf16.msra.mxu1 %v12957_v3  ;;  %v4478_v3 = vld [vmem:[%s19551_s17 + $0xda8] sm:$0xff] }
 0xae1   : > { %10668 = vmatpush1.bf16.msra.mxu0 %v12959_v27  ;;  %10350 = vmatprep.subr.bf16.mxu1 %v12966_v13  ;;  %v13005_v27 = vcombine.low %v4465_v52, %v4469_v20  ;;  %v13014_v13 = vcombine.high %v4473_v19, %v4477_v9  ;;  %v13015_v23 = vcombine.low %v4474_v2, %v4478_v3  ;;  %v4517_v52 = vld [vmem:[%s19551_s17 + $0xee0] sm:$0xff]  ;;  %v4514_v20 = vld [vmem:[%s19551_s17 + $0xec8] sm:$0xff] }
 0xae2   : > { %10678 = vmatprep.subr.bf16.mxu0 %v12968_v14  ;;  %v13016_v14 = vcombine.high %v4474_v2, %v4478_v3  ;;  %v4525_v19 = vld [vmem:[%s19551_s17 + $0xf20] sm:$0xff]  ;;  %v4522_v9 = vld [vmem:[%s19551_s17 + $0xf08] sm:$0xff] }
 0xae3   : > { %10342 = vmatmul.mubr.bf16.vlgmr.msra.gmra.mrb[28].mxu1 %v16727_v17  ;;  %v4526_v2 = vld [vmem:[%s19551_s17 + $0xf28] sm:$0xff] }
 0xae4   : > { %10670 = vmatmul.mubr.bf16.vlgmr.msra.gmra.mrb[36].mxu0 %v16727_v17  ;;  %10351 = vmatpush1.bf16.msra.mxu1 %v12965_v55  ;;  %v4486_v55 = vld [vmem:[%s19551_s17 + $0xde8] sm:$0xff] }
 0xae5   : > { %10382 = vmatprep.mubr.bf16.mxu1 %v16736_v25  ;;  %10679 = vmatpush1.bf16.msra.mxu0 %v12967_v60  ;;  %v13022_v60 = vcombine.high %v4481_v15, %v4485_v16  ;;  %v4533_v15 = vld [vmem:[%s19551_s17 + $0xf60] sm:$0xff]  ;;  %v4530_v16 = vld [vmem:[%s19551_s17 + $0xf48] sm:$0xff] }
 0xae6   : > { %10710 = vmatprep.mubr.bf16.mxu0 %v16736_v25  ;;  %10352 = vmatprep.subr.bf16.mxu1 %v12974_v4  ;;  %v13024_v4 = vcombine.high %v4482_v58, %v4486_v55 }
 0xae7   : > { %10680 = vmatprep.subr.bf16.mxu0 %v12976_v31  ;;  %v4490_v31 = vld [vmem:[%s19551_s17 + $0xe08] sm:$0xff] }
 0xae8   : > { %10353 = vmatpush1.bf16.msra.mxu1 %v12973_v28  ;;  %v13023_v28 = vcombine.low %v4482_v58, %v4486_v55  ;;  %v4534_v58 = vld [vmem:[%s19551_s17 + $0xf68] sm:$0xff] }
 0xae9   : > { %10681 = vmatpush1.bf16.msra.mxu0 %v12975_v33  ;;  %10354 = vmatprep.subr.bf16.mxu1 %v12982_v6  ;;  %v13030_v33 = vcombine.high %v4489_v26, %v4493_v49  ;;  %v13032_v6 = vcombine.high %v4490_v31, %v4494_v40  ;;  %v4541_v26 = vld [vmem:[%s19551_s17 + $0xfa0] sm:$0xff]  ;;  %v4538_v49 = vld [vmem:[%s19551_s17 + $0xf88] sm:$0xff] }
 0xaea   : > { %10682 = vmatprep.subr.bf16.mxu0 %v12984_v35  ;;  %v4497_v35 = vld [vmem:[%s19551_s17 + $0xe40] sm:$0xff] }
 0xaeb   : > { %v13037_v47 = vcombine.low %v4497_v35, %v4501_v41 }
 0xaec   : > { %10355 = vmatpush1.bf16.msra.mxu1 %v12981_v22  ;;  %v13031_v22 = vcombine.low %v4490_v31, %v4494_v40  ;;  %v4542_v31 = vld [vmem:[%s19551_s17 + $0xfa8] sm:$0xff] }
 0xaed   : > { %10683 = vmatpush1.bf16.msra.mxu0 %v12983_v36  ;;  %10356 = vmatprep.subr.bf16.mxu1 %v12990_v39  ;;  %v13038_v36 = vcombine.high %v4497_v35, %v4501_v41  ;;  %v13040_v39 = vcombine.high %v4498_v45, %v4502_v38  ;;  %v4549_v35 = vld [vmem:[%s19551_s17 + $0xfe0] sm:$0xff]  ;;  %v4546_v41 = vld [vmem:[%s19551_s17 + $0xfc8] sm:$0xff] }
 0xaee   : > { %10684 = vmatprep.subr.bf16.mxu0 %v12992_v18  ;;  %v4505_v18 = vld [vmem:[%s19551_s17 + $0xe80] sm:$0xff] }
 0xaef   : > { %v13045_v62 = vcombine.low %v4505_v18, %v4509_v7 }
 0xaf0   : > { %10357 = vmatpush1.bf16.msra.mxu1 %v12989_v50  ;;  %v13039_v50 = vcombine.low %v4498_v45, %v4502_v38  ;;  %v4550_v45 = vld [vmem:[%s19551_s17 + $0xfe8] sm:$0xff] }
 0xaf1   : > { %10685 = vmatpush1.bf16.msra.mxu0 %v12991_v54  ;;  %10358 = vmatprep.subr.bf16.mxu1 %v12998_v57  ;;  %v13046_v54 = vcombine.high %v4505_v18, %v4509_v7  ;;  %v13048_v57 = vcombine.high %v4506_v46, %v4510_v56  ;;  %v4553_v18 = vld [vmem:[%s19551_s17 + $0x1000] sm:$0xff] }
 0xaf2   : > { %10686 = vmatprep.subr.bf16.mxu0 %v13000_v59  ;;  %v4513_v59 = vld [vmem:[%s19551_s17 + $0xec0] sm:$0xff] }
 0xaf3   : > { %v13053_v3 = vcombine.low %v4513_v59, %v4517_v52  ;;  %v4557_v7 = vld [vmem:[%s19551_s17 + $0x1020] sm:$0xff] }
 0xaf4   : > { %10359 = vmatpush1.bf16.msra.mxu1 %v12997_v21  ;;  %v13047_v21 = vcombine.low %v4506_v46, %v4510_v56  ;;  %v4554_v46 = vld [vmem:[%s19551_s17 + $0x1008] sm:$0xff] }
 0xaf5   : > { %10687 = vmatpush1.bf16.msra.mxu0 %v12999_v0  ;;  %10360 = vmatprep.subr.bf16.mxu1 %v13006_v1  ;;  %v13054_v0 = vcombine.high %v4513_v59, %v4517_v52  ;;  %v13056_v1 = vcombine.high %v4514_v20, %v4518_v61  ;;  %v4558_v56 = vld [vmem:[%s19551_s17 + $0x1028] sm:$0xff]  ;;  %v13094_v59 = vcombine.high %v4553_v18, %v4557_v7 }
 0xaf6   : > { %10688 = vmatprep.subr.bf16.mxu0 %v13008_v8  ;;  %v4521_v8 = vld [vmem:[%s19551_s17 + $0xf00] sm:$0xff]  ;;  %v13096_v52 = vcombine.high %v4554_v46, %v4558_v56 }
 0xaf7   : > { %v13061_v55 = vcombine.low %v4521_v8, %v4525_v19 }
 0xaf8   : > { %10361 = vmatpush1.bf16.msra.mxu1 %v13005_v27  ;;  %v13055_v27 = vcombine.low %v4514_v20, %v4518_v61  ;;  %v4561_v61 = vld [vmem:[%s19551_s17 + $0x1040] sm:$0xff] }
 0xaf9   : > { %10689 = vmatpush1.bf16.msra.mxu0 %v13007_v11  ;;  %10362 = vmatprep.subr.bf16.mxu1 %v13014_v13  ;;  %v13062_v11 = vcombine.high %v4521_v8, %v4525_v19  ;;  %v13064_v13 = vcombine.high %v4522_v9, %v4526_v2  ;;  %v13095_v19 = vcombine.low %v4554_v46, %v4558_v56 }
 0xafa   : > { %10690 = vmatprep.subr.bf16.mxu0 %v13016_v14  ;;  %v4529_v14 = vld [vmem:[%s19551_s17 + $0xf40] sm:$0xff] }
 0xafb   : > { %v13069_v40 = vcombine.low %v4529_v14, %v4533_v15 }
 0xafc   : > { %10363 = vmatpush1.bf16.msra.mxu1 %v13013_v10  ;;  %v13063_v10 = vcombine.low %v4522_v9, %v4526_v2  ;;  %v4569_v2 = vld [vmem:[%s19551_s17 + $0x1080] sm:$0xff] }
 0xafd   : > { %10691 = vmatpush1.bf16.msra.mxu0 %v13015_v23  ;;  %10364 = vmatprep.subr.bf16.mxu1 %v13022_v60  ;;  %v13070_v23 = vcombine.high %v4529_v14, %v4533_v15  ;;  %v13072_v60 = vcombine.high %v4530_v16, %v4534_v58  ;;  %v4574_v14 = vld [vmem:[%s19551_s17 + $0x10a8] sm:$0xff] }
 0xafe   : > { %10692 = vmatprep.subr.bf16.mxu0 %v13024_v4  ;;  %v4537_v4 = vld [vmem:[%s19551_s17 + $0xf80] sm:$0xff] }
 0xaff   : > { %v13077_v38 = vcombine.low %v4537_v4, %v4541_v26 }
 0xb00   : > { %10365 = vmatpush1.bf16.msra.mxu1 %v13021_v32  ;;  %v13071_v32 = vcombine.low %v4530_v16, %v4534_v58 }
 0xb01   : > { %10693 = vmatpush1.bf16.msra.mxu0 %v13023_v28  ;;  %10366 = vmatprep.subr.bf16.mxu1 %v13030_v33  ;;  %v13078_v28 = vcombine.high %v4537_v4, %v4541_v26  ;;  %v13080_v33 = vcombine.high %v4538_v49, %v4542_v31  ;;  %v4582_v4 = vld [vmem:[%s19551_s17 + $0x10e8] sm:$0xff] }
 0xb02   : > { %10694 = vmatprep.subr.bf16.mxu0 %v13032_v6  ;;  %v4545_v6 = vld [vmem:[%s19551_s17 + $0xfc0] sm:$0xff] }
 0xb04   : > { %10367 = vmatpush1.bf16.msra.mxu1 %v13029_v34  ;;  %v13079_v34 = vcombine.low %v4538_v49, %v4542_v31 }
 0xb05   : > { %10695 = vmatpush1.bf16.msra.mxu0 %v13031_v22  ;;  %10368 = vmatprep.subr.bf16.mxu1 %v13038_v36  ;;  %v13086_v22 = vcombine.high %v4545_v6, %v4549_v35  ;;  %v16904_v36 = vsub.s32 6, %v15527_v51  ;;  %v13085_v51 = vcombine.low %v4545_v6, %v4549_v35  ;;  %v4590_v6 = vld [vmem:[%s19551_s17 + $0x1128] sm:$0xff] }
 0xb06   : > { %10696 = vmatprep.subr.bf16.mxu0 %v13040_v39  ;;  %v13088_v39 = vcombine.high %v4546_v41, %v4550_v45 }
 0xb08   : > { %10369 = vmatpush1.bf16.msra.mxu1 %v13037_v47  ;;  %v16918_v47 = vld [vmem:[#allocation2 + $0x8] sm:$0xff] }
 0xb09   : > { %10697 = vmatpush1.bf16.msra.mxu0 %v13039_v50  ;;  %10370 = vmatprep.subr.bf16.mxu1 %v13046_v54  ;;  %v13087_v50 = vcombine.low %v4546_v41, %v4550_v45  ;;  %v14648_v54 = vld [vmem:[#allocation2] sm:$0xff]  ;;  %v3984_v20 = vrot.slane %v16918_v47, %v15536_v24 }
 0xb0a   : > { %10698 = vmatprep.subr.bf16.mxu0 %v13048_v57  ;;  %v3972_v57 = vrot.slane %v14648_v54, %v16904_v36  ;;  %v4605_v54 = vld [vmem:[%s19551_s17 + $0x11a0] sm:$0xff] }
 0xb0c   : > { %10371 = vmatpush1.bf16.msra.mxu1 %v13045_v62  ;;  %v4565_v62 = vld [vmem:[%s19551_s17 + $0x1060] sm:$0xff]  ;;  %v16935_v8 = vpack.c.bf16 %v3972_v57, %v3972_v57  ;;  %v4602_v57 = vld [vmem:[%s19551_s17 + $0x1188] sm:$0xff] }
 0xb0d   : > { %10699 = vmatpush1.bf16.msra.mxu0 %v13047_v21  ;;  %10372 = vmatprep.subr.bf16.mxu1 %v13054_v0  ;;  %v13093_v21 = vcombine.low %v4553_v18, %v4557_v7  ;;  %v4562_v0 = vld [vmem:[%s19551_s17 + $0x1048] sm:$0xff]  ;;  %v13102_v9 = vcombine.high %v4561_v61, %v4565_v62  ;;  %v13101_v15 = vcombine.low %v4561_v61, %v4565_v62 }
 0xb0e   : > { %10700 = vmatprep.subr.bf16.mxu0 %v13056_v1  ;;  %v4566_v1 = vld [vmem:[%s19551_s17 + $0x1068] sm:$0xff] }
 0xb0f   : > { %v13103_v16 = vcombine.low %v4562_v0, %v4566_v1  ;;  %v4598_v18 = vld [vmem:[%s19551_s17 + $0x1168] sm:$0xff] }
 0xb10   : > { %10373 = vmatpush1.bf16.msra.mxu1 %v13053_v3  ;;  %v4573_v3 = vld [vmem:[%s19551_s17 + $0x10a0] sm:$0xff] }
 0xb11   : > { %10701 = vmatpush1.bf16.msra.mxu0 %v13055_v27  ;;  %10374 = vmatprep.subr.bf16.mxu1 %v13062_v11  ;;  %v16944_v27 = vpack.c.bf16 %v3984_v20, %v3984_v20  ;;  %v13104_v11 = vcombine.high %v4562_v0, %v4566_v1  ;;  %v13110_v58 = vcombine.high %v4569_v2, %v4573_v3  ;;  %v4613_v0 = vld [vmem:[%s19551_s17 + $0x11e0] sm:$0xff]  ;;  %v4610_v1 = vld [vmem:[%s19551_s17 + $0x11c8] sm:$0xff] }
 0xb12   : > { %10702 = vmatprep.subr.bf16.mxu0 %v13064_v13  ;;  %v4570_v13 = vld [vmem:[%s19551_s17 + $0x1088] sm:$0xff]  ;;  %v13109_v26 = vcombine.low %v4569_v2, %v4573_v3 }
 0xb13   : > { %v13111_v49 = vcombine.low %v4570_v13, %v4574_v14 }
 0xb14   : > { %10375 = vmatpush1.bf16.msra.mxu1 %v13061_v55  ;;  %v13112_v55 = vcombine.high %v4570_v13, %v4574_v14  ;;  %v4617_v13 = vld [vmem:[%s19551_s17 + $0x1200] sm:$0xff] }
 0xb15   : > { %10703 = vmatpush1.bf16.msra.mxu0 %v13063_v10  ;;  %10376 = vmatprep.subr.bf16.mxu1 %v13070_v23  ;;  %v4577_v10 = vld [vmem:[%s19551_s17 + $0x10c0] sm:$0xff] }
 0xb16   : > { %10704 = vmatprep.subr.bf16.mxu0 %v13072_v60  ;;  %v4581_v23 = vld [vmem:[%s19551_s17 + $0x10e0] sm:$0xff]  ;;  %v4578_v60 = vld [vmem:[%s19551_s17 + $0x10c8] sm:$0xff] }
 0xb17   : > { %v13118_v31 = vcombine.high %v4577_v10, %v4581_v23  ;;  %v13117_v35 = vcombine.low %v4577_v10, %v4581_v23  ;;  %v13119_v41 = vcombine.low %v4578_v60, %v4582_v4  ;;  %v4621_v14 = vld [vmem:[%s19551_s17 + $0x1220] sm:$0xff] }
 0xb18   : > { %10377 = vmatpush1.bf16.msra.mxu1 %v13069_v40  ;;  %v13120_v40 = vcombine.high %v4578_v60, %v4582_v4  ;;  %v13158_v10 = vcombine.high %v4617_v13, %v4621_v14  ;;  %v4625_v60 = vld [vmem:[%s19551_s17 + $0x1240] sm:$0xff] }
 0xb19   : > { %10705 = vmatpush1.bf16.msra.mxu0 %v13071_v32  ;;  %10378 = vmatprep.subr.bf16.mxu1 %v13078_v28  ;;  %v4585_v32 = vld [vmem:[%s19551_s17 + $0x1100] sm:$0xff] }
 0xb1a   : > { %10706 = vmatprep.subr.bf16.mxu0 %v13080_v33  ;;  %v4589_v28 = vld [vmem:[%s19551_s17 + $0x1120] sm:$0xff]  ;;  %v4586_v33 = vld [vmem:[%s19551_s17 + $0x1108] sm:$0xff] }
 0xb1b   : > { %v13126_v45 = vcombine.high %v4585_v32, %v4589_v28  ;;  %v13125_v7 = vcombine.low %v4585_v32, %v4589_v28  ;;  %v13127_v46 = vcombine.low %v4586_v33, %v4590_v6  ;;  %v4629_v4 = vld [vmem:[%s19551_s17 + $0x1260] sm:$0xff] }
 0xb1c   : > { %10379 = vmatpush1.bf16.msra.mxu1 %v13077_v38  ;;  %v13128_v38 = vcombine.high %v4586_v33, %v4590_v6  ;;  %v13166_v32 = vcombine.high %v4625_v60, %v4629_v4  ;;  %v4633_v33 = vld [vmem:[%s19551_s17 + $0x1280] sm:$0xff] }
 0xb1d   : > { %10707 = vmatpush1.bf16.msra.mxu0 %v13079_v34  ;;  %10380 = vmatprep.subr.bf16.mxu1 %v13086_v22  ;;  %v4593_v34 = vld [vmem:[%s19551_s17 + $0x1140] sm:$0xff] }
 0xb1e   : > { %10708 = vmatprep.subr.bf16.mxu0 %v13088_v39  ;;  %v4597_v22 = vld [vmem:[%s19551_s17 + $0x1160] sm:$0xff]  ;;  %v4594_v39 = vld [vmem:[%s19551_s17 + $0x1148] sm:$0xff] }
 0xb1f   : > { %v13134_v56 = vcombine.high %v4593_v34, %v4597_v22  ;;  %v13135_v20 = vcombine.low %v4594_v39, %v4598_v18  ;;  %v4637_v6 = vld [vmem:[%s19551_s17 + $0x12a0] sm:$0xff] }
 0xb20   : > { %10381 = vmatpush1.bf16.msra.mxu1 %v13085_v51  ;;  %v13136_v51 = vcombine.high %v4594_v39, %v4598_v18  ;;  %v4641_v39 = vld [vmem:[%s19551_s17 + $0x12c0] sm:$0xff] }
 0xb21   : > { %10709 = vmatpush1.bf16.msra.mxu0 %v13087_v50  ;;  %10391 = vmatprep.subr.bf16.mxu1 %v13094_v59  ;;  %v4601_v50 = vld [vmem:[%s19551_s17 + $0x1180] sm:$0xff]  ;;  %v4606_v59 = vld [vmem:[%s19551_s17 + $0x11a8] sm:$0xff] }
 0xb22   : > { %10719 = vmatprep.subr.bf16.mxu0 %v13096_v52  ;;  %v13133_v52 = vcombine.low %v4593_v34, %v4597_v22  ;;  %v13142_v61 = vcombine.high %v4601_v50, %v4605_v54  ;;  %v13144_v62 = vcombine.high %v4602_v57, %v4606_v59  ;;  %v13143_v2 = vcombine.low %v4602_v57, %v4606_v59  ;;  %v4645_v18 = vld [vmem:[%s19551_s17 + $0x12e0] sm:$0xff] }
 0xb23   : > { %10383 = vmatmul.mubr.bf16.vlgmr.msra.gmra.mrb[28].mxu1 %v16935_v8  ;;  %v13174_v34 = vcombine.high %v4633_v33, %v4637_v6  ;;  %v4649_v57 = vld [vmem:[%s19551_s17 + $0x1300] sm:$0xff] }
 0xb24   : > { %10711 = vmatmul.mubr.bf16.vlgmr.msra.gmra.mrb[36].mxu0 %v16935_v8  ;;  %10392 = vmatpush1.bf16.msra.mxu1 %v13093_v21  ;;  %v4609_v21 = vld [vmem:[%s19551_s17 + $0x11c0] sm:$0xff] }
 0xb25   : > { %10423 = vmatprep.mubr.bf16.mxu1 %v16944_v27  ;;  %10720 = vmatpush1.bf16.msra.mxu0 %v13095_v19  ;;  %v4614_v19 = vld [vmem:[%s19551_s17 + $0x11e8] sm:$0xff]  ;;  %v13150_v3 = vcombine.high %v4609_v21, %v4613_v0  ;;  %v4653_v59 = vld [vmem:[%s19551_s17 + $0x1320] sm:$0xff] }
 0xb26   : > { %10751 = vmatprep.mubr.bf16.mxu0 %v16944_v27  ;;  %10393 = vmatprep.subr.bf16.mxu1 %v13102_v9  ;;  %v13141_v9 = vcombine.low %v4601_v50, %v4605_v54  ;;  %v13182_v50 = vcombine.high %v4641_v39, %v4645_v18 }
 0xb27   : > { %10721 = vmatprep.subr.bf16.mxu0 %v13104_v11  ;;  %v13152_v11 = vcombine.high %v4610_v1, %v4614_v19 }
 0xb28   : > { %10394 = vmatpush1.bf16.msra.mxu1 %v13101_v15  ;;  %v4618_v15 = vld [vmem:[%s19551_s17 + $0x1208] sm:$0xff] }
 0xb29   : > { %10722 = vmatpush1.bf16.msra.mxu0 %v13103_v16  ;;  %10395 = vmatprep.subr.bf16.mxu1 %v13110_v58  ;;  %v4622_v16 = vld [vmem:[%s19551_s17 + $0x1228] sm:$0xff]  ;;  %v13149_v58 = vcombine.low %v4609_v21, %v4613_v0  ;;  %v13190_v21 = vcombine.high %v4649_v57, %v4653_v59 }
 0xb2a   : > { %10723 = vmatprep.subr.bf16.mxu0 %v13112_v55  ;;  %v13151_v55 = vcombine.low %v4610_v1, %v4614_v19  ;;  %v13160_v23 = vcombine.high %v4618_v15, %v4622_v16  ;;  %v4657_v1 = vld [vmem:[%s19551_s17 + $0x1340] sm:$0xff] }
 0xb2b   : > { %v4661_v19 = vld [vmem:[%s19551_s17 + $0x1360] sm:$0xff] }
 0xb2c   : > { %10396 = vmatpush1.bf16.msra.mxu1 %v13109_v26  ;;  %v4626_v26 = vld [vmem:[%s19551_s17 + $0x1248] sm:$0xff] }
 0xb2d   : > { %10724 = vmatpush1.bf16.msra.mxu0 %v13111_v49  ;;  %10397 = vmatprep.subr.bf16.mxu1 %v13118_v31  ;;  %v4630_v49 = vld [vmem:[%s19551_s17 + $0x1268] sm:$0xff]  ;;  %v13157_v31 = vcombine.low %v4617_v13, %v4621_v14  ;;  %v13198_v13 = vcombine.high %v4657_v1, %v4661_v19 }
 0xb2e   : > { %10725 = vmatprep.subr.bf16.mxu0 %v13120_v40  ;;  %v13159_v40 = vcombine.low %v4618_v15, %v4622_v16  ;;  %v13168_v28 = vcombine.high %v4626_v26, %v4630_v49  ;;  %v4665_v15 = vld [vmem:[%s19551_s17 + $0x1380] sm:$0xff] }
 0xb2f   : > { %v4669_v16 = vld [vmem:[%s19551_s17 + $0x13a0] sm:$0xff] }
 0xb30   : > { %10398 = vmatpush1.bf16.msra.mxu1 %v13117_v35  ;;  %v4634_v35 = vld [vmem:[%s19551_s17 + $0x1288] sm:$0xff] }
 0xb31   : > { %10726 = vmatpush1.bf16.msra.mxu0 %v13119_v41  ;;  %10399 = vmatprep.subr.bf16.mxu1 %v13126_v45  ;;  %v4638_v41 = vld [vmem:[%s19551_s17 + $0x12a8] sm:$0xff]  ;;  %v13165_v45 = vcombine.low %v4625_v60, %v4629_v4  ;;  %v13206_v60 = vcombine.high %v4665_v15, %v4669_v16 }
 0xb32   : > { %10727 = vmatprep.subr.bf16.mxu0 %v13128_v38  ;;  %v13167_v38 = vcombine.low %v4626_v26, %v4630_v49  ;;  %v13176_v22 = vcombine.high %v4634_v35, %v4638_v41  ;;  %v4673_v26 = vld [vmem:[%s19551_s17 + $0x13c0] sm:$0xff] }
 0xb33   : > { %v4677_v49 = vld [vmem:[%s19551_s17 + $0x13e0] sm:$0xff] }
 0xb34   : > { %10400 = vmatpush1.bf16.msra.mxu1 %v13125_v7  ;;  %v4642_v7 = vld [vmem:[%s19551_s17 + $0x12c8] sm:$0xff] }
 0xb35   : > { %10728 = vmatpush1.bf16.msra.mxu0 %v13127_v46  ;;  %10401 = vmatprep.subr.bf16.mxu1 %v13134_v56  ;;  %v4646_v46 = vld [vmem:[%s19551_s17 + $0x12e8] sm:$0xff]  ;;  %v13173_v56 = vcombine.low %v4633_v33, %v4637_v6  ;;  %v13214_v33 = vcombine.high %v4673_v26, %v4677_v49 }
 0xb36   : > { %10729 = vmatprep.subr.bf16.mxu0 %v13136_v51  ;;  %v13175_v51 = vcombine.low %v4634_v35, %v4638_v41  ;;  %v13184_v54 = vcombine.high %v4642_v7, %v4646_v46  ;;  %v4681_v35 = vld [vmem:[%s19551_s17 + $0x1400] sm:$0xff] }
 0xb37   : > { %v4685_v41 = vld [vmem:[%s19551_s17 + $0x1420] sm:$0xff] }
 0xb38   : > { %10402 = vmatpush1.bf16.msra.mxu1 %v13133_v52  ;;  %v4650_v52 = vld [vmem:[%s19551_s17 + $0x1308] sm:$0xff] }
 0xb39   : > { %10730 = vmatpush1.bf16.msra.mxu0 %v13135_v20  ;;  %10403 = vmatprep.subr.bf16.mxu1 %v13142_v61  ;;  %v4654_v20 = vld [vmem:[%s19551_s17 + $0x1328] sm:$0xff]  ;;  %v13181_v61 = vcombine.low %v4641_v39, %v4645_v18  ;;  %v3980_v39 = vrot.slane %v16918_v47, %v15530_v63  ;;  %v13222_v18 = vcombine.high %v4681_v35, %v4685_v41 }
 0xb3a   : > { %10731 = vmatprep.subr.bf16.mxu0 %v13144_v62  ;;  %v13183_v62 = vcombine.low %v4642_v7, %v4646_v46  ;;  %v13192_v0 = vcombine.high %v4650_v52, %v4654_v20  ;;  %v3992_v46 = vrot.slane %v16918_v47, %v16272_v43 }
 0xb3c   : > { %10404 = vmatpush1.bf16.msra.mxu1 %v13141_v9  ;;  %v4658_v9 = vld [vmem:[%s19551_s17 + $0x1348] sm:$0xff] }
 0xb3d   : > { %10732 = vmatpush1.bf16.msra.mxu0 %v13143_v2  ;;  %10405 = vmatprep.subr.bf16.mxu1 %v13150_v3  ;;  %v4662_v2 = vld [vmem:[%s19551_s17 + $0x1368] sm:$0xff]  ;;  %v13189_v3 = vcombine.low %v4649_v57, %v4653_v59  ;;  %v17139_v59 = vpack.c.bf16 %v3980_v39, %v3980_v39  ;;  %v4729_v39 = vld [vmem:[%s19551_s17 + $0x1580] sm:$0xff] }
 0xb3e   : > { %10733 = vmatprep.subr.bf16.mxu0 %v13152_v11  ;;  %v13191_v11 = vcombine.low %v4650_v52, %v4654_v20  ;;  %v13200_v14 = vcombine.high %v4658_v9, %v4662_v2  ;;  %v4694_v57 = vld [vmem:[%s19551_s17 + $0x1468] sm:$0xff] }
 0xb40   : > { %10406 = vmatpush1.bf16.msra.mxu1 %v13149_v58  ;;  %v4666_v58 = vld [vmem:[%s19551_s17 + $0x1388] sm:$0xff] }
 0xb41   : > { %10734 = vmatpush1.bf16.msra.mxu0 %v13151_v55  ;;  %10407 = vmatprep.subr.bf16.mxu1 %v13158_v10  ;;  %v4670_v55 = vld [vmem:[%s19551_s17 + $0x13a8] sm:$0xff]  ;;  %v13197_v10 = vcombine.low %v4657_v1, %v4661_v19 }
 0xb42   : > { %10735 = vmatprep.subr.bf16.mxu0 %v13160_v23  ;;  %v13199_v23 = vcombine.low %v4658_v9, %v4662_v2  ;;  %v13208_v4 = vcombine.high %v4666_v58, %v4670_v55  ;;  %v4698_v1 = vld [vmem:[%s19551_s17 + $0x1488] sm:$0xff] }
 0xb43   : > { %v4702_v19 = vld [vmem:[%s19551_s17 + $0x14a8] sm:$0xff] }
 0xb44   : > { %10408 = vmatpush1.bf16.msra.mxu1 %v13157_v31  ;;  %v4674_v31 = vld [vmem:[%s19551_s17 + $0x13c8] sm:$0xff] }
 0xb45   : > { %10736 = vmatpush1.bf16.msra.mxu0 %v13159_v40  ;;  %10409 = vmatprep.subr.bf16.mxu1 %v13166_v32  ;;  %v4678_v40 = vld [vmem:[%s19551_s17 + $0x13e8] sm:$0xff]  ;;  %v13205_v32 = vcombine.low %v4665_v15, %v4669_v16 }
 0xb46   : > { %10737 = vmatprep.subr.bf16.mxu0 %v13168_v28  ;;  %v13207_v28 = vcombine.low %v4666_v58, %v4670_v55  ;;  %v13216_v6 = vcombine.high %v4674_v31, %v4678_v40  ;;  %v4706_v15 = vld [vmem:[%s19551_s17 + $0x14c8] sm:$0xff]  ;;  %v13239_v55 = vcombine.low %v4698_v1, %v4702_v19 }
 0xb47   : > { %v4710_v16 = vld [vmem:[%s19551_s17 + $0x14e8] sm:$0xff] }
 0xb48   : > { %10410 = vmatpush1.bf16.msra.mxu1 %v13165_v45  ;;  %v4682_v45 = vld [vmem:[%s19551_s17 + $0x1408] sm:$0xff] }
 0xb49   : > { %10738 = vmatpush1.bf16.msra.mxu0 %v13167_v38  ;;  %10411 = vmatprep.subr.bf16.mxu1 %v13174_v34  ;;  %v4686_v38 = vld [vmem:[%s19551_s17 + $0x1428] sm:$0xff]  ;;  %v13213_v34 = vcombine.low %v4673_v26, %v4677_v49 }
 0xb4a   : > { %10739 = vmatprep.subr.bf16.mxu0 %v13176_v22  ;;  %v13215_v22 = vcombine.low %v4674_v31, %v4678_v40  ;;  %v13224_v7 = vcombine.high %v4682_v45, %v4686_v38  ;;  %v13223_v52 = vcombine.low %v4682_v45, %v4686_v38  ;;  %v4714_v26 = vld [vmem:[%s19551_s17 + $0x1508] sm:$0xff]  ;;  %v13247_v40 = vcombine.low %v4706_v15, %v4710_v16 }
 0xb4b   : > { %v4718_v49 = vld [vmem:[%s19551_s17 + $0x1528] sm:$0xff] }
 0xb4c   : > { %10412 = vmatpush1.bf16.msra.mxu1 %v13173_v56  ;;  %v4689_v56 = vld [vmem:[%s19551_s17 + $0x1440] sm:$0xff]  ;;  %v13255_v38 = vcombine.low %v4714_v26, %v4718_v49 }
 0xb4d   : > { %10740 = vmatpush1.bf16.msra.mxu0 %v13175_v51  ;;  %10413 = vmatprep.subr.bf16.mxu1 %v13182_v50  ;;  %v4693_v51 = vld [vmem:[%s19551_s17 + $0x1460] sm:$0xff]  ;;  %v13221_v50 = vcombine.low %v4681_v35, %v4685_v41  ;;  %v4722_v35 = vld [vmem:[%s19551_s17 + $0x1548] sm:$0xff] }
 0xb4e   : > { %10741 = vmatprep.subr.bf16.mxu0 %v13184_v54  ;;  %v4690_v54 = vld [vmem:[%s19551_s17 + $0x1448] sm:$0xff]  ;;  %v13230_v20 = vcombine.high %v4689_v56, %v4693_v51  ;;  %v13229_v9 = vcombine.low %v4689_v56, %v4693_v51 }
 0xb4f   : > { %v13231_v2 = vcombine.low %v4690_v54, %v4694_v57  ;;  %v4726_v41 = vld [vmem:[%s19551_s17 + $0x1568] sm:$0xff] }
 0xb50   : > { %10414 = vmatpush1.bf16.msra.mxu1 %v13181_v61  ;;  %v4697_v61 = vld [vmem:[%s19551_s17 + $0x1480] sm:$0xff]  ;;  %v13263_v51 = vcombine.low %v4722_v35, %v4726_v41 }
 0xb51   : > { %10742 = vmatpush1.bf16.msra.mxu0 %v13183_v62  ;;  %10415 = vmatprep.subr.bf16.mxu1 %v13190_v21  ;;  %v4701_v62 = vld [vmem:[%s19551_s17 + $0x14a0] sm:$0xff]  ;;  %v17148_v21 = vpack.c.bf16 %v3992_v46, %v3992_v46  ;;  %v4734_v46 = vld [vmem:[%s19551_s17 + $0x15a8] sm:$0xff] }
 0xb52   : > { %10743 = vmatprep.subr.bf16.mxu0 %v13192_v0  ;;  %v13232_v0 = vcombine.high %v4690_v54, %v4694_v57  ;;  %v13237_v58 = vcombine.low %v4697_v61, %v4701_v62  ;;  %v4737_v57 = vld [vmem:[%s19551_s17 + $0x15c0] sm:$0xff] }
 0xb54   : > { %10416 = vmatpush1.bf16.msra.mxu1 %v13189_v3  ;;  %v13238_v3 = vcombine.high %v4697_v61, %v4701_v62  ;;  %v4742_v61 = vld [vmem:[%s19551_s17 + $0x15e8] sm:$0xff] }
 0xb55   : > { %10744 = vmatpush1.bf16.msra.mxu0 %v13191_v11  ;;  %10417 = vmatprep.subr.bf16.mxu1 %v13198_v13  ;;  %v13240_v11 = vcombine.high %v4698_v1, %v4702_v19  ;;  %v4705_v13 = vld [vmem:[%s19551_s17 + $0x14c0] sm:$0xff] }
 0xb56   : > { %10745 = vmatprep.subr.bf16.mxu0 %v13200_v14  ;;  %v4709_v14 = vld [vmem:[%s19551_s17 + $0x14e0] sm:$0xff] }
 0xb57   : > { %v13245_v31 = vcombine.low %v4705_v13, %v4709_v14 }
 0xb58   : > { %10418 = vmatpush1.bf16.msra.mxu1 %v13197_v10  ;;  %v13246_v10 = vcombine.high %v4705_v13, %v4709_v14 }
 0xb59   : > { %10746 = vmatpush1.bf16.msra.mxu0 %v13199_v23  ;;  %10419 = vmatprep.subr.bf16.mxu1 %v13206_v60  ;;  %v13248_v23 = vcombine.high %v4706_v15, %v4710_v16  ;;  %v4713_v60 = vld [vmem:[%s19551_s17 + $0x1500] sm:$0xff] }
 0xb5a   : > { %10747 = vmatprep.subr.bf16.mxu0 %v13208_v4  ;;  %v4717_v4 = vld [vmem:[%s19551_s17 + $0x1520] sm:$0xff] }
 0xb5b   : > { %v13253_v45 = vcombine.low %v4713_v60, %v4717_v4 }
 0xb5c   : > { %10420 = vmatpush1.bf16.msra.mxu1 %v13205_v32  ;;  %v13254_v32 = vcombine.high %v4713_v60, %v4717_v4 }
 0xb5d   : > { %10748 = vmatpush1.bf16.msra.mxu0 %v13207_v28  ;;  %10421 = vmatprep.subr.bf16.mxu1 %v13214_v33  ;;  %v13256_v28 = vcombine.high %v4714_v26, %v4718_v49  ;;  %v4721_v33 = vld [vmem:[%s19551_s17 + $0x1540] sm:$0xff] }
 0xb5e   : > { %10749 = vmatprep.subr.bf16.mxu0 %v13216_v6  ;;  %v4725_v6 = vld [vmem:[%s19551_s17 + $0x1560] sm:$0xff] }
 0xb5f   : > { %v13261_v56 = vcombine.low %v4721_v33, %v4725_v6 }
 0xb60   : > { %10422 = vmatpush1.bf16.msra.mxu1 %v13213_v34  ;;  %v13262_v34 = vcombine.high %v4721_v33, %v4725_v6 }
 0xb61   : > { %10750 = vmatpush1.bf16.msra.mxu0 %v13215_v22  ;;  %10432 = vmatprep.subr.bf16.mxu1 %v13222_v18  ;;  %v13264_v22 = vcombine.high %v4722_v35, %v4726_v41  ;;  %v4733_v18 = vld [vmem:[%s19551_s17 + $0x15a0] sm:$0xff] }
 0xb62   : > { %10760 = vmatprep.subr.bf16.mxu0 %v13224_v7  ;;  %v4730_v7 = vld [vmem:[%s19551_s17 + $0x1588] sm:$0xff]  ;;  %v13269_v62 = vcombine.low %v4729_v39, %v4733_v18 }
 0xb63   : > { %10424 = vmatmul.mubr.bf16.vlgmr.msra.gmra.mrb[28].mxu1 %v17139_v59  ;;  %v13272_v54 = vcombine.high %v4730_v7, %v4734_v46 }
 0xb64   : > { %10752 = vmatmul.mubr.bf16.vlgmr.msra.gmra.mrb[36].mxu0 %v17139_v59  ;;  %10433 = vmatpush1.bf16.msra.mxu1 %v13221_v50  ;;  %v13270_v50 = vcombine.high %v4729_v39, %v4733_v18 }
 0xb65   : > { %10464 = vmatprep.mubr.bf16.mxu1 %v17148_v21  ;;  %10761 = vmatpush1.bf16.msra.mxu0 %v13223_v52  ;;  %v4741_v52 = vld [vmem:[%s19551_s17 + $0x15e0] sm:$0xff] }
 0xb66   : > { %10792 = vmatprep.mubr.bf16.mxu0 %v17148_v21  ;;  %10434 = vmatprep.subr.bf16.mxu1 %v13230_v20  ;;  %v4738_v20 = vld [vmem:[%s19551_s17 + $0x15c8] sm:$0xff]  ;;  %v13278_v1 = vcombine.high %v4737_v57, %v4741_v52  ;;  %v13277_v13 = vcombine.low %v4737_v57, %v4741_v52 }
 0xb67   : > { %10762 = vmatprep.subr.bf16.mxu0 %v13232_v0  ;;  %v13271_v0 = vcombine.low %v4730_v7, %v4734_v46  ;;  %v13280_v19 = vcombine.high %v4738_v20, %v4742_v61  ;;  %v13279_v14 = vcombine.low %v4738_v20, %v4742_v61 }
 0xb68   : > { %10435 = vmatpush1.bf16.msra.mxu1 %v13229_v9  ;;  %v4745_v9 = vld [vmem:[%s19551_s17 + $0x1600] sm:$0xff] }
 0xb69   : > { %10763 = vmatpush1.bf16.msra.mxu0 %v13231_v2  ;;  %10436 = vmatprep.subr.bf16.mxu1 %v13238_v3  ;;  %v4749_v2 = vld [vmem:[%s19551_s17 + $0x1620] sm:$0xff]  ;;  %v4746_v3 = vld [vmem:[%s19551_s17 + $0x1608] sm:$0xff] }
 0xb6a   : > { %10764 = vmatprep.subr.bf16.mxu0 %v13240_v11  ;;  %v4750_v11 = vld [vmem:[%s19551_s17 + $0x1628] sm:$0xff]  ;;  %v13286_v15 = vcombine.high %v4745_v9, %v4749_v2  ;;  %v13285_v60 = vcombine.low %v4745_v9, %v4749_v2 }
 0xb6b   : > { %v13288_v16 = vcombine.high %v4746_v3, %v4750_v11  ;;  %v13287_v4 = vcombine.low %v4746_v3, %v4750_v11 }
 0xb6c   : > { %10437 = vmatpush1.bf16.msra.mxu1 %v13237_v58  ;;  %v4753_v58 = vld [vmem:[%s19551_s17 + $0x1640] sm:$0xff] }
 0xb6d   : > { %10765 = vmatpush1.bf16.msra.mxu0 %v13239_v55  ;;  %10438 = vmatprep.subr.bf16.mxu1 %v13246_v10  ;;  %v4757_v55 = vld [vmem:[%s19551_s17 + $0x1660] sm:$0xff]  ;;  %v4754_v10 = vld [vmem:[%s19551_s17 + $0x1648] sm:$0xff] }
 0xb6e   : > { %10766 = vmatprep.subr.bf16.mxu0 %v13248_v23  ;;  %v4758_v23 = vld [vmem:[%s19551_s17 + $0x1668] sm:$0xff]  ;;  %v13294_v26 = vcombine.high %v4753_v58, %v4757_v55  ;;  %v13293_v33 = vcombine.low %v4753_v58, %v4757_v55 }
 0xb6f   : > { %v13296_v49 = vcombine.high %v4754_v10, %v4758_v23  ;;  %v13295_v6 = vcombine.low %v4754_v10, %v4758_v23 }
 0xb70   : > { %10439 = vmatpush1.bf16.msra.mxu1 %v13245_v31  ;;  %v4761_v31 = vld [vmem:[%s19551_s17 + $0x1680] sm:$0xff] }
 0xb71   : > { %10767 = vmatpush1.bf16.msra.mxu0 %v13247_v40  ;;  %10440 = vmatprep.subr.bf16.mxu1 %v13254_v32  ;;  %v4765_v40 = vld [vmem:[%s19551_s17 + $0x16a0] sm:$0xff]  ;;  %v4762_v32 = vld [vmem:[%s19551_s17 + $0x1688] sm:$0xff] }
 0xb72   : > { %10768 = vmatprep.subr.bf16.mxu0 %v13256_v28  ;;  %v4766_v28 = vld [vmem:[%s19551_s17 + $0x16a8] sm:$0xff]  ;;  %v13302_v35 = vcombine.high %v4761_v31, %v4765_v40  ;;  %v13301_v39 = vcombine.low %v4761_v31, %v4765_v40 }
 0xb73   : > { %v13304_v41 = vcombine.high %v4762_v32, %v4766_v28  ;;  %v13303_v18 = vcombine.low %v4762_v32, %v4766_v28 }
 0xb74   : > { %10441 = vmatpush1.bf16.msra.mxu1 %v13253_v45  ;;  %v4769_v45 = vld [vmem:[%s19551_s17 + $0x16c0] sm:$0xff] }
 0xb75   : > { %10769 = vmatpush1.bf16.msra.mxu0 %v13255_v38  ;;  %10442 = vmatprep.subr.bf16.mxu1 %v13262_v34  ;;  %v4773_v38 = vld [vmem:[%s19551_s17 + $0x16e0] sm:$0xff]  ;;  %v4770_v34 = vld [vmem:[%s19551_s17 + $0x16c8] sm:$0xff] }
 0xb76   : > { %10770 = vmatprep.subr.bf16.mxu0 %v13264_v22  ;;  %v4774_v22 = vld [vmem:[%s19551_s17 + $0x16e8] sm:$0xff]  ;;  %v13310_v7 = vcombine.high %v4769_v45, %v4773_v38  ;;  %v13309_v57 = vcombine.low %v4769_v45, %v4773_v38 }
 0xb77   : > { %v13312_v46 = vcombine.high %v4770_v34, %v4774_v22  ;;  %v13311_v52 = vcombine.low %v4770_v34, %v4774_v22  ;;  %v3988_v34 = vrot.slane %v16918_v47, %v16269_v42 }
 0xb78   : > { %10443 = vmatpush1.bf16.msra.mxu1 %v13261_v56  ;;  %v4777_v56 = vld [vmem:[%s19551_s17 + $0x1700] sm:$0xff] }
 0xb79   : > { %10771 = vmatpush1.bf16.msra.mxu0 %v13263_v51  ;;  %10444 = vmatprep.subr.bf16.mxu1 %v13270_v50  ;;  %v4781_v51 = vld [vmem:[%s19551_s17 + $0x1720] sm:$0xff]  ;;  %v4778_v50 = vld [vmem:[%s19551_s17 + $0x1708] sm:$0xff] }
 0xb7a   : > { %10772 = vmatprep.subr.bf16.mxu0 %v13272_v54  ;;  %v4782_v54 = vld [vmem:[%s19551_s17 + $0x1728] sm:$0xff]  ;;  %v13318_v20 = vcombine.high %v4777_v56, %v4781_v51  ;;  %v13317_v9 = vcombine.low %v4777_v56, %v4781_v51 }
 0xb7b   : > { %v13320_v61 = vcombine.high %v4778_v50, %v4782_v54  ;;  %v13319_v2 = vcombine.low %v4778_v50, %v4782_v54  ;;  %v4818_v51 = vld [vmem:[%s19551_s17 + $0x1848] sm:$0xff] }
 0xb7c   : > { %10445 = vmatpush1.bf16.msra.mxu1 %v13269_v62  ;;  %v4785_v62 = vld [vmem:[%s19551_s17 + $0x1740] sm:$0xff]  ;;  %v4822_v50 = vld [vmem:[%s19551_s17 + $0x1868] sm:$0xff] }
 0xb7d   : > { %10773 = vmatpush1.bf16.msra.mxu0 %v13271_v0  ;;  %10446 = vmatprep.subr.bf16.mxu1 %v13278_v1  ;;  %v4789_v0 = vld [vmem:[%s19551_s17 + $0x1760] sm:$0xff]  ;;  %v4786_v1 = vld [vmem:[%s19551_s17 + $0x1748] sm:$0xff] }
 0xb7e   : > { %10774 = vmatprep.subr.bf16.mxu0 %v13280_v19  ;;  %v4790_v19 = vld [vmem:[%s19551_s17 + $0x1768] sm:$0xff]  ;;  %v13326_v3 = vcombine.high %v4785_v62, %v4789_v0  ;;  %v13325_v58 = vcombine.low %v4785_v62, %v4789_v0  ;;  %v13360_v62 = vcombine.high %v4818_v51, %v4822_v50 }
 0xb7f   : > { %v13328_v11 = vcombine.high %v4786_v1, %v4790_v19  ;;  %v13327_v55 = vcombine.low %v4786_v1, %v4790_v19  ;;  %v4826_v0 = vld [vmem:[%s19551_s17 + $0x1888] sm:$0xff] }
 0xb80   : > { %10447 = vmatpush1.bf16.msra.mxu1 %v13277_v13  ;;  %v4793_v13 = vld [vmem:[%s19551_s17 + $0x1780] sm:$0xff]  ;;  %v4830_v1 = vld [vmem:[%s19551_s17 + $0x18a8] sm:$0xff] }
 0xb81   : > { %10775 = vmatpush1.bf16.msra.mxu0 %v13279_v14  ;;  %10448 = vmatprep.subr.bf16.mxu1 %v13286_v15  ;;  %v4797_v14 = vld [vmem:[%s19551_s17 + $0x17a0] sm:$0xff]  ;;  %v4794_v15 = vld [vmem:[%s19551_s17 + $0x1788] sm:$0xff] }
 0xb82   : > { %10776 = vmatprep.subr.bf16.mxu0 %v13288_v16  ;;  %v4798_v16 = vld [vmem:[%s19551_s17 + $0x17a8] sm:$0xff]  ;;  %v13334_v10 = vcombine.high %v4793_v13, %v4797_v14  ;;  %v13333_v31 = vcombine.low %v4793_v13, %v4797_v14  ;;  %v4837_v13 = vld [vmem:[%s19551_s17 + $0x18e0] sm:$0xff] }
 0xb83   : > { %v13336_v23 = vcombine.high %v4794_v15, %v4798_v16  ;;  %v13335_v40 = vcombine.low %v4794_v15, %v4798_v16  ;;  %v4834_v14 = vld [vmem:[%s19551_s17 + $0x18c8] sm:$0xff] }
 0xb84   : > { %10449 = vmatpush1.bf16.msra.mxu1 %v13285_v60  ;;  %v4801_v60 = vld [vmem:[%s19551_s17 + $0x17c0] sm:$0xff]  ;;  %v4838_v15 = vld [vmem:[%s19551_s17 + $0x18e8] sm:$0xff] }
 0xb85   : > { %10777 = vmatpush1.bf16.msra.mxu0 %v13287_v4  ;;  %10450 = vmatprep.subr.bf16.mxu1 %v13294_v26  ;;  %v4805_v4 = vld [vmem:[%s19551_s17 + $0x17e0] sm:$0xff]  ;;  %v4802_v26 = vld [vmem:[%s19551_s17 + $0x17c8] sm:$0xff] }
 0xb86   : > { %10778 = vmatprep.subr.bf16.mxu0 %v13296_v49  ;;  %v4806_v49 = vld [vmem:[%s19551_s17 + $0x17e8] sm:$0xff]  ;;  %v13342_v32 = vcombine.high %v4801_v60, %v4805_v4  ;;  %v13341_v45 = vcombine.low %v4801_v60, %v4805_v4  ;;  %v4845_v60 = vld [vmem:[%s19551_s17 + $0x1920] sm:$0xff] }
 0xb87   : > { %v13344_v28 = vcombine.high %v4802_v26, %v4806_v49  ;;  %v13343_v38 = vcombine.low %v4802_v26, %v4806_v49  ;;  %v4842_v4 = vld [vmem:[%s19551_s17 + $0x1908] sm:$0xff] }
 0xb88   : > { %10451 = vmatpush1.bf16.msra.mxu1 %v13293_v33  ;;  %v4809_v33 = vld [vmem:[%s19551_s17 + $0x1800] sm:$0xff]  ;;  %v4846_v26 = vld [vmem:[%s19551_s17 + $0x1928] sm:$0xff] }
 0xb89   : > { %10779 = vmatpush1.bf16.msra.mxu0 %v13295_v6  ;;  %10452 = vmatprep.subr.bf16.mxu1 %v13302_v35  ;;  %v4813_v6 = vld [vmem:[%s19551_s17 + $0x1820] sm:$0xff]  ;;  %v4810_v35 = vld [vmem:[%s19551_s17 + $0x1808] sm:$0xff] }
 0xb8a   : > { %10780 = vmatprep.subr.bf16.mxu0 %v13304_v41  ;;  %v4814_v41 = vld [vmem:[%s19551_s17 + $0x1828] sm:$0xff]  ;;  %v13350_v22 = vcombine.high %v4809_v33, %v4813_v6  ;;  %v13349_v56 = vcombine.low %v4809_v33, %v4813_v6  ;;  %v4853_v33 = vld [vmem:[%s19551_s17 + $0x1960] sm:$0xff] }
 0xb8b   : > { %v13351_v54 = vcombine.low %v4810_v35, %v4814_v41  ;;  %v4850_v6 = vld [vmem:[%s19551_s17 + $0x1948] sm:$0xff] }
 0xb8c   : > { %10453 = vmatpush1.bf16.msra.mxu1 %v13301_v39  ;;  %v13352_v39 = vcombine.high %v4810_v35, %v4814_v41  ;;  %v4854_v35 = vld [vmem:[%s19551_s17 + $0x1968] sm:$0xff] }
 0xb8d   : > { %10781 = vmatpush1.bf16.msra.mxu0 %v13303_v18  ;;  %10454 = vmatprep.subr.bf16.mxu1 %v13310_v7  ;;  %v4000_v18 = vrot.slane %v16918_v47, %v16499_v44  ;;  %v4817_v7 = vld [vmem:[%s19551_s17 + $0x1840] sm:$0xff]  ;;  %v17343_v47 = vpack.c.bf16 %v3988_v34, %v3988_v34  ;;  %v13392_v34 = vcombine.high %v4850_v6, %v4854_v35 }
 0xb8e   : > { %10782 = vmatprep.subr.bf16.mxu0 %v13312_v46  ;;  %v4821_v46 = vld [vmem:[%s19551_s17 + $0x1860] sm:$0xff] }
 0xb8f   : > { %v13357_v19 = vcombine.low %v4817_v7, %v4821_v46 }
 0xb90   : > { %10455 = vmatpush1.bf16.msra.mxu1 %v13309_v57  ;;  %v13358_v57 = vcombine.high %v4817_v7, %v4821_v46  ;;  %v4862_v7 = vld [vmem:[%s19551_s17 + $0x19a8] sm:$0xff] }
 0xb91   : > { %10783 = vmatpush1.bf16.msra.mxu0 %v13311_v52  ;;  %10456 = vmatprep.subr.bf16.mxu1 %v13318_v20  ;;  %v4825_v52 = vld [vmem:[%s19551_s17 + $0x1880] sm:$0xff] }
 0xb92   : > { %10784 = vmatprep.subr.bf16.mxu0 %v13320_v61  ;;  %v4829_v20 = vld [vmem:[%s19551_s17 + $0x18a0] sm:$0xff]  ;;  %v17352_v61 = vpack.c.bf16 %v4000_v18, %v4000_v18  ;;  %v4858_v18 = vld [vmem:[%s19551_s17 + $0x1988] sm:$0xff] }
 0xb93   : > { %v13365_v16 = vcombine.low %v4825_v52, %v4829_v20 }
 0xb94   : > { %10457 = vmatpush1.bf16.msra.mxu1 %v13317_v9  ;;  %v13359_v9 = vcombine.low %v4818_v51, %v4822_v50  ;;  %v13400_v50 = vcombine.high %v4858_v18, %v4862_v7 }
 0xb95   : > { %10785 = vmatpush1.bf16.msra.mxu0 %v13319_v2  ;;  %10458 = vmatprep.subr.bf16.mxu1 %v13326_v3  ;;  %v13366_v2 = vcombine.high %v4825_v52, %v4829_v20  ;;  %v13368_v3 = vcombine.high %v4826_v0, %v4830_v1  ;;  %v4866_v52 = vld [vmem:[%s19551_s17 + $0x19c8] sm:$0xff] }
 0xb96   : > { %10786 = vmatprep.subr.bf16.mxu0 %v13328_v11  ;;  %v4833_v11 = vld [vmem:[%s19551_s17 + $0x18c0] sm:$0xff]  ;;  %v4870_v20 = vld [vmem:[%s19551_s17 + $0x19e8] sm:$0xff] }
 0xb97   : > { %v13373_v49 = vcombine.low %v4833_v11, %v4837_v13 }
 0xb98   : > { %10459 = vmatpush1.bf16.msra.mxu1 %v13325_v58  ;;  %v13367_v58 = vcombine.low %v4826_v0, %v4830_v1  ;;  %v13399_v0 = vcombine.low %v4858_v18, %v4862_v7 }
 0xb99   : > { %10787 = vmatpush1.bf16.msra.mxu0 %v13327_v55  ;;  %10460 = vmatprep.subr.bf16.mxu1 %v13334_v10  ;;  %v13374_v55 = vcombine.high %v4833_v11, %v4837_v13  ;;  %v13376_v10 = vcombine.high %v4834_v14, %v4838_v15  ;;  %v4878_v11 = vld [vmem:[%s19551_s17 + $0x1a28] sm:$0xff] }
 0xb9a   : > { %10788 = vmatprep.subr.bf16.mxu0 %v13336_v23  ;;  %v4841_v23 = vld [vmem:[%s19551_s17 + $0x1900] sm:$0xff] }
 0xb9b   : > { %v13381_v41 = vcombine.low %v4841_v23, %v4845_v60 }
 0xb9c   : > { %10461 = vmatpush1.bf16.msra.mxu1 %v13333_v31  ;;  %v13375_v31 = vcombine.low %v4834_v14, %v4838_v15  ;;  %v13407_v14 = vcombine.low %v4866_v52, %v4870_v20 }
 0xb9d   : > { %10789 = vmatpush1.bf16.msra.mxu0 %v13335_v40  ;;  %10462 = vmatprep.subr.bf16.mxu1 %v13342_v32  ;;  %v13382_v40 = vcombine.high %v4841_v23, %v4845_v60  ;;  %v13384_v32 = vcombine.high %v4842_v4, %v4846_v26  ;;  %v4886_v23 = vld [vmem:[%s19551_s17 + $0x1a68] sm:$0xff] }
 0xb9e   : > { %10790 = vmatprep.subr.bf16.mxu0 %v13344_v28  ;;  %v4849_v28 = vld [vmem:[%s19551_s17 + $0x1940] sm:$0xff] }
 0xb9f   : > { %v13389_v46 = vcombine.low %v4849_v28, %v4853_v33 }
 0xba0   : > { %10463 = vmatpush1.bf16.msra.mxu1 %v13341_v45  ;;  %v13383_v45 = vcombine.low %v4842_v4, %v4846_v26 }
 0xba1   : > { %10791 = vmatpush1.bf16.msra.mxu0 %v13343_v38  ;;  %10473 = vmatprep.subr.bf16.mxu1 %v13350_v22  ;;  %v13390_v38 = vcombine.high %v4849_v28, %v4853_v33  ;;  %v4857_v22 = vld [vmem:[%s19551_s17 + $0x1980] sm:$0xff]  ;;  %v4894_v28 = vld [vmem:[%s19551_s17 + $0x1aa8] sm:$0xff] }
 0xba2   : > { %10801 = vmatprep.subr.bf16.mxu0 %v13352_v39  ;;  %v4861_v39 = vld [vmem:[%s19551_s17 + $0x19a0] sm:$0xff] }
 0xba3   : > { %10465 = vmatmul.mubr.bf16.vlgmr.msra.gmra.mrb[28].mxu1 %v17343_v47  ;;  %v13398_v51 = vcombine.high %v4857_v22, %v4861_v39 }
 0xba4   : > { %10793 = vmatmul.mubr.bf16.vlgmr.msra.gmra.mrb[36].mxu0 %v17343_v47  ;;  %10474 = vmatpush1.bf16.msra.mxu1 %v13349_v56  ;;  %v13391_v56 = vcombine.low %v4850_v6, %v4854_v35 }
 0xba5   : > { %10505 = vmatprep.mubr.bf16.mxu1 %v17352_v61  ;;  %10802 = vmatpush1.bf16.msra.mxu0 %v13351_v54  ;;  %v4865_v54 = vld [vmem:[%s19551_s17 + $0x19c0] sm:$0xff] }
 0xba6   : > { %10833 = vmatprep.mubr.bf16.mxu0 %v17352_v61  ;;  %10475 = vmatprep.subr.bf16.mxu1 %v13358_v57  ;;  %v4869_v57 = vld [vmem:[%s19551_s17 + $0x19e0] sm:$0xff] }
 0xba7   : > { %10803 = vmatprep.subr.bf16.mxu0 %v13360_v62  ;;  %v13397_v62 = vcombine.low %v4857_v22, %v4861_v39  ;;  %v13406_v1 = vcombine.high %v4865_v54, %v4869_v57  ;;  %v13405_v13 = vcombine.low %v4865_v54, %v4869_v57  ;;  %v4902_v22 = vld [vmem:[%s19551_s17 + $0x1ae8] sm:$0xff] }
 0xba8   : > { %10476 = vmatpush1.bf16.msra.mxu1 %v13357_v19  ;;  %v13408_v19 = vcombine.high %v4866_v52, %v4870_v20  ;;  %v4910_v54 = vld [vmem:[%s19551_s17 + $0x1b28] sm:$0xff] }
 0xba9   : > { %10804 = vmatpush1.bf16.msra.mxu0 %v13359_v9  ;;  %10477 = vmatprep.subr.bf16.mxu1 %v13366_v2  ;;  %v4873_v9 = vld [vmem:[%s19551_s17 + $0x1a00] sm:$0xff] }
 0xbaa   : > { %10805 = vmatprep.subr.bf16.mxu0 %v13368_v3  ;;  %v4877_v2 = vld [vmem:[%s19551_s17 + $0x1a20] sm:$0xff]  ;;  %v4874_v3 = vld [vmem:[%s19551_s17 + $0x1a08] sm:$0xff] }
 0xbab   : > { %v13414_v15 = vcombine.high %v4873_v9, %v4877_v2  ;;  %v13413_v60 = vcombine.low %v4873_v9, %v4877_v2  ;;  %v13415_v4 = vcombine.low %v4874_v3, %v4878_v11  ;;  %v4918_v9 = vld [vmem:[%s19551_s17 + $0x1b68] sm:$0xff] }
 0xbac   : > { %10478 = vmatpush1.bf16.msra.mxu1 %v13365_v16  ;;  %v13416_v16 = vcombine.high %v4874_v3, %v4878_v11 }
 0xbad   : > { %10806 = vmatpush1.bf16.msra.mxu0 %v13367_v58  ;;  %10479 = vmatprep.subr.bf16.mxu1 %v13374_v55  ;;  %v4881_v58 = vld [vmem:[%s19551_s17 + $0x1a40] sm:$0xff] }
 0xbae   : > { %10807 = vmatprep.subr.bf16.mxu0 %v13376_v10  ;;  %v4885_v55 = vld [vmem:[%s19551_s17 + $0x1a60] sm:$0xff]  ;;  %v4882_v10 = vld [vmem:[%s19551_s17 + $0x1a48] sm:$0xff] }
 0xbaf   : > { %v13422_v26 = vcombine.high %v4881_v58, %v4885_v55  ;;  %v13421_v33 = vcombine.low %v4881_v58, %v4885_v55  ;;  %v13423_v6 = vcombine.low %v4882_v10, %v4886_v23  ;;  %v4926_v58 = vld [vmem:[%s19551_s17 + $0x1ba8] sm:$0xff] }
 0xbb0   : > { %10480 = vmatpush1.bf16.msra.mxu1 %v13373_v49  ;;  %v13424_v49 = vcombine.high %v4882_v10, %v4886_v23 }
 0xbb1   : > { %10808 = vmatpush1.bf16.msra.mxu0 %v13375_v31  ;;  %10481 = vmatprep.subr.bf16.mxu1 %v13382_v40  ;;  %v4889_v31 = vld [vmem:[%s19551_s17 + $0x1a80] sm:$0xff] }
 0xbb2   : > { %10809 = vmatprep.subr.bf16.mxu0 %v13384_v32  ;;  %v4893_v40 = vld [vmem:[%s19551_s17 + $0x1aa0] sm:$0xff]  ;;  %v4890_v32 = vld [vmem:[%s19551_s17 + $0x1a88] sm:$0xff] }
 0xbb3   : > { %v13430_v35 = vcombine.high %v4889_v31, %v4893_v40  ;;  %v13429_v39 = vcombine.low %v4889_v31, %v4893_v40  ;;  %v13431_v18 = vcombine.low %v4890_v32, %v4894_v28  ;;  %v4934_v31 = vld [vmem:[%s19551_s17 + $0x1be8] sm:$0xff] }
 0xbb4   : > { %10482 = vmatpush1.bf16.msra.mxu1 %v13381_v41  ;;  %v13432_v41 = vcombine.high %v4890_v32, %v4894_v28 }
 0xbb5   : > { %10810 = vmatpush1.bf16.msra.mxu0 %v13383_v45  ;;  %10483 = vmatprep.subr.bf16.mxu1 %v13390_v38  ;;  %v4897_v45 = vld [vmem:[%s19551_s17 + $0x1ac0] sm:$0xff] }
 0xbb6   : > { %10811 = vmatprep.subr.bf16.mxu0 %v13392_v34  ;;  %v4901_v38 = vld [vmem:[%s19551_s17 + $0x1ae0] sm:$0xff]  ;;  %v4898_v34 = vld [vmem:[%s19551_s17 + $0x1ac8] sm:$0xff] }
 0xbb7   : > { %v13438_v7 = vcombine.high %v4897_v45, %v4901_v38  ;;  %v13437_v57 = vcombine.low %v4897_v45, %v4901_v38  ;;  %v13439_v52 = vcombine.low %v4898_v34, %v4902_v22  ;;  %v4942_v45 = vld [vmem:[%s19551_s17 + $0x1c28] sm:$0xff] }
 0xbb8   : > { %10484 = vmatpush1.bf16.msra.mxu1 %v13389_v46  ;;  %v13440_v46 = vcombine.high %v4898_v34, %v4902_v22  ;;  %v17531_v22 = vld [vmem:[#allocation2 + $0x8] sm:$0xff] }
 0xbb9   : > { %10812 = vmatpush1.bf16.msra.mxu0 %v13391_v56  ;;  %10485 = vmatprep.subr.bf16.mxu1 %v13398_v51  ;;  %v4905_v56 = vld [vmem:[%s19551_s17 + $0x1b00] sm:$0xff] }
 0xbba   : > { %10813 = vmatprep.subr.bf16.mxu0 %v13400_v50  ;;  %v4909_v51 = vld [vmem:[%s19551_s17 + $0x1b20] sm:$0xff]  ;;  %v4906_v50 = vld [vmem:[%s19551_s17 + $0x1b08] sm:$0xff] }
 0xbbb   : > { %v13446_v20 = vcombine.high %v4905_v56, %v4909_v51  ;;  %v13445_v2 = vcombine.low %v4905_v56, %v4909_v51  ;;  %v13447_v3 = vcombine.low %v4906_v50, %v4910_v54  ;;  %v4945_v56 = vld [vmem:[%s19551_s17 + $0x1c40] sm:$0xff] }
 0xbbc   : > { %10486 = vmatpush1.bf16.msra.mxu1 %v13397_v62  ;;  %v13448_v62 = vcombine.high %v4906_v50, %v4910_v54  ;;  %v4949_v51 = vld [vmem:[%s19551_s17 + $0x1c60] sm:$0xff]  ;;  %v4946_v54 = vld [vmem:[%s19551_s17 + $0x1c48] sm:$0xff] }
 0xbbd   : > { %10814 = vmatpush1.bf16.msra.mxu0 %v13399_v0  ;;  %10487 = vmatprep.subr.bf16.mxu1 %v13406_v1  ;;  %v4913_v0 = vld [vmem:[%s19551_s17 + $0x1b40] sm:$0xff] }
 0xbbe   : > { %10815 = vmatprep.subr.bf16.mxu0 %v13408_v19  ;;  %v4917_v1 = vld [vmem:[%s19551_s17 + $0x1b60] sm:$0xff]  ;;  %v4914_v19 = vld [vmem:[%s19551_s17 + $0x1b48] sm:$0xff] }
 0xbbf   : > { %v13454_v11 = vcombine.high %v4913_v0, %v4917_v1  ;;  %v13453_v55 = vcombine.low %v4913_v0, %v4917_v1  ;;  %v13455_v10 = vcombine.low %v4914_v19, %v4918_v9  ;;  %v4953_v0 = vld [vmem:[%s19551_s17 + $0x1c80] sm:$0xff] }
 0xbc0   : > { %10488 = vmatpush1.bf16.msra.mxu1 %v13405_v13  ;;  %v13456_v13 = vcombine.high %v4914_v19, %v4918_v9  ;;  %v4957_v1 = vld [vmem:[%s19551_s17 + $0x1ca0] sm:$0xff] }
 0xbc1   : > { %10816 = vmatpush1.bf16.msra.mxu0 %v13407_v14  ;;  %10489 = vmatprep.subr.bf16.mxu1 %v13414_v15  ;;  %v4921_v14 = vld [vmem:[%s19551_s17 + $0x1b80] sm:$0xff] }
 0xbc2   : > { %10817 = vmatprep.subr.bf16.mxu0 %v13416_v16  ;;  %v4925_v15 = vld [vmem:[%s19551_s17 + $0x1ba0] sm:$0xff]  ;;  %v4922_v16 = vld [vmem:[%s19551_s17 + $0x1b88] sm:$0xff] }
 0xbc3   : > { %v13462_v23 = vcombine.high %v4921_v14, %v4925_v15  ;;  %v13461_v40 = vcombine.low %v4921_v14, %v4925_v15  ;;  %v13463_v32 = vcombine.low %v4922_v16, %v4926_v58  ;;  %v13494_v14 = vcombine.high %v4953_v0, %v4957_v1 }
 0xbc4   : > { %10490 = vmatpush1.bf16.msra.mxu1 %v13413_v60  ;;  %v13464_v60 = vcombine.high %v4922_v16, %v4926_v58  ;;  %v4961_v16 = vld [vmem:[%s19551_s17 + $0x1cc0] sm:$0xff] }
 0xbc5   : > { %10818 = vmatpush1.bf16.msra.mxu0 %v13415_v4  ;;  %10491 = vmatprep.subr.bf16.mxu1 %v13422_v26  ;;  %v4929_v4 = vld [vmem:[%s19551_s17 + $0x1bc0] sm:$0xff] }
 0xbc6   : > { %10819 = vmatprep.subr.bf16.mxu0 %v13424_v49  ;;  %v4933_v26 = vld [vmem:[%s19551_s17 + $0x1be0] sm:$0xff]  ;;  %v4930_v49 = vld [vmem:[%s19551_s17 + $0x1bc8] sm:$0xff] }
 0xbc7   : > { %v13470_v28 = vcombine.high %v4929_v4, %v4933_v26  ;;  %v13469_v38 = vcombine.low %v4929_v4, %v4933_v26  ;;  %v13471_v34 = vcombine.low %v4930_v49, %v4934_v31  ;;  %v4965_v58 = vld [vmem:[%s19551_s17 + $0x1ce0] sm:$0xff] }
 0xbc8   : > { %10492 = vmatpush1.bf16.msra.mxu1 %v13421_v33  ;;  %v13472_v33 = vcombine.high %v4930_v49, %v4934_v31  ;;  %v13502_v4 = vcombine.high %v4961_v16, %v4965_v58  ;;  %v4969_v49 = vld [vmem:[%s19551_s17 + $0x1d00] sm:$0xff] }
 0xbc9   : > { %10820 = vmatpush1.bf16.msra.mxu0 %v13423_v6  ;;  %10493 = vmatprep.subr.bf16.mxu1 %v13430_v35  ;;  %v4937_v6 = vld [vmem:[%s19551_s17 + $0x1c00] sm:$0xff] }
 0xbca   : > { %10821 = vmatprep.subr.bf16.mxu0 %v13432_v41  ;;  %v4941_v35 = vld [vmem:[%s19551_s17 + $0x1c20] sm:$0xff]  ;;  %v4938_v41 = vld [vmem:[%s19551_s17 + $0x1c08] sm:$0xff] }
 0xbcb   : > { %v13477_v50 = vcombine.low %v4937_v6, %v4941_v35  ;;  %v4973_v31 = vld [vmem:[%s19551_s17 + $0x1d20] sm:$0xff] }
 0xbcc   : > { %10494 = vmatpush1.bf16.msra.mxu1 %v13429_v39  ;;  %v3996_v39 = vrot.slane %v17531_v22, %v16694_v5 }
 0xbcd   : > { %10822 = vmatpush1.bf16.msra.mxu0 %v13431_v18  ;;  %10495 = vmatprep.subr.bf16.mxu1 %v13438_v7  ;;  %v13478_v18 = vcombine.high %v4937_v6, %v4941_v35  ;;  %v13480_v7 = vcombine.high %v4938_v41, %v4942_v45  ;;  %v13510_v6 = vcombine.high %v4969_v49, %v4973_v31 }
 0xbce   : > { %10823 = vmatprep.subr.bf16.mxu0 %v13440_v46  ;;  %v4008_v46 = vrot.slane %v17531_v22, %v16709_v12 }
 0xbd0   : > { %10496 = vmatpush1.bf16.msra.mxu1 %v13437_v57  ;;  %v4950_v57 = vld [vmem:[%s19551_s17 + $0x1c68] sm:$0xff]  ;;  %v17558_v19 = vpack.c.bf16 %v4008_v46, %v4008_v46 }
 0xbd1   : > { %10824 = vmatpush1.bf16.msra.mxu0 %v13439_v52  ;;  %10497 = vmatprep.subr.bf16.mxu1 %v13446_v20  ;;  %v17549_v52 = vpack.c.bf16 %v3996_v39, %v3996_v39  ;;  %v13479_v20 = vcombine.low %v4938_v41, %v4942_v45  ;;  %v13488_v9 = vcombine.high %v4946_v54, %v4950_v57  ;;  %v4977_v41 = vld [vmem:[%s19551_s17 + $0x1d40] sm:$0xff] }
 0xbd2   : > { %10825 = vmatprep.subr.bf16.mxu0 %v13448_v62  ;;  %v13486_v62 = vcombine.high %v4945_v56, %v4949_v51  ;;  %v4981_v45 = vld [vmem:[%s19551_s17 + $0x1d60] sm:$0xff]  ;;  %v13509_v39 = vcombine.low %v4969_v49, %v4973_v31 }
 0xbd3   : > { %v5009_v49 = vld [vmem:[%s19551_s17 + $0x1e40] sm:$0xff] }
 0xbd4   : > { %10498 = vmatpush1.bf16.msra.mxu1 %v13445_v2  ;;  %v4954_v2 = vld [vmem:[%s19551_s17 + $0x1c88] sm:$0xff]  ;;  %v5013_v31 = vld [vmem:[%s19551_s17 + $0x1e60] sm:$0xff] }
 0xbd5   : > { %10826 = vmatpush1.bf16.msra.mxu0 %v13447_v3  ;;  %10499 = vmatprep.subr.bf16.mxu1 %v13454_v11  ;;  %v4958_v3 = vld [vmem:[%s19551_s17 + $0x1ca8] sm:$0xff]  ;;  %v13485_v11 = vcombine.low %v4945_v56, %v4949_v51  ;;  %v4985_v56 = vld [vmem:[%s19551_s17 + $0x1d80] sm:$0xff] }
 0xbd6   : > { %10827 = vmatprep.subr.bf16.mxu0 %v13456_v13  ;;  %v13487_v13 = vcombine.low %v4946_v54, %v4950_v57  ;;  %v13496_v15 = vcombine.high %v4954_v2, %v4958_v3  ;;  %v4989_v51 = vld [vmem:[%s19551_s17 + $0x1da0] sm:$0xff]  ;;  %v4990_v54 = vld [vmem:[%s19551_s17 + $0x1da8] sm:$0xff]  ;;  %v13517_v57 = vcombine.low %v4977_v41, %v4981_v45 }
 0xbd8   : > { %10500 = vmatpush1.bf16.msra.mxu1 %v13453_v55  ;;  %v4962_v55 = vld [vmem:[%s19551_s17 + $0x1cc8] sm:$0xff] }
 0xbd9   : > { %10828 = vmatpush1.bf16.msra.mxu0 %v13455_v10  ;;  %10501 = vmatprep.subr.bf16.mxu1 %v13462_v23  ;;  %v4966_v10 = vld [vmem:[%s19551_s17 + $0x1ce8] sm:$0xff]  ;;  %v13493_v23 = vcombine.low %v4953_v0, %v4957_v1  ;;  %v4993_v1 = vld [vmem:[%s19551_s17 + $0x1dc0] sm:$0xff] }
 0xbda   : > { %10829 = vmatprep.subr.bf16.mxu0 %v13464_v60  ;;  %v13495_v60 = vcombine.low %v4954_v2, %v4958_v3  ;;  %v13504_v26 = vcombine.high %v4962_v55, %v4966_v10  ;;  %v4994_v2 = vld [vmem:[%s19551_s17 + $0x1dc8] sm:$0xff] }
 0xbdb   : > { %v4998_v3 = vld [vmem:[%s19551_s17 + $0x1de8] sm:$0xff] }
 0xbdc   : > { %10502 = vmatpush1.bf16.msra.mxu1 %v13461_v40  ;;  %v4970_v40 = vld [vmem:[%s19551_s17 + $0x1d08] sm:$0xff] }
 0xbdd   : > { %10830 = vmatpush1.bf16.msra.mxu0 %v13463_v32  ;;  %10503 = vmatprep.subr.bf16.mxu1 %v13470_v28  ;;  %v4974_v32 = vld [vmem:[%s19551_s17 + $0x1d28] sm:$0xff]  ;;  %v13501_v28 = vcombine.low %v4961_v16, %v4965_v58  ;;  %v5001_v16 = vld [vmem:[%s19551_s17 + $0x1e00] sm:$0xff] }
 0xbde   : > { %10831 = vmatprep.subr.bf16.mxu0 %v13472_v33  ;;  %v13503_v33 = vcombine.low %v4962_v55, %v4966_v10  ;;  %v13512_v35 = vcombine.high %v4970_v40, %v4974_v32  ;;  %v5005_v58 = vld [vmem:[%s19551_s17 + $0x1e20] sm:$0xff]  ;;  %v5002_v55 = vld [vmem:[%s19551_s17 + $0x1e08] sm:$0xff] }
 0xbdf   : > { %v5006_v10 = vld [vmem:[%s19551_s17 + $0x1e28] sm:$0xff] }
 0xbe0   : > { %10504 = vmatpush1.bf16.msra.mxu1 %v13469_v38  ;;  %v4978_v38 = vld [vmem:[%s19551_s17 + $0x1d48] sm:$0xff] }
 0xbe1   : > { %10832 = vmatpush1.bf16.msra.mxu0 %v13471_v34  ;;  %10514 = vmatprep.subr.bf16.mxu1 %v13478_v18  ;;  %v4982_v34 = vld [vmem:[%s19551_s17 + $0x1d68] sm:$0xff]  ;;  %v13511_v18 = vcombine.low %v4970_v40, %v4974_v32 }
 0xbe2   : > { %10842 = vmatprep.subr.bf16.mxu0 %v13480_v7  ;;  %v13518_v7 = vcombine.high %v4977_v41, %v4981_v45  ;;  %v13520_v46 = vcombine.high %v4978_v38, %v4982_v34  ;;  %v5010_v40 = vld [vmem:[%s19551_s17 + $0x1e48] sm:$0xff]  ;;  %v5017_v41 = vld [vmem:[%s19551_s17 + $0x1e80] sm:$0xff] }
 0xbe3   : > { %10506 = vmatmul.mubr.bf16.vlgmr.msra.gmra.mrb[28].mxu1 %v17549_v52  ;;  %v5014_v32 = vld [vmem:[%s19551_s17 + $0x1e68] sm:$0xff]  ;;  %v5021_v45 = vld [vmem:[%s19551_s17 + $0x1ea0] sm:$0xff] }
 0xbe4   : > { %10834 = vmatmul.mubr.bf16.vlgmr.msra.gmra.mrb[36].mxu0 %v17549_v52  ;;  %10515 = vmatpush1.bf16.msra.mxu1 %v13477_v50  ;;  %v4986_v50 = vld [vmem:[%s19551_s17 + $0x1d88] sm:$0xff] }
 0xbe5   : > { %10546 = vmatprep.mubr.bf16.mxu1 %v17558_v19  ;;  %10843 = vmatpush1.bf16.msra.mxu0 %v13479_v20  ;;  %v13519_v20 = vcombine.low %v4978_v38, %v4982_v34  ;;  %v13528_v0 = vcombine.high %v4986_v50, %v4990_v54  ;;  %v5018_v38 = vld [vmem:[%s19551_s17 + $0x1e88] sm:$0xff] }
 0xbe6   : > { %10874 = vmatprep.mubr.bf16.mxu0 %v17558_v19  ;;  %10516 = vmatprep.subr.bf16.mxu1 %v13486_v62  ;;  %v13526_v62 = vcombine.high %v4985_v56, %v4989_v51  ;;  %v5022_v34 = vld [vmem:[%s19551_s17 + $0x1ea8] sm:$0xff] }
 0xbe7   : > { %10844 = vmatprep.subr.bf16.mxu0 %v13488_v9  ;;  %v4997_v9 = vld [vmem:[%s19551_s17 + $0x1de0] sm:$0xff] }
 0xbe8   : > { %10517 = vmatpush1.bf16.msra.mxu1 %v13485_v11  ;;  %v13525_v11 = vcombine.low %v4985_v56, %v4989_v51  ;;  %v5025_v56 = vld [vmem:[%s19551_s17 + $0x1ec0] sm:$0xff] }
 0xbe9   : > { %10845 = vmatpush1.bf16.msra.mxu0 %v13487_v13  ;;  %10518 = vmatprep.subr.bf16.mxu1 %v13494_v14  ;;  %v13527_v13 = vcombine.low %v4986_v50, %v4990_v54  ;;  %v13534_v14 = vcombine.high %v4993_v1, %v4997_v9  ;;  %v5029_v51 = vld [vmem:[%s19551_s17 + $0x1ee0] sm:$0xff]  ;;  %v5026_v50 = vld [vmem:[%s19551_s17 + $0x1ec8] sm:$0xff] }
 0xbea   : > { %10846 = vmatprep.subr.bf16.mxu0 %v13496_v15  ;;  %v13536_v15 = vcombine.high %v4994_v2, %v4998_v3  ;;  %v5030_v54 = vld [vmem:[%s19551_s17 + $0x1ee8] sm:$0xff] }
 0xbec   : > { %10519 = vmatpush1.bf16.msra.mxu1 %v13493_v23  ;;  %v13533_v23 = vcombine.low %v4993_v1, %v4997_v9  ;;  %v5033_v1 = vld [vmem:[%s19551_s17 + $0x1f00] sm:$0xff] }
 0xbed   : > { %10847 = vmatpush1.bf16.msra.mxu0 %v13495_v60  ;;  %10520 = vmatprep.subr.bf16.mxu1 %v13502_v4  ;;  %v13535_v60 = vcombine.low %v4994_v2, %v4998_v3  ;;  %v13542_v4 = vcombine.high %v5001_v16, %v5005_v58  ;;  %v5037_v9 = vld [vmem:[%s19551_s17 + $0x1f20] sm:$0xff]  ;;  %v5034_v2 = vld [vmem:[%s19551_s17 + $0x1f08] sm:$0xff] }
 0xbee   : > { %10848 = vmatprep.subr.bf16.mxu0 %v13504_v26  ;;  %v13544_v26 = vcombine.high %v5002_v55, %v5006_v10  ;;  %v5038_v3 = vld [vmem:[%s19551_s17 + $0x1f28] sm:$0xff] }
 0xbf0   : > { %10521 = vmatpush1.bf16.msra.mxu1 %v13501_v28  ;;  %v13541_v28 = vcombine.low %v5001_v16, %v5005_v58  ;;  %v5041_v16 = vld [vmem:[%s19551_s17 + $0x1f40] sm:$0xff] }
 0xbf1   : > { %10849 = vmatpush1.bf16.msra.mxu0 %v13503_v33  ;;  %10522 = vmatprep.subr.bf16.mxu1 %v13510_v6  ;;  %v13543_v33 = vcombine.low %v5002_v55, %v5006_v10  ;;  %v13550_v6 = vcombine.high %v5009_v49, %v5013_v31  ;;  %v5045_v58 = vld [vmem:[%s19551_s17 + $0x1f60] sm:$0xff]  ;;  %v5042_v55 = vld [vmem:[%s19551_s17 + $0x1f48] sm:$0xff] }
 0xbf2   : > { %10850 = vmatprep.subr.bf16.mxu0 %v13512_v35  ;;  %v13552_v35 = vcombine.high %v5010_v40, %v5014_v32  ;;  %v5046_v10 = vld [vmem:[%s19551_s17 + $0x1f68] sm:$0xff] }
 0xbf4   : > { %10523 = vmatpush1.bf16.msra.mxu1 %v13509_v39  ;;  %v13549_v39 = vcombine.low %v5009_v49, %v5013_v31  ;;  %v5049_v49 = vld [vmem:[%s19551_s17 + $0x1f80] sm:$0xff] }
 0xbf5   : > { %10851 = vmatpush1.bf16.msra.mxu0 %v13511_v18  ;;  %10524 = vmatprep.subr.bf16.mxu1 %v13518_v7  ;;  %v13551_v18 = vcombine.low %v5010_v40, %v5014_v32  ;;  %v13558_v7 = vcombine.high %v5017_v41, %v5021_v45  ;;  %v5053_v31 = vld [vmem:[%s19551_s17 + $0x1fa0] sm:$0xff]  ;;  %v5050_v40 = vld [vmem:[%s19551_s17 + $0x1f88] sm:$0xff] }
 0xbf6   : > { %10852 = vmatprep.subr.bf16.mxu0 %v13520_v46  ;;  %v13560_v46 = vcombine.high %v5018_v38, %v5022_v34  ;;  %v5054_v32 = vld [vmem:[%s19551_s17 + $0x1fa8] sm:$0xff] }
 0xbf8   : > { %10525 = vmatpush1.bf16.msra.mxu1 %v13517_v57  ;;  %v13557_v57 = vcombine.low %v5017_v41, %v5021_v45  ;;  %v5057_v41 = vld [vmem:[%s19551_s17 + $0x1fc0] sm:$0xff] }
 0xbf9   : > { %10853 = vmatpush1.bf16.msra.mxu0 %v13519_v20  ;;  %10526 = vmatprep.subr.bf16.mxu1 %v13526_v62  ;;  %v13559_v20 = vcombine.low %v5018_v38, %v5022_v34  ;;  %v13566_v62 = vcombine.high %v5025_v56, %v5029_v51  ;;  %v5061_v45 = vld [vmem:[%s19551_s17 + $0x1fe0] sm:$0xff]  ;;  %v5058_v38 = vld [vmem:[%s19551_s17 + $0x1fc8] sm:$0xff] }
 0xbfa   : > { %10854 = vmatprep.subr.bf16.mxu0 %v13528_v0  ;;  %v13568_v0 = vcombine.high %v5026_v50, %v5030_v54  ;;  %v5062_v34 = vld [vmem:[%s19551_s17 + $0x1fe8] sm:$0xff] }
 0xbfc   : > { %10527 = vmatpush1.bf16.msra.mxu1 %v13525_v11  ;;  %v13565_v11 = vcombine.low %v5025_v56, %v5029_v51  ;;  %v4043_v56 = vld [vmem:[%s19551_s17 + $0x10] sm:$0xff] }
 0xbfd   : > { %10855 = vmatpush1.bf16.msra.mxu0 %v13527_v13  ;;  %10528 = vmatprep.subr.bf16.mxu1 %v13534_v14  ;;  %v13567_v13 = vcombine.low %v5026_v50, %v5030_v54  ;;  %v13574_v14 = vcombine.high %v5033_v1, %v5037_v9  ;;  %v4047_v51 = vld [vmem:[%s19551_s17 + $0x30] sm:$0xff]  ;;  %v4044_v50 = vld [vmem:[%s19551_s17 + $0x18] sm:$0xff] }
 0xbfe   : > { %10856 = vmatprep.subr.bf16.mxu0 %v13536_v15  ;;  %v13576_v15 = vcombine.high %v5034_v2, %v5038_v3  ;;  %v4048_v54 = vld [vmem:[%s19551_s17 + $0x38] sm:$0xff] }
 0xc00   : > { %10529 = vmatpush1.bf16.msra.mxu1 %v13533_v23  ;;  %v13573_v23 = vcombine.low %v5033_v1, %v5037_v9  ;;  %v12588_v1 = vcombine.high %v4044_v50, %v4048_v54  ;;  %v4051_v9 = vld [vmem:[%s19551_s17 + $0x50] sm:$0xff] }
 0xc01   : > { %10857 = vmatpush1.bf16.msra.mxu0 %v13535_v60  ;;  %10530 = vmatprep.subr.bf16.mxu1 %v13542_v4  ;;  %v13575_v60 = vcombine.low %v5034_v2, %v5038_v3  ;;  %v13582_v4 = vcombine.high %v5041_v16, %v5045_v58  ;;  %v4055_v2 = vld [vmem:[%s19551_s17 + $0x70] sm:$0xff]  ;;  %v12585_v3 = vcombine.low %v4043_v56, %v4047_v51 }
 0xc02   : > { %10858 = vmatprep.subr.bf16.mxu0 %v13544_v26  ;;  %v13584_v26 = vcombine.high %v5042_v55, %v5046_v10 }
 0xc04   : > { %10531 = vmatpush1.bf16.msra.mxu1 %v13541_v28  ;;  %v13581_v28 = vcombine.low %v5041_v16, %v5045_v58  ;;  %v4059_v16 = vld [vmem:[%s19551_s17 + $0x90] sm:$0xff] }
 0xc05   : > { %10859 = vmatpush1.bf16.msra.mxu0 %v13543_v33  ;;  %10532 = vmatprep.subr.bf16.mxu1 %v13550_v6  ;;  %v13583_v33 = vcombine.low %v5042_v55, %v5046_v10  ;;  %v13590_v6 = vcombine.high %v5049_v49, %v5053_v31  ;;  %v4063_v58 = vld [vmem:[%s19551_s17 + $0xb0] sm:$0xff]  ;;  %v4060_v10 = vld [vmem:[%s19551_s17 + $0x98] sm:$0xff] }
 0xc06   : > { %10860 = vmatprep.subr.bf16.mxu0 %v13552_v35  ;;  %v13592_v35 = vcombine.high %v5050_v40, %v5054_v32 }
 0xc08   : > { %10533 = vmatpush1.bf16.msra.mxu1 %v13549_v39  ;;  %v13589_v39 = vcombine.low %v5049_v49, %v5053_v31  ;;  %v4067_v31 = vld [vmem:[%s19551_s17 + $0xd0] sm:$0xff] }
 0xc09   : > { %10861 = vmatpush1.bf16.msra.mxu0 %v13551_v18  ;;  %10534 = vmatprep.subr.bf16.mxu1 %v13558_v7  ;;  %v13591_v18 = vcombine.low %v5050_v40, %v5054_v32  ;;  %v13598_v7 = vcombine.high %v5057_v41, %v5061_v45  ;;  %v4071_v40 = vld [vmem:[%s19551_s17 + $0xf0] sm:$0xff]  ;;  %v4068_v32 = vld [vmem:[%s19551_s17 + $0xd8] sm:$0xff] }
 0xc0a   : > { %10862 = vmatprep.subr.bf16.mxu0 %v13560_v46  ;;  %v13600_v46 = vcombine.high %v5058_v38, %v5062_v34 }
 0xc0c   : > { %10535 = vmatpush1.bf16.msra.mxu1 %v13557_v57  ;;  %v13597_v57 = vcombine.low %v5057_v41, %v5061_v45  ;;  %v4075_v41 = vld [vmem:[%s19551_s17 + $0x110] sm:$0xff] }
 0xc0d   : > { %10863 = vmatpush1.bf16.msra.mxu0 %v13559_v20  ;;  %10536 = vmatprep.subr.bf16.mxu1 %v13566_v62  ;;  %v13599_v20 = vcombine.low %v5058_v38, %v5062_v34  ;;  %v4004_v62 = vrot.slane %v17531_v22, %v16904_v36  ;;  %v4056_v22 = vld [vmem:[%s19551_s17 + $0x78] sm:$0xff]  ;;  %v4079_v45 = vld [vmem:[%s19551_s17 + $0x130] sm:$0xff] }
 0xc0e   : > { %10864 = vmatprep.subr.bf16.mxu0 %v13568_v0  ;;  %v12586_v0 = vcombine.high %v4043_v56, %v4047_v51  ;;  %v4076_v38 = vld [vmem:[%s19551_s17 + $0x118] sm:$0xff]  ;;  %v4083_v56 = vld [vmem:[%s19551_s17 + $0x150] sm:$0xff] }
 0xc0f   : > { %v4080_v34 = vld [vmem:[%s19551_s17 + $0x138] sm:$0xff]  ;;  %v4087_v51 = vld [vmem:[%s19551_s17 + $0x170] sm:$0xff] }
 0xc10   : > { %10537 = vmatpush1.bf16.msra.mxu1 %v13565_v11  ;;  %v4052_v11 = vld [vmem:[%s19551_s17 + $0x58] sm:$0xff] }
 0xc11   : > { %10865 = vmatpush1.bf16.msra.mxu0 %v13567_v13  ;;  %10538 = vmatprep.subr.bf16.mxu1 %v13574_v14  ;;  %v17751_v13 = vpack.c.bf16 %v4004_v62, %v4004_v62  ;;  %v12587_v14 = vcombine.low %v4044_v50, %v4048_v54  ;;  %v12596_v55 = vcombine.high %v4052_v11, %v4056_v22  ;;  %v4084_v50 = vld [vmem:[%s19551_s17 + $0x158] sm:$0xff] }
 0xc12   : > { %10866 = vmatprep.subr.bf16.mxu0 %v13576_v15  ;;  %v12594_v15 = vcombine.high %v4051_v9, %v4055_v2  ;;  %v4088_v54 = vld [vmem:[%s19551_s17 + $0x178] sm:$0xff]  ;;  %v12626_v62 = vcombine.high %v4083_v56, %v4087_v51 }
 0xc14   : > { %10539 = vmatpush1.bf16.msra.mxu1 %v13573_v23  ;;  %v4064_v23 = vld [vmem:[%s19551_s17 + $0xb8] sm:$0xff] }
 0xc15   : > { %10867 = vmatpush1.bf16.msra.mxu0 %v13575_v60  ;;  %10540 = vmatprep.subr.bf16.mxu1 %v13582_v4  ;;  %v12593_v60 = vcombine.low %v4051_v9, %v4055_v2  ;;  %v12595_v4 = vcombine.low %v4052_v11, %v4056_v22  ;;  %v12604_v49 = vcombine.high %v4060_v10, %v4064_v23  ;;  %v4095_v9 = vld [vmem:[%s19551_s17 + $0x1b0] sm:$0xff]  ;;  %v4092_v2 = vld [vmem:[%s19551_s17 + $0x198] sm:$0xff] }
 0xc16   : > { %10868 = vmatprep.subr.bf16.mxu0 %v13584_v26  ;;  %v12602_v26 = vcombine.high %v4059_v16, %v4063_v58  ;;  %v12625_v11 = vcombine.low %v4083_v56, %v4087_v51  ;;  %v12627_v22 = vcombine.low %v4084_v50, %v4088_v54  ;;  %v4127_v56 = vld [vmem:[%s19551_s17 + $0x2b0] sm:$0xff]  ;;  %v4124_v51 = vld [vmem:[%s19551_s17 + $0x298] sm:$0xff] }
 0xc18   : > { %10541 = vmatpush1.bf16.msra.mxu1 %v13581_v28  ;;  %v4072_v28 = vld [vmem:[%s19551_s17 + $0xf8] sm:$0xff] }
 0xc19   : > { %10869 = vmatpush1.bf16.msra.mxu0 %v13583_v33  ;;  %10542 = vmatprep.subr.bf16.mxu1 %v13590_v6  ;;  %v12603_v33 = vcombine.low %v4060_v10, %v4064_v23  ;;  %v12610_v6 = vcombine.high %v4067_v31, %v4071_v40  ;;  %v4104_v10 = vld [vmem:[%s19551_s17 + $0x1f8] sm:$0xff] }
 0xc1a   : > { %10870 = vmatprep.subr.bf16.mxu0 %v13592_v35  ;;  %v12612_v35 = vcombine.high %v4068_v32, %v4072_v28 }
 0xc1c   : > { %10543 = vmatpush1.bf16.msra.mxu1 %v13589_v39  ;;  %v12609_v39 = vcombine.low %v4067_v31, %v4071_v40  ;;  %v4111_v31 = vld [vmem:[%s19551_s17 + $0x230] sm:$0xff]  ;;  %v4108_v40 = vld [vmem:[%s19551_s17 + $0x218] sm:$0xff] }
 0xc1d   : > { %10871 = vmatpush1.bf16.msra.mxu0 %v13591_v18  ;;  %10544 = vmatprep.subr.bf16.mxu1 %v13598_v7  ;;  %v12611_v18 = vcombine.low %v4068_v32, %v4072_v28  ;;  %v12618_v7 = vcombine.high %v4075_v41, %v4079_v45  ;;  %v4112_v32 = vld [vmem:[%s19551_s17 + $0x238] sm:$0xff] }
 0xc1e   : > { %10872 = vmatprep.subr.bf16.mxu0 %v13600_v46  ;;  %v12620_v46 = vcombine.high %v4076_v38, %v4080_v34 }
 0xc20   : > { %10545 = vmatpush1.bf16.msra.mxu1 %v13597_v57  ;;  %v12617_v57 = vcombine.low %v4075_v41, %v4079_v45  ;;  %v4119_v41 = vld [vmem:[%s19551_s17 + $0x270] sm:$0xff]  ;;  %v4116_v45 = vld [vmem:[%s19551_s17 + $0x258] sm:$0xff] }
 0xc21   : > { %10873 = vmatpush1.bf16.msra.mxu0 %v13599_v20  ;;  %10883 = vmatprep.subr.bf16.mxu1 %v12586_v0  ;;  %v12619_v20 = vcombine.low %v4076_v38, %v4080_v34  ;;  %v12628_v0 = vcombine.high %v4084_v50, %v4088_v54  ;;  %v4120_v38 = vld [vmem:[%s19551_s17 + $0x278] sm:$0xff] }
 0xc22   : > { %11211 = vmatprep.subr.bf16.mxu0 %v12588_v1  ;;  %v4091_v1 = vld [vmem:[%s19551_s17 + $0x190] sm:$0xff]  ;;  %v4128_v50 = vld [vmem:[%s19551_s17 + $0x2b8] sm:$0xff] }
 0xc23   : > { %10547 = vmatmul.mubr.bf16.vlgmr.msra.gmra.mrb[28].mxu1 %v17751_v13  ;;  %v12633_v23 = vcombine.low %v4091_v1, %v4095_v9 }
 0xc24   : > { %10875 = vmatmul.mubr.bf16.vlgmr.msra.gmra.mrb[36].mxu0 %v17751_v13  ;;  %10884 = vmatpush1.bf16.msra.mxu1 %v12585_v3  ;;  %v4096_v3 = vld [vmem:[%s19551_s17 + $0x1b8] sm:$0xff] }
 0xc25   : > { %10915 = vmatprep.mubr.bf16.mxu1 %v16300_v29  ;;  %11212 = vmatpush1.bf16.msra.mxu0 %v12587_v14  ;;  %v12634_v14 = vcombine.high %v4091_v1, %v4095_v9  ;;  %v4135_v1 = vld [vmem:[%s19551_s17 + $0x2f0] sm:$0xff]  ;;  %v4132_v9 = vld [vmem:[%s19551_s17 + $0x2d8] sm:$0xff] }
 0xc26   : > { %11243 = vmatprep.mubr.bf16.mxu0 %v16300_v29  ;;  %10885 = vmatprep.subr.bf16.mxu1 %v12594_v15  ;;  %v12601_v29 = vcombine.low %v4059_v16, %v4063_v58  ;;  %v12636_v15 = vcombine.high %v4092_v2, %v4096_v3  ;;  %v4099_v16 = vld [vmem:[%s19551_s17 + $0x1d0] sm:$0xff] }
 0xc27   : > { %11213 = vmatprep.subr.bf16.mxu0 %v12596_v55  ;;  %v4103_v58 = vld [vmem:[%s19551_s17 + $0x1f0] sm:$0xff]  ;;  %v4100_v55 = vld [vmem:[%s19551_s17 + $0x1d8] sm:$0xff] }
 0xc28   : > { %10886 = vmatpush1.bf16.msra.mxu1 %v12593_v60  ;;  %v12635_v60 = vcombine.low %v4092_v2, %v4096_v3  ;;  %v12641_v28 = vcombine.low %v4099_v16, %v4103_v58  ;;  %v4136_v2 = vld [vmem:[%s19551_s17 + $0x2f8] sm:$0xff] }
 0xc29   : > { %11214 = vmatpush1.bf16.msra.mxu0 %v12595_v4  ;;  %10887 = vmatprep.subr.bf16.mxu1 %v12602_v26  ;;  %v12642_v4 = vcombine.high %v4099_v16, %v4103_v58  ;;  %v12644_v26 = vcombine.high %v4100_v55, %v4104_v10  ;;  %v4143_v16 = vld [vmem:[%s19551_s17 + $0x330] sm:$0xff]  ;;  %v4140_v58 = vld [vmem:[%s19551_s17 + $0x318] sm:$0xff] }
 0xc2a   : > { %11215 = vmatprep.subr.bf16.mxu0 %v12604_v49  ;;  %v4107_v49 = vld [vmem:[%s19551_s17 + $0x210] sm:$0xff] }
 0xc2b   : > { %v12649_v34 = vcombine.low %v4107_v49, %v4111_v31 }
 0xc2c   : > { %10888 = vmatpush1.bf16.msra.mxu1 %v12601_v29  ;;  %v12643_v29 = vcombine.low %v4100_v55, %v4104_v10  ;;  %v4144_v55 = vld [vmem:[%s19551_s17 + $0x338] sm:$0xff] }
 0xc2d   : > { %11216 = vmatpush1.bf16.msra.mxu0 %v12603_v33  ;;  %10889 = vmatprep.subr.bf16.mxu1 %v12610_v6  ;;  %v12650_v33 = vcombine.high %v4107_v49, %v4111_v31  ;;  %v12652_v6 = vcombine.high %v4108_v40, %v4112_v32  ;;  %v4151_v49 = vld [vmem:[%s19551_s17 + $0x370] sm:$0xff]  ;;  %v4148_v31 = vld [vmem:[%s19551_s17 + $0x358] sm:$0xff] }
 0xc2e   : > { %11217 = vmatprep.subr.bf16.mxu0 %v12612_v35  ;;  %v4115_v35 = vld [vmem:[%s19551_s17 + $0x250] sm:$0xff] }
 0xc2f   : > { %v12657_v54 = vcombine.low %v4115_v35, %v4119_v41 }
 0xc30   : > { %10890 = vmatpush1.bf16.msra.mxu1 %v12609_v39  ;;  %v12651_v39 = vcombine.low %v4108_v40, %v4112_v32  ;;  %v4152_v40 = vld [vmem:[%s19551_s17 + $0x378] sm:$0xff] }
 0xc31   : > { %11218 = vmatpush1.bf16.msra.mxu0 %v12611_v18  ;;  %10891 = vmatprep.subr.bf16.mxu1 %v12618_v7  ;;  %v12658_v18 = vcombine.high %v4115_v35, %v4119_v41  ;;  %v12660_v7 = vcombine.high %v4116_v45, %v4120_v38  ;;  %v4159_v35 = vld [vmem:[%s19551_s17 + $0x3b0] sm:$0xff]  ;;  %v4156_v41 = vld [vmem:[%s19551_s17 + $0x398] sm:$0xff] }
 0xc32   : > { %11219 = vmatprep.subr.bf16.mxu0 %v12620_v46  ;;  %v4123_v46 = vld [vmem:[%s19551_s17 + $0x290] sm:$0xff] }
 0xc33   : > { %v12665_v3 = vcombine.low %v4123_v46, %v4127_v56 }
 0xc34   : > { %10892 = vmatpush1.bf16.msra.mxu1 %v12617_v57  ;;  %v12659_v57 = vcombine.low %v4116_v45, %v4120_v38  ;;  %v4160_v45 = vld [vmem:[%s19551_s17 + $0x3b8] sm:$0xff] }
 0xc35   : > { %11220 = vmatpush1.bf16.msra.mxu0 %v12619_v20  ;;  %10893 = vmatprep.subr.bf16.mxu1 %v12626_v62  ;;  %v12666_v20 = vcombine.high %v4123_v46, %v4127_v56  ;;  %v12668_v62 = vcombine.high %v4124_v51, %v4128_v50  ;;  %v4167_v46 = vld [vmem:[%s19551_s17 + $0x3f0] sm:$0xff]  ;;  %v4164_v56 = vld [vmem:[%s19551_s17 + $0x3d8] sm:$0xff] }
 0xc36   : > { %11221 = vmatprep.subr.bf16.mxu0 %v12628_v0  ;;  %v4131_v0 = vld [vmem:[%s19551_s17 + $0x2d0] sm:$0xff] }
 0xc37   : > { %v12673_v10 = vcombine.low %v4131_v0, %v4135_v1 }
 0xc38   : > { %10894 = vmatpush1.bf16.msra.mxu1 %v12625_v11  ;;  %v12667_v11 = vcombine.low %v4124_v51, %v4128_v50  ;;  %v4168_v51 = vld [vmem:[%s19551_s17 + $0x3f8] sm:$0xff] }
 0xc39   : > { %11222 = vmatpush1.bf16.msra.mxu0 %v12627_v22  ;;  %10895 = vmatprep.subr.bf16.mxu1 %v12634_v14  ;;  %v12674_v22 = vcombine.high %v4131_v0, %v4135_v1  ;;  %v12676_v14 = vcombine.high %v4132_v9, %v4136_v2  ;;  %v4175_v0 = vld [vmem:[%s19551_s17 + $0x430] sm:$0xff]  ;;  %v4172_v1 = vld [vmem:[%s19551_s17 + $0x418] sm:$0xff] }
 0xc3a   : > { %11223 = vmatprep.subr.bf16.mxu0 %v12636_v15  ;;  %v4139_v15 = vld [vmem:[%s19551_s17 + $0x310] sm:$0xff] }
 0xc3b   : > { %v12681_v32 = vcombine.low %v4139_v15, %v4143_v16 }
 0xc3c   : > { %10896 = vmatpush1.bf16.msra.mxu1 %v12633_v23  ;;  %v12675_v23 = vcombine.low %v4132_v9, %v4136_v2  ;;  %v4176_v9 = vld [vmem:[%s19551_s17 + $0x438] sm:$0xff] }
 0xc3d   : > { %11224 = vmatpush1.bf16.msra.mxu0 %v12635_v60  ;;  %10897 = vmatprep.subr.bf16.mxu1 %v12642_v4  ;;  %v12682_v60 = vcombine.high %v4139_v15, %v4143_v16  ;;  %v12684_v4 = vcombine.high %v4140_v58, %v4144_v55  ;;  %v4183_v15 = vld [vmem:[%s19551_s17 + $0x470] sm:$0xff] }
 0xc3e   : > { %11225 = vmatprep.subr.bf16.mxu0 %v12644_v26  ;;  %v4147_v26 = vld [vmem:[%s19551_s17 + $0x350] sm:$0xff] }
 0xc3f   : > { %v12689_v38 = vcombine.low %v4147_v26, %v4151_v49 }
 0xc40   : > { %10898 = vmatpush1.bf16.msra.mxu1 %v12641_v28  ;;  %v12683_v28 = vcombine.low %v4140_v58, %v4144_v55  ;;  %v4180_v58 = vld [vmem:[%s19551_s17 + $0x458] sm:$0xff] }
 0xc41   : > { %11226 = vmatpush1.bf16.msra.mxu0 %v12643_v29  ;;  %10899 = vmatprep.subr.bf16.mxu1 %v12650_v33  ;;  %v12690_v29 = vcombine.high %v4147_v26, %v4151_v49  ;;  %v12692_v33 = vcombine.high %v4148_v31, %v4152_v40  ;;  %v4184_v55 = vld [vmem:[%s19551_s17 + $0x478] sm:$0xff] }
 0xc42   : > { %11227 = vmatprep.subr.bf16.mxu0 %v12652_v6  ;;  %v4155_v6 = vld [vmem:[%s19551_s17 + $0x390] sm:$0xff]  ;;  %v12724_v26 = vcombine.high %v4180_v58, %v4184_v55  ;;  %v4188_v49 = vld [vmem:[%s19551_s17 + $0x498] sm:$0xff] }
 0xc43   : > { %v12697_v50 = vcombine.low %v4155_v6, %v4159_v35 }
 0xc44   : > { %10900 = vmatpush1.bf16.msra.mxu1 %v12649_v34  ;;  %v12691_v34 = vcombine.low %v4148_v31, %v4152_v40  ;;  %v4192_v31 = vld [vmem:[%s19551_s17 + $0x4b8] sm:$0xff] }
 0xc45   : > { %11228 = vmatpush1.bf16.msra.mxu0 %v12651_v39  ;;  %10901 = vmatprep.subr.bf16.mxu1 %v12658_v18  ;;  %v12698_v39 = vcombine.high %v4155_v6, %v4159_v35  ;;  %v12700_v18 = vcombine.high %v4156_v41, %v4160_v45  ;;  %v4199_v6 = vld [vmem:[%s19551_s17 + $0x4f0] sm:$0xff]  ;;  %v4200_v35 = vld [vmem:[%s19551_s17 + $0x4f8] sm:$0xff] }
 0xc46   : > { %11229 = vmatprep.subr.bf16.mxu0 %v12660_v7  ;;  %v4163_v7 = vld [vmem:[%s19551_s17 + $0x3d0] sm:$0xff] }
 0xc47   : > { %v12705_v2 = vcombine.low %v4163_v7, %v4167_v46 }
 0xc48   : > { %10902 = vmatpush1.bf16.msra.mxu1 %v12657_v54  ;;  %v12699_v54 = vcombine.low %v4156_v41, %v4160_v45  ;;  %v12731_v41 = vcombine.low %v4188_v49, %v4192_v31 }
 0xc49   : > { %11230 = vmatpush1.bf16.msra.mxu0 %v12659_v57  ;;  %10903 = vmatprep.subr.bf16.mxu1 %v12666_v20  ;;  %v12706_v57 = vcombine.high %v4163_v7, %v4167_v46  ;;  %v12708_v20 = vcombine.high %v4164_v56, %v4168_v51  ;;  %v4208_v7 = vld [vmem:[%s19551_s17 + $0x538] sm:$0xff] }
 0xc4a   : > { %11231 = vmatprep.subr.bf16.mxu0 %v12668_v62  ;;  %v4171_v62 = vld [vmem:[%s19551_s17 + $0x410] sm:$0xff] }
 0xc4b   : > { %v12713_v16 = vcombine.low %v4171_v62, %v4175_v0 }
 0xc4c   : > { %10904 = vmatpush1.bf16.msra.mxu1 %v12665_v3  ;;  %v12707_v3 = vcombine.low %v4164_v56, %v4168_v51 }
 0xc4d   : > { %11232 = vmatpush1.bf16.msra.mxu0 %v12667_v11  ;;  %10905 = vmatprep.subr.bf16.mxu1 %v12674_v22  ;;  %v12714_v11 = vcombine.high %v4171_v62, %v4175_v0  ;;  %v12716_v22 = vcombine.high %v4172_v1, %v4176_v9  ;;  %v4216_v62 = vld [vmem:[%s19551_s17 + $0x578] sm:$0xff] }
 0xc4e   : > { %11233 = vmatprep.subr.bf16.mxu0 %v12676_v14  ;;  %v4179_v14 = vld [vmem:[%s19551_s17 + $0x450] sm:$0xff] }
 0xc4f   : > { %v12721_v40 = vcombine.low %v4179_v14, %v4183_v15 }
 0xc50   : > { %10906 = vmatpush1.bf16.msra.mxu1 %v12673_v10  ;;  %v12715_v10 = vcombine.low %v4172_v1, %v4176_v9 }
 0xc51   : > { %11234 = vmatpush1.bf16.msra.mxu0 %v12675_v23  ;;  %10907 = vmatprep.subr.bf16.mxu1 %v12682_v60  ;;  %v12722_v23 = vcombine.high %v4179_v14, %v4183_v15  ;;  %v4187_v60 = vld [vmem:[%s19551_s17 + $0x490] sm:$0xff]  ;;  %v4224_v14 = vld [vmem:[%s19551_s17 + $0x5b8] sm:$0xff] }
 0xc52   : > { %11235 = vmatprep.subr.bf16.mxu0 %v12684_v4  ;;  %v4191_v4 = vld [vmem:[%s19551_s17 + $0x4b0] sm:$0xff] }
 0xc54   : > { %10908 = vmatpush1.bf16.msra.mxu1 %v12681_v32  ;;  %v12723_v32 = vcombine.low %v4180_v58, %v4184_v55 }
 0xc55   : > { %11236 = vmatpush1.bf16.msra.mxu0 %v12683_v28  ;;  %10909 = vmatprep.subr.bf16.mxu1 %v12690_v29  ;;  %v12730_v28 = vcombine.high %v4187_v60, %v4191_v4  ;;  %v12732_v29 = vcombine.high %v4188_v49, %v4192_v31 }
 0xc56   : > { %11237 = vmatprep.subr.bf16.mxu0 %v12692_v33  ;;  %v4195_v33 = vld [vmem:[%s19551_s17 + $0x4d0] sm:$0xff] }
 0xc57   : > { %v12738_v45 = vcombine.high %v4195_v33, %v4199_v6  ;;  %v12737_v46 = vcombine.low %v4195_v33, %v4199_v6  ;;  %v4240_v33 = vld [vmem:[%s19551_s17 + $0x638] sm:$0xff] }
 0xc58   : > { %10910 = vmatpush1.bf16.msra.mxu1 %v12689_v38 }
 0xc59   : > { %11238 = vmatpush1.bf16.msra.mxu0 %v12691_v34  ;;  %10911 = vmatprep.subr.bf16.mxu1 %v12698_v39  ;;  %v4203_v34 = vld [vmem:[%s19551_s17 + $0x510] sm:$0xff] }
 0xc5a   : > { %11239 = vmatprep.subr.bf16.mxu0 %v12700_v18  ;;  %v4207_v39 = vld [vmem:[%s19551_s17 + $0x530] sm:$0xff]  ;;  %v4204_v18 = vld [vmem:[%s19551_s17 + $0x518] sm:$0xff] }
 0xc5b   : > { %v12746_v51 = vcombine.high %v4203_v34, %v4207_v39  ;;  %v12745_v0 = vcombine.low %v4203_v34, %v4207_v39  ;;  %v12747_v1 = vcombine.low %v4204_v18, %v4208_v7  ;;  %v4248_v34 = vld [vmem:[%s19551_s17 + $0x678] sm:$0xff] }
 0xc5c   : > { %10912 = vmatpush1.bf16.msra.mxu1 %v12697_v50  ;;  %v12748_v50 = vcombine.high %v4204_v18, %v4208_v7 }
 0xc5d   : > { %11240 = vmatpush1.bf16.msra.mxu0 %v12699_v54  ;;  %10913 = vmatprep.subr.bf16.mxu1 %v12706_v57  ;;  %v4211_v54 = vld [vmem:[%s19551_s17 + $0x550] sm:$0xff] }
 0xc5e   : > { %11241 = vmatprep.subr.bf16.mxu0 %v12708_v20  ;;  %v4215_v57 = vld [vmem:[%s19551_s17 + $0x570] sm:$0xff]  ;;  %v4212_v20 = vld [vmem:[%s19551_s17 + $0x558] sm:$0xff] }
 0xc5f   : > { %v12754_v9 = vcombine.high %v4211_v54, %v4215_v57  ;;  %v12753_v15 = vcombine.low %v4211_v54, %v4215_v57  ;;  %v4256_v54 = vld [vmem:[%s19551_s17 + $0x6b8] sm:$0xff] }
 0xc60   : > { %10914 = vmatpush1.bf16.msra.mxu1 %v12705_v2  ;;  %v12756_v2 = vcombine.high %v4212_v20, %v4216_v62 }
 0xc61   : > { %11242 = vmatpush1.bf16.msra.mxu0 %v12707_v3  ;;  %10924 = vmatprep.subr.bf16.mxu1 %v12714_v11  ;;  %v4219_v3 = vld [vmem:[%s19551_s17 + $0x590] sm:$0xff] }
 0xc62   : > { %11252 = vmatprep.subr.bf16.mxu0 %v12716_v22  ;;  %v4223_v11 = vld [vmem:[%s19551_s17 + $0x5b0] sm:$0xff]  ;;  %v4220_v22 = vld [vmem:[%s19551_s17 + $0x598] sm:$0xff] }
 0xc63   : > { %10916 = vmatmul.mubr.bf16.vlgmr.msra.gmra.mrb[32].mxu1 %v16302_v30  ;;  %v12762_v58 = vcombine.high %v4219_v3, %v4223_v11  ;;  %v12764_v55 = vcombine.high %v4220_v22, %v4224_v14  ;;  %v12763_v49 = vcombine.low %v4220_v22, %v4224_v14 }
 0xc64   : > { %11244 = vmatmul.mubr.bf16.vlgmr.msra.gmra.mrb[40].mxu0 %v16302_v30  ;;  %10925 = vmatpush1.bf16.msra.mxu1 %v12713_v16  ;;  %v4196_v30 = vld [vmem:[%s19551_s17 + $0x4d8] sm:$0xff]  ;;  %v12755_v16 = vcombine.low %v4212_v20, %v4216_v62 }
 0xc65   : > { %10956 = vmatprep.mubr.bf16.mxu1 %v16320_v37  ;;  %11253 = vmatpush1.bf16.msra.mxu0 %v12715_v10  ;;  %v12740_v38 = vcombine.high %v4196_v30, %v4200_v35  ;;  %v12739_v56 = vcombine.low %v4196_v30, %v4200_v35  ;;  %v4227_v10 = vld [vmem:[%s19551_s17 + $0x5d0] sm:$0xff] }
 0xc66   : > { %11284 = vmatprep.mubr.bf16.mxu0 %v16320_v37  ;;  %10926 = vmatprep.subr.bf16.mxu1 %v12722_v23  ;;  %v12729_v37 = vcombine.low %v4187_v60, %v4191_v4  ;;  %v4231_v23 = vld [vmem:[%s19551_s17 + $0x5f0] sm:$0xff]  ;;  %v4228_v60 = vld [vmem:[%s19551_s17 + $0x5d8] sm:$0xff] }
 0xc67   : > { %11254 = vmatprep.subr.bf16.mxu0 %v12724_v26  ;;  %v4232_v4 = vld [vmem:[%s19551_s17 + $0x5f8] sm:$0xff]  ;;  %v12761_v26 = vcombine.low %v4219_v3, %v4223_v11  ;;  %v12770_v31 = vcombine.high %v4227_v10, %v4231_v23  ;;  %v12769_v6 = vcombine.low %v4227_v10, %v4231_v23 }
 0xc68   : > { %10927 = vmatpush1.bf16.msra.mxu1 %v12721_v40  ;;  %v12772_v40 = vcombine.high %v4228_v60, %v4232_v4  ;;  %v12771_v30 = vcombine.low %v4228_v60, %v4232_v4  ;;  %v4264_v3 = vld [vmem:[%s19551_s17 + $0x6f8] sm:$0xff] }
 0xc69   : > { %11255 = vmatpush1.bf16.msra.mxu0 %v12723_v32  ;;  %10928 = vmatprep.subr.bf16.mxu1 %v12730_v28  ;;  %v4235_v32 = vld [vmem:[%s19551_s17 + $0x610] sm:$0xff]  ;;  %v4272_v10 = vld [vmem:[%s19551_s17 + $0x738] sm:$0xff] }
 0xc6a   : > { %11256 = vmatprep.subr.bf16.mxu0 %v12732_v29  ;;  %v4239_v28 = vld [vmem:[%s19551_s17 + $0x630] sm:$0xff]  ;;  %v4236_v29 = vld [vmem:[%s19551_s17 + $0x618] sm:$0xff] }
 0xc6b   : > { %v12778_v35 = vcombine.high %v4235_v32, %v4239_v28  ;;  %v12777_v39 = vcombine.low %v4235_v32, %v4239_v28  ;;  %v12779_v18 = vcombine.low %v4236_v29, %v4240_v33  ;;  %v4280_v32 = vld [vmem:[%s19551_s17 + $0x778] sm:$0xff] }
 0xc6c   : > { %10929 = vmatpush1.bf16.msra.mxu1 %v12729_v37  ;;  %v12780_v37 = vcombine.high %v4236_v29, %v4240_v33 }
 0xc6d   : > { %11257 = vmatpush1.bf16.msra.mxu0 %v12731_v41  ;;  %10930 = vmatprep.subr.bf16.mxu1 %v12738_v45  ;;  %v4243_v41 = vld [vmem:[%s19551_s17 + $0x650] sm:$0xff] }
 0xc6e   : > { %11258 = vmatprep.subr.bf16.mxu0 %v12740_v38  ;;  %v4247_v45 = vld [vmem:[%s19551_s17 + $0x670] sm:$0xff]  ;;  %v4244_v38 = vld [vmem:[%s19551_s17 + $0x658] sm:$0xff] }
 0xc6f   : > { %v12786_v7 = vcombine.high %v4243_v41, %v4247_v45  ;;  %v12785_v57 = vcombine.low %v4243_v41, %v4247_v45  ;;  %v12787_v20 = vcombine.low %v4244_v38, %v4248_v34  ;;  %v4288_v41 = vld [vmem:[%s19551_s17 + $0x7b8] sm:$0xff] }
 0xc70   : > { %10931 = vmatpush1.bf16.msra.mxu1 %v12737_v46  ;;  %v12788_v46 = vcombine.high %v4244_v38, %v4248_v34 }
 0xc71   : > { %11259 = vmatpush1.bf16.msra.mxu0 %v12739_v56  ;;  %10932 = vmatprep.subr.bf16.mxu1 %v12746_v51  ;;  %v4251_v56 = vld [vmem:[%s19551_s17 + $0x690] sm:$0xff] }
 0xc72   : > { %11260 = vmatprep.subr.bf16.mxu0 %v12748_v50  ;;  %v4255_v51 = vld [vmem:[%s19551_s17 + $0x6b0] sm:$0xff]  ;;  %v4252_v50 = vld [vmem:[%s19551_s17 + $0x698] sm:$0xff] }
 0xc73   : > { %v12794_v62 = vcombine.high %v4251_v56, %v4255_v51  ;;  %v12793_v11 = vcombine.low %v4251_v56, %v4255_v51  ;;  %v12795_v22 = vcombine.low %v4252_v50, %v4256_v54  ;;  %v4296_v56 = vld [vmem:[%s19551_s17 + $0x7f8] sm:$0xff] }
 0xc74   : > { %10933 = vmatpush1.bf16.msra.mxu1 %v12745_v0  ;;  %v12796_v0 = vcombine.high %v4252_v50, %v4256_v54 }
 0xc75   : > { %11261 = vmatpush1.bf16.msra.mxu0 %v12747_v1  ;;  %10934 = vmatprep.subr.bf16.mxu1 %v12754_v9  ;;  %v4259_v1 = vld [vmem:[%s19551_s17 + $0x6d0] sm:$0xff] }
 0xc76   : > { %11262 = vmatprep.subr.bf16.mxu0 %v12756_v2  ;;  %v4263_v9 = vld [vmem:[%s19551_s17 + $0x6f0] sm:$0xff]  ;;  %v4260_v2 = vld [vmem:[%s19551_s17 + $0x6d8] sm:$0xff] }
 0xc77   : > { %v12802_v14 = vcombine.high %v4259_v1, %v4263_v9  ;;  %v12801_v23 = vcombine.low %v4259_v1, %v4263_v9  ;;  %v12803_v60 = vcombine.low %v4260_v2, %v4264_v3  ;;  %v4304_v1 = vld [vmem:[%s19551_s17 + $0x838] sm:$0xff] }
 0xc78   : > { %10935 = vmatpush1.bf16.msra.mxu1 %v12753_v15  ;;  %v12804_v15 = vcombine.high %v4260_v2, %v4264_v3 }
 0xc79   : > { %11263 = vmatpush1.bf16.msra.mxu0 %v12755_v16  ;;  %10936 = vmatprep.subr.bf16.mxu1 %v12762_v58  ;;  %v4267_v16 = vld [vmem:[%s19551_s17 + $0x710] sm:$0xff] }
 0xc7a   : > { %11264 = vmatprep.subr.bf16.mxu0 %v12764_v55  ;;  %v4271_v58 = vld [vmem:[%s19551_s17 + $0x730] sm:$0xff]  ;;  %v4268_v55 = vld [vmem:[%s19551_s17 + $0x718] sm:$0xff] }
 0xc7b   : > { %v12810_v4 = vcombine.high %v4267_v16, %v4271_v58  ;;  %v12809_v28 = vcombine.low %v4267_v16, %v4271_v58  ;;  %v12811_v29 = vcombine.low %v4268_v55, %v4272_v10  ;;  %v4308_v16 = vld [vmem:[%s19551_s17 + $0x858] sm:$0xff] }
 0xc7c   : > { %10937 = vmatpush1.bf16.msra.mxu1 %v12761_v26  ;;  %v12812_v26 = vcombine.high %v4268_v55, %v4272_v10  ;;  %v4312_v58 = vld [vmem:[%s19551_s17 + $0x878] sm:$0xff] }
 0xc7d   : > { %11265 = vmatpush1.bf16.msra.mxu0 %v12763_v49  ;;  %10938 = vmatprep.subr.bf16.mxu1 %v12770_v31  ;;  %v4275_v49 = vld [vmem:[%s19551_s17 + $0x750] sm:$0xff] }
 0xc7e   : > { %11266 = vmatprep.subr.bf16.mxu0 %v12772_v40  ;;  %v4279_v31 = vld [vmem:[%s19551_s17 + $0x770] sm:$0xff]  ;;  %v4276_v40 = vld [vmem:[%s19551_s17 + $0x758] sm:$0xff] }
 0xc7f   : > { %v12818_v33 = vcombine.high %v4275_v49, %v4279_v31  ;;  %v12817_v45 = vcombine.low %v4275_v49, %v4279_v31  ;;  %v12819_v38 = vcombine.low %v4276_v40, %v4280_v32  ;;  %v4320_v49 = vld [vmem:[%s19551_s17 + $0x8b8] sm:$0xff] }
 0xc80   : > { %10939 = vmatpush1.bf16.msra.mxu1 %v12769_v6  ;;  %v12820_v6 = vcombine.high %v4276_v40, %v4280_v32  ;;  %v12851_v40 = vcombine.low %v4308_v16, %v4312_v58 }
 0xc81   : > { %11267 = vmatpush1.bf16.msra.mxu0 %v12771_v30  ;;  %10940 = vmatprep.subr.bf16.mxu1 %v12778_v35  ;;  %v4283_v30 = vld [vmem:[%s19551_s17 + $0x790] sm:$0xff] }
 0xc82   : > { %11268 = vmatprep.subr.bf16.mxu0 %v12780_v37  ;;  %v4287_v35 = vld [vmem:[%s19551_s17 + $0x7b0] sm:$0xff]  ;;  %v4284_v37 = vld [vmem:[%s19551_s17 + $0x798] sm:$0xff] }
 0xc83   : > { %v12826_v34 = vcombine.high %v4283_v30, %v4287_v35  ;;  %v12825_v51 = vcombine.low %v4283_v30, %v4287_v35  ;;  %v12827_v50 = vcombine.low %v4284_v37, %v4288_v41 }
 0xc84   : > { %10941 = vmatpush1.bf16.msra.mxu1 %v12777_v39  ;;  %v12828_v39 = vcombine.high %v4284_v37, %v4288_v41  ;;  %v4331_v41 = vld [vmem:[%s19551_s17 + $0x910] sm:$0xff] }
 0xc85   : > { %11269 = vmatpush1.bf16.msra.mxu0 %v12779_v18  ;;  %10942 = vmatprep.subr.bf16.mxu1 %v12786_v7  ;;  %v4291_v18 = vld [vmem:[%s19551_s17 + $0x7d0] sm:$0xff] }
 0xc86   : > { %11270 = vmatprep.subr.bf16.mxu0 %v12788_v46  ;;  %v4295_v7 = vld [vmem:[%s19551_s17 + $0x7f0] sm:$0xff]  ;;  %v4292_v46 = vld [vmem:[%s19551_s17 + $0x7d8] sm:$0xff] }
 0xc87   : > { %v12834_v54 = vcombine.high %v4291_v18, %v4295_v7  ;;  %v12833_v9 = vcombine.low %v4291_v18, %v4295_v7  ;;  %v12835_v2 = vcombine.low %v4292_v46, %v4296_v56 }
 0xc88   : > { %10943 = vmatpush1.bf16.msra.mxu1 %v12785_v57  ;;  %v12836_v57 = vcombine.high %v4292_v46, %v4296_v56  ;;  %v4339_v56 = vld [vmem:[%s19551_s17 + $0x950] sm:$0xff] }
 0xc89   : > { %11271 = vmatpush1.bf16.msra.mxu0 %v12787_v20  ;;  %10944 = vmatprep.subr.bf16.mxu1 %v12794_v62  ;;  %v4299_v20 = vld [vmem:[%s19551_s17 + $0x810] sm:$0xff] }
 0xc8a   : > { %11272 = vmatprep.subr.bf16.mxu0 %v12796_v0  ;;  %v4303_v62 = vld [vmem:[%s19551_s17 + $0x830] sm:$0xff]  ;;  %v4300_v0 = vld [vmem:[%s19551_s17 + $0x818] sm:$0xff] }
 0xc8b   : > { %v12842_v3 = vcombine.high %v4299_v20, %v4303_v62  ;;  %v12843_v55 = vcombine.low %v4300_v0, %v4304_v1 }
 0xc8c   : > { %10945 = vmatpush1.bf16.msra.mxu1 %v12793_v11  ;;  %v12844_v11 = vcombine.high %v4300_v0, %v4304_v1  ;;  %v4347_v1 = vld [vmem:[%s19551_s17 + $0x990] sm:$0xff] }
 0xc8d   : > { %11273 = vmatpush1.bf16.msra.mxu0 %v12795_v22  ;;  %10946 = vmatprep.subr.bf16.mxu1 %v12802_v14  ;;  %v4307_v22 = vld [vmem:[%s19551_s17 + $0x850] sm:$0xff] }
 0xc8e   : > { %11274 = vmatprep.subr.bf16.mxu0 %v12804_v15  ;;  %v4311_v14 = vld [vmem:[%s19551_s17 + $0x870] sm:$0xff]  ;;  %v12841_v15 = vcombine.low %v4299_v20, %v4303_v62 }
 0xc8f   : > { %v12850_v10 = vcombine.high %v4307_v22, %v4311_v14  ;;  %v12849_v31 = vcombine.low %v4307_v22, %v4311_v14 }
 0xc90   : > { %10947 = vmatpush1.bf16.msra.mxu1 %v12801_v23  ;;  %v4315_v23 = vld [vmem:[%s19551_s17 + $0x890] sm:$0xff] }
 0xc91   : > { %11275 = vmatpush1.bf16.msra.mxu0 %v12803_v60  ;;  %10948 = vmatprep.subr.bf16.mxu1 %v12810_v4  ;;  %v4319_v60 = vld [vmem:[%s19551_s17 + $0x8b0] sm:$0xff]  ;;  %v12852_v4 = vcombine.high %v4308_v16, %v4312_v58 }
 0xc92   : > { %11276 = vmatprep.subr.bf16.mxu0 %v12812_v26  ;;  %v4316_v26 = vld [vmem:[%s19551_s17 + $0x898] sm:$0xff]  ;;  %v12858_v32 = vcombine.high %v4315_v23, %v4319_v60  ;;  %v4355_v16 = vld [vmem:[%s19551_s17 + $0x9d0] sm:$0xff] }
 0xc93   : > { %v12859_v30 = vcombine.low %v4316_v26, %v4320_v49  ;;  %v4359_v58 = vld [vmem:[%s19551_s17 + $0x9f0] sm:$0xff] }
 0xc94   : > { %10949 = vmatpush1.bf16.msra.mxu1 %v12809_v28  ;;  %v12860_v28 = vcombine.high %v4316_v26, %v4320_v49  ;;  %v4363_v49 = vld [vmem:[%s19551_s17 + $0xa10] sm:$0xff] }
 0xc95   : > { %11277 = vmatpush1.bf16.msra.mxu0 %v12811_v29  ;;  %10950 = vmatprep.subr.bf16.mxu1 %v12818_v33  ;;  %v4323_v29 = vld [vmem:[%s19551_s17 + $0x8d0] sm:$0xff] }
 0xc96   : > { %11278 = vmatprep.subr.bf16.mxu0 %v12820_v6  ;;  %v4327_v33 = vld [vmem:[%s19551_s17 + $0x8f0] sm:$0xff]  ;;  %v4328_v6 = vld [vmem:[%s19551_s17 + $0x8f8] sm:$0xff] }
 0xc97   : > { %v12866_v35 = vcombine.high %v4323_v29, %v4327_v33 }
 0xc98   : > { %10951 = vmatpush1.bf16.msra.mxu1 %v12817_v45  ;;  %v4335_v45 = vld [vmem:[%s19551_s17 + $0x930] sm:$0xff] }
 0xc99   : > { %11279 = vmatpush1.bf16.msra.mxu0 %v12819_v38  ;;  %10952 = vmatprep.subr.bf16.mxu1 %v12826_v34  ;;  %v4332_v38 = vld [vmem:[%s19551_s17 + $0x918] sm:$0xff]  ;;  %v12874_v7 = vcombine.high %v4331_v41, %v4335_v45 }
 0xc9a   : > { %11280 = vmatprep.subr.bf16.mxu0 %v12828_v39  ;;  %v4336_v34 = vld [vmem:[%s19551_s17 + $0x938] sm:$0xff]  ;;  %v12865_v39 = vcombine.low %v4323_v29, %v4327_v33 }
 0xc9b   : > { %v12876_v46 = vcombine.high %v4332_v38, %v4336_v34  ;;  %v12875_v20 = vcombine.low %v4332_v38, %v4336_v34  ;;  %v4379_v34 = vld [vmem:[%s19551_s17 + $0xa90] sm:$0xff] }
 0xc9c   : > { %10953 = vmatpush1.bf16.msra.mxu1 %v12825_v51  ;;  %v4343_v51 = vld [vmem:[%s19551_s17 + $0x970] sm:$0xff] }
 0xc9d   : > { %11281 = vmatpush1.bf16.msra.mxu0 %v12827_v50  ;;  %10954 = vmatprep.subr.bf16.mxu1 %v12834_v54  ;;  %v4340_v50 = vld [vmem:[%s19551_s17 + $0x958] sm:$0xff]  ;;  %v12882_v62 = vcombine.high %v4339_v56, %v4343_v51 }
 0xc9e   : > { %11282 = vmatprep.subr.bf16.mxu0 %v12836_v57  ;;  %v4344_v54 = vld [vmem:[%s19551_s17 + $0x978] sm:$0xff]  ;;  %v12873_v57 = vcombine.low %v4331_v41, %v4335_v45 }
 0xc9f   : > { %v12884_v0 = vcombine.high %v4340_v50, %v4344_v54  ;;  %v12883_v22 = vcombine.low %v4340_v50, %v4344_v54  ;;  %v4387_v54 = vld [vmem:[%s19551_s17 + $0xad0] sm:$0xff] }
 0xca0   : > { %10955 = vmatpush1.bf16.msra.mxu1 %v12833_v9  ;;  %v4351_v9 = vld [vmem:[%s19551_s17 + $0x9b0] sm:$0xff] }
 0xca1   : > { %11283 = vmatpush1.bf16.msra.mxu0 %v12835_v2  ;;  %10965 = vmatprep.subr.bf16.mxu1 %v12842_v3  ;;  %v4348_v2 = vld [vmem:[%s19551_s17 + $0x998] sm:$0xff]  ;;  %v12890_v14 = vcombine.high %v4347_v1, %v4351_v9 }
 0xca2   : > { %11293 = vmatprep.subr.bf16.mxu0 %v12844_v11  ;;  %v4352_v3 = vld [vmem:[%s19551_s17 + $0x9b8] sm:$0xff]  ;;  %v12881_v11 = vcombine.low %v4339_v56, %v4343_v51 }
 0xca3   : > { %10957 = vmatmul.mubr.bf16.vlgmr.msra.gmra.mrb[32].mxu1 %v16517_v48 }
 0xca4   : > { %11285 = vmatmul.mubr.bf16.vlgmr.msra.gmra.mrb[40].mxu0 %v16517_v48  ;;  %10966 = vmatpush1.bf16.msra.mxu1 %v12841_v15  ;;  %v4324_v48 = vld [vmem:[%s19551_s17 + $0x8d8] sm:$0xff]  ;;  %v12892_v15 = vcombine.high %v4348_v2, %v4352_v3 }
 0xca5   : > { %10997 = vmatprep.mubr.bf16.mxu1 %v16519_v53  ;;  %11294 = vmatpush1.bf16.msra.mxu0 %v12843_v55  ;;  %v12868_v37 = vcombine.high %v4324_v48, %v4328_v6  ;;  %v12867_v18 = vcombine.low %v4324_v48, %v4328_v6  ;;  %v4356_v55 = vld [vmem:[%s19551_s17 + $0x9d8] sm:$0xff]  ;;  %v4371_v6 = vld [vmem:[%s19551_s17 + $0xa50] sm:$0xff] }
 0xca6   : > { %11325 = vmatprep.mubr.bf16.mxu0 %v16519_v53  ;;  %10967 = vmatprep.subr.bf16.mxu1 %v12850_v10  ;;  %v12857_v53 = vcombine.low %v4315_v23, %v4319_v60  ;;  %v4360_v10 = vld [vmem:[%s19551_s17 + $0x9f8] sm:$0xff]  ;;  %v12889_v23 = vcombine.low %v4347_v1, %v4351_v9  ;;  %v12891_v60 = vcombine.low %v4348_v2, %v4352_v3  ;;  %v4395_v3 = vld [vmem:[%s19551_s17 + $0xb10] sm:$0xff] }
 0xca7   : > { %11295 = vmatprep.subr.bf16.mxu0 %v12852_v4  ;;  %v12898_v4 = vcombine.high %v4355_v16, %v4359_v58  ;;  %v12900_v26 = vcombine.high %v4356_v55, %v4360_v10  ;;  %v12899_v29 = vcombine.low %v4356_v55, %v4360_v10  ;;  %v4403_v10 = vld [vmem:[%s19551_s17 + $0xb50] sm:$0xff] }
 0xca8   : > { %10968 = vmatpush1.bf16.msra.mxu1 %v12849_v31  ;;  %v4367_v31 = vld [vmem:[%s19551_s17 + $0xa30] sm:$0xff] }
 0xca9   : > { %11296 = vmatpush1.bf16.msra.mxu0 %v12851_v40  ;;  %10969 = vmatprep.subr.bf16.mxu1 %v12858_v32  ;;  %v4364_v40 = vld [vmem:[%s19551_s17 + $0xa18] sm:$0xff]  ;;  %v12906_v33 = vcombine.high %v4363_v49, %v4367_v31 }
 0xcaa   : > { %11297 = vmatprep.subr.bf16.mxu0 %v12860_v28  ;;  %v4368_v32 = vld [vmem:[%s19551_s17 + $0xa38] sm:$0xff]  ;;  %v12897_v28 = vcombine.low %v4355_v16, %v4359_v58 }
 0xcab   : > { %v12908_v48 = vcombine.high %v4364_v40, %v4368_v32  ;;  %v12907_v41 = vcombine.low %v4364_v40, %v4368_v32  ;;  %v4411_v32 = vld [vmem:[%s19551_s17 + $0xb90] sm:$0xff] }
 0xcac   : > { %10970 = vmatpush1.bf16.msra.mxu1 %v12857_v53  ;;  %v4375_v53 = vld [vmem:[%s19551_s17 + $0xa70] sm:$0xff] }
 0xcad   : > { %11298 = vmatpush1.bf16.msra.mxu0 %v12859_v30  ;;  %10971 = vmatprep.subr.bf16.mxu1 %v12866_v35  ;;  %v4372_v30 = vld [vmem:[%s19551_s17 + $0xa58] sm:$0xff]  ;;  %v12914_v45 = vcombine.high %v4371_v6, %v4375_v53 }
 0xcae   : > { %11299 = vmatprep.subr.bf16.mxu0 %v12868_v37  ;;  %v4376_v35 = vld [vmem:[%s19551_s17 + $0xa78] sm:$0xff]  ;;  %v12905_v37 = vcombine.low %v4363_v49, %v4367_v31 }
 0xcaf   : > { %v12916_v38 = vcombine.high %v4372_v30, %v4376_v35  ;;  %v12915_v56 = vcombine.low %v4372_v30, %v4376_v35  ;;  %v4419_v35 = vld [vmem:[%s19551_s17 + $0xbd0] sm:$0xff] }
 0xcb0   : > { %10972 = vmatpush1.bf16.msra.mxu1 %v12865_v39  ;;  %v4383_v39 = vld [vmem:[%s19551_s17 + $0xab0] sm:$0xff] }
 0xcb1   : > { %11300 = vmatpush1.bf16.msra.mxu0 %v12867_v18  ;;  %10973 = vmatprep.subr.bf16.mxu1 %v12874_v7  ;;  %v4380_v18 = vld [vmem:[%s19551_s17 + $0xa98] sm:$0xff]  ;;  %v12922_v51 = vcombine.high %v4379_v34, %v4383_v39 }
 0xcb2   : > { %11301 = vmatprep.subr.bf16.mxu0 %v12876_v46  ;;  %v4384_v7 = vld [vmem:[%s19551_s17 + $0xab8] sm:$0xff]  ;;  %v12913_v46 = vcombine.low %v4371_v6, %v4375_v53 }
 0xcb3   : > { %v12924_v50 = vcombine.high %v4380_v18, %v4384_v7  ;;  %v12923_v1 = vcombine.low %v4380_v18, %v4384_v7  ;;  %v4427_v7 = vld [vmem:[%s19551_s17 + $0xc10] sm:$0xff] }
 0xcb4   : > { %10974 = vmatpush1.bf16.msra.mxu1 %v12873_v57  ;;  %v4391_v57 = vld [vmem:[%s19551_s17 + $0xaf0] sm:$0xff] }
 0xcb5   : > { %11302 = vmatpush1.bf16.msra.mxu0 %v12875_v20  ;;  %10975 = vmatprep.subr.bf16.mxu1 %v12882_v62  ;;  %v4388_v20 = vld [vmem:[%s19551_s17 + $0xad8] sm:$0xff]  ;;  %v12930_v9 = vcombine.high %v4387_v54, %v4391_v57 }
 0xcb6   : > { %11303 = vmatprep.subr.bf16.mxu0 %v12884_v0  ;;  %v4392_v62 = vld [vmem:[%s19551_s17 + $0xaf8] sm:$0xff]  ;;  %v12921_v0 = vcombine.low %v4379_v34, %v4383_v39 }
 0xcb7   : > { %v12932_v2 = vcombine.high %v4388_v20, %v4392_v62  ;;  %v12931_v16 = vcombine.low %v4388_v20, %v4392_v62  ;;  %v4435_v62 = vld [vmem:[%s19551_s17 + $0xc50] sm:$0xff] }
 0xcb8   : > { %10976 = vmatpush1.bf16.msra.mxu1 %v12881_v11  ;;  %v4399_v11 = vld [vmem:[%s19551_s17 + $0xb30] sm:$0xff] }
 0xcb9   : > { %11304 = vmatpush1.bf16.msra.mxu0 %v12883_v22  ;;  %10977 = vmatprep.subr.bf16.mxu1 %v12890_v14  ;;  %v4396_v22 = vld [vmem:[%s19551_s17 + $0xb18] sm:$0xff]  ;;  %v12938_v58 = vcombine.high %v4395_v3, %v4399_v11 }
 0xcba   : > { %11305 = vmatprep.subr.bf16.mxu0 %v12892_v15  ;;  %v4400_v14 = vld [vmem:[%s19551_s17 + $0xb38] sm:$0xff]  ;;  %v12929_v15 = vcombine.low %v4387_v54, %v4391_v57 }
 0xcbb   : > { %v12940_v55 = vcombine.high %v4396_v22, %v4400_v14  ;;  %v12939_v49 = vcombine.low %v4396_v22, %v4400_v14  ;;  %v4443_v22 = vld [vmem:[%s19551_s17 + $0xc90] sm:$0xff] }
 0xcbc   : > { %10978 = vmatpush1.bf16.msra.mxu1 %v12889_v23  ;;  %v4407_v23 = vld [vmem:[%s19551_s17 + $0xb70] sm:$0xff] }
 0xcbd   : > { %11306 = vmatpush1.bf16.msra.mxu0 %v12891_v60  ;;  %10979 = vmatprep.subr.bf16.mxu1 %v12898_v4  ;;  %v4404_v60 = vld [vmem:[%s19551_s17 + $0xb58] sm:$0xff]  ;;  %v12946_v31 = vcombine.high %v4403_v10, %v4407_v23  ;;  %v4447_v14 = vld [vmem:[%s19551_s17 + $0xcb0] sm:$0xff] }
 0xcbe   : > { %11307 = vmatprep.subr.bf16.mxu0 %v12900_v26  ;;  %v4408_v4 = vld [vmem:[%s19551_s17 + $0xb78] sm:$0xff]  ;;  %v12937_v26 = vcombine.low %v4395_v3, %v4399_v11 }
 0xcbf   : > { %v12948_v40 = vcombine.high %v4404_v60, %v4408_v4  ;;  %v12947_v6 = vcombine.low %v4404_v60, %v4408_v4  ;;  %v4451_v4 = vld [vmem:[%s19551_s17 + $0xcd0] sm:$0xff] }
 0xcc0   : > { %10980 = vmatpush1.bf16.msra.mxu1 %v12897_v28  ;;  %v4415_v28 = vld [vmem:[%s19551_s17 + $0xbb0] sm:$0xff] }
 0xcc1   : > { %11308 = vmatpush1.bf16.msra.mxu0 %v12899_v29  ;;  %10981 = vmatprep.subr.bf16.mxu1 %v12906_v33  ;;  %v4412_v29 = vld [vmem:[%s19551_s17 + $0xb98] sm:$0xff]  ;;  %v12954_v53 = vcombine.high %v4411_v32, %v4415_v28 }
 0xcc2   : > { %11309 = vmatprep.subr.bf16.mxu0 %v12908_v48  ;;  %v4416_v33 = vld [vmem:[%s19551_s17 + $0xbb8] sm:$0xff]  ;;  %v12945_v48 = vcombine.low %v4403_v10, %v4407_v23  ;;  %v12986_v23 = vcombine.high %v4443_v22, %v4447_v14 }
 0xcc3   : > { %v12956_v30 = vcombine.high %v4412_v29, %v4416_v33  ;;  %v12955_v34 = vcombine.low %v4412_v29, %v4416_v33  ;;  %v4463_v29 = vld [vmem:[%s19551_s17 + $0xd30] sm:$0xff]  ;;  %v4460_v33 = vld [vmem:[%s19551_s17 + $0xd18] sm:$0xff] }
 0xcc4   : > { %10982 = vmatpush1.bf16.msra.mxu1 %v12905_v37  ;;  %v4423_v37 = vld [vmem:[%s19551_s17 + $0xbf0] sm:$0xff] }
 0xcc5   : > { %11310 = vmatpush1.bf16.msra.mxu0 %v12907_v41  ;;  %10983 = vmatprep.subr.bf16.mxu1 %v12914_v45  ;;  %v4420_v41 = vld [vmem:[%s19551_s17 + $0xbd8] sm:$0xff]  ;;  %v12962_v39 = vcombine.high %v4419_v35, %v4423_v37 }
 0xcc6   : > { %11311 = vmatprep.subr.bf16.mxu0 %v12916_v38  ;;  %v4424_v45 = vld [vmem:[%s19551_s17 + $0xbf8] sm:$0xff]  ;;  %v12953_v38 = vcombine.low %v4411_v32, %v4415_v28  ;;  %v4459_v28 = vld [vmem:[%s19551_s17 + $0xd10] sm:$0xff] }
 0xcc7   : > { %v12964_v18 = vcombine.high %v4420_v41, %v4424_v45  ;;  %v12963_v54 = vcombine.low %v4420_v41, %v4424_v45  ;;  %v4471_v41 = vld [vmem:[%s19551_s17 + $0xd70] sm:$0xff]  ;;  %v4468_v45 = vld [vmem:[%s19551_s17 + $0xd58] sm:$0xff] }
 0xcc8   : > { %10984 = vmatpush1.bf16.msra.mxu1 %v12913_v46  ;;  %v4431_v46 = vld [vmem:[%s19551_s17 + $0xc30] sm:$0xff] }
 0xcc9   : > { %11312 = vmatpush1.bf16.msra.mxu0 %v12915_v56  ;;  %10985 = vmatprep.subr.bf16.mxu1 %v12922_v51  ;;  %v4428_v56 = vld [vmem:[%s19551_s17 + $0xc18] sm:$0xff]  ;;  %v12970_v57 = vcombine.high %v4427_v7, %v4431_v46 }
 0xcca   : > { %11313 = vmatprep.subr.bf16.mxu0 %v12924_v50  ;;  %v4432_v51 = vld [vmem:[%s19551_s17 + $0xc38] sm:$0xff]  ;;  %v12961_v50 = vcombine.low %v4419_v35, %v4423_v37  ;;  %v4467_v37 = vld [vmem:[%s19551_s17 + $0xd50] sm:$0xff] }
 0xccb   : > { %v12972_v20 = vcombine.high %v4428_v56, %v4432_v51  ;;  %v12971_v3 = vcombine.low %v4428_v56, %v4432_v51  ;;  %v4479_v56 = vld [vmem:[%s19551_s17 + $0xdb0] sm:$0xff]  ;;  %v4476_v51 = vld [vmem:[%s19551_s17 + $0xd98] sm:$0xff] }
 0xccc   : > { %10986 = vmatpush1.bf16.msra.mxu1 %v12921_v0  ;;  %v4439_v0 = vld [vmem:[%s19551_s17 + $0xc70] sm:$0xff] }
 0xccd   : > { %11314 = vmatpush1.bf16.msra.mxu0 %v12923_v1  ;;  %10987 = vmatprep.subr.bf16.mxu1 %v12930_v9  ;;  %v12969_v1 = vcombine.low %v4427_v7, %v4431_v46  ;;  %v4436_v9 = vld [vmem:[%s19551_s17 + $0xc58] sm:$0xff]  ;;  %v12978_v11 = vcombine.high %v4435_v62, %v4439_v0  ;;  %v4475_v46 = vld [vmem:[%s19551_s17 + $0xd90] sm:$0xff] }
 0xcce   : > { %11315 = vmatprep.subr.bf16.mxu0 %v12932_v2  ;;  %v4440_v2 = vld [vmem:[%s19551_s17 + $0xc78] sm:$0xff] }
 0xccf   : > { %v12979_v10 = vcombine.low %v4436_v9, %v4440_v2 }
 0xcd0   : > { %10988 = vmatpush1.bf16.msra.mxu1 %v12929_v15  ;;  %v12980_v15 = vcombine.high %v4436_v9, %v4440_v2  ;;  %v4487_v9 = vld [vmem:[%s19551_s17 + $0xdf0] sm:$0xff] }
 0xcd1   : > { %11316 = vmatpush1.bf16.msra.mxu0 %v12931_v16  ;;  %10989 = vmatprep.subr.bf16.mxu1 %v12938_v58  ;;  %v4444_v16 = vld [vmem:[%s19551_s17 + $0xc98] sm:$0xff] }
 0xcd2   : > { %11317 = vmatprep.subr.bf16.mxu0 %v12940_v55  ;;  %v4448_v58 = vld [vmem:[%s19551_s17 + $0xcb8] sm:$0xff]  ;;  %v12977_v55 = vcombine.low %v4435_v62, %v4439_v0 }
 0xcd3   : > { %v12988_v60 = vcombine.high %v4444_v16, %v4448_v58 }
 0xcd4   : > { %10990 = vmatpush1.bf16.msra.mxu1 %v12937_v26  ;;  %v4455_v26 = vld [vmem:[%s19551_s17 + $0xcf0] sm:$0xff] }
 0xcd5   : > { %11318 = vmatpush1.bf16.msra.mxu0 %v12939_v49  ;;  %10991 = vmatprep.subr.bf16.mxu1 %v12946_v31  ;;  %v4456_v49 = vld [vmem:[%s19551_s17 + $0xcf8] sm:$0xff]  ;;  %v12987_v31 = vcombine.low %v4444_v16, %v4448_v58  ;;  %v13017_v16 = vcombine.low %v4475_v46, %v4479_v56 }
 0xcd6   : > { %11319 = vmatprep.subr.bf16.mxu0 %v12948_v40  ;;  %v12994_v40 = vcombine.high %v4451_v4, %v4455_v26 }
 0xcd8   : > { %10992 = vmatpush1.bf16.msra.mxu1 %v12945_v48  ;;  %v4464_v48 = vld [vmem:[%s19551_s17 + $0xd38] sm:$0xff] }
 0xcd9   : > { %11320 = vmatpush1.bf16.msra.mxu0 %v12947_v6  ;;  %10993 = vmatprep.subr.bf16.mxu1 %v12954_v53  ;;  %v12993_v6 = vcombine.low %v4451_v4, %v4455_v26  ;;  %v13004_v35 = vcombine.high %v4460_v33, %v4464_v48  ;;  %v4491_v26 = vld [vmem:[%s19551_s17 + $0xe10] sm:$0xff] }
 0xcda   : > { %11321 = vmatprep.subr.bf16.mxu0 %v12956_v30  ;;  %v13002_v30 = vcombine.high %v4459_v28, %v4463_v29 }
 0xcdc   : > { %10994 = vmatpush1.bf16.msra.mxu1 %v12953_v38  ;;  %v4472_v38 = vld [vmem:[%s19551_s17 + $0xd78] sm:$0xff] }
 0xcdd   : > { %11322 = vmatpush1.bf16.msra.mxu0 %v12955_v34  ;;  %10995 = vmatprep.subr.bf16.mxu1 %v12962_v39  ;;  %v13001_v34 = vcombine.low %v4459_v28, %v4463_v29  ;;  %v13003_v39 = vcombine.low %v4460_v33, %v4464_v48  ;;  %v13012_v7 = vcombine.high %v4468_v45, %v4472_v38  ;;  %v4499_v29 = vld [vmem:[%s19551_s17 + $0xe50] sm:$0xff]  ;;  %v4500_v48 = vld [vmem:[%s19551_s17 + $0xe58] sm:$0xff] }
 0xcde   : > { %11323 = vmatprep.subr.bf16.mxu0 %v12964_v18  ;;  %v13010_v18 = vcombine.high %v4467_v37, %v4471_v41  ;;  %v4503_v33 = vld [vmem:[%s19551_s17 + $0xe70] sm:$0xff] }
 0xce0   : > { %10996 = vmatpush1.bf16.msra.mxu1 %v12961_v50  ;;  %v4480_v50 = vld [vmem:[%s19551_s17 + $0xdb8] sm:$0xff] }
 0xce1   : > { %11324 = vmatpush1.bf16.msra.mxu0 %v12963_v54  ;;  %11006 = vmatprep.subr.bf16.mxu1 %v12970_v57  ;;  %v13009_v54 = vcombine.low %v4467_v37, %v4471_v41  ;;  %v13011_v57 = vcombine.low %v4468_v45, %v4472_v38  ;;  %v13020_v0 = vcombine.high %v4476_v51, %v4480_v50  ;;  %v4507_v41 = vld [vmem:[%s19551_s17 + $0xe90] sm:$0xff]  ;;  %v4508_v38 = vld [vmem:[%s19551_s17 + $0xe98] sm:$0xff] }
 0xce2   : > { %11334 = vmatprep.subr.bf16.mxu0 %v12972_v20  ;;  %v13018_v20 = vcombine.high %v4475_v46, %v4479_v56  ;;  %v4511_v45 = vld [vmem:[%s19551_s17 + $0xeb0] sm:$0xff] }
 0xce3   : > { %10998 = vmatmul.mubr.bf16.vlgmr.msra.gmra.mrb[32].mxu1 %v16727_v17  ;;  %v4515_v56 = vld [vmem:[%s19551_s17 + $0xed0] sm:$0xff] }
 0xce4   : > { %11326 = vmatmul.mubr.bf16.vlgmr.msra.gmra.mrb[40].mxu0 %v16727_v17  ;;  %11007 = vmatpush1.bf16.msra.mxu1 %v12969_v1  ;;  %v4452_v17 = vld [vmem:[%s19551_s17 + $0xcd8] sm:$0xff]  ;;  %v4483_v1 = vld [vmem:[%s19551_s17 + $0xdd0] sm:$0xff] }
 0xce5   : > { %11038 = vmatprep.mubr.bf16.mxu1 %v16736_v25  ;;  %11335 = vmatpush1.bf16.msra.mxu0 %v12971_v3  ;;  %v12996_v32 = vcombine.high %v4452_v17, %v4456_v49  ;;  %v12995_v53 = vcombine.low %v4452_v17, %v4456_v49  ;;  %v4495_v17 = vld [vmem:[%s19551_s17 + $0xe30] sm:$0xff]  ;;  %v4492_v49 = vld [vmem:[%s19551_s17 + $0xe18] sm:$0xff] }
 0xce6   : > { %11366 = vmatprep.mubr.bf16.mxu0 %v16736_v25  ;;  %11008 = vmatprep.subr.bf16.mxu1 %v12978_v11  ;;  %v12985_v25 = vcombine.low %v4443_v22, %v4447_v14  ;;  %v4484_v11 = vld [vmem:[%s19551_s17 + $0xdd8] sm:$0xff] }
 0xce7   : > { %11336 = vmatprep.subr.bf16.mxu0 %v12980_v15  ;;  %v4488_v22 = vld [vmem:[%s19551_s17 + $0xdf8] sm:$0xff] }
 0xce8   : > { %11009 = vmatpush1.bf16.msra.mxu1 %v12977_v55  ;;  %v13028_v4 = vcombine.high %v4484_v11, %v4488_v22 }
 0xce9   : > { %11337 = vmatpush1.bf16.msra.mxu0 %v12979_v10  ;;  %11010 = vmatprep.subr.bf16.mxu1 %v12986_v23  ;;  %v13019_v10 = vcombine.low %v4476_v51, %v4480_v50  ;;  %v13026_v23 = vcombine.high %v4483_v1, %v4487_v9  ;;  %v4519_v51 = vld [vmem:[%s19551_s17 + $0xef0] sm:$0xff]  ;;  %v4516_v50 = vld [vmem:[%s19551_s17 + $0xed8] sm:$0xff] }
 0xcea   : > { %11338 = vmatprep.subr.bf16.mxu0 %v12988_v60 }
 0xcec   : > { %11011 = vmatpush1.bf16.msra.mxu1 %v12985_v25  ;;  %v4496_v25 = vld [vmem:[%s19551_s17 + $0xe38] sm:$0xff] }
 0xced   : > { %11339 = vmatpush1.bf16.msra.mxu0 %v12987_v31  ;;  %11012 = vmatprep.subr.bf16.mxu1 %v12994_v40  ;;  %v13025_v31 = vcombine.low %v4483_v1, %v4487_v9  ;;  %v13027_v40 = vcombine.low %v4484_v11, %v4488_v22  ;;  %v13036_v28 = vcombine.high %v4492_v49, %v4496_v25  ;;  %v4523_v9 = vld [vmem:[%s19551_s17 + $0xf10] sm:$0xff]  ;;  %v4524_v22 = vld [vmem:[%s19551_s17 + $0xf18] sm:$0xff] }
 0xcee   : > { %11340 = vmatprep.subr.bf16.mxu0 %v12996_v32  ;;  %v13034_v32 = vcombine.high %v4491_v26, %v4495_v17  ;;  %v4527_v11 = vld [vmem:[%s19551_s17 + $0xf30] sm:$0xff] }
 0xcf0   : > { %11013 = vmatpush1.bf16.msra.mxu1 %v12993_v6  ;;  %v4504_v6 = vld [vmem:[%s19551_s17 + $0xe78] sm:$0xff] }
 0xcf1   : > { %11341 = vmatpush1.bf16.msra.mxu0 %v12995_v53  ;;  %11014 = vmatprep.subr.bf16.mxu1 %v13002_v30  ;;  %v13033_v53 = vcombine.low %v4491_v26, %v4495_v17  ;;  %v13035_v30 = vcombine.low %v4492_v49, %v4496_v25  ;;  %v13044_v37 = vcombine.high %v4500_v48, %v4504_v6  ;;  %v4536_v26 = vld [vmem:[%s19551_s17 + $0xf78] sm:$0xff] }
 0xcf2   : > { %11342 = vmatprep.subr.bf16.mxu0 %v13004_v35  ;;  %v13042_v35 = vcombine.high %v4499_v29, %v4503_v33  ;;  %v13065_v17 = vcombine.low %v4523_v9, %v4527_v11 }
 0xcf4   : > { %11015 = vmatpush1.bf16.msra.mxu1 %v13001_v34  ;;  %v4512_v34 = vld [vmem:[%s19551_s17 + $0xeb8] sm:$0xff] }
 0xcf5   : > { %11343 = vmatpush1.bf16.msra.mxu0 %v13003_v39  ;;  %11016 = vmatprep.subr.bf16.mxu1 %v13010_v18  ;;  %v13041_v39 = vcombine.low %v4499_v29, %v4503_v33  ;;  %v13043_v18 = vcombine.low %v4500_v48, %v4504_v6  ;;  %v13052_v46 = vcombine.high %v4508_v38, %v4512_v34  ;;  %v4544_v29 = vld [vmem:[%s19551_s17 + $0xfb8] sm:$0xff] }
 0xcf6   : > { %v18405_v62 = vpop.f32.mrb[28].mxu1  ;;  %11344 = vmatprep.subr.bf16.mxu0 %v13012_v7  ;;  %v13050_v7 = vcombine.high %v4507_v41, %v4511_v45 }
 0xcf7   : > { %v18413_v2 = vpop.f32.mrb[36].mxu0  ;;  %v18415_v3 = vpop.f32.mrb[29].mxu1 }
 0xcf8   : > { %v18423_v14 = vpop.f32.mrb[37].mxu0  ;;  %v10552_v15 = vpop.f32.mrb[30].mxu1  ;;  %11017 = vmatpush1.bf16.msra.mxu1 %v13009_v54  ;;  %v4520_v54 = vld [vmem:[%s19551_s17 + $0xef8] sm:$0xff] }
 0xcf9   : > { %v10880_v58 = vpop.f32.mrb[38].mxu0  ;;  %11345 = vmatpush1.bf16.msra.mxu0 %v13011_v57  ;;  %v10553_v55 = vpop.f32.mrb[31].mxu1  ;;  %11018 = vmatprep.subr.bf16.mxu1 %v13018_v20  ;;  %v13049_v57 = vcombine.low %v4507_v41, %v4511_v45  ;;  %v13051_v20 = vcombine.low %v4508_v38, %v4512_v34  ;;  %v13060_v1 = vcombine.high %v4516_v50, %v4520_v54  ;;  %v4528_v15 = vld [vmem:[%s19551_s17 + $0xf38] sm:$0xff] }
 0xcfa   : > { %v10881_v60 = vpop.f32.mrb[39].mxu0  ;;  %11346 = vmatprep.subr.bf16.mxu0 %v13020_v0  ;;  %v13058_v0 = vcombine.high %v4515_v56, %v4519_v51  ;;  %v13059_v58 = vcombine.low %v4516_v50, %v4520_v54  ;;  %v13066_v55 = vcombine.high %v4523_v9, %v4527_v11  ;;  %v13067_v49 = vcombine.low %v4524_v22, %v4528_v15  ;;  %v4552_v41 = vld [vmem:[%s19551_s17 + $0xff8] sm:$0xff] }
 0xcfb   : > { %v4535_v60 = vld [vmem:[%s19551_s17 + $0xf70] sm:$0xff]  ;;  %v4564_v9 = vld [vmem:[%s19551_s17 + $0x1058] sm:$0xff] }
 0xcfc   : > { %11019 = vmatpush1.bf16.msra.mxu1 %v13017_v16  ;;  %v13057_v16 = vcombine.low %v4515_v56, %v4519_v51  ;;  %v4560_v56 = vld [vmem:[%s19551_s17 + $0x1038] sm:$0xff] }
 0xcfd   : > { %11347 = vmatpush1.bf16.msra.mxu0 %v13019_v10  ;;  %11020 = vmatprep.subr.bf16.mxu1 %v13026_v23  ;;  %v13068_v10 = vcombine.high %v4524_v22, %v4528_v15  ;;  %v4531_v23 = vld [vmem:[%s19551_s17 + $0xf50] sm:$0xff]  ;;  %v4568_v11 = vld [vmem:[%s19551_s17 + $0x1078] sm:$0xff] }
 0xcfe   : > { %11348 = vmatprep.subr.bf16.mxu0 %v13028_v4  ;;  %v4532_v4 = vld [vmem:[%s19551_s17 + $0xf58] sm:$0xff]  ;;  %v13074_v25 = vcombine.high %v4531_v23, %v4535_v60  ;;  %v13073_v33 = vcombine.low %v4531_v23, %v4535_v60 }
 0xcff   : > { %v13075_v48 = vcombine.low %v4532_v4, %v4536_v26  ;;  %v4576_v23 = vld [vmem:[%s19551_s17 + $0x10b8] sm:$0xff] }
 0xd00   : > { %11021 = vmatpush1.bf16.msra.mxu1 %v13025_v31  ;;  %v13076_v31 = vcombine.high %v4532_v4, %v4536_v26  ;;  %v13107_v4 = vcombine.low %v4564_v9, %v4568_v11 }
 0xd01   : > { %11349 = vmatpush1.bf16.msra.mxu0 %v13027_v40  ;;  %11022 = vmatprep.subr.bf16.mxu1 %v13034_v32  ;;  %v4539_v40 = vld [vmem:[%s19551_s17 + $0xf90] sm:$0xff] }
 0xd02   : > { %11350 = vmatprep.subr.bf16.mxu0 %v13036_v28  ;;  %v4543_v32 = vld [vmem:[%s19551_s17 + $0xfb0] sm:$0xff]  ;;  %v4540_v28 = vld [vmem:[%s19551_s17 + $0xf98] sm:$0xff] }
 0xd03   : > { %v13082_v6 = vcombine.high %v4539_v40, %v4543_v32  ;;  %v13081_v45 = vcombine.low %v4539_v40, %v4543_v32  ;;  %v13083_v38 = vcombine.low %v4540_v28, %v4544_v29 }
 0xd04   : > { %11023 = vmatpush1.bf16.msra.mxu1 %v13033_v53  ;;  %v13084_v53 = vcombine.high %v4540_v28, %v4544_v29  ;;  %v4587_v29 = vld [vmem:[%s19551_s17 + $0x1110] sm:$0xff] }
 0xd05   : > { %11351 = vmatpush1.bf16.msra.mxu0 %v13035_v30  ;;  %11024 = vmatprep.subr.bf16.mxu1 %v13042_v35  ;;  %v4547_v30 = vld [vmem:[%s19551_s17 + $0xfd0] sm:$0xff] }
 0xd06   : > { %11352 = vmatprep.subr.bf16.mxu0 %v13044_v37  ;;  %v4551_v35 = vld [vmem:[%s19551_s17 + $0xff0] sm:$0xff]  ;;  %v4548_v37 = vld [vmem:[%s19551_s17 + $0xfd8] sm:$0xff] }
 0xd07   : > { %v13090_v34 = vcombine.high %v4547_v30, %v4551_v35  ;;  %v13089_v51 = vcombine.low %v4547_v30, %v4551_v35  ;;  %v13091_v50 = vcombine.low %v4548_v37, %v4552_v41 }
 0xd08   : > { %11025 = vmatpush1.bf16.msra.mxu1 %v13041_v39  ;;  %v13092_v39 = vcombine.high %v4548_v37, %v4552_v41  ;;  %v4595_v41 = vld [vmem:[%s19551_s17 + $0x1150] sm:$0xff] }
 0xd09   : > { %11353 = vmatpush1.bf16.msra.mxu0 %v13043_v18  ;;  %11026 = vmatprep.subr.bf16.mxu1 %v13050_v7  ;;  %v4555_v18 = vld [vmem:[%s19551_s17 + $0x1010] sm:$0xff] }
 0xd0a   : > { %11354 = vmatprep.subr.bf16.mxu0 %v13052_v46  ;;  %v4559_v7 = vld [vmem:[%s19551_s17 + $0x1030] sm:$0xff]  ;;  %v4556_v46 = vld [vmem:[%s19551_s17 + $0x1018] sm:$0xff] }
 0xd0b   : > { %v13098_v54 = vcombine.high %v4555_v18, %v4559_v7  ;;  %v13099_v22 = vcombine.low %v4556_v46, %v4560_v56 }
 0xd0c   : > { %11027 = vmatpush1.bf16.msra.mxu1 %v13049_v57  ;;  %v13100_v57 = vcombine.high %v4556_v46, %v4560_v56  ;;  %v4603_v56 = vld [vmem:[%s19551_s17 + $0x1190] sm:$0xff] }
 0xd0d   : > { %11355 = vmatpush1.bf16.msra.mxu0 %v13051_v20  ;;  %11028 = vmatprep.subr.bf16.mxu1 %v13058_v0  ;;  %v4563_v20 = vld [vmem:[%s19551_s17 + $0x1050] sm:$0xff] }
 0xd0e   : > { %11356 = vmatprep.subr.bf16.mxu0 %v13060_v1  ;;  %v4567_v0 = vld [vmem:[%s19551_s17 + $0x1070] sm:$0xff]  ;;  %v13097_v1 = vcombine.low %v4555_v18, %v4559_v7 }
 0xd0f   : > { %v13106_v15 = vcombine.high %v4563_v20, %v4567_v0  ;;  %v13105_v60 = vcombine.low %v4563_v20, %v4567_v0 }
 0xd10   : > { %11029 = vmatpush1.bf16.msra.mxu1 %v13057_v16  ;;  %v4571_v16 = vld [vmem:[%s19551_s17 + $0x1090] sm:$0xff] }
 0xd11   : > { %11357 = vmatpush1.bf16.msra.mxu0 %v13059_v58  ;;  %11030 = vmatprep.subr.bf16.mxu1 %v13066_v55  ;;  %v4575_v58 = vld [vmem:[%s19551_s17 + $0x10b0] sm:$0xff]  ;;  %v13108_v55 = vcombine.high %v4564_v9, %v4568_v11 }
 0xd12   : > { %11358 = vmatprep.subr.bf16.mxu0 %v13068_v10  ;;  %v4572_v10 = vld [vmem:[%s19551_s17 + $0x1098] sm:$0xff]  ;;  %v13114_v26 = vcombine.high %v4571_v16, %v4575_v58  ;;  %v4611_v9 = vld [vmem:[%s19551_s17 + $0x11d0] sm:$0xff] }
 0xd13   : > { %v13115_v40 = vcombine.low %v4572_v10, %v4576_v23  ;;  %v4615_v11 = vld [vmem:[%s19551_s17 + $0x11f0] sm:$0xff] }
 0xd14   : > { %11031 = vmatpush1.bf16.msra.mxu1 %v13065_v17  ;;  %v13116_v17 = vcombine.high %v4572_v10, %v4576_v23  ;;  %v4619_v23 = vld [vmem:[%s19551_s17 + $0x1210] sm:$0xff] }
 0xd15   : > { %11359 = vmatpush1.bf16.msra.mxu0 %v13067_v49  ;;  %11032 = vmatprep.subr.bf16.mxu1 %v13074_v25  ;;  %v4579_v49 = vld [vmem:[%s19551_s17 + $0x10d0] sm:$0xff] }
 0xd16   : > { %11360 = vmatprep.subr.bf16.mxu0 %v13076_v31  ;;  %v4583_v25 = vld [vmem:[%s19551_s17 + $0x10f0] sm:$0xff]  ;;  %v4584_v31 = vld [vmem:[%s19551_s17 + $0x10f8] sm:$0xff] }
 0xd17   : > { %v13122_v32 = vcombine.high %v4579_v49, %v4583_v25 }
 0xd18   : > { %11033 = vmatpush1.bf16.msra.mxu1 %v13073_v33  ;;  %v4591_v33 = vld [vmem:[%s19551_s17 + $0x1130] sm:$0xff] }
 0xd19   : > { %11361 = vmatpush1.bf16.msra.mxu0 %v13075_v48  ;;  %11034 = vmatprep.subr.bf16.mxu1 %v13082_v6  ;;  %v4588_v48 = vld [vmem:[%s19551_s17 + $0x1118] sm:$0xff]  ;;  %v13130_v35 = vcombine.high %v4587_v29, %v4591_v33 }
 0xd1a   : > { %11362 = vmatprep.subr.bf16.mxu0 %v13084_v53  ;;  %v4592_v6 = vld [vmem:[%s19551_s17 + $0x1138] sm:$0xff]  ;;  %v13121_v53 = vcombine.low %v4579_v49, %v4583_v25 }
 0xd1b   : > { %v13132_v37 = vcombine.high %v4588_v48, %v4592_v6  ;;  %v13131_v18 = vcombine.low %v4588_v48, %v4592_v6  ;;  %v4635_v6 = vld [vmem:[%s19551_s17 + $0x1290] sm:$0xff] }
 0xd1c   : > { %11035 = vmatpush1.bf16.msra.mxu1 %v13081_v45  ;;  %v4599_v45 = vld [vmem:[%s19551_s17 + $0x1170] sm:$0xff] }
 0xd1d   : > { %11363 = vmatpush1.bf16.msra.mxu0 %v13083_v38  ;;  %11036 = vmatprep.subr.bf16.mxu1 %v13090_v34  ;;  %v4596_v38 = vld [vmem:[%s19551_s17 + $0x1158] sm:$0xff]  ;;  %v13138_v7 = vcombine.high %v4595_v41, %v4599_v45 }
 0xd1e   : > { %11364 = vmatprep.subr.bf16.mxu0 %v13092_v39  ;;  %v4600_v34 = vld [vmem:[%s19551_s17 + $0x1178] sm:$0xff]  ;;  %v13129_v39 = vcombine.low %v4587_v29, %v4591_v33 }
 0xd1f   : > { %v13140_v46 = vcombine.high %v4596_v38, %v4600_v34  ;;  %v13139_v20 = vcombine.low %v4596_v38, %v4600_v34  ;;  %v4643_v34 = vld [vmem:[%s19551_s17 + $0x12d0] sm:$0xff] }
 0xd20   : > { %11037 = vmatpush1.bf16.msra.mxu1 %v13089_v51  ;;  %v4607_v51 = vld [vmem:[%s19551_s17 + $0x11b0] sm:$0xff] }
 0xd21   : > { %11365 = vmatpush1.bf16.msra.mxu0 %v13091_v50  ;;  %11047 = vmatprep.subr.bf16.mxu1 %v13098_v54  ;;  %v4604_v50 = vld [vmem:[%s19551_s17 + $0x1198] sm:$0xff]  ;;  %v13146_v0 = vcombine.high %v4603_v56, %v4607_v51 }
 0xd22   : > { %11375 = vmatprep.subr.bf16.mxu0 %v13100_v57  ;;  %v4608_v54 = vld [vmem:[%s19551_s17 + $0x11b8] sm:$0xff]  ;;  %v13137_v57 = vcombine.low %v4595_v41, %v4599_v45 }
 0xd23   : > { %11039 = vmatmul.mubr.bf16.vlgmr.msra.gmra.mrb[32].mxu1 %v16935_v8 }
 0xd24   : > { %11367 = vmatmul.mubr.bf16.vlgmr.msra.gmra.mrb[40].mxu0 %v16935_v8  ;;  %11048 = vmatpush1.bf16.msra.mxu1 %v13097_v1  ;;  %v4580_v8 = vld [vmem:[%s19551_s17 + $0x10d8] sm:$0xff]  ;;  %v13148_v1 = vcombine.high %v4604_v50, %v4608_v54 }
 0xd25   : > { %11079 = vmatprep.mubr.bf16.mxu1 %v16944_v27  ;;  %11376 = vmatpush1.bf16.msra.mxu0 %v13099_v22  ;;  %v13124_v28 = vcombine.high %v4580_v8, %v4584_v31  ;;  %v13123_v30 = vcombine.low %v4580_v8, %v4584_v31  ;;  %v4612_v22 = vld [vmem:[%s19551_s17 + $0x11d8] sm:$0xff]  ;;  %v4627_v31 = vld [vmem:[%s19551_s17 + $0x1250] sm:$0xff] }
 0xd26   : > { %11407 = vmatprep.mubr.bf16.mxu0 %v16944_v27  ;;  %11049 = vmatprep.subr.bf16.mxu1 %v13106_v15  ;;  %v13113_v27 = vcombine.low %v4571_v16, %v4575_v58  ;;  %v4616_v15 = vld [vmem:[%s19551_s17 + $0x11f8] sm:$0xff]  ;;  %v13145_v16 = vcombine.low %v4603_v56, %v4607_v51  ;;  %v13147_v58 = vcombine.low %v4604_v50, %v4608_v54  ;;  %v4651_v54 = vld [vmem:[%s19551_s17 + $0x1310] sm:$0xff] }
 0xd27   : > { %11377 = vmatprep.subr.bf16.mxu0 %v13108_v55  ;;  %v13154_v55 = vcombine.high %v4611_v9, %v4615_v11  ;;  %v13156_v10 = vcombine.high %v4612_v22, %v4616_v15  ;;  %v13155_v49 = vcombine.low %v4612_v22, %v4616_v15  ;;  %v4659_v15 = vld [vmem:[%s19551_s17 + $0x1350] sm:$0xff] }
 0xd28   : > { %11050 = vmatpush1.bf16.msra.mxu1 %v13105_v60  ;;  %v4623_v60 = vld [vmem:[%s19551_s17 + $0x1230] sm:$0xff] }
 0xd29   : > { %11378 = vmatpush1.bf16.msra.mxu0 %v13107_v4  ;;  %11051 = vmatprep.subr.bf16.mxu1 %v13114_v26  ;;  %v4620_v4 = vld [vmem:[%s19551_s17 + $0x1218] sm:$0xff]  ;;  %v13162_v25 = vcombine.high %v4619_v23, %v4623_v60 }
 0xd2a   : > { %11379 = vmatprep.subr.bf16.mxu0 %v13116_v17  ;;  %v4624_v26 = vld [vmem:[%s19551_s17 + $0x1238] sm:$0xff]  ;;  %v13153_v17 = vcombine.low %v4611_v9, %v4615_v11 }
 0xd2b   : > { %v13164_v8 = vcombine.high %v4620_v4, %v4624_v26  ;;  %v13163_v29 = vcombine.low %v4620_v4, %v4624_v26  ;;  %v4667_v26 = vld [vmem:[%s19551_s17 + $0x1390] sm:$0xff] }
 0xd2c   : > { %11052 = vmatpush1.bf16.msra.mxu1 %v13113_v27  ;;  %v4631_v27 = vld [vmem:[%s19551_s17 + $0x1270] sm:$0xff] }
 0xd2d   : > { %11380 = vmatpush1.bf16.msra.mxu0 %v13115_v40  ;;  %11053 = vmatprep.subr.bf16.mxu1 %v13122_v32  ;;  %v4628_v40 = vld [vmem:[%s19551_s17 + $0x1258] sm:$0xff]  ;;  %v13170_v33 = vcombine.high %v4627_v31, %v4631_v27 }
 0xd2e   : > { %11381 = vmatprep.subr.bf16.mxu0 %v13124_v28  ;;  %v4632_v32 = vld [vmem:[%s19551_s17 + $0x1278] sm:$0xff]  ;;  %v13161_v28 = vcombine.low %v4619_v23, %v4623_v60 }
 0xd2f   : > { %v13172_v48 = vcombine.high %v4628_v40, %v4632_v32  ;;  %v13171_v41 = vcombine.low %v4628_v40, %v4632_v32  ;;  %v4675_v32 = vld [vmem:[%s19551_s17 + $0x13d0] sm:$0xff] }
 0xd30   : > { %11054 = vmatpush1.bf16.msra.mxu1 %v13121_v53  ;;  %v4639_v53 = vld [vmem:[%s19551_s17 + $0x12b0] sm:$0xff] }
 0xd31   : > { %11382 = vmatpush1.bf16.msra.mxu0 %v13123_v30  ;;  %11055 = vmatprep.subr.bf16.mxu1 %v13130_v35  ;;  %v4636_v30 = vld [vmem:[%s19551_s17 + $0x1298] sm:$0xff]  ;;  %v13178_v45 = vcombine.high %v4635_v6, %v4639_v53 }
 0xd32   : > { %11383 = vmatprep.subr.bf16.mxu0 %v13132_v37  ;;  %v4640_v35 = vld [vmem:[%s19551_s17 + $0x12b8] sm:$0xff]  ;;  %v13169_v37 = vcombine.low %v4627_v31, %v4631_v27 }
 0xd33   : > { %v13180_v38 = vcombine.high %v4636_v30, %v4640_v35  ;;  %v13179_v56 = vcombine.low %v4636_v30, %v4640_v35  ;;  %v4683_v35 = vld [vmem:[%s19551_s17 + $0x1410] sm:$0xff] }
 0xd34   : > { %11056 = vmatpush1.bf16.msra.mxu1 %v13129_v39  ;;  %v4647_v39 = vld [vmem:[%s19551_s17 + $0x12f0] sm:$0xff] }
 0xd35   : > { %11384 = vmatpush1.bf16.msra.mxu0 %v13131_v18  ;;  %11057 = vmatprep.subr.bf16.mxu1 %v13138_v7  ;;  %v4644_v18 = vld [vmem:[%s19551_s17 + $0x12d8] sm:$0xff]  ;;  %v13186_v51 = vcombine.high %v4643_v34, %v4647_v39 }
 0xd36   : > { %11385 = vmatprep.subr.bf16.mxu0 %v13140_v46  ;;  %v4648_v7 = vld [vmem:[%s19551_s17 + $0x12f8] sm:$0xff]  ;;  %v13177_v46 = vcombine.low %v4635_v6, %v4639_v53 }
 0xd37   : > { %v13188_v50 = vcombine.high %v4644_v18, %v4648_v7  ;;  %v13187_v9 = vcombine.low %v4644_v18, %v4648_v7  ;;  %v4691_v7 = vld [vmem:[%s19551_s17 + $0x1450] sm:$0xff] }
 0xd38   : > { %11058 = vmatpush1.bf16.msra.mxu1 %v13137_v57  ;;  %v4655_v57 = vld [vmem:[%s19551_s17 + $0x1330] sm:$0xff] }
 0xd39   : > { %11386 = vmatpush1.bf16.msra.mxu0 %v13139_v20  ;;  %11059 = vmatprep.subr.bf16.mxu1 %v13146_v0  ;;  %v4652_v20 = vld [vmem:[%s19551_s17 + $0x1318] sm:$0xff]  ;;  %v13194_v11 = vcombine.high %v4651_v54, %v4655_v57 }
 0xd3a   : > { %11387 = vmatprep.subr.bf16.mxu0 %v13148_v1  ;;  %v4656_v0 = vld [vmem:[%s19551_s17 + $0x1338] sm:$0xff]  ;;  %v13185_v1 = vcombine.low %v4643_v34, %v4647_v39 }
 0xd3b   : > { %v13196_v22 = vcombine.high %v4652_v20, %v4656_v0  ;;  %v13195_v23 = vcombine.low %v4652_v20, %v4656_v0  ;;  %v4699_v20 = vld [vmem:[%s19551_s17 + $0x1490] sm:$0xff] }
 0xd3c   : > { %11060 = vmatpush1.bf16.msra.mxu1 %v13145_v16  ;;  %v4663_v16 = vld [vmem:[%s19551_s17 + $0x1370] sm:$0xff] }
 0xd3d   : > { %11388 = vmatpush1.bf16.msra.mxu0 %v13147_v58  ;;  %11061 = vmatprep.subr.bf16.mxu1 %v13154_v55  ;;  %v4660_v58 = vld [vmem:[%s19551_s17 + $0x1358] sm:$0xff]  ;;  %v13202_v60 = vcombine.high %v4659_v15, %v4663_v16  ;;  %v4703_v0 = vld [vmem:[%s19551_s17 + $0x14b0] sm:$0xff] }
 0xd3e   : > { %11389 = vmatprep.subr.bf16.mxu0 %v13156_v10  ;;  %v4664_v55 = vld [vmem:[%s19551_s17 + $0x1378] sm:$0xff]  ;;  %v13193_v10 = vcombine.low %v4651_v54, %v4655_v57 }
 0xd3f   : > { %v13204_v4 = vcombine.high %v4660_v58, %v4664_v55  ;;  %v13203_v31 = vcombine.low %v4660_v58, %v4664_v55  ;;  %v4707_v55 = vld [vmem:[%s19551_s17 + $0x14d0] sm:$0xff] }
 0xd40   : > { %11062 = vmatpush1.bf16.msra.mxu1 %v13153_v17  ;;  %v4671_v17 = vld [vmem:[%s19551_s17 + $0x13b0] sm:$0xff] }
 0xd41   : > { %11390 = vmatpush1.bf16.msra.mxu0 %v13155_v49  ;;  %11063 = vmatprep.subr.bf16.mxu1 %v13162_v25  ;;  %v4668_v49 = vld [vmem:[%s19551_s17 + $0x1398] sm:$0xff]  ;;  %v13210_v27 = vcombine.high %v4667_v26, %v4671_v17 }
 0xd42   : > { %11391 = vmatprep.subr.bf16.mxu0 %v13164_v8  ;;  %v4672_v25 = vld [vmem:[%s19551_s17 + $0x13b8] sm:$0xff]  ;;  %v13201_v8 = vcombine.low %v4659_v15, %v4663_v16  ;;  %v13242_v16 = vcombine.high %v4699_v20, %v4703_v0 }
 0xd43   : > { %v13212_v40 = vcombine.high %v4668_v49, %v4672_v25  ;;  %v13211_v6 = vcombine.low %v4668_v49, %v4672_v25  ;;  %v4719_v49 = vld [vmem:[%s19551_s17 + $0x1530] sm:$0xff]  ;;  %v4716_v25 = vld [vmem:[%s19551_s17 + $0x1518] sm:$0xff] }
 0xd44   : > { %11064 = vmatpush1.bf16.msra.mxu1 %v13161_v28  ;;  %v4679_v28 = vld [vmem:[%s19551_s17 + $0x13f0] sm:$0xff] }
 0xd45   : > { %11392 = vmatpush1.bf16.msra.mxu0 %v13163_v29  ;;  %11065 = vmatprep.subr.bf16.mxu1 %v13170_v33  ;;  %v4676_v29 = vld [vmem:[%s19551_s17 + $0x13d8] sm:$0xff]  ;;  %v13218_v53 = vcombine.high %v4675_v32, %v4679_v28 }
 0xd46   : > { %11393 = vmatprep.subr.bf16.mxu0 %v13172_v48  ;;  %v4680_v33 = vld [vmem:[%s19551_s17 + $0x13f8] sm:$0xff]  ;;  %v13209_v48 = vcombine.low %v4667_v26, %v4671_v17  ;;  %v4715_v17 = vld [vmem:[%s19551_s17 + $0x1510] sm:$0xff] }
 0xd47   : > { %v13220_v30 = vcombine.high %v4676_v29, %v4680_v33  ;;  %v13219_v34 = vcombine.low %v4676_v29, %v4680_v33  ;;  %v4727_v29 = vld [vmem:[%s19551_s17 + $0x1570] sm:$0xff]  ;;  %v4724_v33 = vld [vmem:[%s19551_s17 + $0x1558] sm:$0xff] }
 0xd48   : > { %11066 = vmatpush1.bf16.msra.mxu1 %v13169_v37  ;;  %v4687_v37 = vld [vmem:[%s19551_s17 + $0x1430] sm:$0xff] }
 0xd49   : > { %11394 = vmatpush1.bf16.msra.mxu0 %v13171_v41  ;;  %11067 = vmatprep.subr.bf16.mxu1 %v13178_v45  ;;  %v4684_v41 = vld [vmem:[%s19551_s17 + $0x1418] sm:$0xff]  ;;  %v13226_v39 = vcombine.high %v4683_v35, %v4687_v37 }
 0xd4a   : > { %11395 = vmatprep.subr.bf16.mxu0 %v13180_v38  ;;  %v4688_v45 = vld [vmem:[%s19551_s17 + $0x1438] sm:$0xff]  ;;  %v13217_v38 = vcombine.low %v4675_v32, %v4679_v28  ;;  %v4723_v28 = vld [vmem:[%s19551_s17 + $0x1550] sm:$0xff] }
 0xd4b   : > { %v13228_v18 = vcombine.high %v4684_v41, %v4688_v45  ;;  %v13227_v54 = vcombine.low %v4684_v41, %v4688_v45  ;;  %v4735_v41 = vld [vmem:[%s19551_s17 + $0x15b0] sm:$0xff]  ;;  %v4732_v45 = vld [vmem:[%s19551_s17 + $0x1598] sm:$0xff] }
 0xd4c   : > { %11068 = vmatpush1.bf16.msra.mxu1 %v13177_v46  ;;  %v4695_v46 = vld [vmem:[%s19551_s17 + $0x1470] sm:$0xff] }
 0xd4d   : > { %11396 = vmatpush1.bf16.msra.mxu0 %v13179_v56  ;;  %11069 = vmatprep.subr.bf16.mxu1 %v13186_v51  ;;  %v13225_v56 = vcombine.low %v4683_v35, %v4687_v37  ;;  %v4692_v51 = vld [vmem:[%s19551_s17 + $0x1458] sm:$0xff]  ;;  %v13234_v57 = vcombine.high %v4691_v7, %v4695_v46  ;;  %v4731_v37 = vld [vmem:[%s19551_s17 + $0x1590] sm:$0xff] }
 0xd4e   : > { %11397 = vmatprep.subr.bf16.mxu0 %v13188_v50  ;;  %v4696_v50 = vld [vmem:[%s19551_s17 + $0x1478] sm:$0xff] }
 0xd4f   : > { %v13235_v15 = vcombine.low %v4692_v51, %v4696_v50 }
 0xd50   : > { %11070 = vmatpush1.bf16.msra.mxu1 %v13185_v1  ;;  %v13236_v1 = vcombine.high %v4692_v51, %v4696_v50  ;;  %v4740_v51 = vld [vmem:[%s19551_s17 + $0x15d8] sm:$0xff] }
 0xd51   : > { %11398 = vmatpush1.bf16.msra.mxu0 %v13187_v9  ;;  %11071 = vmatprep.subr.bf16.mxu1 %v13194_v11  ;;  %v4700_v9 = vld [vmem:[%s19551_s17 + $0x1498] sm:$0xff] }
 0xd52   : > { %11399 = vmatprep.subr.bf16.mxu0 %v13196_v22  ;;  %v4704_v11 = vld [vmem:[%s19551_s17 + $0x14b8] sm:$0xff]  ;;  %v13233_v22 = vcombine.low %v4691_v7, %v4695_v46  ;;  %v4739_v46 = vld [vmem:[%s19551_s17 + $0x15d0] sm:$0xff] }
 0xd53   : > { %v13244_v58 = vcombine.high %v4700_v9, %v4704_v11  ;;  %v4744_v50 = vld [vmem:[%s19551_s17 + $0x15f8] sm:$0xff] }
 0xd54   : > { %11072 = vmatpush1.bf16.msra.mxu1 %v13193_v10  ;;  %v4711_v10 = vld [vmem:[%s19551_s17 + $0x14f0] sm:$0xff] }
 0xd55   : > { %11400 = vmatpush1.bf16.msra.mxu0 %v13195_v23  ;;  %11073 = vmatprep.subr.bf16.mxu1 %v13202_v60  ;;  %v4712_v23 = vld [vmem:[%s19551_s17 + $0x14f8] sm:$0xff]  ;;  %v13243_v60 = vcombine.low %v4700_v9, %v4704_v11  ;;  %v4751_v9 = vld [vmem:[%s19551_s17 + $0x1630] sm:$0xff] }
 0xd56   : > { %11401 = vmatprep.subr.bf16.mxu0 %v13204_v4  ;;  %v13250_v4 = vcombine.high %v4707_v55, %v4711_v10  ;;  %v4748_v11 = vld [vmem:[%s19551_s17 + $0x1618] sm:$0xff] }
 0xd58   : > { %11074 = vmatpush1.bf16.msra.mxu1 %v13201_v8  ;;  %v4720_v8 = vld [vmem:[%s19551_s17 + $0x1538] sm:$0xff] }
 0xd59   : > { %11402 = vmatpush1.bf16.msra.mxu0 %v13203_v31  ;;  %11075 = vmatprep.subr.bf16.mxu1 %v13210_v27  ;;  %v13249_v31 = vcombine.low %v4707_v55, %v4711_v10  ;;  %v13260_v32 = vcombine.high %v4716_v25, %v4720_v8  ;;  %v4755_v10 = vld [vmem:[%s19551_s17 + $0x1650] sm:$0xff] }
 0xd5a   : > { %11403 = vmatprep.subr.bf16.mxu0 %v13212_v40  ;;  %v13258_v40 = vcombine.high %v4715_v17, %v4719_v49 }
 0xd5c   : > { %11076 = vmatpush1.bf16.msra.mxu1 %v13209_v48  ;;  %v4728_v48 = vld [vmem:[%s19551_s17 + $0x1578] sm:$0xff] }
 0xd5d   : > { %11404 = vmatpush1.bf16.msra.mxu0 %v13211_v6  ;;  %11077 = vmatprep.subr.bf16.mxu1 %v13218_v53  ;;  %v13257_v6 = vcombine.low %v4715_v17, %v4719_v49  ;;  %v13259_v53 = vcombine.low %v4716_v25, %v4720_v8  ;;  %v13268_v35 = vcombine.high %v4724_v33, %v4728_v48  ;;  %v4763_v49 = vld [vmem:[%s19551_s17 + $0x1690] sm:$0xff]  ;;  %v4764_v8 = vld [vmem:[%s19551_s17 + $0x1698] sm:$0xff] }
 0xd5e   : > { %11405 = vmatprep.subr.bf16.mxu0 %v13220_v30  ;;  %v13266_v30 = vcombine.high %v4723_v28, %v4727_v29  ;;  %v4767_v25 = vld [vmem:[%s19551_s17 + $0x16b0] sm:$0xff] }
 0xd60   : > { %11078 = vmatpush1.bf16.msra.mxu1 %v13217_v38  ;;  %v4736_v38 = vld [vmem:[%s19551_s17 + $0x15b8] sm:$0xff] }
 0xd61   : > { %11406 = vmatpush1.bf16.msra.mxu0 %v13219_v34  ;;  %11088 = vmatprep.subr.bf16.mxu1 %v13226_v39  ;;  %v13265_v34 = vcombine.low %v4723_v28, %v4727_v29  ;;  %v13267_v39 = vcombine.low %v4724_v33, %v4728_v48  ;;  %v13276_v7 = vcombine.high %v4732_v45, %v4736_v38  ;;  %v4771_v29 = vld [vmem:[%s19551_s17 + $0x16d0] sm:$0xff]  ;;  %v4772_v48 = vld [vmem:[%s19551_s17 + $0x16d8] sm:$0xff] }
 0xd62   : > { %11416 = vmatprep.subr.bf16.mxu0 %v13228_v18  ;;  %v13274_v18 = vcombine.high %v4731_v37, %v4735_v41  ;;  %v4775_v33 = vld [vmem:[%s19551_s17 + $0x16f0] sm:$0xff] }
 0xd63   : > { %11080 = vmatmul.mubr.bf16.vlgmr.msra.gmra.mrb[32].mxu1 %v17139_v59 }
 0xd64   : > { %11408 = vmatmul.mubr.bf16.vlgmr.msra.gmra.mrb[40].mxu0 %v17139_v59  ;;  %11089 = vmatpush1.bf16.msra.mxu1 %v13225_v56  ;;  %v4708_v59 = vld [vmem:[%s19551_s17 + $0x14d8] sm:$0xff]  ;;  %v4743_v56 = vld [vmem:[%s19551_s17 + $0x15f0] sm:$0xff] }
 0xd65   : > { %11120 = vmatprep.mubr.bf16.mxu1 %v17148_v21  ;;  %11417 = vmatpush1.bf16.msra.mxu0 %v13227_v54  ;;  %v13252_v26 = vcombine.high %v4708_v59, %v4712_v23  ;;  %v13251_v27 = vcombine.low %v4708_v59, %v4712_v23  ;;  %v13273_v54 = vcombine.low %v4731_v37, %v4735_v41  ;;  %v4759_v59 = vld [vmem:[%s19551_s17 + $0x1670] sm:$0xff]  ;;  %v4756_v23 = vld [vmem:[%s19551_s17 + $0x1658] sm:$0xff] }
 0xd66   : > { %11448 = vmatprep.mubr.bf16.mxu0 %v17148_v21  ;;  %11090 = vmatprep.subr.bf16.mxu1 %v13234_v57  ;;  %v13241_v21 = vcombine.low %v4699_v20, %v4703_v0  ;;  %v13275_v57 = vcombine.low %v4732_v45, %v4736_v38  ;;  %v13282_v20 = vcombine.high %v4739_v46, %v4743_v56  ;;  %v4779_v41 = vld [vmem:[%s19551_s17 + $0x1710] sm:$0xff]  ;;  %v4780_v38 = vld [vmem:[%s19551_s17 + $0x1718] sm:$0xff] }
 0xd67   : > { %11418 = vmatprep.subr.bf16.mxu0 %v13236_v1  ;;  %v13284_v0 = vcombine.high %v4740_v51, %v4744_v50  ;;  %v4747_v1 = vld [vmem:[%s19551_s17 + $0x1610] sm:$0xff] }
 0xd68   : > { %11091 = vmatpush1.bf16.msra.mxu1 %v13233_v22  ;;  %v4752_v22 = vld [vmem:[%s19551_s17 + $0x1638] sm:$0xff]  ;;  %v4783_v45 = vld [vmem:[%s19551_s17 + $0x1730] sm:$0xff] }
 0xd69   : > { %11419 = vmatpush1.bf16.msra.mxu0 %v13235_v15  ;;  %11092 = vmatprep.subr.bf16.mxu1 %v13242_v16  ;;  %v13281_v15 = vcombine.low %v4739_v46, %v4743_v56  ;;  %v13283_v16 = vcombine.low %v4740_v51, %v4744_v50  ;;  %v13292_v55 = vcombine.high %v4748_v11, %v4752_v22  ;;  %v4787_v56 = vld [vmem:[%s19551_s17 + $0x1750] sm:$0xff]  ;;  %v4788_v50 = vld [vmem:[%s19551_s17 + $0x1758] sm:$0xff] }
 0xd6a   : > { %11420 = vmatprep.subr.bf16.mxu0 %v13244_v58  ;;  %v13290_v58 = vcombine.high %v4747_v1, %v4751_v9  ;;  %v4791_v51 = vld [vmem:[%s19551_s17 + $0x1770] sm:$0xff] }
 0xd6c   : > { %11093 = vmatpush1.bf16.msra.mxu1 %v13241_v21  ;;  %v4760_v21 = vld [vmem:[%s19551_s17 + $0x1678] sm:$0xff] }
 0xd6d   : > { %11421 = vmatpush1.bf16.msra.mxu0 %v13243_v60  ;;  %11094 = vmatprep.subr.bf16.mxu1 %v13250_v4  ;;  %v13289_v60 = vcombine.low %v4747_v1, %v4751_v9  ;;  %v13291_v4 = vcombine.low %v4748_v11, %v4752_v22  ;;  %v13300_v17 = vcombine.high %v4756_v23, %v4760_v21  ;;  %v4795_v9 = vld [vmem:[%s19551_s17 + $0x1790] sm:$0xff]  ;;  %v4796_v22 = vld [vmem:[%s19551_s17 + $0x1798] sm:$0xff] }
 0xd6e   : > { %11422 = vmatprep.subr.bf16.mxu0 %v13252_v26  ;;  %v13298_v26 = vcombine.high %v4755_v10, %v4759_v59  ;;  %v4799_v11 = vld [vmem:[%s19551_s17 + $0x17b0] sm:$0xff] }
 0xd70   : > { %11095 = vmatpush1.bf16.msra.mxu1 %v13249_v31  ;;  %v4768_v31 = vld [vmem:[%s19551_s17 + $0x16b8] sm:$0xff] }
 0xd71   : > { %11423 = vmatpush1.bf16.msra.mxu0 %v13251_v27  ;;  %11096 = vmatprep.subr.bf16.mxu1 %v13258_v40  ;;  %v13297_v27 = vcombine.low %v4755_v10, %v4759_v59  ;;  %v13299_v40 = vcombine.low %v4756_v23, %v4760_v21  ;;  %v13308_v28 = vcombine.high %v4764_v8, %v4768_v31  ;;  %v4803_v59 = vld [vmem:[%s19551_s17 + $0x17d0] sm:$0xff]  ;;  %v4804_v21 = vld [vmem:[%s19551_s17 + $0x17d8] sm:$0xff] }
 0xd72   : > { %11424 = vmatprep.subr.bf16.mxu0 %v13260_v32  ;;  %v13306_v32 = vcombine.high %v4763_v49, %v4767_v25  ;;  %v4807_v23 = vld [vmem:[%s19551_s17 + $0x17f0] sm:$0xff] }
 0xd74   : > { %11097 = vmatpush1.bf16.msra.mxu1 %v13257_v6  ;;  %v4776_v6 = vld [vmem:[%s19551_s17 + $0x16f8] sm:$0xff] }
 0xd75   : > { %11425 = vmatpush1.bf16.msra.mxu0 %v13259_v53  ;;  %11098 = vmatprep.subr.bf16.mxu1 %v13266_v30  ;;  %v13305_v53 = vcombine.low %v4763_v49, %v4767_v25  ;;  %v13307_v30 = vcombine.low %v4764_v8, %v4768_v31  ;;  %v13316_v37 = vcombine.high %v4772_v48, %v4776_v6  ;;  %v4811_v25 = vld [vmem:[%s19551_s17 + $0x1810] sm:$0xff]  ;;  %v4812_v31 = vld [vmem:[%s19551_s17 + $0x1818] sm:$0xff] }
 0xd76   : > { %11426 = vmatprep.subr.bf16.mxu0 %v13268_v35  ;;  %v13314_v35 = vcombine.high %v4771_v29, %v4775_v33  ;;  %v4815_v8 = vld [vmem:[%s19551_s17 + $0x1830] sm:$0xff] }
 0xd78   : > { %11099 = vmatpush1.bf16.msra.mxu1 %v13265_v34  ;;  %v4784_v34 = vld [vmem:[%s19551_s17 + $0x1738] sm:$0xff] }
 0xd79   : > { %11427 = vmatpush1.bf16.msra.mxu0 %v13267_v39  ;;  %11100 = vmatprep.subr.bf16.mxu1 %v13274_v18  ;;  %v13313_v39 = vcombine.low %v4771_v29, %v4775_v33  ;;  %v13315_v18 = vcombine.low %v4772_v48, %v4776_v6  ;;  %v13324_v46 = vcombine.high %v4780_v38, %v4784_v34  ;;  %v4819_v33 = vld [vmem:[%s19551_s17 + $0x1850] sm:$0xff] }
 0xd7a   : > { %11428 = vmatprep.subr.bf16.mxu0 %v13276_v7  ;;  %v13322_v7 = vcombine.high %v4779_v41, %v4783_v45  ;;  %v4823_v48 = vld [vmem:[%s19551_s17 + $0x1870] sm:$0xff]  ;;  %v13353_v6 = vcombine.low %v4811_v25, %v4815_v8 }
 0xd7c   : > { %11101 = vmatpush1.bf16.msra.mxu1 %v13273_v54  ;;  %v4792_v54 = vld [vmem:[%s19551_s17 + $0x1778] sm:$0xff] }
 0xd7d   : > { %11429 = vmatpush1.bf16.msra.mxu0 %v13275_v57  ;;  %11102 = vmatprep.subr.bf16.mxu1 %v13282_v20  ;;  %v13321_v57 = vcombine.low %v4779_v41, %v4783_v45  ;;  %v13323_v20 = vcombine.low %v4780_v38, %v4784_v34  ;;  %v13332_v1 = vcombine.high %v4788_v50, %v4792_v54  ;;  %v4827_v41 = vld [vmem:[%s19551_s17 + $0x1890] sm:$0xff]  ;;  %v4828_v34 = vld [vmem:[%s19551_s17 + $0x1898] sm:$0xff] }
 0xd7e   : > { %11430 = vmatprep.subr.bf16.mxu0 %v13284_v0  ;;  %v13330_v0 = vcombine.high %v4787_v56, %v4791_v51  ;;  %v4831_v45 = vld [vmem:[%s19551_s17 + $0x18b0] sm:$0xff] }
 0xd80   : > { %11103 = vmatpush1.bf16.msra.mxu1 %v13281_v15  ;;  %v4800_v15 = vld [vmem:[%s19551_s17 + $0x17b8] sm:$0xff] }
 0xd81   : > { %11431 = vmatpush1.bf16.msra.mxu0 %v13283_v16  ;;  %11104 = vmatprep.subr.bf16.mxu1 %v13290_v58  ;;  %v13329_v16 = vcombine.low %v4787_v56, %v4791_v51  ;;  %v13331_v58 = vcombine.low %v4788_v50, %v4792_v54  ;;  %v13340_v10 = vcombine.high %v4796_v22, %v4800_v15  ;;  %v4835_v51 = vld [vmem:[%s19551_s17 + $0x18d0] sm:$0xff]  ;;  %v4840_v54 = vld [vmem:[%s19551_s17 + $0x18f8] sm:$0xff] }
 0xd82   : > { %11432 = vmatprep.subr.bf16.mxu0 %v13292_v55  ;;  %v13338_v55 = vcombine.high %v4795_v9, %v4799_v11  ;;  %v4839_v50 = vld [vmem:[%s19551_s17 + $0x18f0] sm:$0xff] }
 0xd84   : > { %11105 = vmatpush1.bf16.msra.mxu1 %v13289_v60  ;;  %v4808_v60 = vld [vmem:[%s19551_s17 + $0x17f8] sm:$0xff] }
 0xd85   : > { %11433 = vmatpush1.bf16.msra.mxu0 %v13291_v4  ;;  %11106 = vmatprep.subr.bf16.mxu1 %v13298_v26  ;;  %v13337_v4 = vcombine.low %v4795_v9, %v4799_v11  ;;  %v13339_v26 = vcombine.low %v4796_v22, %v4800_v15  ;;  %v13348_v49 = vcombine.high %v4804_v21, %v4808_v60  ;;  %v4847_v9 = vld [vmem:[%s19551_s17 + $0x1930] sm:$0xff]  ;;  %v4844_v11 = vld [vmem:[%s19551_s17 + $0x1918] sm:$0xff] }
 0xd86   : > { %11434 = vmatprep.subr.bf16.mxu0 %v13300_v17  ;;  %v13346_v17 = vcombine.high %v4803_v59, %v4807_v23  ;;  %v4848_v22 = vld [vmem:[%s19551_s17 + $0x1938] sm:$0xff]  ;;  %v13377_v15 = vcombine.low %v4835_v51, %v4839_v50 }
 0xd88   : > { %11107 = vmatpush1.bf16.msra.mxu1 %v13297_v27  ;;  %v4816_v27 = vld [vmem:[%s19551_s17 + $0x1838] sm:$0xff] }
 0xd89   : > { %11435 = vmatpush1.bf16.msra.mxu0 %v13299_v40  ;;  %11108 = vmatprep.subr.bf16.mxu1 %v13306_v32  ;;  %v13345_v40 = vcombine.low %v4803_v59, %v4807_v23  ;;  %v13347_v32 = vcombine.low %v4804_v21, %v4808_v60  ;;  %v13356_v29 = vcombine.high %v4812_v31, %v4816_v27  ;;  %v4855_v59 = vld [vmem:[%s19551_s17 + $0x1970] sm:$0xff]  ;;  %v4852_v23 = vld [vmem:[%s19551_s17 + $0x1958] sm:$0xff] }
 0xd8a   : > { %11436 = vmatprep.subr.bf16.mxu0 %v13308_v28  ;;  %v13354_v28 = vcombine.high %v4811_v25, %v4815_v8  ;;  %v4856_v21 = vld [vmem:[%s19551_s17 + $0x1978] sm:$0xff]  ;;  %v4863_v25 = vld [vmem:[%s19551_s17 + $0x19b0] sm:$0xff] }
 0xd8b   : > { %v4860_v8 = vld [vmem:[%s19551_s17 + $0x1998] sm:$0xff] }
 0xd8c   : > { %11109 = vmatpush1.bf16.msra.mxu1 %v13305_v53  ;;  %v4820_v53 = vld [vmem:[%s19551_s17 + $0x1858] sm:$0xff] }
 0xd8d   : > { %11437 = vmatpush1.bf16.msra.mxu0 %v13307_v30  ;;  %11110 = vmatprep.subr.bf16.mxu1 %v13314_v35  ;;  %v4824_v30 = vld [vmem:[%s19551_s17 + $0x1878] sm:$0xff]  ;;  %v13355_v35 = vcombine.low %v4812_v31, %v4816_v27 }
 0xd8e   : > { %11438 = vmatprep.subr.bf16.mxu0 %v13316_v37  ;;  %v13362_v37 = vcombine.high %v4819_v33, %v4823_v48  ;;  %v13364_v38 = vcombine.high %v4820_v53, %v4824_v30  ;;  %v4864_v31 = vld [vmem:[%s19551_s17 + $0x19b8] sm:$0xff] }
 0xd90   : > { %11111 = vmatpush1.bf16.msra.mxu1 %v13313_v39  ;;  %v4832_v39 = vld [vmem:[%s19551_s17 + $0x18b8] sm:$0xff] }
 0xd91   : > { %11439 = vmatpush1.bf16.msra.mxu0 %v13315_v18  ;;  %11112 = vmatprep.subr.bf16.mxu1 %v13322_v7  ;;  %v13361_v18 = vcombine.low %v4819_v33, %v4823_v48  ;;  %v13363_v7 = vcombine.low %v4820_v53, %v4824_v30  ;;  %v13372_v56 = vcombine.high %v4828_v34, %v4832_v39  ;;  %v4871_v33 = vld [vmem:[%s19551_s17 + $0x19f0] sm:$0xff]  ;;  %v4868_v48 = vld [vmem:[%s19551_s17 + $0x19d8] sm:$0xff] }
 0xd92   : > { %11440 = vmatprep.subr.bf16.mxu0 %v13324_v46  ;;  %v13370_v46 = vcombine.high %v4827_v41, %v4831_v45  ;;  %v13403_v30 = vcombine.low %v4860_v8, %v4864_v31 }
 0xd94   : > { %11113 = vmatpush1.bf16.msra.mxu1 %v13321_v57  ;;  %v13371_v57 = vcombine.low %v4828_v34, %v4832_v39  ;;  %v4880_v34 = vld [vmem:[%s19551_s17 + $0x1a38] sm:$0xff] }
 0xd95   : > { %11441 = vmatpush1.bf16.msra.mxu0 %v13323_v20  ;;  %11114 = vmatprep.subr.bf16.mxu1 %v13330_v0  ;;  %v13378_v20 = vcombine.high %v4835_v51, %v4839_v50  ;;  %v4887_v51 = vld [vmem:[%s19551_s17 + $0x1a70] sm:$0xff]  ;;  %v4884_v50 = vld [vmem:[%s19551_s17 + $0x1a58] sm:$0xff] }
 0xd96   : > { %11442 = vmatprep.subr.bf16.mxu0 %v13332_v1  ;;  %v4843_v1 = vld [vmem:[%s19551_s17 + $0x1910] sm:$0xff] }
 0xd97   : > { %v13385_v60 = vcombine.low %v4843_v1, %v4847_v9 }
 0xd98   : > { %11115 = vmatpush1.bf16.msra.mxu1 %v13329_v16 }
 0xd99   : > { %11443 = vmatpush1.bf16.msra.mxu0 %v13331_v58  ;;  %11116 = vmatprep.subr.bf16.mxu1 %v13338_v55  ;;  %v13386_v58 = vcombine.high %v4843_v1, %v4847_v9  ;;  %v13388_v55 = vcombine.high %v4844_v11, %v4848_v22  ;;  %v4895_v1 = vld [vmem:[%s19551_s17 + $0x1ab0] sm:$0xff]  ;;  %v4892_v9 = vld [vmem:[%s19551_s17 + $0x1a98] sm:$0xff] }
 0xd9a   : > { %11444 = vmatprep.subr.bf16.mxu0 %v13340_v10  ;;  %v4851_v10 = vld [vmem:[%s19551_s17 + $0x1950] sm:$0xff] }
 0xd9b   : > { %v13393_v27 = vcombine.low %v4851_v10, %v4855_v59 }
 0xd9c   : > { %11117 = vmatpush1.bf16.msra.mxu1 %v13337_v4  ;;  %v13387_v4 = vcombine.low %v4844_v11, %v4848_v22  ;;  %v4896_v11 = vld [vmem:[%s19551_s17 + $0x1ab8] sm:$0xff] }
 0xd9d   : > { %11445 = vmatpush1.bf16.msra.mxu0 %v13339_v26  ;;  %11118 = vmatprep.subr.bf16.mxu1 %v13346_v17  ;;  %v13394_v26 = vcombine.high %v4851_v10, %v4855_v59  ;;  %v13396_v17 = vcombine.high %v4852_v23, %v4856_v21  ;;  %v4903_v10 = vld [vmem:[%s19551_s17 + $0x1af0] sm:$0xff]  ;;  %v4900_v59 = vld [vmem:[%s19551_s17 + $0x1ad8] sm:$0xff] }
 0xd9e   : > { %11446 = vmatprep.subr.bf16.mxu0 %v13348_v49  ;;  %v4859_v49 = vld [vmem:[%s19551_s17 + $0x1990] sm:$0xff] }
 0xd9f   : > { %v13401_v53 = vcombine.low %v4859_v49, %v4863_v25 }
 0xda0   : > { %11119 = vmatpush1.bf16.msra.mxu1 %v13345_v40  ;;  %v13395_v40 = vcombine.low %v4852_v23, %v4856_v21  ;;  %v4904_v23 = vld [vmem:[%s19551_s17 + $0x1af8] sm:$0xff] }
 0xda1   : > { %11447 = vmatpush1.bf16.msra.mxu0 %v13347_v32  ;;  %11129 = vmatprep.subr.bf16.mxu1 %v13354_v28  ;;  %v13402_v32 = vcombine.high %v4859_v49, %v4863_v25  ;;  %v13404_v28 = vcombine.high %v4860_v8, %v4864_v31  ;;  %v4911_v49 = vld [vmem:[%s19551_s17 + $0x1b30] sm:$0xff]  ;;  %v4908_v25 = vld [vmem:[%s19551_s17 + $0x1b18] sm:$0xff] }
 0xda2   : > { %11457 = vmatprep.subr.bf16.mxu0 %v13356_v29  ;;  %v4867_v29 = vld [vmem:[%s19551_s17 + $0x19d0] sm:$0xff]  ;;  %v4912_v8 = vld [vmem:[%s19551_s17 + $0x1b38] sm:$0xff] }
 0xda3   : > { %11121 = vmatmul.mubr.bf16.vlgmr.msra.gmra.mrb[32].mxu1 %v17343_v47  ;;  %v13409_v39 = vcombine.low %v4867_v29, %v4871_v33 }
 0xda4   : > { %11449 = vmatmul.mubr.bf16.vlgmr.msra.gmra.mrb[40].mxu0 %v17343_v47  ;;  %11130 = vmatpush1.bf16.msra.mxu1 %v13353_v6  ;;  %v4836_v47 = vld [vmem:[%s19551_s17 + $0x18d8] sm:$0xff] }
 0xda5   : > { %11161 = vmatprep.mubr.bf16.mxu1 %v17352_v61  ;;  %11458 = vmatpush1.bf16.msra.mxu0 %v13355_v35  ;;  %v13380_v0 = vcombine.high %v4836_v47, %v4840_v54  ;;  %v13379_v16 = vcombine.low %v4836_v47, %v4840_v54  ;;  %v4872_v6 = vld [vmem:[%s19551_s17 + $0x19f8] sm:$0xff]  ;;  %v13410_v35 = vcombine.high %v4867_v29, %v4871_v33  ;;  %v4919_v29 = vld [vmem:[%s19551_s17 + $0x1b70] sm:$0xff] }
 0xda6   : > { %11489 = vmatprep.mubr.bf16.mxu0 %v17352_v61  ;;  %11131 = vmatprep.subr.bf16.mxu1 %v13362_v37  ;;  %v13369_v61 = vcombine.low %v4827_v41, %v4831_v45  ;;  %v13412_v37 = vcombine.high %v4868_v48, %v4872_v6  ;;  %v4875_v41 = vld [vmem:[%s19551_s17 + $0x1a10] sm:$0xff]  ;;  %v4888_v47 = vld [vmem:[%s19551_s17 + $0x1a78] sm:$0xff] }
 0xda7   : > { %11459 = vmatprep.subr.bf16.mxu0 %v13364_v38  ;;  %v4879_v45 = vld [vmem:[%s19551_s17 + $0x1a30] sm:$0xff]  ;;  %v4876_v38 = vld [vmem:[%s19551_s17 + $0x1a18] sm:$0xff] }
 0xda8   : > { %11132 = vmatpush1.bf16.msra.mxu1 %v13361_v18  ;;  %v13411_v18 = vcombine.low %v4868_v48, %v4872_v6  ;;  %v13417_v54 = vcombine.low %v4875_v41, %v4879_v45  ;;  %v4916_v33 = vld [vmem:[%s19551_s17 + $0x1b58] sm:$0xff] }
 0xda9   : > { %11460 = vmatpush1.bf16.msra.mxu0 %v13363_v7  ;;  %11133 = vmatprep.subr.bf16.mxu1 %v13370_v46  ;;  %v13418_v7 = vcombine.high %v4875_v41, %v4879_v45  ;;  %v13420_v46 = vcombine.high %v4876_v38, %v4880_v34  ;;  %v4920_v48 = vld [vmem:[%s19551_s17 + $0x1b78] sm:$0xff]  ;;  %v4927_v41 = vld [vmem:[%s19551_s17 + $0x1bb0] sm:$0xff] }
 0xdaa   : > { %11461 = vmatprep.subr.bf16.mxu0 %v13372_v56  ;;  %v4883_v56 = vld [vmem:[%s19551_s17 + $0x1a50] sm:$0xff]  ;;  %v4924_v45 = vld [vmem:[%s19551_s17 + $0x1b98] sm:$0xff] }
 0xdab   : > { %v13425_v22 = vcombine.low %v4883_v56, %v4887_v51 }
 0xdac   : > { %11134 = vmatpush1.bf16.msra.mxu1 %v13369_v61  ;;  %v13419_v61 = vcombine.low %v4876_v38, %v4880_v34  ;;  %v4928_v38 = vld [vmem:[%s19551_s17 + $0x1bb8] sm:$0xff] }
 0xdad   : > { %11462 = vmatpush1.bf16.msra.mxu0 %v13371_v57  ;;  %11135 = vmatprep.subr.bf16.mxu1 %v13378_v20  ;;  %v13426_v57 = vcombine.high %v4883_v56, %v4887_v51  ;;  %v13428_v20 = vcombine.high %v4884_v50, %v4888_v47  ;;  %v4935_v56 = vld [vmem:[%s19551_s17 + $0x1bf0] sm:$0xff]  ;;  %v4932_v51 = vld [vmem:[%s19551_s17 + $0x1bd8] sm:$0xff] }
 0xdae   : > { %11463 = vmatprep.subr.bf16.mxu0 %v13380_v0  ;;  %v4891_v0 = vld [vmem:[%s19551_s17 + $0x1a90] sm:$0xff] }
 0xdaf   : > { %v13433_v21 = vcombine.low %v4891_v0, %v4895_v1 }
 0xdb0   : > { %11136 = vmatpush1.bf16.msra.mxu1 %v13377_v15  ;;  %v13427_v15 = vcombine.low %v4884_v50, %v4888_v47  ;;  %v4936_v50 = vld [vmem:[%s19551_s17 + $0x1bf8] sm:$0xff] }
 0xdb1   : > { %11464 = vmatpush1.bf16.msra.mxu0 %v13379_v16  ;;  %11137 = vmatprep.subr.bf16.mxu1 %v13386_v58  ;;  %v13434_v16 = vcombine.high %v4891_v0, %v4895_v1  ;;  %v13436_v58 = vcombine.high %v4892_v9, %v4896_v11  ;;  %v4943_v0 = vld [vmem:[%s19551_s17 + $0x1c30] sm:$0xff]  ;;  %v4940_v1 = vld [vmem:[%s19551_s17 + $0x1c18] sm:$0xff] }
 0xdb2   : > { %11465 = vmatprep.subr.bf16.mxu0 %v13388_v55  ;;  %v4899_v55 = vld [vmem:[%s19551_s17 + $0x1ad0] sm:$0xff] }
 0xdb3   : > { %v13441_v31 = vcombine.low %v4899_v55, %v4903_v10 }
 0xdb4   : > { %11138 = vmatpush1.bf16.msra.mxu1 %v13385_v60  ;;  %v13435_v60 = vcombine.low %v4892_v9, %v4896_v11  ;;  %v4944_v9 = vld [vmem:[%s19551_s17 + $0x1c38] sm:$0xff] }
 0xdb5   : > { %11466 = vmatpush1.bf16.msra.mxu0 %v13387_v4  ;;  %11139 = vmatprep.subr.bf16.mxu1 %v13394_v26  ;;  %v13442_v4 = vcombine.high %v4899_v55, %v4903_v10  ;;  %v13444_v26 = vcombine.high %v4900_v59, %v4904_v23  ;;  %v4951_v55 = vld [vmem:[%s19551_s17 + $0x1c70] sm:$0xff] }
 0xdb6   : > { %11467 = vmatprep.subr.bf16.mxu0 %v13396_v17  ;;  %v4907_v17 = vld [vmem:[%s19551_s17 + $0x1b10] sm:$0xff] }
 0xdb7   : > { %v13449_v6 = vcombine.low %v4907_v17, %v4911_v49 }
 0xdb8   : > { %11140 = vmatpush1.bf16.msra.mxu1 %v13393_v27  ;;  %v13443_v27 = vcombine.low %v4900_v59, %v4904_v23  ;;  %v4948_v59 = vld [vmem:[%s19551_s17 + $0x1c58] sm:$0xff] }
 0xdb9   : > { %11468 = vmatpush1.bf16.msra.mxu0 %v13395_v40  ;;  %11141 = vmatprep.subr.bf16.mxu1 %v13402_v32  ;;  %v13450_v40 = vcombine.high %v4907_v17, %v4911_v49  ;;  %v13452_v32 = vcombine.high %v4908_v25, %v4912_v8  ;;  %v4952_v23 = vld [vmem:[%s19551_s17 + $0x1c78] sm:$0xff] }
 0xdba   : > { %11469 = vmatprep.subr.bf16.mxu0 %v13404_v28  ;;  %v4915_v28 = vld [vmem:[%s19551_s17 + $0x1b50] sm:$0xff]  ;;  %v13492_v17 = vcombine.high %v4948_v59, %v4952_v23  ;;  %v4956_v49 = vld [vmem:[%s19551_s17 + $0x1c98] sm:$0xff] }
 0xdbb   : > { %v13457_v34 = vcombine.low %v4915_v28, %v4919_v29 }
 0xdbc   : > { %11142 = vmatpush1.bf16.msra.mxu1 %v13401_v53  ;;  %v13451_v53 = vcombine.low %v4908_v25, %v4912_v8  ;;  %v4960_v25 = vld [vmem:[%s19551_s17 + $0x1cb8] sm:$0xff] }
 0xdbd   : > { %11470 = vmatpush1.bf16.msra.mxu0 %v13403_v30  ;;  %11143 = vmatprep.subr.bf16.mxu1 %v13410_v35  ;;  %v13458_v30 = vcombine.high %v4915_v28, %v4919_v29  ;;  %v13460_v35 = vcombine.high %v4916_v33, %v4920_v48  ;;  %v4967_v28 = vld [vmem:[%s19551_s17 + $0x1cf0] sm:$0xff]  ;;  %v4968_v29 = vld [vmem:[%s19551_s17 + $0x1cf8] sm:$0xff] }
 0xdbe   : > { %11471 = vmatprep.subr.bf16.mxu0 %v13412_v37  ;;  %v4923_v37 = vld [vmem:[%s19551_s17 + $0x1b90] sm:$0xff] }
 0xdbf   : > { %v13465_v47 = vcombine.low %v4923_v37, %v4927_v41 }
 0xdc0   : > { %11144 = vmatpush1.bf16.msra.mxu1 %v13409_v39  ;;  %v13459_v39 = vcombine.low %v4916_v33, %v4920_v48  ;;  %v13499_v33 = vcombine.low %v4956_v49, %v4960_v25 }
 0xdc1   : > { %11472 = vmatpush1.bf16.msra.mxu0 %v13411_v18  ;;  %11145 = vmatprep.subr.bf16.mxu1 %v13418_v7  ;;  %v13466_v18 = vcombine.high %v4923_v37, %v4927_v41  ;;  %v13468_v7 = vcombine.high %v4924_v45, %v4928_v38  ;;  %v4976_v37 = vld [vmem:[%s19551_s17 + $0x1d38] sm:$0xff] }
 0xdc2   : > { %11473 = vmatprep.subr.bf16.mxu0 %v13420_v46  ;;  %v4931_v46 = vld [vmem:[%s19551_s17 + $0x1bd0] sm:$0xff] }
 0xdc3   : > { %v13473_v11 = vcombine.low %v4931_v46, %v4935_v56 }
 0xdc4   : > { %11146 = vmatpush1.bf16.msra.mxu1 %v13417_v54  ;;  %v13467_v54 = vcombine.low %v4924_v45, %v4928_v38 }
 0xdc5   : > { %11474 = vmatpush1.bf16.msra.mxu0 %v13419_v61  ;;  %11147 = vmatprep.subr.bf16.mxu1 %v13426_v57  ;;  %v13474_v61 = vcombine.high %v4931_v46, %v4935_v56  ;;  %v13476_v57 = vcombine.high %v4932_v51, %v4936_v50  ;;  %v4984_v46 = vld [vmem:[%s19551_s17 + $0x1d78] sm:$0xff] }
 0xdc6   : > { %11475 = vmatprep.subr.bf16.mxu0 %v13428_v20  ;;  %v4939_v20 = vld [vmem:[%s19551_s17 + $0x1c10] sm:$0xff] }
 0xdc7   : > { %v13481_v10 = vcombine.low %v4939_v20, %v4943_v0 }
 0xdc8   : > { %11148 = vmatpush1.bf16.msra.mxu1 %v13425_v22  ;;  %v13475_v22 = vcombine.low %v4932_v51, %v4936_v50 }
 0xdc9   : > { %11476 = vmatpush1.bf16.msra.mxu0 %v13427_v15  ;;  %11149 = vmatprep.subr.bf16.mxu1 %v13434_v16  ;;  %v13482_v15 = vcombine.high %v4939_v20, %v4943_v0  ;;  %v13484_v16 = vcombine.high %v4940_v1, %v4944_v9  ;;  %v4992_v20 = vld [vmem:[%s19551_s17 + $0x1db8] sm:$0xff] }
 0xdca   : > { %11477 = vmatprep.subr.bf16.mxu0 %v13436_v58  ;;  %v4947_v58 = vld [vmem:[%s19551_s17 + $0x1c50] sm:$0xff] }
 0xdcb   : > { %v13489_v8 = vcombine.low %v4947_v58, %v4951_v55 }
 0xdcc   : > { %11150 = vmatpush1.bf16.msra.mxu1 %v13433_v21  ;;  %v13483_v21 = vcombine.low %v4940_v1, %v4944_v9 }
 0xdcd   : > { %11478 = vmatpush1.bf16.msra.mxu0 %v13435_v60  ;;  %11151 = vmatprep.subr.bf16.mxu1 %v13442_v4  ;;  %v13490_v60 = vcombine.high %v4947_v58, %v4951_v55  ;;  %v4955_v4 = vld [vmem:[%s19551_s17 + $0x1c90] sm:$0xff]  ;;  %v5000_v58 = vld [vmem:[%s19551_s17 + $0x1df8] sm:$0xff] }
 0xdce   : > { %11479 = vmatprep.subr.bf16.mxu0 %v13444_v26  ;;  %v4959_v26 = vld [vmem:[%s19551_s17 + $0x1cb0] sm:$0xff] }
 0xdd0   : > { %11152 = vmatpush1.bf16.msra.mxu1 %v13441_v31  ;;  %v13491_v31 = vcombine.low %v4948_v59, %v4952_v23 }
 0xdd1   : > { %11480 = vmatpush1.bf16.msra.mxu0 %v13443_v27  ;;  %11153 = vmatprep.subr.bf16.mxu1 %v13450_v40  ;;  %v13498_v27 = vcombine.high %v4955_v4, %v4959_v26  ;;  %v13500_v40 = vcombine.high %v4956_v49, %v4960_v25 }
 0xdd2   : > { %11481 = vmatprep.subr.bf16.mxu0 %v13452_v32  ;;  %v4963_v32 = vld [vmem:[%s19551_s17 + $0x1cd0] sm:$0xff] }
 0xdd3   : > { %v13506_v48 = vcombine.high %v4963_v32, %v4967_v28  ;;  %v13505_v41 = vcombine.low %v4963_v32, %v4967_v28  ;;  %v5016_v32 = vld [vmem:[%s19551_s17 + $0x1e78] sm:$0xff] }
 0xdd4   : > { %11154 = vmatpush1.bf16.msra.mxu1 %v13449_v6 }
 0xdd5   : > { %11482 = vmatpush1.bf16.msra.mxu0 %v13451_v53  ;;  %11155 = vmatprep.subr.bf16.mxu1 %v13458_v30  ;;  %v4971_v53 = vld [vmem:[%s19551_s17 + $0x1d10] sm:$0xff] }
 0xdd6   : > { %11483 = vmatprep.subr.bf16.mxu0 %v13460_v35  ;;  %v4975_v30 = vld [vmem:[%s19551_s17 + $0x1d30] sm:$0xff]  ;;  %v4972_v35 = vld [vmem:[%s19551_s17 + $0x1d18] sm:$0xff] }
 0xdd7   : > { %v13514_v38 = vcombine.high %v4971_v53, %v4975_v30  ;;  %v13513_v56 = vcombine.low %v4971_v53, %v4975_v30  ;;  %v13515_v51 = vcombine.low %v4972_v35, %v4976_v37  ;;  %v5024_v53 = vld [vmem:[%s19551_s17 + $0x1eb8] sm:$0xff] }
 0xdd8   : > { %11156 = vmatpush1.bf16.msra.mxu1 %v13457_v34  ;;  %v13516_v34 = vcombine.high %v4972_v35, %v4976_v37 }
 0xdd9   : > { %11484 = vmatpush1.bf16.msra.mxu0 %v13459_v39  ;;  %11157 = vmatprep.subr.bf16.mxu1 %v13466_v18  ;;  %v4979_v39 = vld [vmem:[%s19551_s17 + $0x1d50] sm:$0xff] }
 0xdda   : > { %11485 = vmatprep.subr.bf16.mxu0 %v13468_v7  ;;  %v4983_v18 = vld [vmem:[%s19551_s17 + $0x1d70] sm:$0xff]  ;;  %v4980_v7 = vld [vmem:[%s19551_s17 + $0x1d58] sm:$0xff] }
 0xddb   : > { %v13522_v50 = vcombine.high %v4979_v39, %v4983_v18  ;;  %v13521_v0 = vcombine.low %v4979_v39, %v4983_v18  ;;  %v13523_v1 = vcombine.low %v4980_v7, %v4984_v46  ;;  %v5032_v39 = vld [vmem:[%s19551_s17 + $0x1ef8] sm:$0xff] }
 0xddc   : > { %11158 = vmatpush1.bf16.msra.mxu1 %v13465_v47  ;;  %v13524_v47 = vcombine.high %v4980_v7, %v4984_v46 }
 0xddd   : > { %11486 = vmatpush1.bf16.msra.mxu0 %v13467_v54  ;;  %11159 = vmatprep.subr.bf16.mxu1 %v13474_v61  ;;  %v4987_v54 = vld [vmem:[%s19551_s17 + $0x1d90] sm:$0xff] }
 0xdde   : > { %11487 = vmatprep.subr.bf16.mxu0 %v13476_v57  ;;  %v4991_v61 = vld [vmem:[%s19551_s17 + $0x1db0] sm:$0xff]  ;;  %v4988_v57 = vld [vmem:[%s19551_s17 + $0x1d98] sm:$0xff] }
 0xddf   : > { %v13530_v9 = vcombine.high %v4987_v54, %v4991_v61  ;;  %v13529_v55 = vcombine.low %v4987_v54, %v4991_v61  ;;  %v5040_v54 = vld [vmem:[%s19551_s17 + $0x1f38] sm:$0xff] }
 0xde0   : > { %11160 = vmatpush1.bf16.msra.mxu1 %v13473_v11  ;;  %v13532_v11 = vcombine.high %v4988_v57, %v4992_v20 }
 0xde1   : > { %11488 = vmatpush1.bf16.msra.mxu0 %v13475_v22  ;;  %11170 = vmatprep.subr.bf16.mxu1 %v13482_v15  ;;  %v4995_v22 = vld [vmem:[%s19551_s17 + $0x1dd0] sm:$0xff] }
 0xde2   : > { %11498 = vmatprep.subr.bf16.mxu0 %v13484_v16  ;;  %v4999_v15 = vld [vmem:[%s19551_s17 + $0x1df0] sm:$0xff]  ;;  %v4996_v16 = vld [vmem:[%s19551_s17 + $0x1dd8] sm:$0xff] }
 0xde3   : > { %11162 = vmatmul.mubr.bf16.vlgmr.msra.gmra.mrb[32].mxu1 %v17549_v52  ;;  %v13538_v59 = vcombine.high %v4995_v22, %v4999_v15  ;;  %v13540_v23 = vcombine.high %v4996_v16, %v5000_v58  ;;  %v13539_v49 = vcombine.low %v4996_v16, %v5000_v58 }
 0xde4   : > { %11490 = vmatmul.mubr.bf16.vlgmr.msra.gmra.mrb[40].mxu0 %v17549_v52  ;;  %11171 = vmatpush1.bf16.msra.mxu1 %v13481_v10  ;;  %v4964_v52 = vld [vmem:[%s19551_s17 + $0x1cd8] sm:$0xff]  ;;  %v13531_v10 = vcombine.low %v4988_v57, %v4992_v20 }
 0xde5   : > { %11202 = vmatprep.mubr.bf16.mxu1 %v17558_v19  ;;  %11499 = vmatpush1.bf16.msra.mxu0 %v13483_v21  ;;  %v13508_v6 = vcombine.high %v4964_v52, %v4968_v29  ;;  %v13507_v45 = vcombine.low %v4964_v52, %v4968_v29  ;;  %v5003_v21 = vld [vmem:[%s19551_s17 + $0x1e10] sm:$0xff] }
 0xde6   : > { %11530 = vmatprep.mubr.bf16.mxu0 %v17558_v19  ;;  %11172 = vmatprep.subr.bf16.mxu1 %v13490_v60  ;;  %v13497_v19 = vcombine.low %v4955_v4, %v4959_v26  ;;  %v5007_v60 = vld [vmem:[%s19551_s17 + $0x1e30] sm:$0xff]  ;;  %v5004_v4 = vld [vmem:[%s19551_s17 + $0x1e18] sm:$0xff] }
 0xde7   : > { %11500 = vmatprep.subr.bf16.mxu0 %v13492_v17  ;;  %v5008_v26 = vld [vmem:[%s19551_s17 + $0x1e38] sm:$0xff]  ;;  %v13537_v17 = vcombine.low %v4995_v22, %v4999_v15  ;;  %v13546_v25 = vcombine.high %v5003_v21, %v5007_v60  ;;  %v13545_v28 = vcombine.low %v5003_v21, %v5007_v60  ;;  %v19296_v60 = vld [vmem:[%s19552_s18] sm:$0xff] }
 0xde8   : > { %11173 = vmatpush1.bf16.msra.mxu1 %v13489_v8  ;;  %v13548_v8 = vcombine.high %v5004_v4, %v5008_v26  ;;  %v13547_v52 = vcombine.low %v5004_v4, %v5008_v26  ;;  %v5048_v22 = vld [vmem:[%s19551_s17 + $0x1f78] sm:$0xff] }
 0xde9   : > { %11501 = vmatpush1.bf16.msra.mxu0 %v13491_v31  ;;  %11174 = vmatprep.subr.bf16.mxu1 %v13498_v27  ;;  %v5011_v31 = vld [vmem:[%s19551_s17 + $0x1e50] sm:$0xff]  ;;  %v5056_v21 = vld [vmem:[%s19551_s17 + $0x1fb8] sm:$0xff] }
 0xdea   : > { %11502 = vmatprep.subr.bf16.mxu0 %v13500_v40  ;;  %v5015_v27 = vld [vmem:[%s19551_s17 + $0x1e70] sm:$0xff]  ;;  %v5012_v40 = vld [vmem:[%s19551_s17 + $0x1e58] sm:$0xff] }
 0xdeb   : > { %v13554_v29 = vcombine.high %v5011_v31, %v5015_v27  ;;  %v13553_v30 = vcombine.low %v5011_v31, %v5015_v27  ;;  %v13555_v35 = vcombine.low %v5012_v40, %v5016_v32  ;;  %v10194_v31 = vrot.slane %v19296_v60, %v15536_v24  ;;  %v5060_v27 = vld [vmem:[%s19551_s17 + $0x1fd8] sm:$0xff] }
 0xdec   : > { %11175 = vmatpush1.bf16.msra.mxu1 %v13497_v19  ;;  %v13556_v19 = vcombine.high %v5012_v40, %v5016_v32  ;;  %v5064_v40 = vld [vmem:[%s19551_s17 + $0x1ff8] sm:$0xff] }
 0xded   : > { %11503 = vmatpush1.bf16.msra.mxu0 %v13499_v33  ;;  %11176 = vmatprep.subr.bf16.mxu1 %v13506_v48  ;;  %v5019_v33 = vld [vmem:[%s19551_s17 + $0x1e90] sm:$0xff] }
 0xdee   : > { %11504 = vmatprep.subr.bf16.mxu0 %v13508_v6  ;;  %v5023_v48 = vld [vmem:[%s19551_s17 + $0x1eb0] sm:$0xff]  ;;  %v5020_v6 = vld [vmem:[%s19551_s17 + $0x1e98] sm:$0xff] }
 0xdef   : > { %v13562_v37 = vcombine.high %v5019_v33, %v5023_v48  ;;  %v13561_v18 = vcombine.low %v5019_v33, %v5023_v48  ;;  %v13563_v7 = vcombine.low %v5020_v6, %v5024_v53  ;;  %v13603_v33 = vcombine.low %v5060_v27, %v5064_v40  ;;  %v14584_v48 = vld [vmem:[%s19553_s19 + $0x40] sm:$0xff]  }
 0xdf0   : > { %11177 = vmatpush1.bf16.msra.mxu1 %v13505_v41  ;;  %v13564_v41 = vcombine.high %v5020_v6, %v5024_v53  ;;  %v14616_v6 = vld [vmem:[%s19553_s19 + $0x140] sm:$0xff]  }
 0xdf1   : > { %11505 = vmatpush1.bf16.msra.mxu0 %v13507_v45  ;;  %11178 = vmatprep.subr.bf16.mxu1 %v13514_v38  ;;  %v5027_v45 = vld [vmem:[%s19551_s17 + $0x1ed0] sm:$0xff] }
 0xdf2   : > { %11506 = vmatprep.subr.bf16.mxu0 %v13516_v34  ;;  %v5031_v38 = vld [vmem:[%s19551_s17 + $0x1ef0] sm:$0xff]  ;;  %v5028_v34 = vld [vmem:[%s19551_s17 + $0x1ed8] sm:$0xff] }
 0xdf3   : > { %v13570_v46 = vcombine.high %v5027_v45, %v5031_v38  ;;  %v13569_v61 = vcombine.low %v5027_v45, %v5031_v38  ;;  %v13571_v57 = vcombine.low %v5028_v34, %v5032_v39  ;;  %v14587_v45 = vld [vmem:[%s19553_s19 + $0x8] sm:$0xff]   ;;  %v14588_v38 = vld [vmem:[%s19553_s19 + $0x50] sm:$0xff]  }
 0xdf4   : > { %11179 = vmatpush1.bf16.msra.mxu1 %v13513_v56  ;;  %v13572_v56 = vcombine.high %v5028_v34, %v5032_v39  ;;  %v14622_v34 = vld [vmem:[%s19553_s19 + $0x108] sm:$0xff]   ;;  %v14589_v39 = vld [vmem:[%s19553_s19 + $0x10] sm:$0xff]  }
 0xdf5   : > { %11507 = vmatpush1.bf16.msra.mxu0 %v13515_v51  ;;  %11180 = vmatprep.subr.bf16.mxu1 %v13522_v50  ;;  %v5035_v51 = vld [vmem:[%s19551_s17 + $0x1f10] sm:$0xff] }
 0xdf6   : > { %11508 = vmatprep.subr.bf16.mxu0 %v13524_v47  ;;  %v5039_v50 = vld [vmem:[%s19551_s17 + $0x1f30] sm:$0xff]  ;;  %v5036_v47 = vld [vmem:[%s19551_s17 + $0x1f18] sm:$0xff] }
 0xdf7   : > { %v13578_v20 = vcombine.high %v5035_v51, %v5039_v50  ;;  %v13577_v15 = vcombine.low %v5035_v51, %v5039_v50  ;;  %v13579_v16 = vcombine.low %v5036_v47, %v5040_v54  ;;  %v14592_v51 = vld [vmem:[%s19553_s19 + $0x60] sm:$0xff]   ;;  %v14630_v50 = vld [vmem:[%s19553_s19 + $0x118] sm:$0xff]  }
 0xdf8   : > { %11181 = vmatpush1.bf16.msra.mxu1 %v13521_v0  ;;  %v13580_v0 = vcombine.high %v5036_v47, %v5040_v54  ;;  %v14632_v47 = vld [vmem:[%s19553_s19 + $0x160] sm:$0xff]  }
 0xdf9   : > { %11509 = vmatpush1.bf16.msra.mxu0 %v13523_v1  ;;  %11182 = vmatprep.subr.bf16.mxu1 %v13530_v9  ;;  %v5043_v1 = vld [vmem:[%s19551_s17 + $0x1f50] sm:$0xff]  ;;  %v14593_v54 = vld [vmem:[%s19553_s19 + $0x20] sm:$0xff]  }
 0xdfa   : > { %11510 = vmatprep.subr.bf16.mxu0 %v13532_v11  ;;  %v5047_v9 = vld [vmem:[%s19551_s17 + $0x1f70] sm:$0xff]  ;;  %v5044_v11 = vld [vmem:[%s19551_s17 + $0x1f58] sm:$0xff] }
 0xdfb   : > { %v13586_v58 = vcombine.high %v5043_v1, %v5047_v9  ;;  %v13585_v4 = vcombine.low %v5043_v1, %v5047_v9  ;;  %v13587_v26 = vcombine.low %v5044_v11, %v5048_v22  ;;  %v10190_v1 = vrot.slane %v19296_v60, %v15530_v63  ;;  %v14596_v9 = vld [vmem:[%s19553_s19 + $0x70] sm:$0xff]  }
 0xdfc   : > { %11183 = vmatpush1.bf16.msra.mxu1 %v13529_v55  ;;  %v13588_v55 = vcombine.high %v5044_v11, %v5048_v22  ;;  %v10202_v11 = vrot.slane %v19296_v60, %v16272_v43  ;;  %v14638_v22 = vld [vmem:[%s19553_s19 + $0x128] sm:$0xff]  }
 0xdfd   : > { %11511 = vmatpush1.bf16.msra.mxu0 %v13531_v10  ;;  %11184 = vmatprep.subr.bf16.mxu1 %v13538_v59  ;;  %v5051_v10 = vld [vmem:[%s19551_s17 + $0x1f90] sm:$0xff]  ;;  %v13905_v63 = vadd.f32 %v18405_v62, %v10190_v1 }
 0xdfe   : > { %11512 = vmatprep.subr.bf16.mxu0 %v13540_v23  ;;  %v5055_v59 = vld [vmem:[%s19551_s17 + $0x1fb0] sm:$0xff]  ;;  %v5052_v23 = vld [vmem:[%s19551_s17 + $0x1f98] sm:$0xff]  ;;  %v13908_v43 = vadd.f32 %v18423_v14, %v10202_v11  ;;  %v14602_v14 = vld [vmem:[%s19553_s19 + $0xc8] sm:$0xff]  }
 0xdff   : > { %v13593_v32 = vcombine.low %v5051_v10, %v5055_v59 }
 0xe00   : > { %11185 = vmatpush1.bf16.msra.mxu1 %v13537_v17  ;;  %v13594_v17 = vcombine.high %v5051_v10, %v5055_v59  ;;  %v14600_v10 = vld [vmem:[%s19553_s19 + $0xc0] sm:$0xff]   ;;  %v11542_v62 = vmax.f32 %v13908_v43, 0.0 }
 0xe01   : > { %11513 = vmatpush1.bf16.msra.mxu0 %v13539_v49  ;;  %11186 = vmatprep.subr.bf16.mxu1 %v13546_v25  ;;  %v13596_v49 = vcombine.high %v5052_v23, %v5056_v21  ;;  %v5059_v25 = vld [vmem:[%s19551_s17 + $0x1fd0] sm:$0xff]  ;;  %v14601_v59 = vld [vmem:[%s19553_s19 + $0x80] sm:$0xff]  }
 0xe02   : > { %11514 = vmatprep.subr.bf16.mxu0 %v13548_v8  ;;  %v5063_v8 = vld [vmem:[%s19551_s17 + $0x1ff0] sm:$0xff] }
 0xe03   : > { %v13601_v24 = vcombine.low %v5059_v25, %v5063_v8 }
 0xe04   : > { %11187 = vmatpush1.bf16.msra.mxu1 %v13545_v28  ;;  %v13595_v28 = vcombine.low %v5052_v23, %v5056_v21  ;;  %v11550_v21 = vpack.c.bf16 %v11542_v62, %v11542_v62 }
 0xe05   : > { %11515 = vmatpush1.bf16.msra.mxu0 %v13547_v52  ;;  %11188 = vmatprep.subr.bf16.mxu1 %v13554_v29  ;;  %v13602_v52 = vcombine.high %v5059_v25, %v5063_v8  ;;  %v13604_v29 = vcombine.high %v5060_v27, %v5064_v40  ;;  %v14607_v25 = vld [vmem:[%s19553_s19 + $0x98] sm:$0xff]   ;;  %v14608_v8 = vld [vmem:[%s19553_s19 + $0xe0] sm:$0xff]   ;;  %v14610_v27 = vld [vmem:[%s19553_s19 + $0xe8] sm:$0xff]  }
 0xe06   : > { %11516 = vmatprep.subr.bf16.mxu0 %v13556_v19  ;;  %v13906_v19 = vadd.f32 %v18415_v3, %v10194_v31  ;;  %v14585_v3 = vld [vmem:[%s19553_s19] sm:$0xff]   ;;  %v14611_v40 = vld [vmem:[%s19553_s19 + $0xa8] sm:$0xff]  }
 0xe07   : > { %v14609_v31 = vld [vmem:[%s19553_s19 + $0xa0] sm:$0xff]  }
 0xe08   : > { %11189 = vmatpush1.bf16.msra.mxu1 %v13553_v30  ;;  %v11540_v53 = vmax.f32 %v13906_v19, 0.0  ;;  %v14586_v30 = vld [vmem:[%s19553_s19 + $0x48] sm:$0xff]   ;;  %v14614_v19 = vld [vmem:[%s19553_s19 + $0xf8] sm:$0xff]  }
 0xe09   : > { %11517 = vmatpush1.bf16.msra.mxu0 %v13555_v35  ;;  %11190 = vmatprep.subr.bf16.mxu1 %v13562_v37  ;;  %v14618_v35 = vld [vmem:[%s19553_s19 + $0x100] sm:$0xff]  }
 0xe0a   : > { %11518 = vmatprep.subr.bf16.mxu0 %v13564_v41  ;;  %v11548_v37 = vpack.c.bf16 %v11540_v53, %v11540_v53  ;;  %v14620_v41 = vld [vmem:[%s19553_s19 + $0x148] sm:$0xff]  }
 0xe0b   : > { %v14623_v53 = vld [vmem:[%s19553_s19 + $0x188] sm:$0xff]  }
 0xe0c   : > { %11191 = vmatpush1.bf16.msra.mxu1 %v13561_v18  ;;  %v14590_v18 = vld [vmem:[%s19553_s19 + $0x58] sm:$0xff]  }
 0xe0d   : > { %11519 = vmatpush1.bf16.msra.mxu0 %v13563_v7  ;;  %11192 = vmatprep.subr.bf16.mxu1 %v13570_v46  ;;  %v14626_v7 = vld [vmem:[%s19553_s19 + $0x110] sm:$0xff]   ;;  %v14628_v46 = vld [vmem:[%s19553_s19 + $0x158] sm:$0xff]  }
 0xe0e   : > { %11520 = vmatprep.subr.bf16.mxu0 %v13572_v56  ;;  %v14591_v56 = vld [vmem:[%s19553_s19 + $0x18] sm:$0xff]  }
 0xe10   : > { %11193 = vmatpush1.bf16.msra.mxu1 %v13569_v61  ;;  %v14594_v61 = vld [vmem:[%s19553_s19 + $0x68] sm:$0xff]  }
 0xe11   : > { %11521 = vmatpush1.bf16.msra.mxu0 %v13571_v57  ;;  %11194 = vmatprep.subr.bf16.mxu1 %v13578_v20  ;;  %v14634_v57 = vld [vmem:[%s19553_s19 + $0x120] sm:$0xff]   ;;  %v14636_v20 = vld [vmem:[%s19553_s19 + $0x168] sm:$0xff]  }
 0xe12   : > { %11522 = vmatprep.subr.bf16.mxu0 %v13580_v0  ;;  %v14595_v0 = vld [vmem:[%s19553_s19 + $0x28] sm:$0xff]  }
 0xe14   : > { %11195 = vmatpush1.bf16.msra.mxu1 %v13577_v15  ;;  %v14597_v15 = vld [vmem:[%s19553_s19 + $0x30] sm:$0xff]  }
 0xe15   : > { %11523 = vmatpush1.bf16.msra.mxu0 %v13579_v16  ;;  %11196 = vmatprep.subr.bf16.mxu1 %v13586_v58  ;;  %v14598_v16 = vld [vmem:[%s19553_s19 + $0x78] sm:$0xff]  }
 0xe16   : > { %11524 = vmatprep.subr.bf16.mxu0 %v13588_v55  ;;  %v14599_v58 = vld [vmem:[%s19553_s19 + $0x38] sm:$0xff]   ;;  %v11539_v55 = vmax.f32 %v13905_v63, 0.0 }
 0xe18   : > { %11197 = vmatpush1.bf16.msra.mxu1 %v13585_v4  ;;  %v11547_v23 = vpack.c.bf16 %v11539_v55, %v11539_v55  ;;  %v14603_v4 = vld [vmem:[%s19553_s19 + $0x88] sm:$0xff]  }
 0xe19   : > { %11525 = vmatpush1.bf16.msra.mxu0 %v13587_v26  ;;  %11198 = vmatprep.subr.bf16.mxu1 %v13594_v17  ;;  %v14604_v26 = vld [vmem:[%s19553_s19 + $0xd0] sm:$0xff]  }
 0xe1a   : > { %11526 = vmatprep.subr.bf16.mxu0 %v13596_v49  ;;  %v14605_v17 = vld [vmem:[%s19553_s19 + $0x90] sm:$0xff]   ;;  %v14606_v49 = vld [vmem:[%s19553_s19 + $0xd8] sm:$0xff]  }
 0xe1c   : > { %11199 = vmatpush1.bf16.msra.mxu1 %v13593_v32  ;;  %v10198_v32 = vrot.slane %v19296_v60, %v16269_v42  ;;  %v14615_v42 = vld [vmem:[%s19553_s19 + $0xb8] sm:$0xff]  }
 0xe1d   : > { %11527 = vmatpush1.bf16.msra.mxu0 %v13595_v28  ;;  %11200 = vmatprep.subr.bf16.mxu1 %v13602_v52  ;;  %v14612_v28 = vld [vmem:[%s19553_s19 + $0xf0] sm:$0xff]  }
 0xe1e   : > { %11528 = vmatprep.subr.bf16.mxu0 %v13604_v29  ;;  %v14613_v52 = vld [vmem:[%s19553_s19 + $0xb0] sm:$0xff]   ;;  %v13907_v29 = vadd.f32 %v18413_v2, %v10198_v32  ;;  %v14619_v2 = vld [vmem:[%s19553_s19 + $0x180] sm:$0xff]  }
 0xe20   : > { %11201 = vmatpush1.bf16.msra.mxu1 %v13601_v24  ;;  %v11541_v24 = vmax.f32 %v13907_v29, 0.0 }
 0xe21   : > { %11529 = vmatpush1.bf16.msra.mxu0 %v13603_v33  ;;  %13717 = vmatprep.subr.bf16.mxu1 %v14584_v48  ;;  %v14617_v33 = vld [vmem:[%s19553_s19 + $0x1c0] sm:$0xff]  }
 0xe22   : > { %13761 = vmatprep.subr.bf16.mxu0 %v14616_v6  ;;  %v11549_v48 = vpack.c.bf16 %v11541_v24, %v11541_v24  ;;  %v14621_v6 = vld [vmem:[%s19553_s19 + $0x1c8] sm:$0xff]  }
 0xe23   : > { %11203 = vmatmul.mubr.bf16.vlgmr.msra.gmra.mrb[32].mxu1 %v17751_v13 }
 0xe24   : > { %11531 = vmatmul.mubr.bf16.vlgmr.msra.gmra.mrb[40].mxu0 %v17751_v13  ;;  %13718 = vmatpush3.bf16.msra.mxu1 %v14585_v3  ;;  %v14624_v13 = vld [vmem:[%s19553_s19 + $0x150] sm:$0xff]  }
 0xe25   : > { %12100 = vmatprep.mubr.bf16.mxu1 %v11548_v37  ;;  %13719 = vmatprep.subr.bf16.mxu1 %v14586_v30  ;;  %v14625_v3 = vld [vmem:[%s19553_s19 + $0x1d0] sm:$0xff]   ;;  %v14631_v37 = vld [vmem:[%s19553_s19 + $0x198] sm:$0xff]  }
 0xe26   : > { %13762 = vmatpush3.bf16.msra.mxu0 %v14618_v35  ;;  %v14627_v30 = vld [vmem:[%s19553_s19 + $0x190] sm:$0xff]   ;;  %v14629_v35 = vld [vmem:[%s19553_s19 + $0x1d8] sm:$0xff]  }
 0xe27   : > { %13763 = vmatprep.subr.bf16.mxu0 %v14620_v41  ;;  %v14633_v41 = vld [vmem:[%s19553_s19 + $0x1e0] sm:$0xff]  }
 0xe28   : > { %13720 = vmatpush3.bf16.msra.mxu1 %v14587_v45  ;;  %v14635_v45 = vld [vmem:[%s19553_s19 + $0x1a0] sm:$0xff]  }
 0xe29   : > { %13721 = vmatprep.subr.bf16.mxu1 %v14588_v38  ;;  %v14637_v38 = vld [vmem:[%s19553_s19 + $0x1e8] sm:$0xff]  }
 0xe2a   : > { %13764 = vmatpush3.bf16.msra.mxu0 %v14622_v34  ;;  %v14639_v34 = vld [vmem:[%s19553_s19 + $0x1a8] sm:$0xff]  }
 0xe2b   : > { %13765 = vmatprep.subr.bf16.mxu0 %v14624_v13  ;;  %v14640_v13 = vld [vmem:[%s19553_s19 + $0x170] sm:$0xff]  }
 0xe2c   : > { %13722 = vmatpush3.bf16.msra.mxu1 %v14589_v39  ;;  %v14641_v39 = vld [vmem:[%s19553_s19 + $0x1f0] sm:$0xff]  }
 0xe2d   : > { %13723 = vmatprep.subr.bf16.mxu1 %v14590_v18  ;;  %v14642_v18 = vld [vmem:[%s19553_s19 + $0x130] sm:$0xff]  }
 0xe2e   : > { %13766 = vmatpush3.bf16.msra.mxu0 %v14626_v7  ;;  %v14643_v7 = vld [vmem:[%s19553_s19 + $0x1b0] sm:$0xff]  }
 0xe2f   : > { %13767 = vmatprep.subr.bf16.mxu0 %v14628_v46  ;;  %v14644_v46 = vld [vmem:[%s19553_s19 + $0x178] sm:$0xff]  }
 0xe30   : > { %13724 = vmatpush3.bf16.msra.mxu1 %v14591_v56  ;;  %v14645_v56 = vld [vmem:[%s19553_s19 + $0x1f8] sm:$0xff]  }
 0xe31   : > { %13725 = vmatprep.subr.bf16.mxu1 %v14592_v51  ;;  %v14646_v51 = vld [vmem:[%s19553_s19 + $0x138] sm:$0xff]  }
 0xe32   : > { %13768 = vmatpush3.bf16.msra.mxu0 %v14630_v50  ;;  %v14647_v50 = vld [vmem:[%s19553_s19 + $0x1b8] sm:$0xff]  }
 0xe33   : > { %13769 = vmatprep.subr.bf16.mxu0 %v14632_v47  ;;  %v10206_v47 = vrot.slane %v19296_v60, %v16694_v5 }
 0xe34   : > { %13726 = vmatpush3.bf16.msra.mxu1 %v14593_v54  ;;  %v10214_v54 = vrot.slane %v19296_v60, %v16904_v36 }
 0xe35   : > { %13727 = vmatprep.subr.bf16.mxu1 %v14594_v61  ;;  %v10210_v61 = vrot.slane %v19296_v60, %v16499_v44 }
 0xe36   : > { %13770 = vmatpush3.bf16.msra.mxu0 %v14634_v57  ;;  %v10218_v57 = vrot.slane %v19296_v60, %v16709_v12 }
 0xe37   : > { %13771 = vmatprep.subr.bf16.mxu0 %v14636_v20 }
 0xe38   : > { %13728 = vmatpush3.bf16.msra.mxu1 %v14595_v0 }
 0xe39   : > { %13729 = vmatprep.subr.bf16.mxu1 %v14596_v9 }
 0xe3a   : > { %13772 = vmatpush3.bf16.msra.mxu0 %v14638_v22 }
 0xe3b   : > { %13773 = vmatprep.subr.bf16.mxu0 %v14640_v13 }
 0xe3c   : > { %13730 = vmatpush3.bf16.msra.mxu1 %v14597_v15 }
 0xe3d   : > { %13731 = vmatprep.subr.bf16.mxu1 %v14598_v16 }
 0xe3e   : > { %13774 = vmatpush3.bf16.msra.mxu0 %v14642_v18 }
 0xe3f   : > { %13775 = vmatprep.subr.bf16.mxu0 %v14644_v46 }
 0xe40   : > { %13732 = vmatpush3.bf16.msra.mxu1 %v14599_v58 }
 0xe41   : > { %13739 = vmatprep.subr.bf16.mxu1 %v14600_v10 }
 0xe42   : > { %13776 = vmatpush3.bf16.msra.mxu0 %v14646_v51 }
 0xe43   : > { %12101 = vmatmul.mubr.bf16.vlgmr.msra.gmra.mrb[36].mxu1 %v11547_v23 }
 0xe44   : > { %13740 = vmatpush3.bf16.msra.mxu1 %v14601_v59  ;;  %12140 = vmatprep.mubr.bf16.mxu1 %v11550_v21 }
 0xe45   : > { %13741 = vmatprep.subr.bf16.mxu1 %v14602_v14 }
 0xe48   : > { %13742 = vmatpush3.bf16.msra.mxu1 %v14603_v4 }
 0xe49   : > { %13743 = vmatprep.subr.bf16.mxu1 %v14604_v26 }
 0xe4c   : > { %13744 = vmatpush3.bf16.msra.mxu1 %v14605_v17  ;;  %v11683_v17 = vld [vmem:[%s19554_s20] sm:$0x1] }
 0xe4d   : > { %13745 = vmatprep.subr.bf16.mxu1 %v14606_v49 }
 0xe50   : > { %13746 = vmatpush3.bf16.msra.mxu1 %v14607_v25 }
 0xe51   : > { %13747 = vmatprep.subr.bf16.mxu1 %v14608_v8 }
 0xe54   : > { %13748 = vmatpush3.bf16.msra.mxu1 %v14609_v31 }
 0xe55   : > { %13749 = vmatprep.subr.bf16.mxu1 %v14610_v27 }
 0xe58   : > { %13750 = vmatpush3.bf16.msra.mxu1 %v14611_v40 }
 0xe59   : > { %13751 = vmatprep.subr.bf16.mxu1 %v14612_v28 }
 0xe5c   : > { %13752 = vmatpush3.bf16.msra.mxu1 %v14613_v52 }
 0xe5d   : > { %13753 = vmatprep.subr.bf16.mxu1 %v14614_v19 }
 0xe60   : > { %13754 = vmatpush3.bf16.msra.mxu1 %v14615_v42 }
 0xe61   : > { %13783 = vmatprep.subr.bf16.mxu1 %v14617_v33 }
 0xe63   : > { %12141 = vmatmul.mubr.bf16.vlgmr.msra.gmra.mrb[40].mxu1 %v11549_v48 }
 0xe64   : > { %13784 = vmatpush3.bf16.msra.mxu1 %v14619_v2 }
 0xe65   : > { %13785 = vmatprep.subr.bf16.mxu1 %v14621_v6 }
 0xe68   : > { %13786 = vmatpush3.bf16.msra.mxu1 %v14623_v53 }
 0xe69   : > { %13787 = vmatprep.subr.bf16.mxu1 %v14625_v3 }
 0xe6c   : > { %13788 = vmatpush3.bf16.msra.mxu1 %v14627_v30 }
 0xe6d   : > { %13789 = vmatprep.subr.bf16.mxu1 %v14629_v35 }
 0xe70   : > { %13790 = vmatpush3.bf16.msra.mxu1 %v14631_v37 }
 0xe71   : > { %13791 = vmatprep.subr.bf16.mxu1 %v14633_v41 }
 0xe74   : > { %13792 = vmatpush3.bf16.msra.mxu1 %v14635_v45 }
 0xe75   : > { %13793 = vmatprep.subr.bf16.mxu1 %v14637_v38 }
 0xe78   : > { %13794 = vmatpush3.bf16.msra.mxu1 %v14639_v34 }
 0xe79   : > { %13795 = vmatprep.subr.bf16.mxu1 %v14641_v39 }
 0xe7c   : > { %13796 = vmatpush3.bf16.msra.mxu1 %v14643_v7 }
 0xe7d   : > { %13797 = vmatprep.subr.bf16.mxu1 %v14645_v56 }
 0xe80   : > { %13798 = vmatpush3.bf16.msra.mxu1 %v14647_v50 }
 0xef6   : > { %v11204_v20 = vpop.f32.mrb[32].mxu1 }
 0xef7   : > { %v13909_v0 = vadd.f32 %v11204_v20, %v10206_v47  ;;  %v11532_v1 = vpop.f32.mrb[40].mxu0  ;;  %v11206_v9 = vpop.f32.mrb[33].mxu1 }
 0xef8   : > { %v13911_v11 = vadd.f32 %v11532_v1, %v10214_v54  ;;  %v13910_v22 = vadd.f32 %v11206_v9, %v10210_v61  ;;  %v11534_v15 = vpop.f32.mrb[41].mxu0  ;;  %v11208_v63 = vpop.f32.mrb[34].mxu1 }
 0xef9   : > { %v11543_v16 = vmax.f32 %v13909_v0, 0.0  ;;  %v13912_v43 = vadd.f32 %v11534_v15, %v10218_v57  ;;  %v11536_v5 = vpop.f32.mrb[42].mxu0  ;;  %v11209_v58 = vpop.f32.mrb[35].mxu1 }
 0xefa   : > { %v11545_v55 = vmax.f32 %v13911_v11, 0.0  ;;  %v11544_v36 = vmax.f32 %v13910_v22, 0.0  ;;  %v11537_v10 = vpop.f32.mrb[43].mxu0 }
 0xefb   : > { %v11546_v62 = vmax.f32 %v13912_v43, 0.0  ;;  %v11551_v59 = vpack.c.bf16 %v11543_v16, %v11543_v16 }
 0xefc   : > { %v11552_v44 = vpack.c.bf16 %v11544_v36, %v11544_v36  ;;  %v11553_v12 = vpack.c.bf16 %v11545_v55, %v11545_v55 }
 0xefd   : > { %v11554_v23 = vpack.c.bf16 %v11546_v62, %v11546_v62 }
 0xefe   : > { %12180 = vmatprep.mubr.bf16.mxu0 %v11552_v44 }
 0xeff   : > { %12220 = vmatprep.mubr.bf16.mxu1 %v11554_v23  ;;  %12181 = vmatmul.mubr.bf16.vlgmr.msra.gmra.mrb[44].mxu0 %v11551_v59 }
 0xf00   : > { %12221 = vmatmul.mubr.bf16.vlgmr.msra.gmra.mrb[44].mxu1 %v11553_v12 }
 0xf16   : > { %v13733_v60 = vpop.f32.mrb[36].mxu1 }
 0xf17   : > { %v13734_v14 = vpop.f32.mrb[37].mxu1 }
 0xf18   : > { %v13735_v21 = vadd.f32 %v13734_v14, %v13733_v60  ;;  %v13736_v4 = vpop.f32.mrb[38].mxu1 }
 0xf19   : > { %v13737_v26 = vpop.f32.mrb[39].mxu1 }
 0xf1a   : > { %v12103_v8 = vadd.f32 %v13735_v21, %v11683_v17 }
 0xf36   : > { %v13755_v49 = vpop.f32.mrb[40].mxu1 }
 0xf37   : > { %v13756_v25 = vpop.f32.mrb[41].mxu1 }
 0xf38   : > { %v13757_v31 = vadd.f32 %v13756_v25, %v13755_v49  ;;  %v13758_v27 = vpop.f32.mrb[42].mxu1 }
 0xf39   : > { %v13759_v40 = vpop.f32.mrb[43].mxu1 }
 0xf3a   : > { %v12143_v32 = vadd.f32 %v13757_v31, %v12103_v8 }
 0xfd2   : > { %v13777_v28 = vpop.f32.mrb[44].mxu0 }
 0xfd3   : > { %v13799_v52 = vpop.f32.mrb[44].mxu1  ;;  %v13778_v29 = vpop.f32.mrb[45].mxu0 }
 0xfd4   : > { %v13779_v19 = vadd.f32 %v13778_v29, %v13777_v28  ;;  %v13800_v42 = vpop.f32.mrb[45].mxu1  ;;  %v13780_v24 = vpop.f32.mrb[46].mxu0 }
 0xfd5   : > { %v13801_v33 = vadd.f32 %v13800_v42, %v13799_v52  ;;  %v13802_v2 = vpop.f32.mrb[46].mxu1  ;;  %v13781_v48 = vpop.f32.mrb[47].mxu0 }
 0xfd6   : > { %v12183_v6 = vadd.f32 %v13779_v19, %v12143_v32  ;;  %v13803_v53 = vpop.f32.mrb[47].mxu1 }
 0xfd8   : > { %v12223_v3 = vadd.f32 %v13801_v33, %v12183_v6 }
 0xfda   : > { %12228 = vst [vmem:[%s652_s0] sm:$0x1] %v12223_v3 }
 0xfdb PF: > { %s19572_s4 = sld [smem:[#allocation3_spill]] }
 0xfe1   : > { %s31_s2 = sadd.s32 1, %s19572_s4  }
 0xfe2   : > { %p28_p4 = scmp.ge.s32.totalorder %s31_s2, 4  }
 0xfe4   :  { %30 = sbr.rel (!%p28_p4) target bundleno = 7 (0x7), region = 134 }

</bundles_post_ra>
